<compile_context>
chip_gen: v7x
topology: tpu7x:2x2x1
jax: 0.10.0
libtpu: 0.0.40
codegen_flags: <defaults>
</compile_context>

<pallas_src>
import functools

import numpy as np
import jax
import jax.numpy as jnp
from jax.experimental import pallas as pl

EPS = 1e-5        # PyTorch nn.LayerNorm default
NEG_BIG = -1e30   # additive mask for cross-group (head) score entries

_LAYER_KEYS = ('wqkv', 'bqkv', 'wo_s', 'bo_s', 'g_sa', 'b_sa',
               'wq_c', 'bq_c', 'wkv_c', 'bkv_c', 'wo_c', 'bo_c', 'g_ea', 'b_ea',
               'w1', 'b1', 'w2', 'b2', 'g_ff', 'b_ff')


# ---------------------------------------------------------------------------
# In-kernel helpers (operate on values, traced inside the single kernel body)
# ---------------------------------------------------------------------------

def _ln(x, g, b):
    """Biased-variance LayerNorm over the last axis (eps = 1e-5)."""
    mean = jnp.mean(x, axis=-1, keepdims=True)
    var = jnp.mean(jnp.square(x - mean), axis=-1, keepdims=True)
    return (x - mean) * jax.lax.rsqrt(var + EPS) * g + b


def _mha_block(q2d, k2d, v2d, wo, bo, bias, dk, n_chunks):
    """Multi-head attention with torch's raw `.view(B*H, -1, dk)` head split,
    fused with the output projection (returns att @ wo + bo).

    The raw view is a contiguous regrouping, so the per-head math is done with
    2-D matmuls over dk-wide column chunks; `bias` is a precomputed
    block-diagonal additive mask keeping only same-group (query-row, key-row)
    pairs.  No in-kernel reshape / concatenate / transpose is required and no
    intermediate leaves VMEM.  (1/sqrt(dk) is pre-folded into the Q weights.)
    """
    y = None
    for cq in range(n_chunks):
        qg = q2d[:, cq * dk:(cq + 1) * dk]                      # (Mq, dk)
        # scores of this query chunk against every key chunk (group-masked)
        s_blocks = [
            jnp.einsum('qd,kd->qk', qg, k2d[:, ck * dk:(ck + 1) * dk],
                       preferred_element_type=jnp.float32) + bias
            for ck in range(n_chunks)]
        m = s_blocks[0]
        for s in s_blocks[1:]:
            m = jnp.maximum(m, s)
        m = jnp.max(m, axis=-1, keepdims=True)                   # row max
        p_blocks = [jnp.exp(s - m) for s in s_blocks]            # masked -> 0.0
        denom = p_blocks[0].sum(axis=-1, keepdims=True)
        for p in p_blocks[1:]:
            denom = denom + p.sum(axis=-1, keepdims=True)
        inv = pl.reciprocal(denom, approx=False)                 # exact 1/x
        acc = None
        for ck, p in enumerate(p_blocks):
            pa = jnp.dot(p, v2d[:, ck * dk:(ck + 1) * dk],
                         preferred_element_type=jnp.float32)
            acc = pa if acc is None else acc + pa
        att_c = acc * inv                                        # (Mq, dk)
        # head-merge + output projection folded: row block cq of Wo
        yc = jnp.dot(att_c, wo[cq * dk:(cq + 1) * dk, :],
                     preferred_element_type=jnp.float32)
        y = yc if y is None else y + yc
    return y + bo


# ---------------------------------------------------------------------------
# The single fused kernel: whole TransformerDecoder forward
# ---------------------------------------------------------------------------

def _decoder_fwd_kernel(*refs, num_layers, d_model, dk, n_chunks,
                        has_emb, has_memo2):
    *ins, out_ref = refs
    it = iter(ins)
    nxt = lambda: next(it)[...]

    tgt = nxt()
    memory = nxt()
    memo2 = nxt() if has_memo2 else None
    emb = nxt() if has_emb else None
    bias_self = nxt()
    bias_mem = nxt()
    bias_mem2 = nxt() if has_memo2 else None
    g_att = nxt()
    b_att = nxt()

    # Loop-invariant: LayerNorm(memory)/(memo2) with the shared norm_att
    # params, hoisted out of the layer loop (the module recomputes it).
    norm_mem = _ln(memory, g_att, b_att)
    norm_mem2 = _ln(memo2, g_att, b_att) if has_memo2 else None

    x = tgt
    for _ in range(num_layers):
        (wqkv, bqkv, wo_s, bo_s, g_sa, b_sa,
         wq_c, bq_c, wkv_c, bkv_c, wo_c, bo_c, g_ea, b_ea,
         w1, b1, w2, b2, g_ff, b_ff) = [nxt() for _ in range(20)]

        norm_tgt = _ln(x + emb, g_att, b_att) if has_emb else _ln(x, g_att, b_att)

        # ---- self attention: fused (D, 3D) QKV matmul (scale in Q cols) ----
        qkv = jnp.dot(norm_tgt, wqkv, preferred_element_type=jnp.float32) + bqkv
        y = _mha_block(qkv[:, :d_model], qkv[:, d_model:2 * d_model],
                       qkv[:, 2 * d_model:], wo_s, bo_s, bias_self,
                       dk, n_chunks)
        tgt2 = _ln(norm_tgt + y, g_sa, b_sa)

        # ---- enc attention: Q matmul + fused (D, 2D) KV matmul ----
        q_c = jnp.dot(tgt2, wq_c, preferred_element_type=jnp.float32) + bq_c

        def cross(mem_n, bias):
            kv = jnp.dot(mem_n, wkv_c, preferred_element_type=jnp.float32) + bkv_c
            yy = _mha_block(q_c, kv[:, :d_model], kv[:, d_model:],
                            wo_c, bo_c, bias, dk, n_chunks)
            return _ln(tgt2 + yy, g_ea, b_ea)

        tgt3 = cross(norm_mem, bias_mem)
        if has_memo2:
            tgt3 = (tgt3 + cross(norm_mem2, bias_mem2)) * 0.5
        # (with memo2=None the module averages two identical branches, which
        #  is the identity, so the duplicate branch is skipped exactly)

        # ---- feed-forward (linear-relu-linear) + residual + LayerNorm ----
        h = jnp.maximum(
            jnp.dot(tgt3, w1, preferred_element_type=jnp.float32) + b1, 0.0)
        ff = jnp.dot(h, w2, preferred_element_type=jnp.float32) + b2
        x = _ln(tgt3 + ff, g_ff, b_ff)

    out_ref[...] = x


# ---------------------------------------------------------------------------
# Wrapper (one pallas_call for the whole forward)
# ---------------------------------------------------------------------------

def _group_bias(mq, rq, mk, rk):
    """Additive mask: 0 where query-row and key-row are in the same head
    group of the raw `.view(B*H, -1, dk)` split, -1e30 otherwise."""
    qi = np.arange(mq)[:, None] // rq
    kj = np.arange(mk)[None, :] // rk
    return jnp.asarray(np.where(qi == kj, 0.0, NEG_BIG), dtype=jnp.float32)


def transformer_decoder(fparams, tgt, memory, memo2=None, embedding=None, *,
                        num_heads=4, d_model=32):
    B, S_t, D = tgt.shape
    S_m = memory.shape[1]
    assert D == d_model and D % num_heads == 0
    # The raw head view is only supported when a head group covers whole rows.
    # TODO(synk): row-straddling raw view (seq % num_heads != 0) unimplemented.
    assert S_t % num_heads == 0 and S_m % num_heads == 0
    dk = D // num_heads
    m_q, m_kv = B * S_t, B * S_m

    inputs = [tgt.reshape(m_q, D), memory.reshape(m_kv, D)]
    has_memo2 = memo2 is not None
    if has_memo2:
        S_m2 = memo2.shape[1]
        assert S_m2 % num_heads == 0
        inputs.append(memo2.reshape(B * S_m2, D))
    has_emb = embedding is not None
    if has_emb:
        inputs.append(embedding.reshape(m_q, D))
    inputs.append(_group_bias(m_q, S_t // num_heads, m_q, S_t // num_heads))
    inputs.append(_group_bias(m_q, S_t // num_heads, m_kv, S_m // num_heads))
    if has_memo2:
        inputs.append(_group_bias(m_q, S_t // num_heads,
                                  B * S_m2, S_m2 // num_heads))
    inputs += [fparams['norm_att']['g'], fparams['norm_att']['b']]
    for lp in fparams['layers']:
        inputs += [lp[k] for k in _LAYER_KEYS]

    kern = functools.partial(
        _decoder_fwd_kernel,
        num_layers=len(fparams['layers']), d_model=d_model, dk=dk,
        n_chunks=num_heads, has_emb=has_emb, has_memo2=has_memo2)

    out = pl.pallas_call(
        kern,
        out_shape=jax.ShapeDtypeStruct((m_q, D), jnp.float32),
    )(*inputs)
    return out.reshape(B, S_t, D)


# ---------------------------------------------------------------------------
# Deterministic parameter init (torch-like layout) + one-time weight fusion
# ---------------------------------------------------------------------------

def init_linear(key, d_in, d_out):
    k1, k2 = jax.random.split(key)
    bound = 1.0 / (d_in ** 0.5)
    return {'w': jax.random.uniform(k1, (d_in, d_out), jnp.float32, -bound, bound),
            'b': jax.random.uniform(k2, (1, d_out), jnp.float32, -bound, bound)}


def init_ln(d):
    return {'g': jnp.ones((1, d), jnp.float32),
            'b': jnp.zeros((1, d), jnp.float32)}


def init_mha(key, d_model):
    ks = jax.random.split(key, 4)
    return {'q': init_linear(ks[0], d_model, d_model),
            'k': init_linear(ks[1], d_model, d_model),
            'v': init_linear(ks[2], d_model, d_model),
            'o': init_linear(ks[3], d_model, d_model)}


def init_layer(key, d_model, d_ff):
    ks = jax.random.split(key, 4)
    return {'self_attn': init_mha(ks[0], d_model), 'sa_norm': init_ln(d_model),
            'enc_attn': init_mha(ks[1], d_model), 'ea_norm': init_ln(d_model),
            'ff1': init_linear(ks[2], d_model, d_ff),
            'ff2': init_linear(ks[3], d_ff, d_model),
            'ff_norm': init_ln(d_model)}


def init_decoder(key, num_layers, d_model, d_ff):
    ks = jax.random.split(key, num_layers)
    return {'layers': [init_layer(ks[i], d_model, d_ff)
                       for i in range(num_layers)],
            'norm_att': init_ln(d_model)}


def fuse_decoder_params(params, num_heads, d_model):
    """One-time prep: concatenate Q/K/V (self) and K/V (cross) weights and
    fold the 1/sqrt(dk) attention scale into the Q weights/bias."""
    scale = jnp.float32(1.0 / ((d_model // num_heads) ** 0.5))

    def fuse_layer(lp):
        sa, ea = lp['self_attn'], lp['enc_attn']
        return {
            'wqkv': jnp.concatenate([sa['q']['w'] * scale, sa['k']['w'],
                                     sa['v']['w']], axis=1),
            'bqkv': jnp.concatenate([sa['q']['b'] * scale, sa['k']['b'],
                                     sa['v']['b']], axis=1),
            'wo_s': sa['o']['w'], 'bo_s': sa['o']['b'],
            'g_sa': lp['sa_norm']['g'], 'b_sa': lp['sa_norm']['b'],
            'wq_c': ea['q']['w'] * scale, 'bq_c': ea['q']['b'] * scale,
            'wkv_c': jnp.concatenate([ea['k']['w'], ea['v']['w']], axis=1),
            'bkv_c': jnp.concatenate([ea['k']['b'], ea['v']['b']], axis=1),
            'wo_c': ea['o']['w'], 'bo_c': ea['o']['b'],
            'g_ea': lp['ea_norm']['g'], 'b_ea': lp['ea_norm']['b'],
            'w1': lp['ff1']['w'], 'b1': lp['ff1']['b'],
            'w2': lp['ff2']['w'], 'b2': lp['ff2']['b'],
            'g_ff': lp['ff_norm']['g'], 'b_ff': lp['ff_norm']['b'],
        }

    return {'norm_att': params['norm_att'],
            'layers': [fuse_layer(lp) for lp in params['layers']]}


# ---------------------------------------------------------------------------
# Pure-JAX reference (mirrors the PyTorch forward) for correctness check
# ---------------------------------------------------------------------------

def _ref_linear(x, w, b):
    return x @ w + b


def _ref_ln(x, g, b):
    mean = x.mean(-1, keepdims=True)
    var = ((x - mean) ** 2).mean(-1, keepdims=True)
    return (x - mean) / jnp.sqrt(var + EPS) * g + b


def _ref_mha(p, query, key, value, H, D):
    B = query.shape[0]
    dk = D // H
    q = _ref_linear(query, p['q']['w'], p['q']['b']).reshape(B * H, -1, dk)
    k = _ref_linear(key, p['k']['w'], p['k']['b']).reshape(B * H, -1, dk)
    v = _ref_linear(value, p['v']['w'], p['v']['b']).reshape(B * H, -1, dk)
    s = jnp.einsum('bqd,bkd->bqk', q, k) / (dk ** 0.5)
    w_ = jax.nn.softmax(s, axis=-1)
    att = jnp.einsum('bqk,bkd->bqd', w_, v).reshape(B, -1, D)
    return _ref_linear(att, p['o']['w'], p['o']['b'])


def _ref_layer(p, tgt, memory, memo2, H, D):
    tgt2 = _ref_ln(tgt + _ref_mha(p['self_attn'], tgt, tgt, tgt, H, D),
                   p['sa_norm']['g'], p['sa_norm']['b'])
    tgt3 = _ref_ln(tgt2 + _ref_mha(p['enc_attn'], tgt2, memory, memory, H, D),
                   p['ea_norm']['g'], p['ea_norm']['b'])
    if memo2 is not None:
        t35 = _ref_ln(tgt2 + _ref_mha(p['enc_attn'], tgt2, memo2, memo2, H, D),
                      p['ea_norm']['g'], p['ea_norm']['b'])
        tgt3 = (tgt3 + t35) / 2.0
    h = jnp.maximum(_ref_linear(tgt3, p['ff1']['w'], p['ff1']['b']), 0.0)
    ff = _ref_linear(h, p['ff2']['w'], p['ff2']['b'])
    return _ref_ln(tgt3 + ff, p['ff_norm']['g'], p['ff_norm']['b'])


def _ref_decoder(params, tgt, memory, memo2, embedding, H, D):
    g, b = params['norm_att']['g'], params['norm_att']['b']
    for lp in params['layers']:
        norm_tgt = _ref_ln(tgt + embedding, g, b) if embedding is not None \
            else _ref_ln(tgt, g, b)
        norm_memo1 = _ref_ln(memory, g, b)
        norm_memo2 = _ref_ln(memo2, g, b) if memo2 is not None else norm_memo1
        tgt = _ref_layer(lp, norm_tgt, norm_memo1, norm_memo2, H, D)
    return tgt


# ---------------------------------------------------------------------------

if __name__ == "__main__":
    num_layers, num_heads, d_model, d_ff = 2, 4, 32, 64
    B, S_tgt, S_mem = 2, 8, 16

    key = jax.random.PRNGKey(0)
    kp, kt, km, ke = jax.random.split(key, 4)
    params = init_decoder(kp, num_layers, d_model, d_ff)
    fparams = fuse_decoder_params(params, num_heads, d_model)
    tgt = jax.random.normal(kt, (B, S_tgt, d_model), jnp.float32)
    memory = jax.random.normal(km, (B, S_mem, d_model), jnp.float32)
    embedding = jax.random.normal(ke, (B, S_tgt, d_model), jnp.float32)

    fwd = jax.jit(functools.partial(transformer_decoder,
                                    num_heads=num_heads, d_model=d_model))
    out = fwd(fparams, tgt, memory, None, embedding)
    out = jax.block_until_ready(out)

    ref = _ref_decoder(params, tgt, memory, None, embedding,
                       num_heads, d_model)
    assert out.shape == (B, S_tgt, d_model), out.shape
    err = float(jnp.max(jnp.abs(out - ref)))
    assert jnp.allclose(out, ref, rtol=1e-4, atol=1e-4), err
    print("KERNEL_OK")
</pallas_src>

<mosaic_0001>
module attributes {stable_mosaic.version = 11 : i64} {
  func.func @_decoder_fwd_kernel(%arg0: memref<16x32xf32, #tpu.memory_space<vmem>>, %arg1: memref<32x32xf32, #tpu.memory_space<vmem>>, %arg2: memref<16x32xf32, #tpu.memory_space<vmem>>, %arg3: memref<16x16xf32, #tpu.memory_space<vmem>>, %arg4: memref<16x32xf32, #tpu.memory_space<vmem>>, %arg5: memref<1x32xf32, #tpu.memory_space<vmem>>, %arg6: memref<1x32xf32, #tpu.memory_space<vmem>>, %arg7: memref<32x96xf32, #tpu.memory_space<vmem>>, %arg8: memref<1x96xf32, #tpu.memory_space<vmem>>, %arg9: memref<32x32xf32, #tpu.memory_space<vmem>>, %arg10: memref<1x32xf32, #tpu.memory_space<vmem>>, %arg11: memref<1x32xf32, #tpu.memory_space<vmem>>, %arg12: memref<1x32xf32, #tpu.memory_space<vmem>>, %arg13: memref<32x32xf32, #tpu.memory_space<vmem>>, %arg14: memref<1x32xf32, #tpu.memory_space<vmem>>, %arg15: memref<32x64xf32, #tpu.memory_space<vmem>>, %arg16: memref<1x64xf32, #tpu.memory_space<vmem>>, %arg17: memref<32x32xf32, #tpu.memory_space<vmem>>, %arg18: memref<1x32xf32, #tpu.memory_space<vmem>>, %arg19: memref<1x32xf32, #tpu.memory_space<vmem>>, %arg20: memref<1x32xf32, #tpu.memory_space<vmem>>, %arg21: memref<32x64xf32, #tpu.memory_space<vmem>>, %arg22: memref<1x64xf32, #tpu.memory_space<vmem>>, %arg23: memref<64x32xf32, #tpu.memory_space<vmem>>, %arg24: memref<1x32xf32, #tpu.memory_space<vmem>>, %arg25: memref<1x32xf32, #tpu.memory_space<vmem>>, %arg26: memref<1x32xf32, #tpu.memory_space<vmem>>, %arg27: memref<32x96xf32, #tpu.memory_space<vmem>>, %arg28: memref<1x96xf32, #tpu.memory_space<vmem>>, %arg29: memref<32x32xf32, #tpu.memory_space<vmem>>, %arg30: memref<1x32xf32, #tpu.memory_space<vmem>>, %arg31: memref<1x32xf32, #tpu.memory_space<vmem>>, %arg32: memref<1x32xf32, #tpu.memory_space<vmem>>, %arg33: memref<32x32xf32, #tpu.memory_space<vmem>>, %arg34: memref<1x32xf32, #tpu.memory_space<vmem>>, %arg35: memref<32x64xf32, #tpu.memory_space<vmem>>, %arg36: memref<1x64xf32, #tpu.memory_space<vmem>>, %arg37: memref<32x32xf32, #tpu.memory_space<vmem>>, %arg38: memref<1x32xf32, #tpu.memory_space<vmem>>, %arg39: memref<1x32xf32, #tpu.memory_space<vmem>>, %arg40: memref<1x32xf32, #tpu.memory_space<vmem>>, %arg41: memref<32x64xf32, #tpu.memory_space<vmem>>, %arg42: memref<1x64xf32, #tpu.memory_space<vmem>>, %arg43: memref<64x32xf32, #tpu.memory_space<vmem>>, %arg44: memref<1x32xf32, #tpu.memory_space<vmem>>, %arg45: memref<1x32xf32, #tpu.memory_space<vmem>>, %arg46: memref<1x32xf32, #tpu.memory_space<vmem>>, %arg47: memref<16x32xf32, #tpu.memory_space<vmem>>) attributes {dimension_semantics = [], scalar_prefetch = 0 : i64, scratch_operands = 0 : i64, tpu.core_type = #tpu.core_type<tc>} {
    %c0 = arith.constant 0 : index
    %c0_0 = arith.constant 0 : index
    %0 = vector.load %arg0[%c0, %c0_0] : memref<16x32xf32, #tpu.memory_space<vmem>>, vector<16x32xf32>
    %c0_1 = arith.constant 0 : index
    %c0_2 = arith.constant 0 : index
    %1 = vector.load %arg1[%c0_1, %c0_2] : memref<32x32xf32, #tpu.memory_space<vmem>>, vector<32x32xf32>
    %c0_3 = arith.constant 0 : index
    %c0_4 = arith.constant 0 : index
    %2 = vector.load %arg2[%c0_3, %c0_4] : memref<16x32xf32, #tpu.memory_space<vmem>>, vector<16x32xf32>
    %c0_5 = arith.constant 0 : index
    %c0_6 = arith.constant 0 : index
    %3 = vector.load %arg3[%c0_5, %c0_6] : memref<16x16xf32, #tpu.memory_space<vmem>>, vector<16x16xf32>
    %c0_7 = arith.constant 0 : index
    %c0_8 = arith.constant 0 : index
    %4 = vector.load %arg4[%c0_7, %c0_8] : memref<16x32xf32, #tpu.memory_space<vmem>>, vector<16x32xf32>
    %c0_9 = arith.constant 0 : index
    %c0_10 = arith.constant 0 : index
    %5 = vector.load %arg5[%c0_9, %c0_10] : memref<1x32xf32, #tpu.memory_space<vmem>>, vector<1x32xf32>
    %c0_11 = arith.constant 0 : index
    %c0_12 = arith.constant 0 : index
    %6 = vector.load %arg6[%c0_11, %c0_12] : memref<1x32xf32, #tpu.memory_space<vmem>>, vector<1x32xf32>
    %cst = arith.constant dense<0.000000e+00> : vector<32xf32>
    %7 = vector.multi_reduction <add>, %1, %cst [1] : vector<32x32xf32> to vector<32xf32>
    %8 = vector.shape_cast %7 : vector<32xf32> to vector<32x1xf32>
    %cst_13 = arith.constant 3.200000e+01 : f32
    %9 = vector.broadcast %cst_13 : f32 to vector<32x1xf32>
    %10 = arith.divf %8, %9 : vector<32x1xf32>
    %11 = vector.broadcast %10 : vector<32x1xf32> to vector<32x32xf32>
    %12 = arith.subf %1, %11 : vector<32x32xf32>
    %13 = arith.mulf %12, %12 : vector<32x32xf32>
    %cst_14 = arith.constant dense<0.000000e+00> : vector<32xf32>
    %14 = vector.multi_reduction <add>, %13, %cst_14 [1] : vector<32x32xf32> to vector<32xf32>
    %15 = vector.shape_cast %14 : vector<32xf32> to vector<32x1xf32>
    %cst_15 = arith.constant 3.200000e+01 : f32
    %16 = vector.broadcast %cst_15 : f32 to vector<32x1xf32>
    %17 = arith.divf %15, %16 : vector<32x1xf32>
    %18 = vector.broadcast %10 : vector<32x1xf32> to vector<32x32xf32>
    %19 = arith.subf %1, %18 : vector<32x32xf32>
    %cst_16 = arith.constant 9.99999974E-6 : f32
    %20 = vector.broadcast %cst_16 : f32 to vector<32x1xf32>
    %21 = arith.addf %17, %20 : vector<32x1xf32>
    %22 = math.rsqrt %21 : vector<32x1xf32>
    %23 = vector.broadcast %22 : vector<32x1xf32> to vector<32x32xf32>
    %24 = arith.mulf %19, %23 : vector<32x32xf32>
    %25 = vector.broadcast %5 : vector<1x32xf32> to vector<32x32xf32>
    %26 = arith.mulf %24, %25 : vector<32x32xf32>
    %27 = vector.broadcast %6 : vector<1x32xf32> to vector<32x32xf32>
    %28 = arith.addf %26, %27 : vector<32x32xf32>
    %c0_17 = arith.constant 0 : index
    %c0_18 = arith.constant 0 : index
    %29 = vector.load %arg7[%c0_17, %c0_18] : memref<32x96xf32, #tpu.memory_space<vmem>>, vector<32x96xf32>
    %c0_19 = arith.constant 0 : index
    %c0_20 = arith.constant 0 : index
    %30 = vector.load %arg8[%c0_19, %c0_20] : memref<1x96xf32, #tpu.memory_space<vmem>>, vector<1x96xf32>
    %c0_21 = arith.constant 0 : index
    %c0_22 = arith.constant 0 : index
    %31 = vector.load %arg9[%c0_21, %c0_22] : memref<32x32xf32, #tpu.memory_space<vmem>>, vector<32x32xf32>
    %c0_23 = arith.constant 0 : index
    %c0_24 = arith.constant 0 : index
    %32 = vector.load %arg10[%c0_23, %c0_24] : memref<1x32xf32, #tpu.memory_space<vmem>>, vector<1x32xf32>
    %c0_25 = arith.constant 0 : index
    %c0_26 = arith.constant 0 : index
    %33 = vector.load %arg11[%c0_25, %c0_26] : memref<1x32xf32, #tpu.memory_space<vmem>>, vector<1x32xf32>
    %c0_27 = arith.constant 0 : index
    %c0_28 = arith.constant 0 : index
    %34 = vector.load %arg12[%c0_27, %c0_28] : memref<1x32xf32, #tpu.memory_space<vmem>>, vector<1x32xf32>
    %c0_29 = arith.constant 0 : index
    %c0_30 = arith.constant 0 : index
    %35 = vector.load %arg13[%c0_29, %c0_30] : memref<32x32xf32, #tpu.memory_space<vmem>>, vector<32x32xf32>
    %c0_31 = arith.constant 0 : index
    %c0_32 = arith.constant 0 : index
    %36 = vector.load %arg14[%c0_31, %c0_32] : memref<1x32xf32, #tpu.memory_space<vmem>>, vector<1x32xf32>
    %c0_33 = arith.constant 0 : index
    %c0_34 = arith.constant 0 : index
    %37 = vector.load %arg15[%c0_33, %c0_34] : memref<32x64xf32, #tpu.memory_space<vmem>>, vector<32x64xf32>
    %c0_35 = arith.constant 0 : index
    %c0_36 = arith.constant 0 : index
    %38 = vector.load %arg16[%c0_35, %c0_36] : memref<1x64xf32, #tpu.memory_space<vmem>>, vector<1x64xf32>
    %c0_37 = arith.constant 0 : index
    %c0_38 = arith.constant 0 : index
    %39 = vector.load %arg17[%c0_37, %c0_38] : memref<32x32xf32, #tpu.memory_space<vmem>>, vector<32x32xf32>
    %c0_39 = arith.constant 0 : index
    %c0_40 = arith.constant 0 : index
    %40 = vector.load %arg18[%c0_39, %c0_40] : memref<1x32xf32, #tpu.memory_space<vmem>>, vector<1x32xf32>
    %c0_41 = arith.constant 0 : index
    %c0_42 = arith.constant 0 : index
    %41 = vector.load %arg19[%c0_41, %c0_42] : memref<1x32xf32, #tpu.memory_space<vmem>>, vector<1x32xf32>
    %c0_43 = arith.constant 0 : index
    %c0_44 = arith.constant 0 : index
    %42 = vector.load %arg20[%c0_43, %c0_44] : memref<1x32xf32, #tpu.memory_space<vmem>>, vector<1x32xf32>
    %c0_45 = arith.constant 0 : index
    %c0_46 = arith.constant 0 : index
    %43 = vector.load %arg21[%c0_45, %c0_46] : memref<32x64xf32, #tpu.memory_space<vmem>>, vector<32x64xf32>
    %c0_47 = arith.constant 0 : index
    %c0_48 = arith.constant 0 : index
    %44 = vector.load %arg22[%c0_47, %c0_48] : memref<1x64xf32, #tpu.memory_space<vmem>>, vector<1x64xf32>
    %c0_49 = arith.constant 0 : index
    %c0_50 = arith.constant 0 : index
    %45 = vector.load %arg23[%c0_49, %c0_50] : memref<64x32xf32, #tpu.memory_space<vmem>>, vector<64x32xf32>
    %c0_51 = arith.constant 0 : index
    %c0_52 = arith.constant 0 : index
    %46 = vector.load %arg24[%c0_51, %c0_52] : memref<1x32xf32, #tpu.memory_space<vmem>>, vector<1x32xf32>
    %c0_53 = arith.constant 0 : index
    %c0_54 = arith.constant 0 : index
    %47 = vector.load %arg25[%c0_53, %c0_54] : memref<1x32xf32, #tpu.memory_space<vmem>>, vector<1x32xf32>
    %c0_55 = arith.constant 0 : index
    %c0_56 = arith.constant 0 : index
    %48 = vector.load %arg26[%c0_55, %c0_56] : memref<1x32xf32, #tpu.memory_space<vmem>>, vector<1x32xf32>
    %49 = arith.addf %0, %2 : vector<16x32xf32>
    %cst_57 = arith.constant dense<0.000000e+00> : vector<16xf32>
    %50 = vector.multi_reduction <add>, %49, %cst_57 [1] : vector<16x32xf32> to vector<16xf32>
    %51 = vector.shape_cast %50 : vector<16xf32> to vector<16x1xf32>
    %cst_58 = arith.constant 3.200000e+01 : f32
    %52 = vector.broadcast %cst_58 : f32 to vector<16x1xf32>
    %53 = arith.divf %51, %52 : vector<16x1xf32>
    %54 = vector.broadcast %53 : vector<16x1xf32> to vector<16x32xf32>
    %55 = arith.subf %49, %54 : vector<16x32xf32>
    %56 = arith.mulf %55, %55 : vector<16x32xf32>
    %cst_59 = arith.constant dense<0.000000e+00> : vector<16xf32>
    %57 = vector.multi_reduction <add>, %56, %cst_59 [1] : vector<16x32xf32> to vector<16xf32>
    %58 = vector.shape_cast %57 : vector<16xf32> to vector<16x1xf32>
    %cst_60 = arith.constant 3.200000e+01 : f32
    %59 = vector.broadcast %cst_60 : f32 to vector<16x1xf32>
    %60 = arith.divf %58, %59 : vector<16x1xf32>
    %61 = vector.broadcast %53 : vector<16x1xf32> to vector<16x32xf32>
    %62 = arith.subf %49, %61 : vector<16x32xf32>
    %cst_61 = arith.constant 9.99999974E-6 : f32
    %63 = vector.broadcast %cst_61 : f32 to vector<16x1xf32>
    %64 = arith.addf %60, %63 : vector<16x1xf32>
    %65 = math.rsqrt %64 : vector<16x1xf32>
    %66 = vector.broadcast %65 : vector<16x1xf32> to vector<16x32xf32>
    %67 = arith.mulf %62, %66 : vector<16x32xf32>
    %68 = vector.broadcast %5 : vector<1x32xf32> to vector<16x32xf32>
    %69 = arith.mulf %67, %68 : vector<16x32xf32>
    %70 = vector.broadcast %6 : vector<1x32xf32> to vector<16x32xf32>
    %71 = arith.addf %69, %70 : vector<16x32xf32>
    %cst_62 = arith.constant dense<0.000000e+00> : vector<16x96xf32>
    %72 = tpu.matmul %71, %29, %cst_62 {dimension_numbers = #tpu.dot_dimension_numbers<[1], [0], [0], [1], [0, 0, 1, 1], [], []>} : vector<16x32xf32>, vector<32x96xf32>, vector<16x96xf32> -> vector<16x96xf32>
    %73 = vector.broadcast %30 : vector<1x96xf32> to vector<16x96xf32>
    %74 = arith.addf %72, %73 : vector<16x96xf32>
    %75 = vector.extract_strided_slice %74 {offsets = [0, 0], sizes = [16, 32], strides = [1, 1]} : vector<16x96xf32> to vector<16x32xf32>
    %76 = vector.extract_strided_slice %74 {offsets = [0, 32], sizes = [16, 32], strides = [1, 1]} : vector<16x96xf32> to vector<16x32xf32>
    %77 = vector.extract_strided_slice %74 {offsets = [0, 64], sizes = [16, 32], strides = [1, 1]} : vector<16x96xf32> to vector<16x32xf32>
    %78 = vector.extract_strided_slice %75 {offsets = [0, 0], sizes = [16, 8], strides = [1, 1]} : vector<16x32xf32> to vector<16x8xf32>
    %79 = vector.extract_strided_slice %76 {offsets = [0, 0], sizes = [16, 8], strides = [1, 1]} : vector<16x32xf32> to vector<16x8xf32>
    "tpu.trace_start"() <{level = 10 : i32, message = "qd,kd->qk"}> : () -> ()
    %cst_63 = arith.constant dense<0.000000e+00> : vector<16x16xf32>
    %80 = tpu.matmul %78, %79, %cst_63 {dimension_numbers = #tpu.dot_dimension_numbers<[1], [1], [0], [0], [0, 0, 1, 0], [], []>} : vector<16x8xf32>, vector<16x8xf32>, vector<16x16xf32> -> vector<16x16xf32>
    "tpu.trace_stop"() : () -> ()
    %81 = arith.addf %80, %3 : vector<16x16xf32>
    %82 = vector.extract_strided_slice %76 {offsets = [0, 8], sizes = [16, 8], strides = [1, 1]} : vector<16x32xf32> to vector<16x8xf32>
    "tpu.trace_start"() <{level = 10 : i32, message = "qd,kd->qk"}> : () -> ()
    %cst_64 = arith.constant dense<0.000000e+00> : vector<16x16xf32>
    %83 = tpu.matmul %78, %82, %cst_64 {dimension_numbers = #tpu.dot_dimension_numbers<[1], [1], [0], [0], [0, 0, 1, 0], [], []>} : vector<16x8xf32>, vector<16x8xf32>, vector<16x16xf32> -> vector<16x16xf32>
    "tpu.trace_stop"() : () -> ()
    %84 = arith.addf %83, %3 : vector<16x16xf32>
    %85 = vector.extract_strided_slice %76 {offsets = [0, 16], sizes = [16, 8], strides = [1, 1]} : vector<16x32xf32> to vector<16x8xf32>
    "tpu.trace_start"() <{level = 10 : i32, message = "qd,kd->qk"}> : () -> ()
    %cst_65 = arith.constant dense<0.000000e+00> : vector<16x16xf32>
    %86 = tpu.matmul %78, %85, %cst_65 {dimension_numbers = #tpu.dot_dimension_numbers<[1], [1], [0], [0], [0, 0, 1, 0], [], []>} : vector<16x8xf32>, vector<16x8xf32>, vector<16x16xf32> -> vector<16x16xf32>
    "tpu.trace_stop"() : () -> ()
    %87 = arith.addf %86, %3 : vector<16x16xf32>
    %88 = vector.extract_strided_slice %76 {offsets = [0, 24], sizes = [16, 8], strides = [1, 1]} : vector<16x32xf32> to vector<16x8xf32>
    "tpu.trace_start"() <{level = 10 : i32, message = "qd,kd->qk"}> : () -> ()
    %cst_66 = arith.constant dense<0.000000e+00> : vector<16x16xf32>
    %89 = tpu.matmul %78, %88, %cst_66 {dimension_numbers = #tpu.dot_dimension_numbers<[1], [1], [0], [0], [0, 0, 1, 0], [], []>} : vector<16x8xf32>, vector<16x8xf32>, vector<16x16xf32> -> vector<16x16xf32>
    "tpu.trace_stop"() : () -> ()
    %90 = arith.addf %89, %3 : vector<16x16xf32>
    %91 = arith.maximumf %81, %84 : vector<16x16xf32>
    %92 = arith.maximumf %91, %87 : vector<16x16xf32>
    %93 = arith.maximumf %92, %90 : vector<16x16xf32>
    %cst_67 = arith.constant dense<0xFF800000> : vector<16xf32>
    %94 = vector.multi_reduction <maximumf>, %93, %cst_67 [1] : vector<16x16xf32> to vector<16xf32>
    %95 = vector.shape_cast %94 : vector<16xf32> to vector<16x1xf32>
    %96 = vector.broadcast %95 : vector<16x1xf32> to vector<16x16xf32>
    %97 = arith.subf %81, %96 : vector<16x16xf32>
    %98 = math.exp %97 : vector<16x16xf32>
    %99 = vector.broadcast %95 : vector<16x1xf32> to vector<16x16xf32>
    %100 = arith.subf %84, %99 : vector<16x16xf32>
    %101 = math.exp %100 : vector<16x16xf32>
    %102 = vector.broadcast %95 : vector<16x1xf32> to vector<16x16xf32>
    %103 = arith.subf %87, %102 : vector<16x16xf32>
    %104 = math.exp %103 : vector<16x16xf32>
    %105 = vector.broadcast %95 : vector<16x1xf32> to vector<16x16xf32>
    %106 = arith.subf %90, %105 : vector<16x16xf32>
    %107 = math.exp %106 : vector<16x16xf32>
    %cst_68 = arith.constant dense<0.000000e+00> : vector<16xf32>
    %108 = vector.multi_reduction <add>, %98, %cst_68 [1] : vector<16x16xf32> to vector<16xf32>
    %109 = vector.shape_cast %108 : vector<16xf32> to vector<16x1xf32>
    %cst_69 = arith.constant dense<0.000000e+00> : vector<16xf32>
    %110 = vector.multi_reduction <add>, %101, %cst_69 [1] : vector<16x16xf32> to vector<16xf32>
    %111 = vector.shape_cast %110 : vector<16xf32> to vector<16x1xf32>
    %112 = arith.addf %109, %111 : vector<16x1xf32>
    %cst_70 = arith.constant dense<0.000000e+00> : vector<16xf32>
    %113 = vector.multi_reduction <add>, %104, %cst_70 [1] : vector<16x16xf32> to vector<16xf32>
    %114 = vector.shape_cast %113 : vector<16xf32> to vector<16x1xf32>
    %115 = arith.addf %112, %114 : vector<16x1xf32>
    %cst_71 = arith.constant dense<0.000000e+00> : vector<16xf32>
    %116 = vector.multi_reduction <add>, %107, %cst_71 [1] : vector<16x16xf32> to vector<16xf32>
    %117 = vector.shape_cast %116 : vector<16xf32> to vector<16x1xf32>
    %118 = arith.addf %115, %117 : vector<16x1xf32>
    %119 = tpu.reciprocal %118 : vector<16x1xf32> -> vector<16x1xf32>
    %120 = vector.extract_strided_slice %77 {offsets = [0, 0], sizes = [16, 8], strides = [1, 1]} : vector<16x32xf32> to vector<16x8xf32>
    %cst_72 = arith.constant dense<0.000000e+00> : vector<16x8xf32>
    %121 = tpu.matmul %98, %120, %cst_72 {dimension_numbers = #tpu.dot_dimension_numbers<[1], [0], [0], [1], [0, 0, 1, 1], [], []>} : vector<16x16xf32>, vector<16x8xf32>, vector<16x8xf32> -> vector<16x8xf32>
    %122 = vector.extract_strided_slice %77 {offsets = [0, 8], sizes = [16, 8], strides = [1, 1]} : vector<16x32xf32> to vector<16x8xf32>
    %cst_73 = arith.constant dense<0.000000e+00> : vector<16x8xf32>
    %123 = tpu.matmul %101, %122, %cst_73 {dimension_numbers = #tpu.dot_dimension_numbers<[1], [0], [0], [1], [0, 0, 1, 1], [], []>} : vector<16x16xf32>, vector<16x8xf32>, vector<16x8xf32> -> vector<16x8xf32>
    %124 = arith.addf %121, %123 : vector<16x8xf32>
    %125 = vector.extract_strided_slice %77 {offsets = [0, 16], sizes = [16, 8], strides = [1, 1]} : vector<16x32xf32> to vector<16x8xf32>
    %cst_74 = arith.constant dense<0.000000e+00> : vector<16x8xf32>
    %126 = tpu.matmul %104, %125, %cst_74 {dimension_numbers = #tpu.dot_dimension_numbers<[1], [0], [0], [1], [0, 0, 1, 1], [], []>} : vector<16x16xf32>, vector<16x8xf32>, vector<16x8xf32> -> vector<16x8xf32>
    %127 = arith.addf %124, %126 : vector<16x8xf32>
    %128 = vector.extract_strided_slice %77 {offsets = [0, 24], sizes = [16, 8], strides = [1, 1]} : vector<16x32xf32> to vector<16x8xf32>
    %cst_75 = arith.constant dense<0.000000e+00> : vector<16x8xf32>
    %129 = tpu.matmul %107, %128, %cst_75 {dimension_numbers = #tpu.dot_dimension_numbers<[1], [0], [0], [1], [0, 0, 1, 1], [], []>} : vector<16x16xf32>, vector<16x8xf32>, vector<16x8xf32> -> vector<16x8xf32>
    %130 = arith.addf %127, %129 : vector<16x8xf32>
    %131 = vector.broadcast %119 : vector<16x1xf32> to vector<16x8xf32>
    %132 = arith.mulf %130, %131 : vector<16x8xf32>
    %133 = vector.extract_strided_slice %31 {offsets = [0, 0], sizes = [8, 32], strides = [1, 1]} : vector<32x32xf32> to vector<8x32xf32>
    %cst_76 = arith.constant dense<0.000000e+00> : vector<16x32xf32>
    %134 = tpu.matmul %132, %133, %cst_76 {dimension_numbers = #tpu.dot_dimension_numbers<[1], [0], [0], [1], [0, 0, 1, 1], [], []>} : vector<16x8xf32>, vector<8x32xf32>, vector<16x32xf32> -> vector<16x32xf32>
    %135 = vector.extract_strided_slice %75 {offsets = [0, 8], sizes = [16, 8], strides = [1, 1]} : vector<16x32xf32> to vector<16x8xf32>
    %136 = vector.extract_strided_slice %76 {offsets = [0, 0], sizes = [16, 8], strides = [1, 1]} : vector<16x32xf32> to vector<16x8xf32>
    "tpu.trace_start"() <{level = 10 : i32, message = "qd,kd->qk"}> : () -> ()
    %cst_77 = arith.constant dense<0.000000e+00> : vector<16x16xf32>
    %137 = tpu.matmul %135, %136, %cst_77 {dimension_numbers = #tpu.dot_dimension_numbers<[1], [1], [0], [0], [0, 0, 1, 0], [], []>} : vector<16x8xf32>, vector<16x8xf32>, vector<16x16xf32> -> vector<16x16xf32>
    "tpu.trace_stop"() : () -> ()
    %138 = arith.addf %137, %3 : vector<16x16xf32>
    %139 = vector.extract_strided_slice %76 {offsets = [0, 8], sizes = [16, 8], strides = [1, 1]} : vector<16x32xf32> to vector<16x8xf32>
    "tpu.trace_start"() <{level = 10 : i32, message = "qd,kd->qk"}> : () -> ()
    %cst_78 = arith.constant dense<0.000000e+00> : vector<16x16xf32>
    %140 = tpu.matmul %135, %139, %cst_78 {dimension_numbers = #tpu.dot_dimension_numbers<[1], [1], [0], [0], [0, 0, 1, 0], [], []>} : vector<16x8xf32>, vector<16x8xf32>, vector<16x16xf32> -> vector<16x16xf32>
    "tpu.trace_stop"() : () -> ()
    %141 = arith.addf %140, %3 : vector<16x16xf32>
    %142 = vector.extract_strided_slice %76 {offsets = [0, 16], sizes = [16, 8], strides = [1, 1]} : vector<16x32xf32> to vector<16x8xf32>
    "tpu.trace_start"() <{level = 10 : i32, message = "qd,kd->qk"}> : () -> ()
    %cst_79 = arith.constant dense<0.000000e+00> : vector<16x16xf32>
    %143 = tpu.matmul %135, %142, %cst_79 {dimension_numbers = #tpu.dot_dimension_numbers<[1], [1], [0], [0], [0, 0, 1, 0], [], []>} : vector<16x8xf32>, vector<16x8xf32>, vector<16x16xf32> -> vector<16x16xf32>
    "tpu.trace_stop"() : () -> ()
    %144 = arith.addf %143, %3 : vector<16x16xf32>
    %145 = vector.extract_strided_slice %76 {offsets = [0, 24], sizes = [16, 8], strides = [1, 1]} : vector<16x32xf32> to vector<16x8xf32>
    "tpu.trace_start"() <{level = 10 : i32, message = "qd,kd->qk"}> : () -> ()
    %cst_80 = arith.constant dense<0.000000e+00> : vector<16x16xf32>
    %146 = tpu.matmul %135, %145, %cst_80 {dimension_numbers = #tpu.dot_dimension_numbers<[1], [1], [0], [0], [0, 0, 1, 0], [], []>} : vector<16x8xf32>, vector<16x8xf32>, vector<16x16xf32> -> vector<16x16xf32>
    "tpu.trace_stop"() : () -> ()
    %147 = arith.addf %146, %3 : vector<16x16xf32>
    %148 = arith.maximumf %138, %141 : vector<16x16xf32>
    %149 = arith.maximumf %148, %144 : vector<16x16xf32>
    %150 = arith.maximumf %149, %147 : vector<16x16xf32>
    %cst_81 = arith.constant dense<0xFF800000> : vector<16xf32>
    %151 = vector.multi_reduction <maximumf>, %150, %cst_81 [1] : vector<16x16xf32> to vector<16xf32>
    %152 = vector.shape_cast %151 : vector<16xf32> to vector<16x1xf32>
    %153 = vector.broadcast %152 : vector<16x1xf32> to vector<16x16xf32>
    %154 = arith.subf %138, %153 : vector<16x16xf32>
    %155 = math.exp %154 : vector<16x16xf32>
    %156 = vector.broadcast %152 : vector<16x1xf32> to vector<16x16xf32>
    %157 = arith.subf %141, %156 : vector<16x16xf32>
    %158 = math.exp %157 : vector<16x16xf32>
    %159 = vector.broadcast %152 : vector<16x1xf32> to vector<16x16xf32>
    %160 = arith.subf %144, %159 : vector<16x16xf32>
    %161 = math.exp %160 : vector<16x16xf32>
    %162 = vector.broadcast %152 : vector<16x1xf32> to vector<16x16xf32>
    %163 = arith.subf %147, %162 : vector<16x16xf32>
    %164 = math.exp %163 : vector<16x16xf32>
    %cst_82 = arith.constant dense<0.000000e+00> : vector<16xf32>
    %165 = vector.multi_reduction <add>, %155, %cst_82 [1] : vector<16x16xf32> to vector<16xf32>
    %166 = vector.shape_cast %165 : vector<16xf32> to vector<16x1xf32>
    %cst_83 = arith.constant dense<0.000000e+00> : vector<16xf32>
    %167 = vector.multi_reduction <add>, %158, %cst_83 [1] : vector<16x16xf32> to vector<16xf32>
    %168 = vector.shape_cast %167 : vector<16xf32> to vector<16x1xf32>
    %169 = arith.addf %166, %168 : vector<16x1xf32>
    %cst_84 = arith.constant dense<0.000000e+00> : vector<16xf32>
    %170 = vector.multi_reduction <add>, %161, %cst_84 [1] : vector<16x16xf32> to vector<16xf32>
    %171 = vector.shape_cast %170 : vector<16xf32> to vector<16x1xf32>
    %172 = arith.addf %169, %171 : vector<16x1xf32>
    %cst_85 = arith.constant dense<0.000000e+00> : vector<16xf32>
    %173 = vector.multi_reduction <add>, %164, %cst_85 [1] : vector<16x16xf32> to vector<16xf32>
    %174 = vector.shape_cast %173 : vector<16xf32> to vector<16x1xf32>
    %175 = arith.addf %172, %174 : vector<16x1xf32>
    %176 = tpu.reciprocal %175 : vector<16x1xf32> -> vector<16x1xf32>
    %177 = vector.extract_strided_slice %77 {offsets = [0, 0], sizes = [16, 8], strides = [1, 1]} : vector<16x32xf32> to vector<16x8xf32>
    %cst_86 = arith.constant dense<0.000000e+00> : vector<16x8xf32>
    %178 = tpu.matmul %155, %177, %cst_86 {dimension_numbers = #tpu.dot_dimension_numbers<[1], [0], [0], [1], [0, 0, 1, 1], [], []>} : vector<16x16xf32>, vector<16x8xf32>, vector<16x8xf32> -> vector<16x8xf32>
    %179 = vector.extract_strided_slice %77 {offsets = [0, 8], sizes = [16, 8], strides = [1, 1]} : vector<16x32xf32> to vector<16x8xf32>
    %cst_87 = arith.constant dense<0.000000e+00> : vector<16x8xf32>
    %180 = tpu.matmul %158, %179, %cst_87 {dimension_numbers = #tpu.dot_dimension_numbers<[1], [0], [0], [1], [0, 0, 1, 1], [], []>} : vector<16x16xf32>, vector<16x8xf32>, vector<16x8xf32> -> vector<16x8xf32>
    %181 = arith.addf %178, %180 : vector<16x8xf32>
    %182 = vector.extract_strided_slice %77 {offsets = [0, 16], sizes = [16, 8], strides = [1, 1]} : vector<16x32xf32> to vector<16x8xf32>
    %cst_88 = arith.constant dense<0.000000e+00> : vector<16x8xf32>
    %183 = tpu.matmul %161, %182, %cst_88 {dimension_numbers = #tpu.dot_dimension_numbers<[1], [0], [0], [1], [0, 0, 1, 1], [], []>} : vector<16x16xf32>, vector<16x8xf32>, vector<16x8xf32> -> vector<16x8xf32>
    %184 = arith.addf %181, %183 : vector<16x8xf32>
    %185 = vector.extract_strided_slice %77 {offsets = [0, 24], sizes = [16, 8], strides = [1, 1]} : vector<16x32xf32> to vector<16x8xf32>
    %cst_89 = arith.constant dense<0.000000e+00> : vector<16x8xf32>
    %186 = tpu.matmul %164, %185, %cst_89 {dimension_numbers = #tpu.dot_dimension_numbers<[1], [0], [0], [1], [0, 0, 1, 1], [], []>} : vector<16x16xf32>, vector<16x8xf32>, vector<16x8xf32> -> vector<16x8xf32>
    %187 = arith.addf %184, %186 : vector<16x8xf32>
    %188 = vector.broadcast %176 : vector<16x1xf32> to vector<16x8xf32>
    %189 = arith.mulf %187, %188 : vector<16x8xf32>
    %190 = vector.extract_strided_slice %31 {offsets = [8, 0], sizes = [8, 32], strides = [1, 1]} : vector<32x32xf32> to vector<8x32xf32>
    %cst_90 = arith.constant dense<0.000000e+00> : vector<16x32xf32>
    %191 = tpu.matmul %189, %190, %cst_90 {dimension_numbers = #tpu.dot_dimension_numbers<[1], [0], [0], [1], [0, 0, 1, 1], [], []>} : vector<16x8xf32>, vector<8x32xf32>, vector<16x32xf32> -> vector<16x32xf32>
    %192 = arith.addf %134, %191 : vector<16x32xf32>
    %193 = vector.extract_strided_slice %75 {offsets = [0, 16], sizes = [16, 8], strides = [1, 1]} : vector<16x32xf32> to vector<16x8xf32>
    %194 = vector.extract_strided_slice %76 {offsets = [0, 0], sizes = [16, 8], strides = [1, 1]} : vector<16x32xf32> to vector<16x8xf32>
    "tpu.trace_start"() <{level = 10 : i32, message = "qd,kd->qk"}> : () -> ()
    %cst_91 = arith.constant dense<0.000000e+00> : vector<16x16xf32>
    %195 = tpu.matmul %193, %194, %cst_91 {dimension_numbers = #tpu.dot_dimension_numbers<[1], [1], [0], [0], [0, 0, 1, 0], [], []>} : vector<16x8xf32>, vector<16x8xf32>, vector<16x16xf32> -> vector<16x16xf32>
    "tpu.trace_stop"() : () -> ()
    %196 = arith.addf %195, %3 : vector<16x16xf32>
    %197 = vector.extract_strided_slice %76 {offsets = [0, 8], sizes = [16, 8], strides = [1, 1]} : vector<16x32xf32> to vector<16x8xf32>
    "tpu.trace_start"() <{level = 10 : i32, message = "qd,kd->qk"}> : () -> ()
    %cst_92 = arith.constant dense<0.000000e+00> : vector<16x16xf32>
    %198 = tpu.matmul %193, %197, %cst_92 {dimension_numbers = #tpu.dot_dimension_numbers<[1], [1], [0], [0], [0, 0, 1, 0], [], []>} : vector<16x8xf32>, vector<16x8xf32>, vector<16x16xf32> -> vector<16x16xf32>
    "tpu.trace_stop"() : () -> ()
    %199 = arith.addf %198, %3 : vector<16x16xf32>
    %200 = vector.extract_strided_slice %76 {offsets = [0, 16], sizes = [16, 8], strides = [1, 1]} : vector<16x32xf32> to vector<16x8xf32>
    "tpu.trace_start"() <{level = 10 : i32, message = "qd,kd->qk"}> : () -> ()
    %cst_93 = arith.constant dense<0.000000e+00> : vector<16x16xf32>
    %201 = tpu.matmul %193, %200, %cst_93 {dimension_numbers = #tpu.dot_dimension_numbers<[1], [1], [0], [0], [0, 0, 1, 0], [], []>} : vector<16x8xf32>, vector<16x8xf32>, vector<16x16xf32> -> vector<16x16xf32>
    "tpu.trace_stop"() : () -> ()
    %202 = arith.addf %201, %3 : vector<16x16xf32>
    %203 = vector.extract_strided_slice %76 {offsets = [0, 24], sizes = [16, 8], strides = [1, 1]} : vector<16x32xf32> to vector<16x8xf32>
    "tpu.trace_start"() <{level = 10 : i32, message = "qd,kd->qk"}> : () -> ()
    %cst_94 = arith.constant dense<0.000000e+00> : vector<16x16xf32>
    %204 = tpu.matmul %193, %203, %cst_94 {dimension_numbers = #tpu.dot_dimension_numbers<[1], [1], [0], [0], [0, 0, 1, 0], [], []>} : vector<16x8xf32>, vector<16x8xf32>, vector<16x16xf32> -> vector<16x16xf32>
    "tpu.trace_stop"() : () -> ()
    %205 = arith.addf %204, %3 : vector<16x16xf32>
    %206 = arith.maximumf %196, %199 : vector<16x16xf32>
    %207 = arith.maximumf %206, %202 : vector<16x16xf32>
    %208 = arith.maximumf %207, %205 : vector<16x16xf32>
    %cst_95 = arith.constant dense<0xFF800000> : vector<16xf32>
    %209 = vector.multi_reduction <maximumf>, %208, %cst_95 [1] : vector<16x16xf32> to vector<16xf32>
    %210 = vector.shape_cast %209 : vector<16xf32> to vector<16x1xf32>
    %211 = vector.broadcast %210 : vector<16x1xf32> to vector<16x16xf32>
    %212 = arith.subf %196, %211 : vector<16x16xf32>
    %213 = math.exp %212 : vector<16x16xf32>
    %214 = vector.broadcast %210 : vector<16x1xf32> to vector<16x16xf32>
    %215 = arith.subf %199, %214 : vector<16x16xf32>
    %216 = math.exp %215 : vector<16x16xf32>
    %217 = vector.broadcast %210 : vector<16x1xf32> to vector<16x16xf32>
    %218 = arith.subf %202, %217 : vector<16x16xf32>
    %219 = math.exp %218 : vector<16x16xf32>
    %220 = vector.broadcast %210 : vector<16x1xf32> to vector<16x16xf32>
    %221 = arith.subf %205, %220 : vector<16x16xf32>
    %222 = math.exp %221 : vector<16x16xf32>
    %cst_96 = arith.constant dense<0.000000e+00> : vector<16xf32>
    %223 = vector.multi_reduction <add>, %213, %cst_96 [1] : vector<16x16xf32> to vector<16xf32>
    %224 = vector.shape_cast %223 : vector<16xf32> to vector<16x1xf32>
    %cst_97 = arith.constant dense<0.000000e+00> : vector<16xf32>
    %225 = vector.multi_reduction <add>, %216, %cst_97 [1] : vector<16x16xf32> to vector<16xf32>
    %226 = vector.shape_cast %225 : vector<16xf32> to vector<16x1xf32>
    %227 = arith.addf %224, %226 : vector<16x1xf32>
    %cst_98 = arith.constant dense<0.000000e+00> : vector<16xf32>
    %228 = vector.multi_reduction <add>, %219, %cst_98 [1] : vector<16x16xf32> to vector<16xf32>
    %229 = vector.shape_cast %228 : vector<16xf32> to vector<16x1xf32>
    %230 = arith.addf %227, %229 : vector<16x1xf32>
    %cst_99 = arith.constant dense<0.000000e+00> : vector<16xf32>
    %231 = vector.multi_reduction <add>, %222, %cst_99 [1] : vector<16x16xf32> to vector<16xf32>
    %232 = vector.shape_cast %231 : vector<16xf32> to vector<16x1xf32>
    %233 = arith.addf %230, %232 : vector<16x1xf32>
    %234 = tpu.reciprocal %233 : vector<16x1xf32> -> vector<16x1xf32>
    %235 = vector.extract_strided_slice %77 {offsets = [0, 0], sizes = [16, 8], strides = [1, 1]} : vector<16x32xf32> to vector<16x8xf32>
    %cst_100 = arith.constant dense<0.000000e+00> : vector<16x8xf32>
    %236 = tpu.matmul %213, %235, %cst_100 {dimension_numbers = #tpu.dot_dimension_numbers<[1], [0], [0], [1], [0, 0, 1, 1], [], []>} : vector<16x16xf32>, vector<16x8xf32>, vector<16x8xf32> -> vector<16x8xf32>
    %237 = vector.extract_strided_slice %77 {offsets = [0, 8], sizes = [16, 8], strides = [1, 1]} : vector<16x32xf32> to vector<16x8xf32>
    %cst_101 = arith.constant dense<0.000000e+00> : vector<16x8xf32>
    %238 = tpu.matmul %216, %237, %cst_101 {dimension_numbers = #tpu.dot_dimension_numbers<[1], [0], [0], [1], [0, 0, 1, 1], [], []>} : vector<16x16xf32>, vector<16x8xf32>, vector<16x8xf32> -> vector<16x8xf32>
    %239 = arith.addf %236, %238 : vector<16x8xf32>
    %240 = vector.extract_strided_slice %77 {offsets = [0, 16], sizes = [16, 8], strides = [1, 1]} : vector<16x32xf32> to vector<16x8xf32>
    %cst_102 = arith.constant dense<0.000000e+00> : vector<16x8xf32>
    %241 = tpu.matmul %219, %240, %cst_102 {dimension_numbers = #tpu.dot_dimension_numbers<[1], [0], [0], [1], [0, 0, 1, 1], [], []>} : vector<16x16xf32>, vector<16x8xf32>, vector<16x8xf32> -> vector<16x8xf32>
    %242 = arith.addf %239, %241 : vector<16x8xf32>
    %243 = vector.extract_strided_slice %77 {offsets = [0, 24], sizes = [16, 8], strides = [1, 1]} : vector<16x32xf32> to vector<16x8xf32>
    %cst_103 = arith.constant dense<0.000000e+00> : vector<16x8xf32>
    %244 = tpu.matmul %222, %243, %cst_103 {dimension_numbers = #tpu.dot_dimension_numbers<[1], [0], [0], [1], [0, 0, 1, 1], [], []>} : vector<16x16xf32>, vector<16x8xf32>, vector<16x8xf32> -> vector<16x8xf32>
    %245 = arith.addf %242, %244 : vector<16x8xf32>
    %246 = vector.broadcast %234 : vector<16x1xf32> to vector<16x8xf32>
    %247 = arith.mulf %245, %246 : vector<16x8xf32>
    %248 = vector.extract_strided_slice %31 {offsets = [16, 0], sizes = [8, 32], strides = [1, 1]} : vector<32x32xf32> to vector<8x32xf32>
    %cst_104 = arith.constant dense<0.000000e+00> : vector<16x32xf32>
    %249 = tpu.matmul %247, %248, %cst_104 {dimension_numbers = #tpu.dot_dimension_numbers<[1], [0], [0], [1], [0, 0, 1, 1], [], []>} : vector<16x8xf32>, vector<8x32xf32>, vector<16x32xf32> -> vector<16x32xf32>
    %250 = arith.addf %192, %249 : vector<16x32xf32>
    %251 = vector.extract_strided_slice %75 {offsets = [0, 24], sizes = [16, 8], strides = [1, 1]} : vector<16x32xf32> to vector<16x8xf32>
    %252 = vector.extract_strided_slice %76 {offsets = [0, 0], sizes = [16, 8], strides = [1, 1]} : vector<16x32xf32> to vector<16x8xf32>
    "tpu.trace_start"() <{level = 10 : i32, message = "qd,kd->qk"}> : () -> ()
    %cst_105 = arith.constant dense<0.000000e+00> : vector<16x16xf32>
    %253 = tpu.matmul %251, %252, %cst_105 {dimension_numbers = #tpu.dot_dimension_numbers<[1], [1], [0], [0], [0, 0, 1, 0], [], []>} : vector<16x8xf32>, vector<16x8xf32>, vector<16x16xf32> -> vector<16x16xf32>
    "tpu.trace_stop"() : () -> ()
    %254 = arith.addf %253, %3 : vector<16x16xf32>
    %255 = vector.extract_strided_slice %76 {offsets = [0, 8], sizes = [16, 8], strides = [1, 1]} : vector<16x32xf32> to vector<16x8xf32>
    "tpu.trace_start"() <{level = 10 : i32, message = "qd,kd->qk"}> : () -> ()
    %cst_106 = arith.constant dense<0.000000e+00> : vector<16x16xf32>
    %256 = tpu.matmul %251, %255, %cst_106 {dimension_numbers = #tpu.dot_dimension_numbers<[1], [1], [0], [0], [0, 0, 1, 0], [], []>} : vector<16x8xf32>, vector<16x8xf32>, vector<16x16xf32> -> vector<16x16xf32>
    "tpu.trace_stop"() : () -> ()
    %257 = arith.addf %256, %3 : vector<16x16xf32>
    %258 = vector.extract_strided_slice %76 {offsets = [0, 16], sizes = [16, 8], strides = [1, 1]} : vector<16x32xf32> to vector<16x8xf32>
    "tpu.trace_start"() <{level = 10 : i32, message = "qd,kd->qk"}> : () -> ()
    %cst_107 = arith.constant dense<0.000000e+00> : vector<16x16xf32>
    %259 = tpu.matmul %251, %258, %cst_107 {dimension_numbers = #tpu.dot_dimension_numbers<[1], [1], [0], [0], [0, 0, 1, 0], [], []>} : vector<16x8xf32>, vector<16x8xf32>, vector<16x16xf32> -> vector<16x16xf32>
    "tpu.trace_stop"() : () -> ()
    %260 = arith.addf %259, %3 : vector<16x16xf32>
    %261 = vector.extract_strided_slice %76 {offsets = [0, 24], sizes = [16, 8], strides = [1, 1]} : vector<16x32xf32> to vector<16x8xf32>
    "tpu.trace_start"() <{level = 10 : i32, message = "qd,kd->qk"}> : () -> ()
    %cst_108 = arith.constant dense<0.000000e+00> : vector<16x16xf32>
    %262 = tpu.matmul %251, %261, %cst_108 {dimension_numbers = #tpu.dot_dimension_numbers<[1], [1], [0], [0], [0, 0, 1, 0], [], []>} : vector<16x8xf32>, vector<16x8xf32>, vector<16x16xf32> -> vector<16x16xf32>
    "tpu.trace_stop"() : () -> ()
    %263 = arith.addf %262, %3 : vector<16x16xf32>
    %264 = arith.maximumf %254, %257 : vector<16x16xf32>
    %265 = arith.maximumf %264, %260 : vector<16x16xf32>
    %266 = arith.maximumf %265, %263 : vector<16x16xf32>
    %cst_109 = arith.constant dense<0xFF800000> : vector<16xf32>
    %267 = vector.multi_reduction <maximumf>, %266, %cst_109 [1] : vector<16x16xf32> to vector<16xf32>
    %268 = vector.shape_cast %267 : vector<16xf32> to vector<16x1xf32>
    %269 = vector.broadcast %268 : vector<16x1xf32> to vector<16x16xf32>
    %270 = arith.subf %254, %269 : vector<16x16xf32>
    %271 = math.exp %270 : vector<16x16xf32>
    %272 = vector.broadcast %268 : vector<16x1xf32> to vector<16x16xf32>
    %273 = arith.subf %257, %272 : vector<16x16xf32>
    %274 = math.exp %273 : vector<16x16xf32>
    %275 = vector.broadcast %268 : vector<16x1xf32> to vector<16x16xf32>
    %276 = arith.subf %260, %275 : vector<16x16xf32>
    %277 = math.exp %276 : vector<16x16xf32>
    %278 = vector.broadcast %268 : vector<16x1xf32> to vector<16x16xf32>
    %279 = arith.subf %263, %278 : vector<16x16xf32>
    %280 = math.exp %279 : vector<16x16xf32>
    %cst_110 = arith.constant dense<0.000000e+00> : vector<16xf32>
    %281 = vector.multi_reduction <add>, %271, %cst_110 [1] : vector<16x16xf32> to vector<16xf32>
    %282 = vector.shape_cast %281 : vector<16xf32> to vector<16x1xf32>
    %cst_111 = arith.constant dense<0.000000e+00> : vector<16xf32>
    %283 = vector.multi_reduction <add>, %274, %cst_111 [1] : vector<16x16xf32> to vector<16xf32>
    %284 = vector.shape_cast %283 : vector<16xf32> to vector<16x1xf32>
    %285 = arith.addf %282, %284 : vector<16x1xf32>
    %cst_112 = arith.constant dense<0.000000e+00> : vector<16xf32>
    %286 = vector.multi_reduction <add>, %277, %cst_112 [1] : vector<16x16xf32> to vector<16xf32>
    %287 = vector.shape_cast %286 : vector<16xf32> to vector<16x1xf32>
    %288 = arith.addf %285, %287 : vector<16x1xf32>
    %cst_113 = arith.constant dense<0.000000e+00> : vector<16xf32>
    %289 = vector.multi_reduction <add>, %280, %cst_113 [1] : vector<16x16xf32> to vector<16xf32>
    %290 = vector.shape_cast %289 : vector<16xf32> to vector<16x1xf32>
    %291 = arith.addf %288, %290 : vector<16x1xf32>
    %292 = tpu.reciprocal %291 : vector<16x1xf32> -> vector<16x1xf32>
    %293 = vector.extract_strided_slice %77 {offsets = [0, 0], sizes = [16, 8], strides = [1, 1]} : vector<16x32xf32> to vector<16x8xf32>
    %cst_114 = arith.constant dense<0.000000e+00> : vector<16x8xf32>
    %294 = tpu.matmul %271, %293, %cst_114 {dimension_numbers = #tpu.dot_dimension_numbers<[1], [0], [0], [1], [0, 0, 1, 1], [], []>} : vector<16x16xf32>, vector<16x8xf32>, vector<16x8xf32> -> vector<16x8xf32>
    %295 = vector.extract_strided_slice %77 {offsets = [0, 8], sizes = [16, 8], strides = [1, 1]} : vector<16x32xf32> to vector<16x8xf32>
    %cst_115 = arith.constant dense<0.000000e+00> : vector<16x8xf32>
    %296 = tpu.matmul %274, %295, %cst_115 {dimension_numbers = #tpu.dot_dimension_numbers<[1], [0], [0], [1], [0, 0, 1, 1], [], []>} : vector<16x16xf32>, vector<16x8xf32>, vector<16x8xf32> -> vector<16x8xf32>
    %297 = arith.addf %294, %296 : vector<16x8xf32>
    %298 = vector.extract_strided_slice %77 {offsets = [0, 16], sizes = [16, 8], strides = [1, 1]} : vector<16x32xf32> to vector<16x8xf32>
    %cst_116 = arith.constant dense<0.000000e+00> : vector<16x8xf32>
    %299 = tpu.matmul %277, %298, %cst_116 {dimension_numbers = #tpu.dot_dimension_numbers<[1], [0], [0], [1], [0, 0, 1, 1], [], []>} : vector<16x16xf32>, vector<16x8xf32>, vector<16x8xf32> -> vector<16x8xf32>
    %300 = arith.addf %297, %299 : vector<16x8xf32>
    %301 = vector.extract_strided_slice %77 {offsets = [0, 24], sizes = [16, 8], strides = [1, 1]} : vector<16x32xf32> to vector<16x8xf32>
    %cst_117 = arith.constant dense<0.000000e+00> : vector<16x8xf32>
    %302 = tpu.matmul %280, %301, %cst_117 {dimension_numbers = #tpu.dot_dimension_numbers<[1], [0], [0], [1], [0, 0, 1, 1], [], []>} : vector<16x16xf32>, vector<16x8xf32>, vector<16x8xf32> -> vector<16x8xf32>
    %303 = arith.addf %300, %302 : vector<16x8xf32>
    %304 = vector.broadcast %292 : vector<16x1xf32> to vector<16x8xf32>
    %305 = arith.mulf %303, %304 : vector<16x8xf32>
    %306 = vector.extract_strided_slice %31 {offsets = [24, 0], sizes = [8, 32], strides = [1, 1]} : vector<32x32xf32> to vector<8x32xf32>
    %cst_118 = arith.constant dense<0.000000e+00> : vector<16x32xf32>
    %307 = tpu.matmul %305, %306, %cst_118 {dimension_numbers = #tpu.dot_dimension_numbers<[1], [0], [0], [1], [0, 0, 1, 1], [], []>} : vector<16x8xf32>, vector<8x32xf32>, vector<16x32xf32> -> vector<16x32xf32>
    %308 = arith.addf %250, %307 : vector<16x32xf32>
    %309 = vector.broadcast %32 : vector<1x32xf32> to vector<16x32xf32>
    %310 = arith.addf %308, %309 : vector<16x32xf32>
    %311 = arith.addf %71, %310 : vector<16x32xf32>
    %cst_119 = arith.constant dense<0.000000e+00> : vector<16xf32>
    %312 = vector.multi_reduction <add>, %311, %cst_119 [1] : vector<16x32xf32> to vector<16xf32>
    %313 = vector.shape_cast %312 : vector<16xf32> to vector<16x1xf32>
    %cst_120 = arith.constant 3.200000e+01 : f32
    %314 = vector.broadcast %cst_120 : f32 to vector<16x1xf32>
    %315 = arith.divf %313, %314 : vector<16x1xf32>
    %316 = vector.broadcast %315 : vector<16x1xf32> to vector<16x32xf32>
    %317 = arith.subf %311, %316 : vector<16x32xf32>
    %318 = arith.mulf %317, %317 : vector<16x32xf32>
    %cst_121 = arith.constant dense<0.000000e+00> : vector<16xf32>
    %319 = vector.multi_reduction <add>, %318, %cst_121 [1] : vector<16x32xf32> to vector<16xf32>
    %320 = vector.shape_cast %319 : vector<16xf32> to vector<16x1xf32>
    %cst_122 = arith.constant 3.200000e+01 : f32
    %321 = vector.broadcast %cst_122 : f32 to vector<16x1xf32>
    %322 = arith.divf %320, %321 : vector<16x1xf32>
    %323 = vector.broadcast %315 : vector<16x1xf32> to vector<16x32xf32>
    %324 = arith.subf %311, %323 : vector<16x32xf32>
    %cst_123 = arith.constant 9.99999974E-6 : f32
    %325 = vector.broadcast %cst_123 : f32 to vector<16x1xf32>
    %326 = arith.addf %322, %325 : vector<16x1xf32>
    %327 = math.rsqrt %326 : vector<16x1xf32>
    %328 = vector.broadcast %327 : vector<16x1xf32> to vector<16x32xf32>
    %329 = arith.mulf %324, %328 : vector<16x32xf32>
    %330 = vector.broadcast %33 : vector<1x32xf32> to vector<16x32xf32>
    %331 = arith.mulf %329, %330 : vector<16x32xf32>
    %332 = vector.broadcast %34 : vector<1x32xf32> to vector<16x32xf32>
    %333 = arith.addf %331, %332 : vector<16x32xf32>
    %cst_124 = arith.constant dense<0.000000e+00> : vector<16x32xf32>
    %334 = tpu.matmul %333, %35, %cst_124 {dimension_numbers = #tpu.dot_dimension_numbers<[1], [0], [0], [1], [0, 0, 1, 1], [], []>} : vector<16x32xf32>, vector<32x32xf32>, vector<16x32xf32> -> vector<16x32xf32>
    %335 = vector.broadcast %36 : vector<1x32xf32> to vector<16x32xf32>
    %336 = arith.addf %334, %335 : vector<16x32xf32>
    %cst_125 = arith.constant dense<0.000000e+00> : vector<32x64xf32>
    %337 = tpu.matmul %28, %37, %cst_125 {dimension_numbers = #tpu.dot_dimension_numbers<[1], [0], [0], [1], [0, 0, 1, 1], [], []>} : vector<32x32xf32>, vector<32x64xf32>, vector<32x64xf32> -> vector<32x64xf32>
    %338 = vector.broadcast %38 : vector<1x64xf32> to vector<32x64xf32>
    %339 = arith.addf %337, %338 : vector<32x64xf32>
    %340 = vector.extract_strided_slice %339 {offsets = [0, 0], sizes = [32, 32], strides = [1, 1]} : vector<32x64xf32> to vector<32x32xf32>
    %341 = vector.extract_strided_slice %339 {offsets = [0, 32], sizes = [32, 32], strides = [1, 1]} : vector<32x64xf32> to vector<32x32xf32>
    %342 = vector.extract_strided_slice %336 {offsets = [0, 0], sizes = [16, 8], strides = [1, 1]} : vector<16x32xf32> to vector<16x8xf32>
    %343 = vector.extract_strided_slice %340 {offsets = [0, 0], sizes = [32, 8], strides = [1, 1]} : vector<32x32xf32> to vector<32x8xf32>
    "tpu.trace_start"() <{level = 10 : i32, message = "qd,kd->qk"}> : () -> ()
    %cst_126 = arith.constant dense<0.000000e+00> : vector<16x32xf32>
    %344 = tpu.matmul %342, %343, %cst_126 {dimension_numbers = #tpu.dot_dimension_numbers<[1], [1], [0], [0], [0, 0, 1, 0], [], []>} : vector<16x8xf32>, vector<32x8xf32>, vector<16x32xf32> -> vector<16x32xf32>
    "tpu.trace_stop"() : () -> ()
    %345 = arith.addf %344, %4 : vector<16x32xf32>
    %346 = vector.extract_strided_slice %340 {offsets = [0, 8], sizes = [32, 8], strides = [1, 1]} : vector<32x32xf32> to vector<32x8xf32>
    "tpu.trace_start"() <{level = 10 : i32, message = "qd,kd->qk"}> : () -> ()
    %cst_127 = arith.constant dense<0.000000e+00> : vector<16x32xf32>
    %347 = tpu.matmul %342, %346, %cst_127 {dimension_numbers = #tpu.dot_dimension_numbers<[1], [1], [0], [0], [0, 0, 1, 0], [], []>} : vector<16x8xf32>, vector<32x8xf32>, vector<16x32xf32> -> vector<16x32xf32>
    "tpu.trace_stop"() : () -> ()
    %348 = arith.addf %347, %4 : vector<16x32xf32>
    %349 = vector.extract_strided_slice %340 {offsets = [0, 16], sizes = [32, 8], strides = [1, 1]} : vector<32x32xf32> to vector<32x8xf32>
    "tpu.trace_start"() <{level = 10 : i32, message = "qd,kd->qk"}> : () -> ()
    %cst_128 = arith.constant dense<0.000000e+00> : vector<16x32xf32>
    %350 = tpu.matmul %342, %349, %cst_128 {dimension_numbers = #tpu.dot_dimension_numbers<[1], [1], [0], [0], [0, 0, 1, 0], [], []>} : vector<16x8xf32>, vector<32x8xf32>, vector<16x32xf32> -> vector<16x32xf32>
    "tpu.trace_stop"() : () -> ()
    %351 = arith.addf %350, %4 : vector<16x32xf32>
    %352 = vector.extract_strided_slice %340 {offsets = [0, 24], sizes = [32, 8], strides = [1, 1]} : vector<32x32xf32> to vector<32x8xf32>
    "tpu.trace_start"() <{level = 10 : i32, message = "qd,kd->qk"}> : () -> ()
    %cst_129 = arith.constant dense<0.000000e+00> : vector<16x32xf32>
    %353 = tpu.matmul %342, %352, %cst_129 {dimension_numbers = #tpu.dot_dimension_numbers<[1], [1], [0], [0], [0, 0, 1, 0], [], []>} : vector<16x8xf32>, vector<32x8xf32>, vector<16x32xf32> -> vector<16x32xf32>
    "tpu.trace_stop"() : () -> ()
    %354 = arith.addf %353, %4 : vector<16x32xf32>
    %355 = arith.maximumf %345, %348 : vector<16x32xf32>
    %356 = arith.maximumf %355, %351 : vector<16x32xf32>
    %357 = arith.maximumf %356, %354 : vector<16x32xf32>
    %cst_130 = arith.constant dense<0xFF800000> : vector<16xf32>
    %358 = vector.multi_reduction <maximumf>, %357, %cst_130 [1] : vector<16x32xf32> to vector<16xf32>
    %359 = vector.shape_cast %358 : vector<16xf32> to vector<16x1xf32>
    %360 = vector.broadcast %359 : vector<16x1xf32> to vector<16x32xf32>
    %361 = arith.subf %345, %360 : vector<16x32xf32>
    %362 = math.exp %361 : vector<16x32xf32>
    %363 = vector.broadcast %359 : vector<16x1xf32> to vector<16x32xf32>
    %364 = arith.subf %348, %363 : vector<16x32xf32>
    %365 = math.exp %364 : vector<16x32xf32>
    %366 = vector.broadcast %359 : vector<16x1xf32> to vector<16x32xf32>
    %367 = arith.subf %351, %366 : vector<16x32xf32>
    %368 = math.exp %367 : vector<16x32xf32>
    %369 = vector.broadcast %359 : vector<16x1xf32> to vector<16x32xf32>
    %370 = arith.subf %354, %369 : vector<16x32xf32>
    %371 = math.exp %370 : vector<16x32xf32>
    %cst_131 = arith.constant dense<0.000000e+00> : vector<16xf32>
    %372 = vector.multi_reduction <add>, %362, %cst_131 [1] : vector<16x32xf32> to vector<16xf32>
    %373 = vector.shape_cast %372 : vector<16xf32> to vector<16x1xf32>
    %cst_132 = arith.constant dense<0.000000e+00> : vector<16xf32>
    %374 = vector.multi_reduction <add>, %365, %cst_132 [1] : vector<16x32xf32> to vector<16xf32>
    %375 = vector.shape_cast %374 : vector<16xf32> to vector<16x1xf32>
    %376 = arith.addf %373, %375 : vector<16x1xf32>
    %cst_133 = arith.constant dense<0.000000e+00> : vector<16xf32>
    %377 = vector.multi_reduction <add>, %368, %cst_133 [1] : vector<16x32xf32> to vector<16xf32>
    %378 = vector.shape_cast %377 : vector<16xf32> to vector<16x1xf32>
    %379 = arith.addf %376, %378 : vector<16x1xf32>
    %cst_134 = arith.constant dense<0.000000e+00> : vector<16xf32>
    %380 = vector.multi_reduction <add>, %371, %cst_134 [1] : vector<16x32xf32> to vector<16xf32>
    %381 = vector.shape_cast %380 : vector<16xf32> to vector<16x1xf32>
    %382 = arith.addf %379, %381 : vector<16x1xf32>
    %383 = tpu.reciprocal %382 : vector<16x1xf32> -> vector<16x1xf32>
    %384 = vector.extract_strided_slice %341 {offsets = [0, 0], sizes = [32, 8], strides = [1, 1]} : vector<32x32xf32> to vector<32x8xf32>
    %cst_135 = arith.constant dense<0.000000e+00> : vector<16x8xf32>
    %385 = tpu.matmul %362, %384, %cst_135 {dimension_numbers = #tpu.dot_dimension_numbers<[1], [0], [0], [1], [0, 0, 1, 1], [], []>} : vector<16x32xf32>, vector<32x8xf32>, vector<16x8xf32> -> vector<16x8xf32>
    %386 = vector.extract_strided_slice %341 {offsets = [0, 8], sizes = [32, 8], strides = [1, 1]} : vector<32x32xf32> to vector<32x8xf32>
    %cst_136 = arith.constant dense<0.000000e+00> : vector<16x8xf32>
    %387 = tpu.matmul %365, %386, %cst_136 {dimension_numbers = #tpu.dot_dimension_numbers<[1], [0], [0], [1], [0, 0, 1, 1], [], []>} : vector<16x32xf32>, vector<32x8xf32>, vector<16x8xf32> -> vector<16x8xf32>
    %388 = arith.addf %385, %387 : vector<16x8xf32>
    %389 = vector.extract_strided_slice %341 {offsets = [0, 16], sizes = [32, 8], strides = [1, 1]} : vector<32x32xf32> to vector<32x8xf32>
    %cst_137 = arith.constant dense<0.000000e+00> : vector<16x8xf32>
    %390 = tpu.matmul %368, %389, %cst_137 {dimension_numbers = #tpu.dot_dimension_numbers<[1], [0], [0], [1], [0, 0, 1, 1], [], []>} : vector<16x32xf32>, vector<32x8xf32>, vector<16x8xf32> -> vector<16x8xf32>
    %391 = arith.addf %388, %390 : vector<16x8xf32>
    %392 = vector.extract_strided_slice %341 {offsets = [0, 24], sizes = [32, 8], strides = [1, 1]} : vector<32x32xf32> to vector<32x8xf32>
    %cst_138 = arith.constant dense<0.000000e+00> : vector<16x8xf32>
    %393 = tpu.matmul %371, %392, %cst_138 {dimension_numbers = #tpu.dot_dimension_numbers<[1], [0], [0], [1], [0, 0, 1, 1], [], []>} : vector<16x32xf32>, vector<32x8xf32>, vector<16x8xf32> -> vector<16x8xf32>
    %394 = arith.addf %391, %393 : vector<16x8xf32>
    %395 = vector.broadcast %383 : vector<16x1xf32> to vector<16x8xf32>
    %396 = arith.mulf %394, %395 : vector<16x8xf32>
    %397 = vector.extract_strided_slice %39 {offsets = [0, 0], sizes = [8, 32], strides = [1, 1]} : vector<32x32xf32> to vector<8x32xf32>
    %cst_139 = arith.constant dense<0.000000e+00> : vector<16x32xf32>
    %398 = tpu.matmul %396, %397, %cst_139 {dimension_numbers = #tpu.dot_dimension_numbers<[1], [0], [0], [1], [0, 0, 1, 1], [], []>} : vector<16x8xf32>, vector<8x32xf32>, vector<16x32xf32> -> vector<16x32xf32>
    %399 = vector.extract_strided_slice %336 {offsets = [0, 8], sizes = [16, 8], strides = [1, 1]} : vector<16x32xf32> to vector<16x8xf32>
    %400 = vector.extract_strided_slice %340 {offsets = [0, 0], sizes = [32, 8], strides = [1, 1]} : vector<32x32xf32> to vector<32x8xf32>
    "tpu.trace_start"() <{level = 10 : i32, message = "qd,kd->qk"}> : () -> ()
    %cst_140 = arith.constant dense<0.000000e+00> : vector<16x32xf32>
    %401 = tpu.matmul %399, %400, %cst_140 {dimension_numbers = #tpu.dot_dimension_numbers<[1], [1], [0], [0], [0, 0, 1, 0], [], []>} : vector<16x8xf32>, vector<32x8xf32>, vector<16x32xf32> -> vector<16x32xf32>
    "tpu.trace_stop"() : () -> ()
    %402 = arith.addf %401, %4 : vector<16x32xf32>
    %403 = vector.extract_strided_slice %340 {offsets = [0, 8], sizes = [32, 8], strides = [1, 1]} : vector<32x32xf32> to vector<32x8xf32>
    "tpu.trace_start"() <{level = 10 : i32, message = "qd,kd->qk"}> : () -> ()
    %cst_141 = arith.constant dense<0.000000e+00> : vector<16x32xf32>
    %404 = tpu.matmul %399, %403, %cst_141 {dimension_numbers = #tpu.dot_dimension_numbers<[1], [1], [0], [0], [0, 0, 1, 0], [], []>} : vector<16x8xf32>, vector<32x8xf32>, vector<16x32xf32> -> vector<16x32xf32>
    "tpu.trace_stop"() : () -> ()
    %405 = arith.addf %404, %4 : vector<16x32xf32>
    %406 = vector.extract_strided_slice %340 {offsets = [0, 16], sizes = [32, 8], strides = [1, 1]} : vector<32x32xf32> to vector<32x8xf32>
    "tpu.trace_start"() <{level = 10 : i32, message = "qd,kd->qk"}> : () -> ()
    %cst_142 = arith.constant dense<0.000000e+00> : vector<16x32xf32>
    %407 = tpu.matmul %399, %406, %cst_142 {dimension_numbers = #tpu.dot_dimension_numbers<[1], [1], [0], [0], [0, 0, 1, 0], [], []>} : vector<16x8xf32>, vector<32x8xf32>, vector<16x32xf32> -> vector<16x32xf32>
    "tpu.trace_stop"() : () -> ()
    %408 = arith.addf %407, %4 : vector<16x32xf32>
    %409 = vector.extract_strided_slice %340 {offsets = [0, 24], sizes = [32, 8], strides = [1, 1]} : vector<32x32xf32> to vector<32x8xf32>
    "tpu.trace_start"() <{level = 10 : i32, message = "qd,kd->qk"}> : () -> ()
    %cst_143 = arith.constant dense<0.000000e+00> : vector<16x32xf32>
    %410 = tpu.matmul %399, %409, %cst_143 {dimension_numbers = #tpu.dot_dimension_numbers<[1], [1], [0], [0], [0, 0, 1, 0], [], []>} : vector<16x8xf32>, vector<32x8xf32>, vector<16x32xf32> -> vector<16x32xf32>
    "tpu.trace_stop"() : () -> ()
    %411 = arith.addf %410, %4 : vector<16x32xf32>
    %412 = arith.maximumf %402, %405 : vector<16x32xf32>
    %413 = arith.maximumf %412, %408 : vector<16x32xf32>
    %414 = arith.maximumf %413, %411 : vector<16x32xf32>
    %cst_144 = arith.constant dense<0xFF800000> : vector<16xf32>
    %415 = vector.multi_reduction <maximumf>, %414, %cst_144 [1] : vector<16x32xf32> to vector<16xf32>
    %416 = vector.shape_cast %415 : vector<16xf32> to vector<16x1xf32>
    %417 = vector.broadcast %416 : vector<16x1xf32> to vector<16x32xf32>
    %418 = arith.subf %402, %417 : vector<16x32xf32>
    %419 = math.exp %418 : vector<16x32xf32>
    %420 = vector.broadcast %416 : vector<16x1xf32> to vector<16x32xf32>
    %421 = arith.subf %405, %420 : vector<16x32xf32>
    %422 = math.exp %421 : vector<16x32xf32>
    %423 = vector.broadcast %416 : vector<16x1xf32> to vector<16x32xf32>
    %424 = arith.subf %408, %423 : vector<16x32xf32>
    %425 = math.exp %424 : vector<16x32xf32>
    %426 = vector.broadcast %416 : vector<16x1xf32> to vector<16x32xf32>
    %427 = arith.subf %411, %426 : vector<16x32xf32>
    %428 = math.exp %427 : vector<16x32xf32>
    %cst_145 = arith.constant dense<0.000000e+00> : vector<16xf32>
    %429 = vector.multi_reduction <add>, %419, %cst_145 [1] : vector<16x32xf32> to vector<16xf32>
    %430 = vector.shape_cast %429 : vector<16xf32> to vector<16x1xf32>
    %cst_146 = arith.constant dense<0.000000e+00> : vector<16xf32>
    %431 = vector.multi_reduction <add>, %422, %cst_146 [1] : vector<16x32xf32> to vector<16xf32>
    %432 = vector.shape_cast %431 : vector<16xf32> to vector<16x1xf32>
    %433 = arith.addf %430, %432 : vector<16x1xf32>
    %cst_147 = arith.constant dense<0.000000e+00> : vector<16xf32>
    %434 = vector.multi_reduction <add>, %425, %cst_147 [1] : vector<16x32xf32> to vector<16xf32>
    %435 = vector.shape_cast %434 : vector<16xf32> to vector<16x1xf32>
    %436 = arith.addf %433, %435 : vector<16x1xf32>
    %cst_148 = arith.constant dense<0.000000e+00> : vector<16xf32>
    %437 = vector.multi_reduction <add>, %428, %cst_148 [1] : vector<16x32xf32> to vector<16xf32>
    %438 = vector.shape_cast %437 : vector<16xf32> to vector<16x1xf32>
    %439 = arith.addf %436, %438 : vector<16x1xf32>
    %440 = tpu.reciprocal %439 : vector<16x1xf32> -> vector<16x1xf32>
    %441 = vector.extract_strided_slice %341 {offsets = [0, 0], sizes = [32, 8], strides = [1, 1]} : vector<32x32xf32> to vector<32x8xf32>
    %cst_149 = arith.constant dense<0.000000e+00> : vector<16x8xf32>
    %442 = tpu.matmul %419, %441, %cst_149 {dimension_numbers = #tpu.dot_dimension_numbers<[1], [0], [0], [1], [0, 0, 1, 1], [], []>} : vector<16x32xf32>, vector<32x8xf32>, vector<16x8xf32> -> vector<16x8xf32>
    %443 = vector.extract_strided_slice %341 {offsets = [0, 8], sizes = [32, 8], strides = [1, 1]} : vector<32x32xf32> to vector<32x8xf32>
    %cst_150 = arith.constant dense<0.000000e+00> : vector<16x8xf32>
    %444 = tpu.matmul %422, %443, %cst_150 {dimension_numbers = #tpu.dot_dimension_numbers<[1], [0], [0], [1], [0, 0, 1, 1], [], []>} : vector<16x32xf32>, vector<32x8xf32>, vector<16x8xf32> -> vector<16x8xf32>
    %445 = arith.addf %442, %444 : vector<16x8xf32>
    %446 = vector.extract_strided_slice %341 {offsets = [0, 16], sizes = [32, 8], strides = [1, 1]} : vector<32x32xf32> to vector<32x8xf32>
    %cst_151 = arith.constant dense<0.000000e+00> : vector<16x8xf32>
    %447 = tpu.matmul %425, %446, %cst_151 {dimension_numbers = #tpu.dot_dimension_numbers<[1], [0], [0], [1], [0, 0, 1, 1], [], []>} : vector<16x32xf32>, vector<32x8xf32>, vector<16x8xf32> -> vector<16x8xf32>
    %448 = arith.addf %445, %447 : vector<16x8xf32>
    %449 = vector.extract_strided_slice %341 {offsets = [0, 24], sizes = [32, 8], strides = [1, 1]} : vector<32x32xf32> to vector<32x8xf32>
    %cst_152 = arith.constant dense<0.000000e+00> : vector<16x8xf32>
    %450 = tpu.matmul %428, %449, %cst_152 {dimension_numbers = #tpu.dot_dimension_numbers<[1], [0], [0], [1], [0, 0, 1, 1], [], []>} : vector<16x32xf32>, vector<32x8xf32>, vector<16x8xf32> -> vector<16x8xf32>
    %451 = arith.addf %448, %450 : vector<16x8xf32>
    %452 = vector.broadcast %440 : vector<16x1xf32> to vector<16x8xf32>
    %453 = arith.mulf %451, %452 : vector<16x8xf32>
    %454 = vector.extract_strided_slice %39 {offsets = [8, 0], sizes = [8, 32], strides = [1, 1]} : vector<32x32xf32> to vector<8x32xf32>
    %cst_153 = arith.constant dense<0.000000e+00> : vector<16x32xf32>
    %455 = tpu.matmul %453, %454, %cst_153 {dimension_numbers = #tpu.dot_dimension_numbers<[1], [0], [0], [1], [0, 0, 1, 1], [], []>} : vector<16x8xf32>, vector<8x32xf32>, vector<16x32xf32> -> vector<16x32xf32>
    %456 = arith.addf %398, %455 : vector<16x32xf32>
    %457 = vector.extract_strided_slice %336 {offsets = [0, 16], sizes = [16, 8], strides = [1, 1]} : vector<16x32xf32> to vector<16x8xf32>
    %458 = vector.extract_strided_slice %340 {offsets = [0, 0], sizes = [32, 8], strides = [1, 1]} : vector<32x32xf32> to vector<32x8xf32>
    "tpu.trace_start"() <{level = 10 : i32, message = "qd,kd->qk"}> : () -> ()
    %cst_154 = arith.constant dense<0.000000e+00> : vector<16x32xf32>
    %459 = tpu.matmul %457, %458, %cst_154 {dimension_numbers = #tpu.dot_dimension_numbers<[1], [1], [0], [0], [0, 0, 1, 0], [], []>} : vector<16x8xf32>, vector<32x8xf32>, vector<16x32xf32> -> vector<16x32xf32>
    "tpu.trace_stop"() : () -> ()
    %460 = arith.addf %459, %4 : vector<16x32xf32>
    %461 = vector.extract_strided_slice %340 {offsets = [0, 8], sizes = [32, 8], strides = [1, 1]} : vector<32x32xf32> to vector<32x8xf32>
    "tpu.trace_start"() <{level = 10 : i32, message = "qd,kd->qk"}> : () -> ()
    %cst_155 = arith.constant dense<0.000000e+00> : vector<16x32xf32>
    %462 = tpu.matmul %457, %461, %cst_155 {dimension_numbers = #tpu.dot_dimension_numbers<[1], [1], [0], [0], [0, 0, 1, 0], [], []>} : vector<16x8xf32>, vector<32x8xf32>, vector<16x32xf32> -> vector<16x32xf32>
    "tpu.trace_stop"() : () -> ()
    %463 = arith.addf %462, %4 : vector<16x32xf32>
    %464 = vector.extract_strided_slice %340 {offsets = [0, 16], sizes = [32, 8], strides = [1, 1]} : vector<32x32xf32> to vector<32x8xf32>
    "tpu.trace_start"() <{level = 10 : i32, message = "qd,kd->qk"}> : () -> ()
    %cst_156 = arith.constant dense<0.000000e+00> : vector<16x32xf32>
    %465 = tpu.matmul %457, %464, %cst_156 {dimension_numbers = #tpu.dot_dimension_numbers<[1], [1], [0], [0], [0, 0, 1, 0], [], []>} : vector<16x8xf32>, vector<32x8xf32>, vector<16x32xf32> -> vector<16x32xf32>
    "tpu.trace_stop"() : () -> ()
    %466 = arith.addf %465, %4 : vector<16x32xf32>
    %467 = vector.extract_strided_slice %340 {offsets = [0, 24], sizes = [32, 8], strides = [1, 1]} : vector<32x32xf32> to vector<32x8xf32>
    "tpu.trace_start"() <{level = 10 : i32, message = "qd,kd->qk"}> : () -> ()
    %cst_157 = arith.constant dense<0.000000e+00> : vector<16x32xf32>
    %468 = tpu.matmul %457, %467, %cst_157 {dimension_numbers = #tpu.dot_dimension_numbers<[1], [1], [0], [0], [0, 0, 1, 0], [], []>} : vector<16x8xf32>, vector<32x8xf32>, vector<16x32xf32> -> vector<16x32xf32>
    "tpu.trace_stop"() : () -> ()
    %469 = arith.addf %468, %4 : vector<16x32xf32>
    %470 = arith.maximumf %460, %463 : vector<16x32xf32>
    %471 = arith.maximumf %470, %466 : vector<16x32xf32>
    %472 = arith.maximumf %471, %469 : vector<16x32xf32>
    %cst_158 = arith.constant dense<0xFF800000> : vector<16xf32>
    %473 = vector.multi_reduction <maximumf>, %472, %cst_158 [1] : vector<16x32xf32> to vector<16xf32>
    %474 = vector.shape_cast %473 : vector<16xf32> to vector<16x1xf32>
    %475 = vector.broadcast %474 : vector<16x1xf32> to vector<16x32xf32>
    %476 = arith.subf %460, %475 : vector<16x32xf32>
    %477 = math.exp %476 : vector<16x32xf32>
    %478 = vector.broadcast %474 : vector<16x1xf32> to vector<16x32xf32>
    %479 = arith.subf %463, %478 : vector<16x32xf32>
    %480 = math.exp %479 : vector<16x32xf32>
    %481 = vector.broadcast %474 : vector<16x1xf32> to vector<16x32xf32>
    %482 = arith.subf %466, %481 : vector<16x32xf32>
    %483 = math.exp %482 : vector<16x32xf32>
    %484 = vector.broadcast %474 : vector<16x1xf32> to vector<16x32xf32>
    %485 = arith.subf %469, %484 : vector<16x32xf32>
    %486 = math.exp %485 : vector<16x32xf32>
    %cst_159 = arith.constant dense<0.000000e+00> : vector<16xf32>
    %487 = vector.multi_reduction <add>, %477, %cst_159 [1] : vector<16x32xf32> to vector<16xf32>
    %488 = vector.shape_cast %487 : vector<16xf32> to vector<16x1xf32>
    %cst_160 = arith.constant dense<0.000000e+00> : vector<16xf32>
    %489 = vector.multi_reduction <add>, %480, %cst_160 [1] : vector<16x32xf32> to vector<16xf32>
    %490 = vector.shape_cast %489 : vector<16xf32> to vector<16x1xf32>
    %491 = arith.addf %488, %490 : vector<16x1xf32>
    %cst_161 = arith.constant dense<0.000000e+00> : vector<16xf32>
    %492 = vector.multi_reduction <add>, %483, %cst_161 [1] : vector<16x32xf32> to vector<16xf32>
    %493 = vector.shape_cast %492 : vector<16xf32> to vector<16x1xf32>
    %494 = arith.addf %491, %493 : vector<16x1xf32>
    %cst_162 = arith.constant dense<0.000000e+00> : vector<16xf32>
    %495 = vector.multi_reduction <add>, %486, %cst_162 [1] : vector<16x32xf32> to vector<16xf32>
    %496 = vector.shape_cast %495 : vector<16xf32> to vector<16x1xf32>
    %497 = arith.addf %494, %496 : vector<16x1xf32>
    %498 = tpu.reciprocal %497 : vector<16x1xf32> -> vector<16x1xf32>
    %499 = vector.extract_strided_slice %341 {offsets = [0, 0], sizes = [32, 8], strides = [1, 1]} : vector<32x32xf32> to vector<32x8xf32>
    %cst_163 = arith.constant dense<0.000000e+00> : vector<16x8xf32>
    %500 = tpu.matmul %477, %499, %cst_163 {dimension_numbers = #tpu.dot_dimension_numbers<[1], [0], [0], [1], [0, 0, 1, 1], [], []>} : vector<16x32xf32>, vector<32x8xf32>, vector<16x8xf32> -> vector<16x8xf32>
    %501 = vector.extract_strided_slice %341 {offsets = [0, 8], sizes = [32, 8], strides = [1, 1]} : vector<32x32xf32> to vector<32x8xf32>
    %cst_164 = arith.constant dense<0.000000e+00> : vector<16x8xf32>
    %502 = tpu.matmul %480, %501, %cst_164 {dimension_numbers = #tpu.dot_dimension_numbers<[1], [0], [0], [1], [0, 0, 1, 1], [], []>} : vector<16x32xf32>, vector<32x8xf32>, vector<16x8xf32> -> vector<16x8xf32>
    %503 = arith.addf %500, %502 : vector<16x8xf32>
    %504 = vector.extract_strided_slice %341 {offsets = [0, 16], sizes = [32, 8], strides = [1, 1]} : vector<32x32xf32> to vector<32x8xf32>
    %cst_165 = arith.constant dense<0.000000e+00> : vector<16x8xf32>
    %505 = tpu.matmul %483, %504, %cst_165 {dimension_numbers = #tpu.dot_dimension_numbers<[1], [0], [0], [1], [0, 0, 1, 1], [], []>} : vector<16x32xf32>, vector<32x8xf32>, vector<16x8xf32> -> vector<16x8xf32>
    %506 = arith.addf %503, %505 : vector<16x8xf32>
    %507 = vector.extract_strided_slice %341 {offsets = [0, 24], sizes = [32, 8], strides = [1, 1]} : vector<32x32xf32> to vector<32x8xf32>
    %cst_166 = arith.constant dense<0.000000e+00> : vector<16x8xf32>
    %508 = tpu.matmul %486, %507, %cst_166 {dimension_numbers = #tpu.dot_dimension_numbers<[1], [0], [0], [1], [0, 0, 1, 1], [], []>} : vector<16x32xf32>, vector<32x8xf32>, vector<16x8xf32> -> vector<16x8xf32>
    %509 = arith.addf %506, %508 : vector<16x8xf32>
    %510 = vector.broadcast %498 : vector<16x1xf32> to vector<16x8xf32>
    %511 = arith.mulf %509, %510 : vector<16x8xf32>
    %512 = vector.extract_strided_slice %39 {offsets = [16, 0], sizes = [8, 32], strides = [1, 1]} : vector<32x32xf32> to vector<8x32xf32>
    %cst_167 = arith.constant dense<0.000000e+00> : vector<16x32xf32>
    %513 = tpu.matmul %511, %512, %cst_167 {dimension_numbers = #tpu.dot_dimension_numbers<[1], [0], [0], [1], [0, 0, 1, 1], [], []>} : vector<16x8xf32>, vector<8x32xf32>, vector<16x32xf32> -> vector<16x32xf32>
    %514 = arith.addf %456, %513 : vector<16x32xf32>
    %515 = vector.extract_strided_slice %336 {offsets = [0, 24], sizes = [16, 8], strides = [1, 1]} : vector<16x32xf32> to vector<16x8xf32>
    %516 = vector.extract_strided_slice %340 {offsets = [0, 0], sizes = [32, 8], strides = [1, 1]} : vector<32x32xf32> to vector<32x8xf32>
    "tpu.trace_start"() <{level = 10 : i32, message = "qd,kd->qk"}> : () -> ()
    %cst_168 = arith.constant dense<0.000000e+00> : vector<16x32xf32>
    %517 = tpu.matmul %515, %516, %cst_168 {dimension_numbers = #tpu.dot_dimension_numbers<[1], [1], [0], [0], [0, 0, 1, 0], [], []>} : vector<16x8xf32>, vector<32x8xf32>, vector<16x32xf32> -> vector<16x32xf32>
    "tpu.trace_stop"() : () -> ()
    %518 = arith.addf %517, %4 : vector<16x32xf32>
    %519 = vector.extract_strided_slice %340 {offsets = [0, 8], sizes = [32, 8], strides = [1, 1]} : vector<32x32xf32> to vector<32x8xf32>
    "tpu.trace_start"() <{level = 10 : i32, message = "qd,kd->qk"}> : () -> ()
    %cst_169 = arith.constant dense<0.000000e+00> : vector<16x32xf32>
    %520 = tpu.matmul %515, %519, %cst_169 {dimension_numbers = #tpu.dot_dimension_numbers<[1], [1], [0], [0], [0, 0, 1, 0], [], []>} : vector<16x8xf32>, vector<32x8xf32>, vector<16x32xf32> -> vector<16x32xf32>
    "tpu.trace_stop"() : () -> ()
    %521 = arith.addf %520, %4 : vector<16x32xf32>
    %522 = vector.extract_strided_slice %340 {offsets = [0, 16], sizes = [32, 8], strides = [1, 1]} : vector<32x32xf32> to vector<32x8xf32>
    "tpu.trace_start"() <{level = 10 : i32, message = "qd,kd->qk"}> : () -> ()
    %cst_170 = arith.constant dense<0.000000e+00> : vector<16x32xf32>
    %523 = tpu.matmul %515, %522, %cst_170 {dimension_numbers = #tpu.dot_dimension_numbers<[1], [1], [0], [0], [0, 0, 1, 0], [], []>} : vector<16x8xf32>, vector<32x8xf32>, vector<16x32xf32> -> vector<16x32xf32>
    "tpu.trace_stop"() : () -> ()
    %524 = arith.addf %523, %4 : vector<16x32xf32>
    %525 = vector.extract_strided_slice %340 {offsets = [0, 24], sizes = [32, 8], strides = [1, 1]} : vector<32x32xf32> to vector<32x8xf32>
    "tpu.trace_start"() <{level = 10 : i32, message = "qd,kd->qk"}> : () -> ()
    %cst_171 = arith.constant dense<0.000000e+00> : vector<16x32xf32>
    %526 = tpu.matmul %515, %525, %cst_171 {dimension_numbers = #tpu.dot_dimension_numbers<[1], [1], [0], [0], [0, 0, 1, 0], [], []>} : vector<16x8xf32>, vector<32x8xf32>, vector<16x32xf32> -> vector<16x32xf32>
    "tpu.trace_stop"() : () -> ()
    %527 = arith.addf %526, %4 : vector<16x32xf32>
    %528 = arith.maximumf %518, %521 : vector<16x32xf32>
    %529 = arith.maximumf %528, %524 : vector<16x32xf32>
    %530 = arith.maximumf %529, %527 : vector<16x32xf32>
    %cst_172 = arith.constant dense<0xFF800000> : vector<16xf32>
    %531 = vector.multi_reduction <maximumf>, %530, %cst_172 [1] : vector<16x32xf32> to vector<16xf32>
    %532 = vector.shape_cast %531 : vector<16xf32> to vector<16x1xf32>
    %533 = vector.broadcast %532 : vector<16x1xf32> to vector<16x32xf32>
    %534 = arith.subf %518, %533 : vector<16x32xf32>
    %535 = math.exp %534 : vector<16x32xf32>
    %536 = vector.broadcast %532 : vector<16x1xf32> to vector<16x32xf32>
    %537 = arith.subf %521, %536 : vector<16x32xf32>
    %538 = math.exp %537 : vector<16x32xf32>
    %539 = vector.broadcast %532 : vector<16x1xf32> to vector<16x32xf32>
    %540 = arith.subf %524, %539 : vector<16x32xf32>
    %541 = math.exp %540 : vector<16x32xf32>
    %542 = vector.broadcast %532 : vector<16x1xf32> to vector<16x32xf32>
    %543 = arith.subf %527, %542 : vector<16x32xf32>
    %544 = math.exp %543 : vector<16x32xf32>
    %cst_173 = arith.constant dense<0.000000e+00> : vector<16xf32>
    %545 = vector.multi_reduction <add>, %535, %cst_173 [1] : vector<16x32xf32> to vector<16xf32>
    %546 = vector.shape_cast %545 : vector<16xf32> to vector<16x1xf32>
    %cst_174 = arith.constant dense<0.000000e+00> : vector<16xf32>
    %547 = vector.multi_reduction <add>, %538, %cst_174 [1] : vector<16x32xf32> to vector<16xf32>
    %548 = vector.shape_cast %547 : vector<16xf32> to vector<16x1xf32>
    %549 = arith.addf %546, %548 : vector<16x1xf32>
    %cst_175 = arith.constant dense<0.000000e+00> : vector<16xf32>
    %550 = vector.multi_reduction <add>, %541, %cst_175 [1] : vector<16x32xf32> to vector<16xf32>
    %551 = vector.shape_cast %550 : vector<16xf32> to vector<16x1xf32>
    %552 = arith.addf %549, %551 : vector<16x1xf32>
    %cst_176 = arith.constant dense<0.000000e+00> : vector<16xf32>
    %553 = vector.multi_reduction <add>, %544, %cst_176 [1] : vector<16x32xf32> to vector<16xf32>
    %554 = vector.shape_cast %553 : vector<16xf32> to vector<16x1xf32>
    %555 = arith.addf %552, %554 : vector<16x1xf32>
    %556 = tpu.reciprocal %555 : vector<16x1xf32> -> vector<16x1xf32>
    %557 = vector.extract_strided_slice %341 {offsets = [0, 0], sizes = [32, 8], strides = [1, 1]} : vector<32x32xf32> to vector<32x8xf32>
    %cst_177 = arith.constant dense<0.000000e+00> : vector<16x8xf32>
    %558 = tpu.matmul %535, %557, %cst_177 {dimension_numbers = #tpu.dot_dimension_numbers<[1], [0], [0], [1], [0, 0, 1, 1], [], []>} : vector<16x32xf32>, vector<32x8xf32>, vector<16x8xf32> -> vector<16x8xf32>
    %559 = vector.extract_strided_slice %341 {offsets = [0, 8], sizes = [32, 8], strides = [1, 1]} : vector<32x32xf32> to vector<32x8xf32>
    %cst_178 = arith.constant dense<0.000000e+00> : vector<16x8xf32>
    %560 = tpu.matmul %538, %559, %cst_178 {dimension_numbers = #tpu.dot_dimension_numbers<[1], [0], [0], [1], [0, 0, 1, 1], [], []>} : vector<16x32xf32>, vector<32x8xf32>, vector<16x8xf32> -> vector<16x8xf32>
    %561 = arith.addf %558, %560 : vector<16x8xf32>
    %562 = vector.extract_strided_slice %341 {offsets = [0, 16], sizes = [32, 8], strides = [1, 1]} : vector<32x32xf32> to vector<32x8xf32>
    %cst_179 = arith.constant dense<0.000000e+00> : vector<16x8xf32>
    %563 = tpu.matmul %541, %562, %cst_179 {dimension_numbers = #tpu.dot_dimension_numbers<[1], [0], [0], [1], [0, 0, 1, 1], [], []>} : vector<16x32xf32>, vector<32x8xf32>, vector<16x8xf32> -> vector<16x8xf32>
    %564 = arith.addf %561, %563 : vector<16x8xf32>
    %565 = vector.extract_strided_slice %341 {offsets = [0, 24], sizes = [32, 8], strides = [1, 1]} : vector<32x32xf32> to vector<32x8xf32>
    %cst_180 = arith.constant dense<0.000000e+00> : vector<16x8xf32>
    %566 = tpu.matmul %544, %565, %cst_180 {dimension_numbers = #tpu.dot_dimension_numbers<[1], [0], [0], [1], [0, 0, 1, 1], [], []>} : vector<16x32xf32>, vector<32x8xf32>, vector<16x8xf32> -> vector<16x8xf32>
    %567 = arith.addf %564, %566 : vector<16x8xf32>
    %568 = vector.broadcast %556 : vector<16x1xf32> to vector<16x8xf32>
    %569 = arith.mulf %567, %568 : vector<16x8xf32>
    %570 = vector.extract_strided_slice %39 {offsets = [24, 0], sizes = [8, 32], strides = [1, 1]} : vector<32x32xf32> to vector<8x32xf32>
    %cst_181 = arith.constant dense<0.000000e+00> : vector<16x32xf32>
    %571 = tpu.matmul %569, %570, %cst_181 {dimension_numbers = #tpu.dot_dimension_numbers<[1], [0], [0], [1], [0, 0, 1, 1], [], []>} : vector<16x8xf32>, vector<8x32xf32>, vector<16x32xf32> -> vector<16x32xf32>
    %572 = arith.addf %514, %571 : vector<16x32xf32>
    %573 = vector.broadcast %40 : vector<1x32xf32> to vector<16x32xf32>
    %574 = arith.addf %572, %573 : vector<16x32xf32>
    %575 = arith.addf %333, %574 : vector<16x32xf32>
    %cst_182 = arith.constant dense<0.000000e+00> : vector<16xf32>
    %576 = vector.multi_reduction <add>, %575, %cst_182 [1] : vector<16x32xf32> to vector<16xf32>
    %577 = vector.shape_cast %576 : vector<16xf32> to vector<16x1xf32>
    %cst_183 = arith.constant 3.200000e+01 : f32
    %578 = vector.broadcast %cst_183 : f32 to vector<16x1xf32>
    %579 = arith.divf %577, %578 : vector<16x1xf32>
    %580 = vector.broadcast %579 : vector<16x1xf32> to vector<16x32xf32>
    %581 = arith.subf %575, %580 : vector<16x32xf32>
    %582 = arith.mulf %581, %581 : vector<16x32xf32>
    %cst_184 = arith.constant dense<0.000000e+00> : vector<16xf32>
    %583 = vector.multi_reduction <add>, %582, %cst_184 [1] : vector<16x32xf32> to vector<16xf32>
    %584 = vector.shape_cast %583 : vector<16xf32> to vector<16x1xf32>
    %cst_185 = arith.constant 3.200000e+01 : f32
    %585 = vector.broadcast %cst_185 : f32 to vector<16x1xf32>
    %586 = arith.divf %584, %585 : vector<16x1xf32>
    %587 = vector.broadcast %579 : vector<16x1xf32> to vector<16x32xf32>
    %588 = arith.subf %575, %587 : vector<16x32xf32>
    %cst_186 = arith.constant 9.99999974E-6 : f32
    %589 = vector.broadcast %cst_186 : f32 to vector<16x1xf32>
    %590 = arith.addf %586, %589 : vector<16x1xf32>
    %591 = math.rsqrt %590 : vector<16x1xf32>
    %592 = vector.broadcast %591 : vector<16x1xf32> to vector<16x32xf32>
    %593 = arith.mulf %588, %592 : vector<16x32xf32>
    %594 = vector.broadcast %41 : vector<1x32xf32> to vector<16x32xf32>
    %595 = arith.mulf %593, %594 : vector<16x32xf32>
    %596 = vector.broadcast %42 : vector<1x32xf32> to vector<16x32xf32>
    %597 = arith.addf %595, %596 : vector<16x32xf32>
    %cst_187 = arith.constant dense<0.000000e+00> : vector<16x64xf32>
    %598 = tpu.matmul %597, %43, %cst_187 {dimension_numbers = #tpu.dot_dimension_numbers<[1], [0], [0], [1], [0, 0, 1, 1], [], []>} : vector<16x32xf32>, vector<32x64xf32>, vector<16x64xf32> -> vector<16x64xf32>
    %599 = vector.broadcast %44 : vector<1x64xf32> to vector<16x64xf32>
    %600 = arith.addf %598, %599 : vector<16x64xf32>
    %cst_188 = arith.constant 0.000000e+00 : f32
    %601 = vector.broadcast %cst_188 : f32 to vector<16x64xf32>
    %602 = arith.maximumf %600, %601 : vector<16x64xf32>
    %cst_189 = arith.constant dense<0.000000e+00> : vector<16x32xf32>
    %603 = tpu.matmul %602, %45, %cst_189 {dimension_numbers = #tpu.dot_dimension_numbers<[1], [0], [0], [1], [0, 0, 1, 1], [], []>} : vector<16x64xf32>, vector<64x32xf32>, vector<16x32xf32> -> vector<16x32xf32>
    %604 = vector.broadcast %46 : vector<1x32xf32> to vector<16x32xf32>
    %605 = arith.addf %603, %604 : vector<16x32xf32>
    %606 = arith.addf %597, %605 : vector<16x32xf32>
    %cst_190 = arith.constant dense<0.000000e+00> : vector<16xf32>
    %607 = vector.multi_reduction <add>, %606, %cst_190 [1] : vector<16x32xf32> to vector<16xf32>
    %608 = vector.shape_cast %607 : vector<16xf32> to vector<16x1xf32>
    %cst_191 = arith.constant 3.200000e+01 : f32
    %609 = vector.broadcast %cst_191 : f32 to vector<16x1xf32>
    %610 = arith.divf %608, %609 : vector<16x1xf32>
    %611 = vector.broadcast %610 : vector<16x1xf32> to vector<16x32xf32>
    %612 = arith.subf %606, %611 : vector<16x32xf32>
    %613 = arith.mulf %612, %612 : vector<16x32xf32>
    %cst_192 = arith.constant dense<0.000000e+00> : vector<16xf32>
    %614 = vector.multi_reduction <add>, %613, %cst_192 [1] : vector<16x32xf32> to vector<16xf32>
    %615 = vector.shape_cast %614 : vector<16xf32> to vector<16x1xf32>
    %cst_193 = arith.constant 3.200000e+01 : f32
    %616 = vector.broadcast %cst_193 : f32 to vector<16x1xf32>
    %617 = arith.divf %615, %616 : vector<16x1xf32>
    %618 = vector.broadcast %610 : vector<16x1xf32> to vector<16x32xf32>
    %619 = arith.subf %606, %618 : vector<16x32xf32>
    %cst_194 = arith.constant 9.99999974E-6 : f32
    %620 = vector.broadcast %cst_194 : f32 to vector<16x1xf32>
    %621 = arith.addf %617, %620 : vector<16x1xf32>
    %622 = math.rsqrt %621 : vector<16x1xf32>
    %623 = vector.broadcast %622 : vector<16x1xf32> to vector<16x32xf32>
    %624 = arith.mulf %619, %623 : vector<16x32xf32>
    %625 = vector.broadcast %47 : vector<1x32xf32> to vector<16x32xf32>
    %626 = arith.mulf %624, %625 : vector<16x32xf32>
    %627 = vector.broadcast %48 : vector<1x32xf32> to vector<16x32xf32>
    %628 = arith.addf %626, %627 : vector<16x32xf32>
    %c0_195 = arith.constant 0 : index
    %c0_196 = arith.constant 0 : index
    %629 = vector.load %arg27[%c0_195, %c0_196] : memref<32x96xf32, #tpu.memory_space<vmem>>, vector<32x96xf32>
    %c0_197 = arith.constant 0 : index
    %c0_198 = arith.constant 0 : index
    %630 = vector.load %arg28[%c0_197, %c0_198] : memref<1x96xf32, #tpu.memory_space<vmem>>, vector<1x96xf32>
    %c0_199 = arith.constant 0 : index
    %c0_200 = arith.constant 0 : index
    %631 = vector.load %arg29[%c0_199, %c0_200] : memref<32x32xf32, #tpu.memory_space<vmem>>, vector<32x32xf32>
    %c0_201 = arith.constant 0 : index
    %c0_202 = arith.constant 0 : index
    %632 = vector.load %arg30[%c0_201, %c0_202] : memref<1x32xf32, #tpu.memory_space<vmem>>, vector<1x32xf32>
    %c0_203 = arith.constant 0 : index
    %c0_204 = arith.constant 0 : index
    %633 = vector.load %arg31[%c0_203, %c0_204] : memref<1x32xf32, #tpu.memory_space<vmem>>, vector<1x32xf32>
    %c0_205 = arith.constant 0 : index
    %c0_206 = arith.constant 0 : index
    %634 = vector.load %arg32[%c0_205, %c0_206] : memref<1x32xf32, #tpu.memory_space<vmem>>, vector<1x32xf32>
    %c0_207 = arith.constant 0 : index
    %c0_208 = arith.constant 0 : index
    %635 = vector.load %arg33[%c0_207, %c0_208] : memref<32x32xf32, #tpu.memory_space<vmem>>, vector<32x32xf32>
    %c0_209 = arith.constant 0 : index
    %c0_210 = arith.constant 0 : index
    %636 = vector.load %arg34[%c0_209, %c0_210] : memref<1x32xf32, #tpu.memory_space<vmem>>, vector<1x32xf32>
    %c0_211 = arith.constant 0 : index
    %c0_212 = arith.constant 0 : index
    %637 = vector.load %arg35[%c0_211, %c0_212] : memref<32x64xf32, #tpu.memory_space<vmem>>, vector<32x64xf32>
    %c0_213 = arith.constant 0 : index
    %c0_214 = arith.constant 0 : index
    %638 = vector.load %arg36[%c0_213, %c0_214] : memref<1x64xf32, #tpu.memory_space<vmem>>, vector<1x64xf32>
    %c0_215 = arith.constant 0 : index
    %c0_216 = arith.constant 0 : index
    %639 = vector.load %arg37[%c0_215, %c0_216] : memref<32x32xf32, #tpu.memory_space<vmem>>, vector<32x32xf32>
    %c0_217 = arith.constant 0 : index
    %c0_218 = arith.constant 0 : index
    %640 = vector.load %arg38[%c0_217, %c0_218] : memref<1x32xf32, #tpu.memory_space<vmem>>, vector<1x32xf32>
    %c0_219 = arith.constant 0 : index
    %c0_220 = arith.constant 0 : index
    %641 = vector.load %arg39[%c0_219, %c0_220] : memref<1x32xf32, #tpu.memory_space<vmem>>, vector<1x32xf32>
    %c0_221 = arith.constant 0 : index
    %c0_222 = arith.constant 0 : index
    %642 = vector.load %arg40[%c0_221, %c0_222] : memref<1x32xf32, #tpu.memory_space<vmem>>, vector<1x32xf32>
    %c0_223 = arith.constant 0 : index
    %c0_224 = arith.constant 0 : index
    %643 = vector.load %arg41[%c0_223, %c0_224] : memref<32x64xf32, #tpu.memory_space<vmem>>, vector<32x64xf32>
    %c0_225 = arith.constant 0 : index
    %c0_226 = arith.constant 0 : index
    %644 = vector.load %arg42[%c0_225, %c0_226] : memref<1x64xf32, #tpu.memory_space<vmem>>, vector<1x64xf32>
    %c0_227 = arith.constant 0 : index
    %c0_228 = arith.constant 0 : index
    %645 = vector.load %arg43[%c0_227, %c0_228] : memref<64x32xf32, #tpu.memory_space<vmem>>, vector<64x32xf32>
    %c0_229 = arith.constant 0 : index
    %c0_230 = arith.constant 0 : index
    %646 = vector.load %arg44[%c0_229, %c0_230] : memref<1x32xf32, #tpu.memory_space<vmem>>, vector<1x32xf32>
    %c0_231 = arith.constant 0 : index
    %c0_232 = arith.constant 0 : index
    %647 = vector.load %arg45[%c0_231, %c0_232] : memref<1x32xf32, #tpu.memory_space<vmem>>, vector<1x32xf32>
    %c0_233 = arith.constant 0 : index
    %c0_234 = arith.constant 0 : index
    %648 = vector.load %arg46[%c0_233, %c0_234] : memref<1x32xf32, #tpu.memory_space<vmem>>, vector<1x32xf32>
    %649 = arith.addf %628, %2 : vector<16x32xf32>
    %cst_235 = arith.constant dense<0.000000e+00> : vector<16xf32>
    %650 = vector.multi_reduction <add>, %649, %cst_235 [1] : vector<16x32xf32> to vector<16xf32>
    %651 = vector.shape_cast %650 : vector<16xf32> to vector<16x1xf32>
    %cst_236 = arith.constant 3.200000e+01 : f32
    %652 = vector.broadcast %cst_236 : f32 to vector<16x1xf32>
    %653 = arith.divf %651, %652 : vector<16x1xf32>
    %654 = vector.broadcast %653 : vector<16x1xf32> to vector<16x32xf32>
    %655 = arith.subf %649, %654 : vector<16x32xf32>
    %656 = arith.mulf %655, %655 : vector<16x32xf32>
    %cst_237 = arith.constant dense<0.000000e+00> : vector<16xf32>
    %657 = vector.multi_reduction <add>, %656, %cst_237 [1] : vector<16x32xf32> to vector<16xf32>
    %658 = vector.shape_cast %657 : vector<16xf32> to vector<16x1xf32>
    %cst_238 = arith.constant 3.200000e+01 : f32
    %659 = vector.broadcast %cst_238 : f32 to vector<16x1xf32>
    %660 = arith.divf %658, %659 : vector<16x1xf32>
    %661 = vector.broadcast %653 : vector<16x1xf32> to vector<16x32xf32>
    %662 = arith.subf %649, %661 : vector<16x32xf32>
    %cst_239 = arith.constant 9.99999974E-6 : f32
    %663 = vector.broadcast %cst_239 : f32 to vector<16x1xf32>
    %664 = arith.addf %660, %663 : vector<16x1xf32>
    %665 = math.rsqrt %664 : vector<16x1xf32>
    %666 = vector.broadcast %665 : vector<16x1xf32> to vector<16x32xf32>
    %667 = arith.mulf %662, %666 : vector<16x32xf32>
    %668 = vector.broadcast %5 : vector<1x32xf32> to vector<16x32xf32>
    %669 = arith.mulf %667, %668 : vector<16x32xf32>
    %670 = vector.broadcast %6 : vector<1x32xf32> to vector<16x32xf32>
    %671 = arith.addf %669, %670 : vector<16x32xf32>
    %cst_240 = arith.constant dense<0.000000e+00> : vector<16x96xf32>
    %672 = tpu.matmul %671, %629, %cst_240 {dimension_numbers = #tpu.dot_dimension_numbers<[1], [0], [0], [1], [0, 0, 1, 1], [], []>} : vector<16x32xf32>, vector<32x96xf32>, vector<16x96xf32> -> vector<16x96xf32>
    %673 = vector.broadcast %630 : vector<1x96xf32> to vector<16x96xf32>
    %674 = arith.addf %672, %673 : vector<16x96xf32>
    %675 = vector.extract_strided_slice %674 {offsets = [0, 0], sizes = [16, 32], strides = [1, 1]} : vector<16x96xf32> to vector<16x32xf32>
    %676 = vector.extract_strided_slice %674 {offsets = [0, 32], sizes = [16, 32], strides = [1, 1]} : vector<16x96xf32> to vector<16x32xf32>
    %677 = vector.extract_strided_slice %674 {offsets = [0, 64], sizes = [16, 32], strides = [1, 1]} : vector<16x96xf32> to vector<16x32xf32>
    %678 = vector.extract_strided_slice %675 {offsets = [0, 0], sizes = [16, 8], strides = [1, 1]} : vector<16x32xf32> to vector<16x8xf32>
    %679 = vector.extract_strided_slice %676 {offsets = [0, 0], sizes = [16, 8], strides = [1, 1]} : vector<16x32xf32> to vector<16x8xf32>
    "tpu.trace_start"() <{level = 10 : i32, message = "qd,kd->qk"}> : () -> ()
    %cst_241 = arith.constant dense<0.000000e+00> : vector<16x16xf32>
    %680 = tpu.matmul %678, %679, %cst_241 {dimension_numbers = #tpu.dot_dimension_numbers<[1], [1], [0], [0], [0, 0, 1, 0], [], []>} : vector<16x8xf32>, vector<16x8xf32>, vector<16x16xf32> -> vector<16x16xf32>
    "tpu.trace_stop"() : () -> ()
    %681 = arith.addf %680, %3 : vector<16x16xf32>
    %682 = vector.extract_strided_slice %676 {offsets = [0, 8], sizes = [16, 8], strides = [1, 1]} : vector<16x32xf32> to vector<16x8xf32>
    "tpu.trace_start"() <{level = 10 : i32, message = "qd,kd->qk"}> : () -> ()
    %cst_242 = arith.constant dense<0.000000e+00> : vector<16x16xf32>
    %683 = tpu.matmul %678, %682, %cst_242 {dimension_numbers = #tpu.dot_dimension_numbers<[1], [1], [0], [0], [0, 0, 1, 0], [], []>} : vector<16x8xf32>, vector<16x8xf32>, vector<16x16xf32> -> vector<16x16xf32>
    "tpu.trace_stop"() : () -> ()
    %684 = arith.addf %683, %3 : vector<16x16xf32>
    %685 = vector.extract_strided_slice %676 {offsets = [0, 16], sizes = [16, 8], strides = [1, 1]} : vector<16x32xf32> to vector<16x8xf32>
    "tpu.trace_start"() <{level = 10 : i32, message = "qd,kd->qk"}> : () -> ()
    %cst_243 = arith.constant dense<0.000000e+00> : vector<16x16xf32>
    %686 = tpu.matmul %678, %685, %cst_243 {dimension_numbers = #tpu.dot_dimension_numbers<[1], [1], [0], [0], [0, 0, 1, 0], [], []>} : vector<16x8xf32>, vector<16x8xf32>, vector<16x16xf32> -> vector<16x16xf32>
    "tpu.trace_stop"() : () -> ()
    %687 = arith.addf %686, %3 : vector<16x16xf32>
    %688 = vector.extract_strided_slice %676 {offsets = [0, 24], sizes = [16, 8], strides = [1, 1]} : vector<16x32xf32> to vector<16x8xf32>
    "tpu.trace_start"() <{level = 10 : i32, message = "qd,kd->qk"}> : () -> ()
    %cst_244 = arith.constant dense<0.000000e+00> : vector<16x16xf32>
    %689 = tpu.matmul %678, %688, %cst_244 {dimension_numbers = #tpu.dot_dimension_numbers<[1], [1], [0], [0], [0, 0, 1, 0], [], []>} : vector<16x8xf32>, vector<16x8xf32>, vector<16x16xf32> -> vector<16x16xf32>
    "tpu.trace_stop"() : () -> ()
    %690 = arith.addf %689, %3 : vector<16x16xf32>
    %691 = arith.maximumf %681, %684 : vector<16x16xf32>
    %692 = arith.maximumf %691, %687 : vector<16x16xf32>
    %693 = arith.maximumf %692, %690 : vector<16x16xf32>
    %cst_245 = arith.constant dense<0xFF800000> : vector<16xf32>
    %694 = vector.multi_reduction <maximumf>, %693, %cst_245 [1] : vector<16x16xf32> to vector<16xf32>
    %695 = vector.shape_cast %694 : vector<16xf32> to vector<16x1xf32>
    %696 = vector.broadcast %695 : vector<16x1xf32> to vector<16x16xf32>
    %697 = arith.subf %681, %696 : vector<16x16xf32>
    %698 = math.exp %697 : vector<16x16xf32>
    %699 = vector.broadcast %695 : vector<16x1xf32> to vector<16x16xf32>
    %700 = arith.subf %684, %699 : vector<16x16xf32>
    %701 = math.exp %700 : vector<16x16xf32>
    %702 = vector.broadcast %695 : vector<16x1xf32> to vector<16x16xf32>
    %703 = arith.subf %687, %702 : vector<16x16xf32>
    %704 = math.exp %703 : vector<16x16xf32>
    %705 = vector.broadcast %695 : vector<16x1xf32> to vector<16x16xf32>
    %706 = arith.subf %690, %705 : vector<16x16xf32>
    %707 = math.exp %706 : vector<16x16xf32>
    %cst_246 = arith.constant dense<0.000000e+00> : vector<16xf32>
    %708 = vector.multi_reduction <add>, %698, %cst_246 [1] : vector<16x16xf32> to vector<16xf32>
    %709 = vector.shape_cast %708 : vector<16xf32> to vector<16x1xf32>
    %cst_247 = arith.constant dense<0.000000e+00> : vector<16xf32>
    %710 = vector.multi_reduction <add>, %701, %cst_247 [1] : vector<16x16xf32> to vector<16xf32>
    %711 = vector.shape_cast %710 : vector<16xf32> to vector<16x1xf32>
    %712 = arith.addf %709, %711 : vector<16x1xf32>
    %cst_248 = arith.constant dense<0.000000e+00> : vector<16xf32>
    %713 = vector.multi_reduction <add>, %704, %cst_248 [1] : vector<16x16xf32> to vector<16xf32>
    %714 = vector.shape_cast %713 : vector<16xf32> to vector<16x1xf32>
    %715 = arith.addf %712, %714 : vector<16x1xf32>
    %cst_249 = arith.constant dense<0.000000e+00> : vector<16xf32>
    %716 = vector.multi_reduction <add>, %707, %cst_249 [1] : vector<16x16xf32> to vector<16xf32>
    %717 = vector.shape_cast %716 : vector<16xf32> to vector<16x1xf32>
    %718 = arith.addf %715, %717 : vector<16x1xf32>
    %719 = tpu.reciprocal %718 : vector<16x1xf32> -> vector<16x1xf32>
    %720 = vector.extract_strided_slice %677 {offsets = [0, 0], sizes = [16, 8], strides = [1, 1]} : vector<16x32xf32> to vector<16x8xf32>
    %cst_250 = arith.constant dense<0.000000e+00> : vector<16x8xf32>
    %721 = tpu.matmul %698, %720, %cst_250 {dimension_numbers = #tpu.dot_dimension_numbers<[1], [0], [0], [1], [0, 0, 1, 1], [], []>} : vector<16x16xf32>, vector<16x8xf32>, vector<16x8xf32> -> vector<16x8xf32>
    %722 = vector.extract_strided_slice %677 {offsets = [0, 8], sizes = [16, 8], strides = [1, 1]} : vector<16x32xf32> to vector<16x8xf32>
    %cst_251 = arith.constant dense<0.000000e+00> : vector<16x8xf32>
    %723 = tpu.matmul %701, %722, %cst_251 {dimension_numbers = #tpu.dot_dimension_numbers<[1], [0], [0], [1], [0, 0, 1, 1], [], []>} : vector<16x16xf32>, vector<16x8xf32>, vector<16x8xf32> -> vector<16x8xf32>
    %724 = arith.addf %721, %723 : vector<16x8xf32>
    %725 = vector.extract_strided_slice %677 {offsets = [0, 16], sizes = [16, 8], strides = [1, 1]} : vector<16x32xf32> to vector<16x8xf32>
    %cst_252 = arith.constant dense<0.000000e+00> : vector<16x8xf32>
    %726 = tpu.matmul %704, %725, %cst_252 {dimension_numbers = #tpu.dot_dimension_numbers<[1], [0], [0], [1], [0, 0, 1, 1], [], []>} : vector<16x16xf32>, vector<16x8xf32>, vector<16x8xf32> -> vector<16x8xf32>
    %727 = arith.addf %724, %726 : vector<16x8xf32>
    %728 = vector.extract_strided_slice %677 {offsets = [0, 24], sizes = [16, 8], strides = [1, 1]} : vector<16x32xf32> to vector<16x8xf32>
    %cst_253 = arith.constant dense<0.000000e+00> : vector<16x8xf32>
    %729 = tpu.matmul %707, %728, %cst_253 {dimension_numbers = #tpu.dot_dimension_numbers<[1], [0], [0], [1], [0, 0, 1, 1], [], []>} : vector<16x16xf32>, vector<16x8xf32>, vector<16x8xf32> -> vector<16x8xf32>
    %730 = arith.addf %727, %729 : vector<16x8xf32>
    %731 = vector.broadcast %719 : vector<16x1xf32> to vector<16x8xf32>
    %732 = arith.mulf %730, %731 : vector<16x8xf32>
    %733 = vector.extract_strided_slice %631 {offsets = [0, 0], sizes = [8, 32], strides = [1, 1]} : vector<32x32xf32> to vector<8x32xf32>
    %cst_254 = arith.constant dense<0.000000e+00> : vector<16x32xf32>
    %734 = tpu.matmul %732, %733, %cst_254 {dimension_numbers = #tpu.dot_dimension_numbers<[1], [0], [0], [1], [0, 0, 1, 1], [], []>} : vector<16x8xf32>, vector<8x32xf32>, vector<16x32xf32> -> vector<16x32xf32>
    %735 = vector.extract_strided_slice %675 {offsets = [0, 8], sizes = [16, 8], strides = [1, 1]} : vector<16x32xf32> to vector<16x8xf32>
    %736 = vector.extract_strided_slice %676 {offsets = [0, 0], sizes = [16, 8], strides = [1, 1]} : vector<16x32xf32> to vector<16x8xf32>
    "tpu.trace_start"() <{level = 10 : i32, message = "qd,kd->qk"}> : () -> ()
    %cst_255 = arith.constant dense<0.000000e+00> : vector<16x16xf32>
    %737 = tpu.matmul %735, %736, %cst_255 {dimension_numbers = #tpu.dot_dimension_numbers<[1], [1], [0], [0], [0, 0, 1, 0], [], []>} : vector<16x8xf32>, vector<16x8xf32>, vector<16x16xf32> -> vector<16x16xf32>
    "tpu.trace_stop"() : () -> ()
    %738 = arith.addf %737, %3 : vector<16x16xf32>
    %739 = vector.extract_strided_slice %676 {offsets = [0, 8], sizes = [16, 8], strides = [1, 1]} : vector<16x32xf32> to vector<16x8xf32>
    "tpu.trace_start"() <{level = 10 : i32, message = "qd,kd->qk"}> : () -> ()
    %cst_256 = arith.constant dense<0.000000e+00> : vector<16x16xf32>
    %740 = tpu.matmul %735, %739, %cst_256 {dimension_numbers = #tpu.dot_dimension_numbers<[1], [1], [0], [0], [0, 0, 1, 0], [], []>} : vector<16x8xf32>, vector<16x8xf32>, vector<16x16xf32> -> vector<16x16xf32>
    "tpu.trace_stop"() : () -> ()
    %741 = arith.addf %740, %3 : vector<16x16xf32>
    %742 = vector.extract_strided_slice %676 {offsets = [0, 16], sizes = [16, 8], strides = [1, 1]} : vector<16x32xf32> to vector<16x8xf32>
    "tpu.trace_start"() <{level = 10 : i32, message = "qd,kd->qk"}> : () -> ()
    %cst_257 = arith.constant dense<0.000000e+00> : vector<16x16xf32>
    %743 = tpu.matmul %735, %742, %cst_257 {dimension_numbers = #tpu.dot_dimension_numbers<[1], [1], [0], [0], [0, 0, 1, 0], [], []>} : vector<16x8xf32>, vector<16x8xf32>, vector<16x16xf32> -> vector<16x16xf32>
    "tpu.trace_stop"() : () -> ()
    %744 = arith.addf %743, %3 : vector<16x16xf32>
    %745 = vector.extract_strided_slice %676 {offsets = [0, 24], sizes = [16, 8], strides = [1, 1]} : vector<16x32xf32> to vector<16x8xf32>
    "tpu.trace_start"() <{level = 10 : i32, message = "qd,kd->qk"}> : () -> ()
    %cst_258 = arith.constant dense<0.000000e+00> : vector<16x16xf32>
    %746 = tpu.matmul %735, %745, %cst_258 {dimension_numbers = #tpu.dot_dimension_numbers<[1], [1], [0], [0], [0, 0, 1, 0], [], []>} : vector<16x8xf32>, vector<16x8xf32>, vector<16x16xf32> -> vector<16x16xf32>
    "tpu.trace_stop"() : () -> ()
    %747 = arith.addf %746, %3 : vector<16x16xf32>
    %748 = arith.maximumf %738, %741 : vector<16x16xf32>
    %749 = arith.maximumf %748, %744 : vector<16x16xf32>
    %750 = arith.maximumf %749, %747 : vector<16x16xf32>
    %cst_259 = arith.constant dense<0xFF800000> : vector<16xf32>
    %751 = vector.multi_reduction <maximumf>, %750, %cst_259 [1] : vector<16x16xf32> to vector<16xf32>
    %752 = vector.shape_cast %751 : vector<16xf32> to vector<16x1xf32>
    %753 = vector.broadcast %752 : vector<16x1xf32> to vector<16x16xf32>
    %754 = arith.subf %738, %753 : vector<16x16xf32>
    %755 = math.exp %754 : vector<16x16xf32>
    %756 = vector.broadcast %752 : vector<16x1xf32> to vector<16x16xf32>
    %757 = arith.subf %741, %756 : vector<16x16xf32>
    %758 = math.exp %757 : vector<16x16xf32>
    %759 = vector.broadcast %752 : vector<16x1xf32> to vector<16x16xf32>
    %760 = arith.subf %744, %759 : vector<16x16xf32>
    %761 = math.exp %760 : vector<16x16xf32>
    %762 = vector.broadcast %752 : vector<16x1xf32> to vector<16x16xf32>
    %763 = arith.subf %747, %762 : vector<16x16xf32>
    %764 = math.exp %763 : vector<16x16xf32>
    %cst_260 = arith.constant dense<0.000000e+00> : vector<16xf32>
    %765 = vector.multi_reduction <add>, %755, %cst_260 [1] : vector<16x16xf32> to vector<16xf32>
    %766 = vector.shape_cast %765 : vector<16xf32> to vector<16x1xf32>
    %cst_261 = arith.constant dense<0.000000e+00> : vector<16xf32>
    %767 = vector.multi_reduction <add>, %758, %cst_261 [1] : vector<16x16xf32> to vector<16xf32>
    %768 = vector.shape_cast %767 : vector<16xf32> to vector<16x1xf32>
    %769 = arith.addf %766, %768 : vector<16x1xf32>
    %cst_262 = arith.constant dense<0.000000e+00> : vector<16xf32>
    %770 = vector.multi_reduction <add>, %761, %cst_262 [1] : vector<16x16xf32> to vector<16xf32>
    %771 = vector.shape_cast %770 : vector<16xf32> to vector<16x1xf32>
    %772 = arith.addf %769, %771 : vector<16x1xf32>
    %cst_263 = arith.constant dense<0.000000e+00> : vector<16xf32>
    %773 = vector.multi_reduction <add>, %764, %cst_263 [1] : vector<16x16xf32> to vector<16xf32>
    %774 = vector.shape_cast %773 : vector<16xf32> to vector<16x1xf32>
    %775 = arith.addf %772, %774 : vector<16x1xf32>
    %776 = tpu.reciprocal %775 : vector<16x1xf32> -> vector<16x1xf32>
    %777 = vector.extract_strided_slice %677 {offsets = [0, 0], sizes = [16, 8], strides = [1, 1]} : vector<16x32xf32> to vector<16x8xf32>
    %cst_264 = arith.constant dense<0.000000e+00> : vector<16x8xf32>
    %778 = tpu.matmul %755, %777, %cst_264 {dimension_numbers = #tpu.dot_dimension_numbers<[1], [0], [0], [1], [0, 0, 1, 1], [], []>} : vector<16x16xf32>, vector<16x8xf32>, vector<16x8xf32> -> vector<16x8xf32>
    %779 = vector.extract_strided_slice %677 {offsets = [0, 8], sizes = [16, 8], strides = [1, 1]} : vector<16x32xf32> to vector<16x8xf32>
    %cst_265 = arith.constant dense<0.000000e+00> : vector<16x8xf32>
    %780 = tpu.matmul %758, %779, %cst_265 {dimension_numbers = #tpu.dot_dimension_numbers<[1], [0], [0], [1], [0, 0, 1, 1], [], []>} : vector<16x16xf32>, vector<16x8xf32>, vector<16x8xf32> -> vector<16x8xf32>
    %781 = arith.addf %778, %780 : vector<16x8xf32>
    %782 = vector.extract_strided_slice %677 {offsets = [0, 16], sizes = [16, 8], strides = [1, 1]} : vector<16x32xf32> to vector<16x8xf32>
    %cst_266 = arith.constant dense<0.000000e+00> : vector<16x8xf32>
    %783 = tpu.matmul %761, %782, %cst_266 {dimension_numbers = #tpu.dot_dimension_numbers<[1], [0], [0], [1], [0, 0, 1, 1], [], []>} : vector<16x16xf32>, vector<16x8xf32>, vector<16x8xf32> -> vector<16x8xf32>
    %784 = arith.addf %781, %783 : vector<16x8xf32>
    %785 = vector.extract_strided_slice %677 {offsets = [0, 24], sizes = [16, 8], strides = [1, 1]} : vector<16x32xf32> to vector<16x8xf32>
    %cst_267 = arith.constant dense<0.000000e+00> : vector<16x8xf32>
    %786 = tpu.matmul %764, %785, %cst_267 {dimension_numbers = #tpu.dot_dimension_numbers<[1], [0], [0], [1], [0, 0, 1, 1], [], []>} : vector<16x16xf32>, vector<16x8xf32>, vector<16x8xf32> -> vector<16x8xf32>
    %787 = arith.addf %784, %786 : vector<16x8xf32>
    %788 = vector.broadcast %776 : vector<16x1xf32> to vector<16x8xf32>
    %789 = arith.mulf %787, %788 : vector<16x8xf32>
    %790 = vector.extract_strided_slice %631 {offsets = [8, 0], sizes = [8, 32], strides = [1, 1]} : vector<32x32xf32> to vector<8x32xf32>
    %cst_268 = arith.constant dense<0.000000e+00> : vector<16x32xf32>
    %791 = tpu.matmul %789, %790, %cst_268 {dimension_numbers = #tpu.dot_dimension_numbers<[1], [0], [0], [1], [0, 0, 1, 1], [], []>} : vector<16x8xf32>, vector<8x32xf32>, vector<16x32xf32> -> vector<16x32xf32>
    %792 = arith.addf %734, %791 : vector<16x32xf32>
    %793 = vector.extract_strided_slice %675 {offsets = [0, 16], sizes = [16, 8], strides = [1, 1]} : vector<16x32xf32> to vector<16x8xf32>
    %794 = vector.extract_strided_slice %676 {offsets = [0, 0], sizes = [16, 8], strides = [1, 1]} : vector<16x32xf32> to vector<16x8xf32>
    "tpu.trace_start"() <{level = 10 : i32, message = "qd,kd->qk"}> : () -> ()
    %cst_269 = arith.constant dense<0.000000e+00> : vector<16x16xf32>
    %795 = tpu.matmul %793, %794, %cst_269 {dimension_numbers = #tpu.dot_dimension_numbers<[1], [1], [0], [0], [0, 0, 1, 0], [], []>} : vector<16x8xf32>, vector<16x8xf32>, vector<16x16xf32> -> vector<16x16xf32>
    "tpu.trace_stop"() : () -> ()
    %796 = arith.addf %795, %3 : vector<16x16xf32>
    %797 = vector.extract_strided_slice %676 {offsets = [0, 8], sizes = [16, 8], strides = [1, 1]} : vector<16x32xf32> to vector<16x8xf32>
    "tpu.trace_start"() <{level = 10 : i32, message = "qd,kd->qk"}> : () -> ()
    %cst_270 = arith.constant dense<0.000000e+00> : vector<16x16xf32>
    %798 = tpu.matmul %793, %797, %cst_270 {dimension_numbers = #tpu.dot_dimension_numbers<[1], [1], [0], [0], [0, 0, 1, 0], [], []>} : vector<16x8xf32>, vector<16x8xf32>, vector<16x16xf32> -> vector<16x16xf32>
    "tpu.trace_stop"() : () -> ()
    %799 = arith.addf %798, %3 : vector<16x16xf32>
    %800 = vector.extract_strided_slice %676 {offsets = [0, 16], sizes = [16, 8], strides = [1, 1]} : vector<16x32xf32> to vector<16x8xf32>
    "tpu.trace_start"() <{level = 10 : i32, message = "qd,kd->qk"}> : () -> ()
    %cst_271 = arith.constant dense<0.000000e+00> : vector<16x16xf32>
    %801 = tpu.matmul %793, %800, %cst_271 {dimension_numbers = #tpu.dot_dimension_numbers<[1], [1], [0], [0], [0, 0, 1, 0], [], []>} : vector<16x8xf32>, vector<16x8xf32>, vector<16x16xf32> -> vector<16x16xf32>
    "tpu.trace_stop"() : () -> ()
    %802 = arith.addf %801, %3 : vector<16x16xf32>
    %803 = vector.extract_strided_slice %676 {offsets = [0, 24], sizes = [16, 8], strides = [1, 1]} : vector<16x32xf32> to vector<16x8xf32>
    "tpu.trace_start"() <{level = 10 : i32, message = "qd,kd->qk"}> : () -> ()
    %cst_272 = arith.constant dense<0.000000e+00> : vector<16x16xf32>
    %804 = tpu.matmul %793, %803, %cst_272 {dimension_numbers = #tpu.dot_dimension_numbers<[1], [1], [0], [0], [0, 0, 1, 0], [], []>} : vector<16x8xf32>, vector<16x8xf32>, vector<16x16xf32> -> vector<16x16xf32>
    "tpu.trace_stop"() : () -> ()
    %805 = arith.addf %804, %3 : vector<16x16xf32>
    %806 = arith.maximumf %796, %799 : vector<16x16xf32>
    %807 = arith.maximumf %806, %802 : vector<16x16xf32>
    %808 = arith.maximumf %807, %805 : vector<16x16xf32>
    %cst_273 = arith.constant dense<0xFF800000> : vector<16xf32>
    %809 = vector.multi_reduction <maximumf>, %808, %cst_273 [1] : vector<16x16xf32> to vector<16xf32>
    %810 = vector.shape_cast %809 : vector<16xf32> to vector<16x1xf32>
    %811 = vector.broadcast %810 : vector<16x1xf32> to vector<16x16xf32>
    %812 = arith.subf %796, %811 : vector<16x16xf32>
    %813 = math.exp %812 : vector<16x16xf32>
    %814 = vector.broadcast %810 : vector<16x1xf32> to vector<16x16xf32>
    %815 = arith.subf %799, %814 : vector<16x16xf32>
    %816 = math.exp %815 : vector<16x16xf32>
    %817 = vector.broadcast %810 : vector<16x1xf32> to vector<16x16xf32>
    %818 = arith.subf %802, %817 : vector<16x16xf32>
    %819 = math.exp %818 : vector<16x16xf32>
    %820 = vector.broadcast %810 : vector<16x1xf32> to vector<16x16xf32>
    %821 = arith.subf %805, %820 : vector<16x16xf32>
    %822 = math.exp %821 : vector<16x16xf32>
    %cst_274 = arith.constant dense<0.000000e+00> : vector<16xf32>
    %823 = vector.multi_reduction <add>, %813, %cst_274 [1] : vector<16x16xf32> to vector<16xf32>
    %824 = vector.shape_cast %823 : vector<16xf32> to vector<16x1xf32>
    %cst_275 = arith.constant dense<0.000000e+00> : vector<16xf32>
    %825 = vector.multi_reduction <add>, %816, %cst_275 [1] : vector<16x16xf32> to vector<16xf32>
    %826 = vector.shape_cast %825 : vector<16xf32> to vector<16x1xf32>
    %827 = arith.addf %824, %826 : vector<16x1xf32>
    %cst_276 = arith.constant dense<0.000000e+00> : vector<16xf32>
    %828 = vector.multi_reduction <add>, %819, %cst_276 [1] : vector<16x16xf32> to vector<16xf32>
    %829 = vector.shape_cast %828 : vector<16xf32> to vector<16x1xf32>
    %830 = arith.addf %827, %829 : vector<16x1xf32>
    %cst_277 = arith.constant dense<0.000000e+00> : vector<16xf32>
    %831 = vector.multi_reduction <add>, %822, %cst_277 [1] : vector<16x16xf32> to vector<16xf32>
    %832 = vector.shape_cast %831 : vector<16xf32> to vector<16x1xf32>
    %833 = arith.addf %830, %832 : vector<16x1xf32>
    %834 = tpu.reciprocal %833 : vector<16x1xf32> -> vector<16x1xf32>
    %835 = vector.extract_strided_slice %677 {offsets = [0, 0], sizes = [16, 8], strides = [1, 1]} : vector<16x32xf32> to vector<16x8xf32>
    %cst_278 = arith.constant dense<0.000000e+00> : vector<16x8xf32>
    %836 = tpu.matmul %813, %835, %cst_278 {dimension_numbers = #tpu.dot_dimension_numbers<[1], [0], [0], [1], [0, 0, 1, 1], [], []>} : vector<16x16xf32>, vector<16x8xf32>, vector<16x8xf32> -> vector<16x8xf32>
    %837 = vector.extract_strided_slice %677 {offsets = [0, 8], sizes = [16, 8], strides = [1, 1]} : vector<16x32xf32> to vector<16x8xf32>
    %cst_279 = arith.constant dense<0.000000e+00> : vector<16x8xf32>
    %838 = tpu.matmul %816, %837, %cst_279 {dimension_numbers = #tpu.dot_dimension_numbers<[1], [0], [0], [1], [0, 0, 1, 1], [], []>} : vector<16x16xf32>, vector<16x8xf32>, vector<16x8xf32> -> vector<16x8xf32>
    %839 = arith.addf %836, %838 : vector<16x8xf32>
    %840 = vector.extract_strided_slice %677 {offsets = [0, 16], sizes = [16, 8], strides = [1, 1]} : vector<16x32xf32> to vector<16x8xf32>
    %cst_280 = arith.constant dense<0.000000e+00> : vector<16x8xf32>
    %841 = tpu.matmul %819, %840, %cst_280 {dimension_numbers = #tpu.dot_dimension_numbers<[1], [0], [0], [1], [0, 0, 1, 1], [], []>} : vector<16x16xf32>, vector<16x8xf32>, vector<16x8xf32> -> vector<16x8xf32>
    %842 = arith.addf %839, %841 : vector<16x8xf32>
    %843 = vector.extract_strided_slice %677 {offsets = [0, 24], sizes = [16, 8], strides = [1, 1]} : vector<16x32xf32> to vector<16x8xf32>
    %cst_281 = arith.constant dense<0.000000e+00> : vector<16x8xf32>
    %844 = tpu.matmul %822, %843, %cst_281 {dimension_numbers = #tpu.dot_dimension_numbers<[1], [0], [0], [1], [0, 0, 1, 1], [], []>} : vector<16x16xf32>, vector<16x8xf32>, vector<16x8xf32> -> vector<16x8xf32>
    %845 = arith.addf %842, %844 : vector<16x8xf32>
    %846 = vector.broadcast %834 : vector<16x1xf32> to vector<16x8xf32>
    %847 = arith.mulf %845, %846 : vector<16x8xf32>
    %848 = vector.extract_strided_slice %631 {offsets = [16, 0], sizes = [8, 32], strides = [1, 1]} : vector<32x32xf32> to vector<8x32xf32>
    %cst_282 = arith.constant dense<0.000000e+00> : vector<16x32xf32>
    %849 = tpu.matmul %847, %848, %cst_282 {dimension_numbers = #tpu.dot_dimension_numbers<[1], [0], [0], [1], [0, 0, 1, 1], [], []>} : vector<16x8xf32>, vector<8x32xf32>, vector<16x32xf32> -> vector<16x32xf32>
    %850 = arith.addf %792, %849 : vector<16x32xf32>
    %851 = vector.extract_strided_slice %675 {offsets = [0, 24], sizes = [16, 8], strides = [1, 1]} : vector<16x32xf32> to vector<16x8xf32>
    %852 = vector.extract_strided_slice %676 {offsets = [0, 0], sizes = [16, 8], strides = [1, 1]} : vector<16x32xf32> to vector<16x8xf32>
    "tpu.trace_start"() <{level = 10 : i32, message = "qd,kd->qk"}> : () -> ()
    %cst_283 = arith.constant dense<0.000000e+00> : vector<16x16xf32>
    %853 = tpu.matmul %851, %852, %cst_283 {dimension_numbers = #tpu.dot_dimension_numbers<[1], [1], [0], [0], [0, 0, 1, 0], [], []>} : vector<16x8xf32>, vector<16x8xf32>, vector<16x16xf32> -> vector<16x16xf32>
    "tpu.trace_stop"() : () -> ()
    %854 = arith.addf %853, %3 : vector<16x16xf32>
    %855 = vector.extract_strided_slice %676 {offsets = [0, 8], sizes = [16, 8], strides = [1, 1]} : vector<16x32xf32> to vector<16x8xf32>
    "tpu.trace_start"() <{level = 10 : i32, message = "qd,kd->qk"}> : () -> ()
    %cst_284 = arith.constant dense<0.000000e+00> : vector<16x16xf32>
    %856 = tpu.matmul %851, %855, %cst_284 {dimension_numbers = #tpu.dot_dimension_numbers<[1], [1], [0], [0], [0, 0, 1, 0], [], []>} : vector<16x8xf32>, vector<16x8xf32>, vector<16x16xf32> -> vector<16x16xf32>
    "tpu.trace_stop"() : () -> ()
    %857 = arith.addf %856, %3 : vector<16x16xf32>
    %858 = vector.extract_strided_slice %676 {offsets = [0, 16], sizes = [16, 8], strides = [1, 1]} : vector<16x32xf32> to vector<16x8xf32>
    "tpu.trace_start"() <{level = 10 : i32, message = "qd,kd->qk"}> : () -> ()
    %cst_285 = arith.constant dense<0.000000e+00> : vector<16x16xf32>
    %859 = tpu.matmul %851, %858, %cst_285 {dimension_numbers = #tpu.dot_dimension_numbers<[1], [1], [0], [0], [0, 0, 1, 0], [], []>} : vector<16x8xf32>, vector<16x8xf32>, vector<16x16xf32> -> vector<16x16xf32>
    "tpu.trace_stop"() : () -> ()
    %860 = arith.addf %859, %3 : vector<16x16xf32>
    %861 = vector.extract_strided_slice %676 {offsets = [0, 24], sizes = [16, 8], strides = [1, 1]} : vector<16x32xf32> to vector<16x8xf32>
    "tpu.trace_start"() <{level = 10 : i32, message = "qd,kd->qk"}> : () -> ()
    %cst_286 = arith.constant dense<0.000000e+00> : vector<16x16xf32>
    %862 = tpu.matmul %851, %861, %cst_286 {dimension_numbers = #tpu.dot_dimension_numbers<[1], [1], [0], [0], [0, 0, 1, 0], [], []>} : vector<16x8xf32>, vector<16x8xf32>, vector<16x16xf32> -> vector<16x16xf32>
    "tpu.trace_stop"() : () -> ()
    %863 = arith.addf %862, %3 : vector<16x16xf32>
    %864 = arith.maximumf %854, %857 : vector<16x16xf32>
    %865 = arith.maximumf %864, %860 : vector<16x16xf32>
    %866 = arith.maximumf %865, %863 : vector<16x16xf32>
    %cst_287 = arith.constant dense<0xFF800000> : vector<16xf32>
    %867 = vector.multi_reduction <maximumf>, %866, %cst_287 [1] : vector<16x16xf32> to vector<16xf32>
    %868 = vector.shape_cast %867 : vector<16xf32> to vector<16x1xf32>
    %869 = vector.broadcast %868 : vector<16x1xf32> to vector<16x16xf32>
    %870 = arith.subf %854, %869 : vector<16x16xf32>
    %871 = math.exp %870 : vector<16x16xf32>
    %872 = vector.broadcast %868 : vector<16x1xf32> to vector<16x16xf32>
    %873 = arith.subf %857, %872 : vector<16x16xf32>
    %874 = math.exp %873 : vector<16x16xf32>
    %875 = vector.broadcast %868 : vector<16x1xf32> to vector<16x16xf32>
    %876 = arith.subf %860, %875 : vector<16x16xf32>
    %877 = math.exp %876 : vector<16x16xf32>
    %878 = vector.broadcast %868 : vector<16x1xf32> to vector<16x16xf32>
    %879 = arith.subf %863, %878 : vector<16x16xf32>
    %880 = math.exp %879 : vector<16x16xf32>
    %cst_288 = arith.constant dense<0.000000e+00> : vector<16xf32>
    %881 = vector.multi_reduction <add>, %871, %cst_288 [1] : vector<16x16xf32> to vector<16xf32>
    %882 = vector.shape_cast %881 : vector<16xf32> to vector<16x1xf32>
    %cst_289 = arith.constant dense<0.000000e+00> : vector<16xf32>
    %883 = vector.multi_reduction <add>, %874, %cst_289 [1] : vector<16x16xf32> to vector<16xf32>
    %884 = vector.shape_cast %883 : vector<16xf32> to vector<16x1xf32>
    %885 = arith.addf %882, %884 : vector<16x1xf32>
    %cst_290 = arith.constant dense<0.000000e+00> : vector<16xf32>
    %886 = vector.multi_reduction <add>, %877, %cst_290 [1] : vector<16x16xf32> to vector<16xf32>
    %887 = vector.shape_cast %886 : vector<16xf32> to vector<16x1xf32>
    %888 = arith.addf %885, %887 : vector<16x1xf32>
    %cst_291 = arith.constant dense<0.000000e+00> : vector<16xf32>
    %889 = vector.multi_reduction <add>, %880, %cst_291 [1] : vector<16x16xf32> to vector<16xf32>
    %890 = vector.shape_cast %889 : vector<16xf32> to vector<16x1xf32>
    %891 = arith.addf %888, %890 : vector<16x1xf32>
    %892 = tpu.reciprocal %891 : vector<16x1xf32> -> vector<16x1xf32>
    %893 = vector.extract_strided_slice %677 {offsets = [0, 0], sizes = [16, 8], strides = [1, 1]} : vector<16x32xf32> to vector<16x8xf32>
    %cst_292 = arith.constant dense<0.000000e+00> : vector<16x8xf32>
    %894 = tpu.matmul %871, %893, %cst_292 {dimension_numbers = #tpu.dot_dimension_numbers<[1], [0], [0], [1], [0, 0, 1, 1], [], []>} : vector<16x16xf32>, vector<16x8xf32>, vector<16x8xf32> -> vector<16x8xf32>
    %895 = vector.extract_strided_slice %677 {offsets = [0, 8], sizes = [16, 8], strides = [1, 1]} : vector<16x32xf32> to vector<16x8xf32>
    %cst_293 = arith.constant dense<0.000000e+00> : vector<16x8xf32>
    %896 = tpu.matmul %874, %895, %cst_293 {dimension_numbers = #tpu.dot_dimension_numbers<[1], [0], [0], [1], [0, 0, 1, 1], [], []>} : vector<16x16xf32>, vector<16x8xf32>, vector<16x8xf32> -> vector<16x8xf32>
    %897 = arith.addf %894, %896 : vector<16x8xf32>
    %898 = vector.extract_strided_slice %677 {offsets = [0, 16], sizes = [16, 8], strides = [1, 1]} : vector<16x32xf32> to vector<16x8xf32>
    %cst_294 = arith.constant dense<0.000000e+00> : vector<16x8xf32>
    %899 = tpu.matmul %877, %898, %cst_294 {dimension_numbers = #tpu.dot_dimension_numbers<[1], [0], [0], [1], [0, 0, 1, 1], [], []>} : vector<16x16xf32>, vector<16x8xf32>, vector<16x8xf32> -> vector<16x8xf32>
    %900 = arith.addf %897, %899 : vector<16x8xf32>
    %901 = vector.extract_strided_slice %677 {offsets = [0, 24], sizes = [16, 8], strides = [1, 1]} : vector<16x32xf32> to vector<16x8xf32>
    %cst_295 = arith.constant dense<0.000000e+00> : vector<16x8xf32>
    %902 = tpu.matmul %880, %901, %cst_295 {dimension_numbers = #tpu.dot_dimension_numbers<[1], [0], [0], [1], [0, 0, 1, 1], [], []>} : vector<16x16xf32>, vector<16x8xf32>, vector<16x8xf32> -> vector<16x8xf32>
    %903 = arith.addf %900, %902 : vector<16x8xf32>
    %904 = vector.broadcast %892 : vector<16x1xf32> to vector<16x8xf32>
    %905 = arith.mulf %903, %904 : vector<16x8xf32>
    %906 = vector.extract_strided_slice %631 {offsets = [24, 0], sizes = [8, 32], strides = [1, 1]} : vector<32x32xf32> to vector<8x32xf32>
    %cst_296 = arith.constant dense<0.000000e+00> : vector<16x32xf32>
    %907 = tpu.matmul %905, %906, %cst_296 {dimension_numbers = #tpu.dot_dimension_numbers<[1], [0], [0], [1], [0, 0, 1, 1], [], []>} : vector<16x8xf32>, vector<8x32xf32>, vector<16x32xf32> -> vector<16x32xf32>
    %908 = arith.addf %850, %907 : vector<16x32xf32>
    %909 = vector.broadcast %632 : vector<1x32xf32> to vector<16x32xf32>
    %910 = arith.addf %908, %909 : vector<16x32xf32>
    %911 = arith.addf %671, %910 : vector<16x32xf32>
    %cst_297 = arith.constant dense<0.000000e+00> : vector<16xf32>
    %912 = vector.multi_reduction <add>, %911, %cst_297 [1] : vector<16x32xf32> to vector<16xf32>
    %913 = vector.shape_cast %912 : vector<16xf32> to vector<16x1xf32>
    %cst_298 = arith.constant 3.200000e+01 : f32
    %914 = vector.broadcast %cst_298 : f32 to vector<16x1xf32>
    %915 = arith.divf %913, %914 : vector<16x1xf32>
    %916 = vector.broadcast %915 : vector<16x1xf32> to vector<16x32xf32>
    %917 = arith.subf %911, %916 : vector<16x32xf32>
    %918 = arith.mulf %917, %917 : vector<16x32xf32>
    %cst_299 = arith.constant dense<0.000000e+00> : vector<16xf32>
    %919 = vector.multi_reduction <add>, %918, %cst_299 [1] : vector<16x32xf32> to vector<16xf32>
    %920 = vector.shape_cast %919 : vector<16xf32> to vector<16x1xf32>
    %cst_300 = arith.constant 3.200000e+01 : f32
    %921 = vector.broadcast %cst_300 : f32 to vector<16x1xf32>
    %922 = arith.divf %920, %921 : vector<16x1xf32>
    %923 = vector.broadcast %915 : vector<16x1xf32> to vector<16x32xf32>
    %924 = arith.subf %911, %923 : vector<16x32xf32>
    %cst_301 = arith.constant 9.99999974E-6 : f32
    %925 = vector.broadcast %cst_301 : f32 to vector<16x1xf32>
    %926 = arith.addf %922, %925 : vector<16x1xf32>
    %927 = math.rsqrt %926 : vector<16x1xf32>
    %928 = vector.broadcast %927 : vector<16x1xf32> to vector<16x32xf32>
    %929 = arith.mulf %924, %928 : vector<16x32xf32>
    %930 = vector.broadcast %633 : vector<1x32xf32> to vector<16x32xf32>
    %931 = arith.mulf %929, %930 : vector<16x32xf32>
    %932 = vector.broadcast %634 : vector<1x32xf32> to vector<16x32xf32>
    %933 = arith.addf %931, %932 : vector<16x32xf32>
    %cst_302 = arith.constant dense<0.000000e+00> : vector<16x32xf32>
    %934 = tpu.matmul %933, %635, %cst_302 {dimension_numbers = #tpu.dot_dimension_numbers<[1], [0], [0], [1], [0, 0, 1, 1], [], []>} : vector<16x32xf32>, vector<32x32xf32>, vector<16x32xf32> -> vector<16x32xf32>
    %935 = vector.broadcast %636 : vector<1x32xf32> to vector<16x32xf32>
    %936 = arith.addf %934, %935 : vector<16x32xf32>
    %cst_303 = arith.constant dense<0.000000e+00> : vector<32x64xf32>
    %937 = tpu.matmul %28, %637, %cst_303 {dimension_numbers = #tpu.dot_dimension_numbers<[1], [0], [0], [1], [0, 0, 1, 1], [], []>} : vector<32x32xf32>, vector<32x64xf32>, vector<32x64xf32> -> vector<32x64xf32>
    %938 = vector.broadcast %638 : vector<1x64xf32> to vector<32x64xf32>
    %939 = arith.addf %937, %938 : vector<32x64xf32>
    %940 = vector.extract_strided_slice %939 {offsets = [0, 0], sizes = [32, 32], strides = [1, 1]} : vector<32x64xf32> to vector<32x32xf32>
    %941 = vector.extract_strided_slice %939 {offsets = [0, 32], sizes = [32, 32], strides = [1, 1]} : vector<32x64xf32> to vector<32x32xf32>
    %942 = vector.extract_strided_slice %936 {offsets = [0, 0], sizes = [16, 8], strides = [1, 1]} : vector<16x32xf32> to vector<16x8xf32>
    %943 = vector.extract_strided_slice %940 {offsets = [0, 0], sizes = [32, 8], strides = [1, 1]} : vector<32x32xf32> to vector<32x8xf32>
    "tpu.trace_start"() <{level = 10 : i32, message = "qd,kd->qk"}> : () -> ()
    %cst_304 = arith.constant dense<0.000000e+00> : vector<16x32xf32>
    %944 = tpu.matmul %942, %943, %cst_304 {dimension_numbers = #tpu.dot_dimension_numbers<[1], [1], [0], [0], [0, 0, 1, 0], [], []>} : vector<16x8xf32>, vector<32x8xf32>, vector<16x32xf32> -> vector<16x32xf32>
    "tpu.trace_stop"() : () -> ()
    %945 = arith.addf %944, %4 : vector<16x32xf32>
    %946 = vector.extract_strided_slice %940 {offsets = [0, 8], sizes = [32, 8], strides = [1, 1]} : vector<32x32xf32> to vector<32x8xf32>
    "tpu.trace_start"() <{level = 10 : i32, message = "qd,kd->qk"}> : () -> ()
    %cst_305 = arith.constant dense<0.000000e+00> : vector<16x32xf32>
    %947 = tpu.matmul %942, %946, %cst_305 {dimension_numbers = #tpu.dot_dimension_numbers<[1], [1], [0], [0], [0, 0, 1, 0], [], []>} : vector<16x8xf32>, vector<32x8xf32>, vector<16x32xf32> -> vector<16x32xf32>
    "tpu.trace_stop"() : () -> ()
    %948 = arith.addf %947, %4 : vector<16x32xf32>
    %949 = vector.extract_strided_slice %940 {offsets = [0, 16], sizes = [32, 8], strides = [1, 1]} : vector<32x32xf32> to vector<32x8xf32>
    "tpu.trace_start"() <{level = 10 : i32, message = "qd,kd->qk"}> : () -> ()
    %cst_306 = arith.constant dense<0.000000e+00> : vector<16x32xf32>
    %950 = tpu.matmul %942, %949, %cst_306 {dimension_numbers = #tpu.dot_dimension_numbers<[1], [1], [0], [0], [0, 0, 1, 0], [], []>} : vector<16x8xf32>, vector<32x8xf32>, vector<16x32xf32> -> vector<16x32xf32>
    "tpu.trace_stop"() : () -> ()
    %951 = arith.addf %950, %4 : vector<16x32xf32>
    %952 = vector.extract_strided_slice %940 {offsets = [0, 24], sizes = [32, 8], strides = [1, 1]} : vector<32x32xf32> to vector<32x8xf32>
    "tpu.trace_start"() <{level = 10 : i32, message = "qd,kd->qk"}> : () -> ()
    %cst_307 = arith.constant dense<0.000000e+00> : vector<16x32xf32>
    %953 = tpu.matmul %942, %952, %cst_307 {dimension_numbers = #tpu.dot_dimension_numbers<[1], [1], [0], [0], [0, 0, 1, 0], [], []>} : vector<16x8xf32>, vector<32x8xf32>, vector<16x32xf32> -> vector<16x32xf32>
    "tpu.trace_stop"() : () -> ()
    %954 = arith.addf %953, %4 : vector<16x32xf32>
    %955 = arith.maximumf %945, %948 : vector<16x32xf32>
    %956 = arith.maximumf %955, %951 : vector<16x32xf32>
    %957 = arith.maximumf %956, %954 : vector<16x32xf32>
    %cst_308 = arith.constant dense<0xFF800000> : vector<16xf32>
    %958 = vector.multi_reduction <maximumf>, %957, %cst_308 [1] : vector<16x32xf32> to vector<16xf32>
    %959 = vector.shape_cast %958 : vector<16xf32> to vector<16x1xf32>
    %960 = vector.broadcast %959 : vector<16x1xf32> to vector<16x32xf32>
    %961 = arith.subf %945, %960 : vector<16x32xf32>
    %962 = math.exp %961 : vector<16x32xf32>
    %963 = vector.broadcast %959 : vector<16x1xf32> to vector<16x32xf32>
    %964 = arith.subf %948, %963 : vector<16x32xf32>
    %965 = math.exp %964 : vector<16x32xf32>
    %966 = vector.broadcast %959 : vector<16x1xf32> to vector<16x32xf32>
    %967 = arith.subf %951, %966 : vector<16x32xf32>
    %968 = math.exp %967 : vector<16x32xf32>
    %969 = vector.broadcast %959 : vector<16x1xf32> to vector<16x32xf32>
    %970 = arith.subf %954, %969 : vector<16x32xf32>
    %971 = math.exp %970 : vector<16x32xf32>
    %cst_309 = arith.constant dense<0.000000e+00> : vector<16xf32>
    %972 = vector.multi_reduction <add>, %962, %cst_309 [1] : vector<16x32xf32> to vector<16xf32>
    %973 = vector.shape_cast %972 : vector<16xf32> to vector<16x1xf32>
    %cst_310 = arith.constant dense<0.000000e+00> : vector<16xf32>
    %974 = vector.multi_reduction <add>, %965, %cst_310 [1] : vector<16x32xf32> to vector<16xf32>
    %975 = vector.shape_cast %974 : vector<16xf32> to vector<16x1xf32>
    %976 = arith.addf %973, %975 : vector<16x1xf32>
    %cst_311 = arith.constant dense<0.000000e+00> : vector<16xf32>
    %977 = vector.multi_reduction <add>, %968, %cst_311 [1] : vector<16x32xf32> to vector<16xf32>
    %978 = vector.shape_cast %977 : vector<16xf32> to vector<16x1xf32>
    %979 = arith.addf %976, %978 : vector<16x1xf32>
    %cst_312 = arith.constant dense<0.000000e+00> : vector<16xf32>
    %980 = vector.multi_reduction <add>, %971, %cst_312 [1] : vector<16x32xf32> to vector<16xf32>
    %981 = vector.shape_cast %980 : vector<16xf32> to vector<16x1xf32>
    %982 = arith.addf %979, %981 : vector<16x1xf32>
    %983 = tpu.reciprocal %982 : vector<16x1xf32> -> vector<16x1xf32>
    %984 = vector.extract_strided_slice %941 {offsets = [0, 0], sizes = [32, 8], strides = [1, 1]} : vector<32x32xf32> to vector<32x8xf32>
    %cst_313 = arith.constant dense<0.000000e+00> : vector<16x8xf32>
    %985 = tpu.matmul %962, %984, %cst_313 {dimension_numbers = #tpu.dot_dimension_numbers<[1], [0], [0], [1], [0, 0, 1, 1], [], []>} : vector<16x32xf32>, vector<32x8xf32>, vector<16x8xf32> -> vector<16x8xf32>
    %986 = vector.extract_strided_slice %941 {offsets = [0, 8], sizes = [32, 8], strides = [1, 1]} : vector<32x32xf32> to vector<32x8xf32>
    %cst_314 = arith.constant dense<0.000000e+00> : vector<16x8xf32>
    %987 = tpu.matmul %965, %986, %cst_314 {dimension_numbers = #tpu.dot_dimension_numbers<[1], [0], [0], [1], [0, 0, 1, 1], [], []>} : vector<16x32xf32>, vector<32x8xf32>, vector<16x8xf32> -> vector<16x8xf32>
    %988 = arith.addf %985, %987 : vector<16x8xf32>
    %989 = vector.extract_strided_slice %941 {offsets = [0, 16], sizes = [32, 8], strides = [1, 1]} : vector<32x32xf32> to vector<32x8xf32>
    %cst_315 = arith.constant dense<0.000000e+00> : vector<16x8xf32>
    %990 = tpu.matmul %968, %989, %cst_315 {dimension_numbers = #tpu.dot_dimension_numbers<[1], [0], [0], [1], [0, 0, 1, 1], [], []>} : vector<16x32xf32>, vector<32x8xf32>, vector<16x8xf32> -> vector<16x8xf32>
    %991 = arith.addf %988, %990 : vector<16x8xf32>
    %992 = vector.extract_strided_slice %941 {offsets = [0, 24], sizes = [32, 8], strides = [1, 1]} : vector<32x32xf32> to vector<32x8xf32>
    %cst_316 = arith.constant dense<0.000000e+00> : vector<16x8xf32>
    %993 = tpu.matmul %971, %992, %cst_316 {dimension_numbers = #tpu.dot_dimension_numbers<[1], [0], [0], [1], [0, 0, 1, 1], [], []>} : vector<16x32xf32>, vector<32x8xf32>, vector<16x8xf32> -> vector<16x8xf32>
    %994 = arith.addf %991, %993 : vector<16x8xf32>
    %995 = vector.broadcast %983 : vector<16x1xf32> to vector<16x8xf32>
    %996 = arith.mulf %994, %995 : vector<16x8xf32>
    %997 = vector.extract_strided_slice %639 {offsets = [0, 0], sizes = [8, 32], strides = [1, 1]} : vector<32x32xf32> to vector<8x32xf32>
    %cst_317 = arith.constant dense<0.000000e+00> : vector<16x32xf32>
    %998 = tpu.matmul %996, %997, %cst_317 {dimension_numbers = #tpu.dot_dimension_numbers<[1], [0], [0], [1], [0, 0, 1, 1], [], []>} : vector<16x8xf32>, vector<8x32xf32>, vector<16x32xf32> -> vector<16x32xf32>
    %999 = vector.extract_strided_slice %936 {offsets = [0, 8], sizes = [16, 8], strides = [1, 1]} : vector<16x32xf32> to vector<16x8xf32>
    %1000 = vector.extract_strided_slice %940 {offsets = [0, 0], sizes = [32, 8], strides = [1, 1]} : vector<32x32xf32> to vector<32x8xf32>
    "tpu.trace_start"() <{level = 10 : i32, message = "qd,kd->qk"}> : () -> ()
    %cst_318 = arith.constant dense<0.000000e+00> : vector<16x32xf32>
    %1001 = tpu.matmul %999, %1000, %cst_318 {dimension_numbers = #tpu.dot_dimension_numbers<[1], [1], [0], [0], [0, 0, 1, 0], [], []>} : vector<16x8xf32>, vector<32x8xf32>, vector<16x32xf32> -> vector<16x32xf32>
    "tpu.trace_stop"() : () -> ()
    %1002 = arith.addf %1001, %4 : vector<16x32xf32>
    %1003 = vector.extract_strided_slice %940 {offsets = [0, 8], sizes = [32, 8], strides = [1, 1]} : vector<32x32xf32> to vector<32x8xf32>
    "tpu.trace_start"() <{level = 10 : i32, message = "qd,kd->qk"}> : () -> ()
    %cst_319 = arith.constant dense<0.000000e+00> : vector<16x32xf32>
    %1004 = tpu.matmul %999, %1003, %cst_319 {dimension_numbers = #tpu.dot_dimension_numbers<[1], [1], [0], [0], [0, 0, 1, 0], [], []>} : vector<16x8xf32>, vector<32x8xf32>, vector<16x32xf32> -> vector<16x32xf32>
    "tpu.trace_stop"() : () -> ()
    %1005 = arith.addf %1004, %4 : vector<16x32xf32>
    %1006 = vector.extract_strided_slice %940 {offsets = [0, 16], sizes = [32, 8], strides = [1, 1]} : vector<32x32xf32> to vector<32x8xf32>
    "tpu.trace_start"() <{level = 10 : i32, message = "qd,kd->qk"}> : () -> ()
    %cst_320 = arith.constant dense<0.000000e+00> : vector<16x32xf32>
    %1007 = tpu.matmul %999, %1006, %cst_320 {dimension_numbers = #tpu.dot_dimension_numbers<[1], [1], [0], [0], [0, 0, 1, 0], [], []>} : vector<16x8xf32>, vector<32x8xf32>, vector<16x32xf32> -> vector<16x32xf32>
    "tpu.trace_stop"() : () -> ()
    %1008 = arith.addf %1007, %4 : vector<16x32xf32>
    %1009 = vector.extract_strided_slice %940 {offsets = [0, 24], sizes = [32, 8], strides = [1, 1]} : vector<32x32xf32> to vector<32x8xf32>
    "tpu.trace_start"() <{level = 10 : i32, message = "qd,kd->qk"}> : () -> ()
    %cst_321 = arith.constant dense<0.000000e+00> : vector<16x32xf32>
    %1010 = tpu.matmul %999, %1009, %cst_321 {dimension_numbers = #tpu.dot_dimension_numbers<[1], [1], [0], [0], [0, 0, 1, 0], [], []>} : vector<16x8xf32>, vector<32x8xf32>, vector<16x32xf32> -> vector<16x32xf32>
    "tpu.trace_stop"() : () -> ()
    %1011 = arith.addf %1010, %4 : vector<16x32xf32>
    %1012 = arith.maximumf %1002, %1005 : vector<16x32xf32>
    %1013 = arith.maximumf %1012, %1008 : vector<16x32xf32>
    %1014 = arith.maximumf %1013, %1011 : vector<16x32xf32>
    %cst_322 = arith.constant dense<0xFF800000> : vector<16xf32>
    %1015 = vector.multi_reduction <maximumf>, %1014, %cst_322 [1] : vector<16x32xf32> to vector<16xf32>
    %1016 = vector.shape_cast %1015 : vector<16xf32> to vector<16x1xf32>
    %1017 = vector.broadcast %1016 : vector<16x1xf32> to vector<16x32xf32>
    %1018 = arith.subf %1002, %1017 : vector<16x32xf32>
    %1019 = math.exp %1018 : vector<16x32xf32>
    %1020 = vector.broadcast %1016 : vector<16x1xf32> to vector<16x32xf32>
    %1021 = arith.subf %1005, %1020 : vector<16x32xf32>
    %1022 = math.exp %1021 : vector<16x32xf32>
    %1023 = vector.broadcast %1016 : vector<16x1xf32> to vector<16x32xf32>
    %1024 = arith.subf %1008, %1023 : vector<16x32xf32>
    %1025 = math.exp %1024 : vector<16x32xf32>
    %1026 = vector.broadcast %1016 : vector<16x1xf32> to vector<16x32xf32>
    %1027 = arith.subf %1011, %1026 : vector<16x32xf32>
    %1028 = math.exp %1027 : vector<16x32xf32>
    %cst_323 = arith.constant dense<0.000000e+00> : vector<16xf32>
    %1029 = vector.multi_reduction <add>, %1019, %cst_323 [1] : vector<16x32xf32> to vector<16xf32>
    %1030 = vector.shape_cast %1029 : vector<16xf32> to vector<16x1xf32>
    %cst_324 = arith.constant dense<0.000000e+00> : vector<16xf32>
    %1031 = vector.multi_reduction <add>, %1022, %cst_324 [1] : vector<16x32xf32> to vector<16xf32>
    %1032 = vector.shape_cast %1031 : vector<16xf32> to vector<16x1xf32>
    %1033 = arith.addf %1030, %1032 : vector<16x1xf32>
    %cst_325 = arith.constant dense<0.000000e+00> : vector<16xf32>
    %1034 = vector.multi_reduction <add>, %1025, %cst_325 [1] : vector<16x32xf32> to vector<16xf32>
    %1035 = vector.shape_cast %1034 : vector<16xf32> to vector<16x1xf32>
    %1036 = arith.addf %1033, %1035 : vector<16x1xf32>
    %cst_326 = arith.constant dense<0.000000e+00> : vector<16xf32>
    %1037 = vector.multi_reduction <add>, %1028, %cst_326 [1] : vector<16x32xf32> to vector<16xf32>
    %1038 = vector.shape_cast %1037 : vector<16xf32> to vector<16x1xf32>
    %1039 = arith.addf %1036, %1038 : vector<16x1xf32>
    %1040 = tpu.reciprocal %1039 : vector<16x1xf32> -> vector<16x1xf32>
    %1041 = vector.extract_strided_slice %941 {offsets = [0, 0], sizes = [32, 8], strides = [1, 1]} : vector<32x32xf32> to vector<32x8xf32>
    %cst_327 = arith.constant dense<0.000000e+00> : vector<16x8xf32>
    %1042 = tpu.matmul %1019, %1041, %cst_327 {dimension_numbers = #tpu.dot_dimension_numbers<[1], [0], [0], [1], [0, 0, 1, 1], [], []>} : vector<16x32xf32>, vector<32x8xf32>, vector<16x8xf32> -> vector<16x8xf32>
    %1043 = vector.extract_strided_slice %941 {offsets = [0, 8], sizes = [32, 8], strides = [1, 1]} : vector<32x32xf32> to vector<32x8xf32>
    %cst_328 = arith.constant dense<0.000000e+00> : vector<16x8xf32>
    %1044 = tpu.matmul %1022, %1043, %cst_328 {dimension_numbers = #tpu.dot_dimension_numbers<[1], [0], [0], [1], [0, 0, 1, 1], [], []>} : vector<16x32xf32>, vector<32x8xf32>, vector<16x8xf32> -> vector<16x8xf32>
    %1045 = arith.addf %1042, %1044 : vector<16x8xf32>
    %1046 = vector.extract_strided_slice %941 {offsets = [0, 16], sizes = [32, 8], strides = [1, 1]} : vector<32x32xf32> to vector<32x8xf32>
    %cst_329 = arith.constant dense<0.000000e+00> : vector<16x8xf32>
    %1047 = tpu.matmul %1025, %1046, %cst_329 {dimension_numbers = #tpu.dot_dimension_numbers<[1], [0], [0], [1], [0, 0, 1, 1], [], []>} : vector<16x32xf32>, vector<32x8xf32>, vector<16x8xf32> -> vector<16x8xf32>
    %1048 = arith.addf %1045, %1047 : vector<16x8xf32>
    %1049 = vector.extract_strided_slice %941 {offsets = [0, 24], sizes = [32, 8], strides = [1, 1]} : vector<32x32xf32> to vector<32x8xf32>
    %cst_330 = arith.constant dense<0.000000e+00> : vector<16x8xf32>
    %1050 = tpu.matmul %1028, %1049, %cst_330 {dimension_numbers = #tpu.dot_dimension_numbers<[1], [0], [0], [1], [0, 0, 1, 1], [], []>} : vector<16x32xf32>, vector<32x8xf32>, vector<16x8xf32> -> vector<16x8xf32>
    %1051 = arith.addf %1048, %1050 : vector<16x8xf32>
    %1052 = vector.broadcast %1040 : vector<16x1xf32> to vector<16x8xf32>
    %1053 = arith.mulf %1051, %1052 : vector<16x8xf32>
    %1054 = vector.extract_strided_slice %639 {offsets = [8, 0], sizes = [8, 32], strides = [1, 1]} : vector<32x32xf32> to vector<8x32xf32>
    %cst_331 = arith.constant dense<0.000000e+00> : vector<16x32xf32>
    %1055 = tpu.matmul %1053, %1054, %cst_331 {dimension_numbers = #tpu.dot_dimension_numbers<[1], [0], [0], [1], [0, 0, 1, 1], [], []>} : vector<16x8xf32>, vector<8x32xf32>, vector<16x32xf32> -> vector<16x32xf32>
    %1056 = arith.addf %998, %1055 : vector<16x32xf32>
    %1057 = vector.extract_strided_slice %936 {offsets = [0, 16], sizes = [16, 8], strides = [1, 1]} : vector<16x32xf32> to vector<16x8xf32>
    %1058 = vector.extract_strided_slice %940 {offsets = [0, 0], sizes = [32, 8], strides = [1, 1]} : vector<32x32xf32> to vector<32x8xf32>
    "tpu.trace_start"() <{level = 10 : i32, message = "qd,kd->qk"}> : () -> ()
    %cst_332 = arith.constant dense<0.000000e+00> : vector<16x32xf32>
    %1059 = tpu.matmul %1057, %1058, %cst_332 {dimension_numbers = #tpu.dot_dimension_numbers<[1], [1], [0], [0], [0, 0, 1, 0], [], []>} : vector<16x8xf32>, vector<32x8xf32>, vector<16x32xf32> -> vector<16x32xf32>
    "tpu.trace_stop"() : () -> ()
    %1060 = arith.addf %1059, %4 : vector<16x32xf32>
    %1061 = vector.extract_strided_slice %940 {offsets = [0, 8], sizes = [32, 8], strides = [1, 1]} : vector<32x32xf32> to vector<32x8xf32>
    "tpu.trace_start"() <{level = 10 : i32, message = "qd,kd->qk"}> : () -> ()
    %cst_333 = arith.constant dense<0.000000e+00> : vector<16x32xf32>
    %1062 = tpu.matmul %1057, %1061, %cst_333 {dimension_numbers = #tpu.dot_dimension_numbers<[1], [1], [0], [0], [0, 0, 1, 0], [], []>} : vector<16x8xf32>, vector<32x8xf32>, vector<16x32xf32> -> vector<16x32xf32>
    "tpu.trace_stop"() : () -> ()
    %1063 = arith.addf %1062, %4 : vector<16x32xf32>
    %1064 = vector.extract_strided_slice %940 {offsets = [0, 16], sizes = [32, 8], strides = [1, 1]} : vector<32x32xf32> to vector<32x8xf32>
    "tpu.trace_start"() <{level = 10 : i32, message = "qd,kd->qk"}> : () -> ()
    %cst_334 = arith.constant dense<0.000000e+00> : vector<16x32xf32>
    %1065 = tpu.matmul %1057, %1064, %cst_334 {dimension_numbers = #tpu.dot_dimension_numbers<[1], [1], [0], [0], [0, 0, 1, 0], [], []>} : vector<16x8xf32>, vector<32x8xf32>, vector<16x32xf32> -> vector<16x32xf32>
    "tpu.trace_stop"() : () -> ()
    %1066 = arith.addf %1065, %4 : vector<16x32xf32>
    %1067 = vector.extract_strided_slice %940 {offsets = [0, 24], sizes = [32, 8], strides = [1, 1]} : vector<32x32xf32> to vector<32x8xf32>
    "tpu.trace_start"() <{level = 10 : i32, message = "qd,kd->qk"}> : () -> ()
    %cst_335 = arith.constant dense<0.000000e+00> : vector<16x32xf32>
    %1068 = tpu.matmul %1057, %1067, %cst_335 {dimension_numbers = #tpu.dot_dimension_numbers<[1], [1], [0], [0], [0, 0, 1, 0], [], []>} : vector<16x8xf32>, vector<32x8xf32>, vector<16x32xf32> -> vector<16x32xf32>
    "tpu.trace_stop"() : () -> ()
    %1069 = arith.addf %1068, %4 : vector<16x32xf32>
    %1070 = arith.maximumf %1060, %1063 : vector<16x32xf32>
    %1071 = arith.maximumf %1070, %1066 : vector<16x32xf32>
    %1072 = arith.maximumf %1071, %1069 : vector<16x32xf32>
    %cst_336 = arith.constant dense<0xFF800000> : vector<16xf32>
    %1073 = vector.multi_reduction <maximumf>, %1072, %cst_336 [1] : vector<16x32xf32> to vector<16xf32>
    %1074 = vector.shape_cast %1073 : vector<16xf32> to vector<16x1xf32>
    %1075 = vector.broadcast %1074 : vector<16x1xf32> to vector<16x32xf32>
    %1076 = arith.subf %1060, %1075 : vector<16x32xf32>
    %1077 = math.exp %1076 : vector<16x32xf32>
    %1078 = vector.broadcast %1074 : vector<16x1xf32> to vector<16x32xf32>
    %1079 = arith.subf %1063, %1078 : vector<16x32xf32>
    %1080 = math.exp %1079 : vector<16x32xf32>
    %1081 = vector.broadcast %1074 : vector<16x1xf32> to vector<16x32xf32>
    %1082 = arith.subf %1066, %1081 : vector<16x32xf32>
    %1083 = math.exp %1082 : vector<16x32xf32>
    %1084 = vector.broadcast %1074 : vector<16x1xf32> to vector<16x32xf32>
    %1085 = arith.subf %1069, %1084 : vector<16x32xf32>
    %1086 = math.exp %1085 : vector<16x32xf32>
    %cst_337 = arith.constant dense<0.000000e+00> : vector<16xf32>
    %1087 = vector.multi_reduction <add>, %1077, %cst_337 [1] : vector<16x32xf32> to vector<16xf32>
    %1088 = vector.shape_cast %1087 : vector<16xf32> to vector<16x1xf32>
    %cst_338 = arith.constant dense<0.000000e+00> : vector<16xf32>
    %1089 = vector.multi_reduction <add>, %1080, %cst_338 [1] : vector<16x32xf32> to vector<16xf32>
    %1090 = vector.shape_cast %1089 : vector<16xf32> to vector<16x1xf32>
    %1091 = arith.addf %1088, %1090 : vector<16x1xf32>
    %cst_339 = arith.constant dense<0.000000e+00> : vector<16xf32>
    %1092 = vector.multi_reduction <add>, %1083, %cst_339 [1] : vector<16x32xf32> to vector<16xf32>
    %1093 = vector.shape_cast %1092 : vector<16xf32> to vector<16x1xf32>
    %1094 = arith.addf %1091, %1093 : vector<16x1xf32>
    %cst_340 = arith.constant dense<0.000000e+00> : vector<16xf32>
    %1095 = vector.multi_reduction <add>, %1086, %cst_340 [1] : vector<16x32xf32> to vector<16xf32>
    %1096 = vector.shape_cast %1095 : vector<16xf32> to vector<16x1xf32>
    %1097 = arith.addf %1094, %1096 : vector<16x1xf32>
    %1098 = tpu.reciprocal %1097 : vector<16x1xf32> -> vector<16x1xf32>
    %1099 = vector.extract_strided_slice %941 {offsets = [0, 0], sizes = [32, 8], strides = [1, 1]} : vector<32x32xf32> to vector<32x8xf32>
    %cst_341 = arith.constant dense<0.000000e+00> : vector<16x8xf32>
    %1100 = tpu.matmul %1077, %1099, %cst_341 {dimension_numbers = #tpu.dot_dimension_numbers<[1], [0], [0], [1], [0, 0, 1, 1], [], []>} : vector<16x32xf32>, vector<32x8xf32>, vector<16x8xf32> -> vector<16x8xf32>
    %1101 = vector.extract_strided_slice %941 {offsets = [0, 8], sizes = [32, 8], strides = [1, 1]} : vector<32x32xf32> to vector<32x8xf32>
    %cst_342 = arith.constant dense<0.000000e+00> : vector<16x8xf32>
    %1102 = tpu.matmul %1080, %1101, %cst_342 {dimension_numbers = #tpu.dot_dimension_numbers<[1], [0], [0], [1], [0, 0, 1, 1], [], []>} : vector<16x32xf32>, vector<32x8xf32>, vector<16x8xf32> -> vector<16x8xf32>
    %1103 = arith.addf %1100, %1102 : vector<16x8xf32>
    %1104 = vector.extract_strided_slice %941 {offsets = [0, 16], sizes = [32, 8], strides = [1, 1]} : vector<32x32xf32> to vector<32x8xf32>
    %cst_343 = arith.constant dense<0.000000e+00> : vector<16x8xf32>
    %1105 = tpu.matmul %1083, %1104, %cst_343 {dimension_numbers = #tpu.dot_dimension_numbers<[1], [0], [0], [1], [0, 0, 1, 1], [], []>} : vector<16x32xf32>, vector<32x8xf32>, vector<16x8xf32> -> vector<16x8xf32>
    %1106 = arith.addf %1103, %1105 : vector<16x8xf32>
    %1107 = vector.extract_strided_slice %941 {offsets = [0, 24], sizes = [32, 8], strides = [1, 1]} : vector<32x32xf32> to vector<32x8xf32>
    %cst_344 = arith.constant dense<0.000000e+00> : vector<16x8xf32>
    %1108 = tpu.matmul %1086, %1107, %cst_344 {dimension_numbers = #tpu.dot_dimension_numbers<[1], [0], [0], [1], [0, 0, 1, 1], [], []>} : vector<16x32xf32>, vector<32x8xf32>, vector<16x8xf32> -> vector<16x8xf32>
    %1109 = arith.addf %1106, %1108 : vector<16x8xf32>
    %1110 = vector.broadcast %1098 : vector<16x1xf32> to vector<16x8xf32>
    %1111 = arith.mulf %1109, %1110 : vector<16x8xf32>
    %1112 = vector.extract_strided_slice %639 {offsets = [16, 0], sizes = [8, 32], strides = [1, 1]} : vector<32x32xf32> to vector<8x32xf32>
    %cst_345 = arith.constant dense<0.000000e+00> : vector<16x32xf32>
    %1113 = tpu.matmul %1111, %1112, %cst_345 {dimension_numbers = #tpu.dot_dimension_numbers<[1], [0], [0], [1], [0, 0, 1, 1], [], []>} : vector<16x8xf32>, vector<8x32xf32>, vector<16x32xf32> -> vector<16x32xf32>
    %1114 = arith.addf %1056, %1113 : vector<16x32xf32>
    %1115 = vector.extract_strided_slice %936 {offsets = [0, 24], sizes = [16, 8], strides = [1, 1]} : vector<16x32xf32> to vector<16x8xf32>
    %1116 = vector.extract_strided_slice %940 {offsets = [0, 0], sizes = [32, 8], strides = [1, 1]} : vector<32x32xf32> to vector<32x8xf32>
    "tpu.trace_start"() <{level = 10 : i32, message = "qd,kd->qk"}> : () -> ()
    %cst_346 = arith.constant dense<0.000000e+00> : vector<16x32xf32>
    %1117 = tpu.matmul %1115, %1116, %cst_346 {dimension_numbers = #tpu.dot_dimension_numbers<[1], [1], [0], [0], [0, 0, 1, 0], [], []>} : vector<16x8xf32>, vector<32x8xf32>, vector<16x32xf32> -> vector<16x32xf32>
    "tpu.trace_stop"() : () -> ()
    %1118 = arith.addf %1117, %4 : vector<16x32xf32>
    %1119 = vector.extract_strided_slice %940 {offsets = [0, 8], sizes = [32, 8], strides = [1, 1]} : vector<32x32xf32> to vector<32x8xf32>
    "tpu.trace_start"() <{level = 10 : i32, message = "qd,kd->qk"}> : () -> ()
    %cst_347 = arith.constant dense<0.000000e+00> : vector<16x32xf32>
    %1120 = tpu.matmul %1115, %1119, %cst_347 {dimension_numbers = #tpu.dot_dimension_numbers<[1], [1], [0], [0], [0, 0, 1, 0], [], []>} : vector<16x8xf32>, vector<32x8xf32>, vector<16x32xf32> -> vector<16x32xf32>
    "tpu.trace_stop"() : () -> ()
    %1121 = arith.addf %1120, %4 : vector<16x32xf32>
    %1122 = vector.extract_strided_slice %940 {offsets = [0, 16], sizes = [32, 8], strides = [1, 1]} : vector<32x32xf32> to vector<32x8xf32>
    "tpu.trace_start"() <{level = 10 : i32, message = "qd,kd->qk"}> : () -> ()
    %cst_348 = arith.constant dense<0.000000e+00> : vector<16x32xf32>
    %1123 = tpu.matmul %1115, %1122, %cst_348 {dimension_numbers = #tpu.dot_dimension_numbers<[1], [1], [0], [0], [0, 0, 1, 0], [], []>} : vector<16x8xf32>, vector<32x8xf32>, vector<16x32xf32> -> vector<16x32xf32>
    "tpu.trace_stop"() : () -> ()
    %1124 = arith.addf %1123, %4 : vector<16x32xf32>
    %1125 = vector.extract_strided_slice %940 {offsets = [0, 24], sizes = [32, 8], strides = [1, 1]} : vector<32x32xf32> to vector<32x8xf32>
    "tpu.trace_start"() <{level = 10 : i32, message = "qd,kd->qk"}> : () -> ()
    %cst_349 = arith.constant dense<0.000000e+00> : vector<16x32xf32>
    %1126 = tpu.matmul %1115, %1125, %cst_349 {dimension_numbers = #tpu.dot_dimension_numbers<[1], [1], [0], [0], [0, 0, 1, 0], [], []>} : vector<16x8xf32>, vector<32x8xf32>, vector<16x32xf32> -> vector<16x32xf32>
    "tpu.trace_stop"() : () -> ()
    %1127 = arith.addf %1126, %4 : vector<16x32xf32>
    %1128 = arith.maximumf %1118, %1121 : vector<16x32xf32>
    %1129 = arith.maximumf %1128, %1124 : vector<16x32xf32>
    %1130 = arith.maximumf %1129, %1127 : vector<16x32xf32>
    %cst_350 = arith.constant dense<0xFF800000> : vector<16xf32>
    %1131 = vector.multi_reduction <maximumf>, %1130, %cst_350 [1] : vector<16x32xf32> to vector<16xf32>
    %1132 = vector.shape_cast %1131 : vector<16xf32> to vector<16x1xf32>
    %1133 = vector.broadcast %1132 : vector<16x1xf32> to vector<16x32xf32>
    %1134 = arith.subf %1118, %1133 : vector<16x32xf32>
    %1135 = math.exp %1134 : vector<16x32xf32>
    %1136 = vector.broadcast %1132 : vector<16x1xf32> to vector<16x32xf32>
    %1137 = arith.subf %1121, %1136 : vector<16x32xf32>
    %1138 = math.exp %1137 : vector<16x32xf32>
    %1139 = vector.broadcast %1132 : vector<16x1xf32> to vector<16x32xf32>
    %1140 = arith.subf %1124, %1139 : vector<16x32xf32>
    %1141 = math.exp %1140 : vector<16x32xf32>
    %1142 = vector.broadcast %1132 : vector<16x1xf32> to vector<16x32xf32>
    %1143 = arith.subf %1127, %1142 : vector<16x32xf32>
    %1144 = math.exp %1143 : vector<16x32xf32>
    %cst_351 = arith.constant dense<0.000000e+00> : vector<16xf32>
    %1145 = vector.multi_reduction <add>, %1135, %cst_351 [1] : vector<16x32xf32> to vector<16xf32>
    %1146 = vector.shape_cast %1145 : vector<16xf32> to vector<16x1xf32>
    %cst_352 = arith.constant dense<0.000000e+00> : vector<16xf32>
    %1147 = vector.multi_reduction <add>, %1138, %cst_352 [1] : vector<16x32xf32> to vector<16xf32>
    %1148 = vector.shape_cast %1147 : vector<16xf32> to vector<16x1xf32>
    %1149 = arith.addf %1146, %1148 : vector<16x1xf32>
    %cst_353 = arith.constant dense<0.000000e+00> : vector<16xf32>
    %1150 = vector.multi_reduction <add>, %1141, %cst_353 [1] : vector<16x32xf32> to vector<16xf32>
    %1151 = vector.shape_cast %1150 : vector<16xf32> to vector<16x1xf32>
    %1152 = arith.addf %1149, %1151 : vector<16x1xf32>
    %cst_354 = arith.constant dense<0.000000e+00> : vector<16xf32>
    %1153 = vector.multi_reduction <add>, %1144, %cst_354 [1] : vector<16x32xf32> to vector<16xf32>
    %1154 = vector.shape_cast %1153 : vector<16xf32> to vector<16x1xf32>
    %1155 = arith.addf %1152, %1154 : vector<16x1xf32>
    %1156 = tpu.reciprocal %1155 : vector<16x1xf32> -> vector<16x1xf32>
    %1157 = vector.extract_strided_slice %941 {offsets = [0, 0], sizes = [32, 8], strides = [1, 1]} : vector<32x32xf32> to vector<32x8xf32>
    %cst_355 = arith.constant dense<0.000000e+00> : vector<16x8xf32>
    %1158 = tpu.matmul %1135, %1157, %cst_355 {dimension_numbers = #tpu.dot_dimension_numbers<[1], [0], [0], [1], [0, 0, 1, 1], [], []>} : vector<16x32xf32>, vector<32x8xf32>, vector<16x8xf32> -> vector<16x8xf32>
    %1159 = vector.extract_strided_slice %941 {offsets = [0, 8], sizes = [32, 8], strides = [1, 1]} : vector<32x32xf32> to vector<32x8xf32>
    %cst_356 = arith.constant dense<0.000000e+00> : vector<16x8xf32>
    %1160 = tpu.matmul %1138, %1159, %cst_356 {dimension_numbers = #tpu.dot_dimension_numbers<[1], [0], [0], [1], [0, 0, 1, 1], [], []>} : vector<16x32xf32>, vector<32x8xf32>, vector<16x8xf32> -> vector<16x8xf32>
    %1161 = arith.addf %1158, %1160 : vector<16x8xf32>
    %1162 = vector.extract_strided_slice %941 {offsets = [0, 16], sizes = [32, 8], strides = [1, 1]} : vector<32x32xf32> to vector<32x8xf32>
    %cst_357 = arith.constant dense<0.000000e+00> : vector<16x8xf32>
    %1163 = tpu.matmul %1141, %1162, %cst_357 {dimension_numbers = #tpu.dot_dimension_numbers<[1], [0], [0], [1], [0, 0, 1, 1], [], []>} : vector<16x32xf32>, vector<32x8xf32>, vector<16x8xf32> -> vector<16x8xf32>
    %1164 = arith.addf %1161, %1163 : vector<16x8xf32>
    %1165 = vector.extract_strided_slice %941 {offsets = [0, 24], sizes = [32, 8], strides = [1, 1]} : vector<32x32xf32> to vector<32x8xf32>
    %cst_358 = arith.constant dense<0.000000e+00> : vector<16x8xf32>
    %1166 = tpu.matmul %1144, %1165, %cst_358 {dimension_numbers = #tpu.dot_dimension_numbers<[1], [0], [0], [1], [0, 0, 1, 1], [], []>} : vector<16x32xf32>, vector<32x8xf32>, vector<16x8xf32> -> vector<16x8xf32>
    %1167 = arith.addf %1164, %1166 : vector<16x8xf32>
    %1168 = vector.broadcast %1156 : vector<16x1xf32> to vector<16x8xf32>
    %1169 = arith.mulf %1167, %1168 : vector<16x8xf32>
    %1170 = vector.extract_strided_slice %639 {offsets = [24, 0], sizes = [8, 32], strides = [1, 1]} : vector<32x32xf32> to vector<8x32xf32>
    %cst_359 = arith.constant dense<0.000000e+00> : vector<16x32xf32>
    %1171 = tpu.matmul %1169, %1170, %cst_359 {dimension_numbers = #tpu.dot_dimension_numbers<[1], [0], [0], [1], [0, 0, 1, 1], [], []>} : vector<16x8xf32>, vector<8x32xf32>, vector<16x32xf32> -> vector<16x32xf32>
    %1172 = arith.addf %1114, %1171 : vector<16x32xf32>
    %1173 = vector.broadcast %640 : vector<1x32xf32> to vector<16x32xf32>
    %1174 = arith.addf %1172, %1173 : vector<16x32xf32>
    %1175 = arith.addf %933, %1174 : vector<16x32xf32>
    %cst_360 = arith.constant dense<0.000000e+00> : vector<16xf32>
    %1176 = vector.multi_reduction <add>, %1175, %cst_360 [1] : vector<16x32xf32> to vector<16xf32>
    %1177 = vector.shape_cast %1176 : vector<16xf32> to vector<16x1xf32>
    %cst_361 = arith.constant 3.200000e+01 : f32
    %1178 = vector.broadcast %cst_361 : f32 to vector<16x1xf32>
    %1179 = arith.divf %1177, %1178 : vector<16x1xf32>
    %1180 = vector.broadcast %1179 : vector<16x1xf32> to vector<16x32xf32>
    %1181 = arith.subf %1175, %1180 : vector<16x32xf32>
    %1182 = arith.mulf %1181, %1181 : vector<16x32xf32>
    %cst_362 = arith.constant dense<0.000000e+00> : vector<16xf32>
    %1183 = vector.multi_reduction <add>, %1182, %cst_362 [1] : vector<16x32xf32> to vector<16xf32>
    %1184 = vector.shape_cast %1183 : vector<16xf32> to vector<16x1xf32>
    %cst_363 = arith.constant 3.200000e+01 : f32
    %1185 = vector.broadcast %cst_363 : f32 to vector<16x1xf32>
    %1186 = arith.divf %1184, %1185 : vector<16x1xf32>
    %1187 = vector.broadcast %1179 : vector<16x1xf32> to vector<16x32xf32>
    %1188 = arith.subf %1175, %1187 : vector<16x32xf32>
    %cst_364 = arith.constant 9.99999974E-6 : f32
    %1189 = vector.broadcast %cst_364 : f32 to vector<16x1xf32>
    %1190 = arith.addf %1186, %1189 : vector<16x1xf32>
    %1191 = math.rsqrt %1190 : vector<16x1xf32>
    %1192 = vector.broadcast %1191 : vector<16x1xf32> to vector<16x32xf32>
    %1193 = arith.mulf %1188, %1192 : vector<16x32xf32>
    %1194 = vector.broadcast %641 : vector<1x32xf32> to vector<16x32xf32>
    %1195 = arith.mulf %1193, %1194 : vector<16x32xf32>
    %1196 = vector.broadcast %642 : vector<1x32xf32> to vector<16x32xf32>
    %1197 = arith.addf %1195, %1196 : vector<16x32xf32>
    %cst_365 = arith.constant dense<0.000000e+00> : vector<16x64xf32>
    %1198 = tpu.matmul %1197, %643, %cst_365 {dimension_numbers = #tpu.dot_dimension_numbers<[1], [0], [0], [1], [0, 0, 1, 1], [], []>} : vector<16x32xf32>, vector<32x64xf32>, vector<16x64xf32> -> vector<16x64xf32>
    %1199 = vector.broadcast %644 : vector<1x64xf32> to vector<16x64xf32>
    %1200 = arith.addf %1198, %1199 : vector<16x64xf32>
    %cst_366 = arith.constant 0.000000e+00 : f32
    %1201 = vector.broadcast %cst_366 : f32 to vector<16x64xf32>
    %1202 = arith.maximumf %1200, %1201 : vector<16x64xf32>
    %cst_367 = arith.constant dense<0.000000e+00> : vector<16x32xf32>
    %1203 = tpu.matmul %1202, %645, %cst_367 {dimension_numbers = #tpu.dot_dimension_numbers<[1], [0], [0], [1], [0, 0, 1, 1], [], []>} : vector<16x64xf32>, vector<64x32xf32>, vector<16x32xf32> -> vector<16x32xf32>
    %1204 = vector.broadcast %646 : vector<1x32xf32> to vector<16x32xf32>
    %1205 = arith.addf %1203, %1204 : vector<16x32xf32>
    %1206 = arith.addf %1197, %1205 : vector<16x32xf32>
    %cst_368 = arith.constant dense<0.000000e+00> : vector<16xf32>
    %1207 = vector.multi_reduction <add>, %1206, %cst_368 [1] : vector<16x32xf32> to vector<16xf32>
    %1208 = vector.shape_cast %1207 : vector<16xf32> to vector<16x1xf32>
    %cst_369 = arith.constant 3.200000e+01 : f32
    %1209 = vector.broadcast %cst_369 : f32 to vector<16x1xf32>
    %1210 = arith.divf %1208, %1209 : vector<16x1xf32>
    %1211 = vector.broadcast %1210 : vector<16x1xf32> to vector<16x32xf32>
    %1212 = arith.subf %1206, %1211 : vector<16x32xf32>
    %1213 = arith.mulf %1212, %1212 : vector<16x32xf32>
    %cst_370 = arith.constant dense<0.000000e+00> : vector<16xf32>
    %1214 = vector.multi_reduction <add>, %1213, %cst_370 [1] : vector<16x32xf32> to vector<16xf32>
    %1215 = vector.shape_cast %1214 : vector<16xf32> to vector<16x1xf32>
    %cst_371 = arith.constant 3.200000e+01 : f32
    %1216 = vector.broadcast %cst_371 : f32 to vector<16x1xf32>
    %1217 = arith.divf %1215, %1216 : vector<16x1xf32>
    %1218 = vector.broadcast %1210 : vector<16x1xf32> to vector<16x32xf32>
    %1219 = arith.subf %1206, %1218 : vector<16x32xf32>
    %cst_372 = arith.constant 9.99999974E-6 : f32
    %1220 = vector.broadcast %cst_372 : f32 to vector<16x1xf32>
    %1221 = arith.addf %1217, %1220 : vector<16x1xf32>
    %1222 = math.rsqrt %1221 : vector<16x1xf32>
    %1223 = vector.broadcast %1222 : vector<16x1xf32> to vector<16x32xf32>
    %1224 = arith.mulf %1219, %1223 : vector<16x32xf32>
    %1225 = vector.broadcast %647 : vector<1x32xf32> to vector<16x32xf32>
    %1226 = arith.mulf %1224, %1225 : vector<16x32xf32>
    %1227 = vector.broadcast %648 : vector<1x32xf32> to vector<16x32xf32>
    %1228 = arith.addf %1226, %1227 : vector<16x32xf32>
    %c0_373 = arith.constant 0 : index
    %c0_374 = arith.constant 0 : index
    %1229 = vector.load %arg47[%c0_373, %c0_374] : memref<16x32xf32, #tpu.memory_space<vmem>>, vector<16x32xf32>
    tpu.vector_store %arg47[%c0_373, %c0_374], %1228 {strides = array<i32>} : memref<16x32xf32, #tpu.memory_space<vmem>>, vector<16x32xf32>,
    return
  }
}

</mosaic_0001>

<bundles_post_ra>
// kernel: transformer_decoder.1
= control target key start
LH: loop header
LB: loop body
LE: loop exit
PB: predicated region body
PF: predicated region fallthrough
CT: control target
= control target key end

     0   :  { %s20332_s6 = smov 1   ;;  %s20333_s10 = smov 2   ;;  %s22942_s0 = inlined_call_operand.smem [shape: u32[48], index: -1, kind: input, shape index: {}] }
   0x1   :  { %s20434_s5 = sld [smem:[%s22942_s0]]   ;;  %s20334_s14 = smov 3  }
   0x2   :  { %s20439_s9 = sld [smem:[%s22942_s0 + %s20332_s6]]   ;;  %s20335_s18 = smov 4  }
   0x3   :  { %s20444_s13 = sld [smem:[%s22942_s0 + %s20333_s10]]   ;;  %s20336_s22 = smov 5  }
   0x4   :  { %s20449_s17 = sld [smem:[%s22942_s0 + %s20334_s14]]   ;;  %s20337_s26 = smov 6  }
   0x5   :  { %s20454_s21 = sld [smem:[%s22942_s0 + %s20335_s18]]   ;;  %s20338_s30 = smov 7  }
   0x6   :  { %s20459_s25 = sld [smem:[%s22942_s0 + %s20336_s22]]   ;;  %s20339_s4 = smov 8  }
   0x7   :  { %22973 = sst [smem:[#allocation72_spill]] %s20434_s5  ;;  %s20340_s10 = smov 9  }
   0x8   :  { %22974 = sst [smem:[#allocation73_spill]] %s20439_s9  ;;  %s20341_s15 = smov 10  }
   0x9   :  { %22975 = sst [smem:[#allocation74_spill]] %s20444_s13  ;;  %s20342_s20 = smov 11  }
   0xa   :  { %22976 = sst [smem:[#allocation75_spill]] %s20449_s17  ;;  %s20344_s1 = smov 13  }
   0xb   :  { %22977 = sst [smem:[#allocation76_spill]] %s20454_s21  ;;  %s20345_s7 = smov 14  }
   0xc   :  { %22978 = sst [smem:[#allocation77_spill]] %s20459_s25  ;;  %s20347_s22 = smov 16  }
   0xd   :  { %s20464_s29 = sld [smem:[%s22942_s0 + %s20337_s26]]   ;;  %s20343_s26 = smov 12  }
   0xe   :  { %s20469_s3 = sld [smem:[%s22942_s0 + %s20338_s30]]   ;;  %s20348_s28 = smov 17  }
   0xf   :  { %s20474_s8 = sld [smem:[%s22942_s0 + %s20339_s4]]  }
  0x10   :  { %s20479_s14 = sld [smem:[%s22942_s0 + %s20340_s10]]  }
  0x11   :  { %s20484_s19 = sld [smem:[%s22942_s0 + %s20341_s15]]   ;;  %s20346_s15 = smov 15  }
  0x12   :  { %s20489_s24 = sld [smem:[%s22942_s0 + %s20342_s20]]  }
  0x13   :  { %s20494_s30 = sld [smem:[%s22942_s0 + %s20343_s26]]  }
  0x14   :  { %22979 = sst [smem:[#allocation78_spill]] %s20469_s3 }
  0x15   :  { %22980 = sst [smem:[#allocation79_spill]] %s20474_s8 }
  0x16   :  { %22981 = sst [smem:[#allocation80_spill]] %s20479_s14 }
  0x17   :  { %s20499_s6 = sld [smem:[%s22942_s0 + %s20344_s1]]  }
  0x18   :  { %22982 = sst [smem:[#allocation81_spill]] %s20489_s24 }
  0x19   :  { %s20504_s12 = sld [smem:[%s22942_s0 + %s20345_s7]]   ;;  %s20349_s7 = smov 18  }
  0x1a   :  { %s20509_s20 = sld [smem:[%s22942_s0 + %s20346_s15]]   ;;  %s20350_s15 = smov 19  }
  0x1b   :  { %s20514_s27 = sld [smem:[%s22942_s0 + %s20347_s22]]   ;;  %s20351_s22 = smov 20  }
  0x1c   :  { %s20519_s4 = sld [smem:[%s22942_s0 + %s20348_s28]]   ;;  %s20352_s28 = smov 21  }
  0x1d   :  { %22983 = sst [smem:[#allocation82_spill]] %s20499_s6 }
  0x1e   :  { %s20524_s21 = sld [smem:[%s22942_s0 + %s20349_s7]]   ;;  %s20353_s7 = smov 22  }
  0x1f   :  { %22984 = sst [smem:[#allocation83_spill]] %s20504_s12 }
  0x20   :  { %22985 = sst [smem:[#allocation84_spill]] %s20509_s20 }
  0x21   :  { %s20529_s20 = sld [smem:[%s22942_s0 + %s20350_s15]]   ;;  %s20354_s15 = smov 23  }
  0x22   :  { %22986 = sst [smem:[#allocation85_spill]] %s20519_s4 }
  0x23   :  { %s20534_s6 = sld [smem:[%s22942_s0 + %s20351_s22]]   ;;  %s20355_s22 = smov 24  }
  0x24   :  { %22987 = sst [smem:[#allocation86_spill]] %s20524_s21 }
  0x25   :  { %s20539_s4 = sld [smem:[%s22942_s0 + %s20352_s28]]   ;;  %s20356_s28 = smov 25  }
  0x26   :  { %s20544_s9 = sld [smem:[%s22942_s0 + %s20353_s7]]   ;;  %s20357_s7 = smov 26  }
  0x27   :  { %s20549_s14 = sld [smem:[%s22942_s0 + %s20354_s15]]   ;;  %s20358_s15 = smov 27  }
  0x28   :  { %s20554_s25 = sld [smem:[%s22942_s0 + %s20355_s22]]   ;;  %s20359_s22 = smov 28  }
  0x29   :  { %22988 = sst [smem:[#allocation87_spill]] %s20534_s6 }
  0x2a   :  { %s20559_s3 = sld [smem:[%s22942_s0 + %s20356_s28]]   ;;  %s20360_s28 = smov 29  }
  0x2b   :  { %s20564_s13 = sld [smem:[%s22942_s0 + %s20357_s7]]   ;;  %s20361_s7 = smov 30  }
  0x2c   :  { %22989 = sst [smem:[#allocation88_spill]] %s20544_s9 }
  0x2d   :  { %22990 = sst [smem:[#allocation89_spill]] %s20549_s14 }
  0x2e   :  { %s20569_s14 = sld [smem:[%s22942_s0 + %s20358_s15]]   ;;  %s20362_s15 = smov 31  }
  0x2f   :  { %s20574_s5 = sld [smem:[%s22942_s0 + %s20359_s22]]   ;;  %s20363_s22 = smov 32  }
  0x30   :  { %22991 = sst [smem:[#allocation90_spill]] %s20559_s3 }
  0x31   :  { %s20579_s3 = sld [smem:[%s22942_s0 + %s20360_s28]]   ;;  %s20364_s28 = smov 33  }
  0x32   :  { %s20584_s9 = sld [smem:[%s22942_s0 + %s20361_s7]]   ;;  %s20365_s7 = smov 34  }
  0x33   :  { %s20604_s6 = sld [smem:[%s22942_s0 + %s20365_s7]]   ;;  %s20369_s7 = smov 38  }
  0x34   :  { %22992 = sst [smem:[#allocation91_spill]] %s20569_s14 }
  0x35   :  { %22993 = sst [smem:[#allocation92_spill]] %s20574_s5 }
  0x36   :  { %s20589_s14 = sld [smem:[%s22942_s0 + %s20362_s15]]   ;;  %s20366_s15 = smov 35  }
  0x37   :  { %22994 = sst [smem:[#allocation93_spill]] %s20579_s3 }
  0x38   :  { %s20594_s5 = sld [smem:[%s22942_s0 + %s20363_s22]]   ;;  %s20367_s22 = smov 36  }
  0x39   :  { %s20599_s3 = sld [smem:[%s22942_s0 + %s20364_s28]]   ;;  %s20368_s28 = smov 37  }
  0x3a   :  { %s20614_s21 = sld [smem:[%s22942_s0 + %s20367_s22]]   ;;  %s20371_s22 = smov 40  }
  0x3b   :  { %s20624_s12 = sld [smem:[%s22942_s0 + %s20369_s7]]   ;;  %s20373_s7 = smov 42  }
  0x3c   :  { %22995 = sst [smem:[#allocation94_spill]] %s20589_s14 }
  0x3d   :  { %s20609_s14 = sld [smem:[%s22942_s0 + %s20366_s15]]   ;;  %s20370_s15 = smov 39  }
  0x3e   :  { %s20634_s24 = sld [smem:[%s22942_s0 + %s20371_s22]]   ;;  %s20375_s22 = smov 44  }
  0x3f   :  { %22996 = sst [smem:[#allocation95_spill]] %s20599_s3 }
  0x40   :  { %s20619_s3 = sld [smem:[%s22942_s0 + %s20368_s28]]   ;;  %s20372_s28 = smov 41  }
  0x41   :  { %s20644_s8 = sld [smem:[%s22942_s0 + %s20373_s7]]   ;;  %s20377_s7 = smov 46  }
  0x42   :  { %s20654_s17 = sld [smem:[%s22942_s0 + %s20375_s22]]  }
  0x43   :  { %22997 = sst [smem:[#allocation96_spill]] %s20609_s14 }
  0x44   :  { %s20629_s14 = sld [smem:[%s22942_s0 + %s20370_s15]]   ;;  %s20374_s15 = smov 43  }
  0x46   :  { %22998 = sst [smem:[#allocation97_spill]] %s20619_s3 }
  0x47   :  { %s20639_s3 = sld [smem:[%s22942_s0 + %s20372_s28]]   ;;  %s20376_s28 = smov 45  }
  0x48   :  { %23001 = sst [smem:[#allocation100_spill]] %s20644_s8 }
  0x49   :  { %s20664_s8 = sld [smem:[%s22942_s0 + %s20377_s7]]  }
  0x4a   :  { %22999 = sst [smem:[#allocation98_spill]] %s20629_s14 }
  0x4b   :  { %s20649_s14 = sld [smem:[%s22942_s0 + %s20374_s15]]   ;;  %s20378_s15 = smov 47  }
  0x4d   :  { %23000 = sst [smem:[#allocation99_spill]] %s20639_s3 }
  0x4e   :  { %s20659_s3 = sld [smem:[%s22942_s0 + %s20376_s28]]  }
  0x51   :  { %23002 = sst [smem:[#allocation101_spill]] %s20649_s14 }
  0x52   :  { %s20669_s14 = sld [smem:[%s22942_s0 + %s20378_s15]]  }
  0x53   :  { %100 = vsyncpa [#allocation3], 0 }
  0x54   :  { %101 = vsyncpa [#allocation6], 0 }
  0x55   :  { %102 = vsyncpa [#allocation9], 0 }
  0x56   :  { %103 = vsyncpa [#allocation12], 0 }
  0x57   :  { %104 = vsyncpa [#allocation15], 0 }
  0x58   :  { %105 = vsyncpa [#allocation18], 0 }
  0x59   :  { %106 = vsyncpa [#allocation21], 0 }
  0x5a   :  { %107 = vsyncpa [#allocation24], 0 }
  0x5b   :  { %108 = vsyncpa [#allocation27], 0 }
  0x5c   :  { %109 = vsyncpa [#allocation30], 0 }
  0x5d   :  { %110 = vsyncpa [#allocation33], 0 }
  0x5e   :  { %111 = vsyncpa [#allocation36], 0 }
  0x5f   :  { %112 = vsyncpa [#allocation39], 0 }
  0x60   :  { %113 = vsyncpa [#allocation42], 0 }
  0x61   :  { %114 = vsyncpa [#allocation45], 0 }
  0x62   :  { %115 = vsyncpa [#allocation48], 0 }
  0x63   :  { %116 = vsyncpa [#allocation51], 0 }
  0x64   :  { %117 = vsyncpa [#allocation4], 0  ;;  %s20379_s0 = smov [#allocation5]   ;;  %s20380_s23 = smov [#allocation8]  }
  0x65   :  { %s146_s22 = sshll.u32 %s20379_s0, 4  ;;  %s170_s26 = sshll.u32 %s20380_s23, 4  ;;  %s147_s22 = int_to_ptr.vmem [resolvable:$true] %s146_s22  ;;  %s171_s26 = int_to_ptr.vmem [resolvable:$true] %s170_s26 }
  0x66   :  { %s19548_s28 = scalar_lea.hbm %s20464_s29, 16 }
  0x67   :  { %p19549_p0 = scmp.ne.s32.totalorder %s20464_s29, %s19548_s28  ;;  %p19552_p1 = scmp.lt.u32.totalorder %s19548_s28, %s20464_s29 }
  0x69   :  { %p19554_p2 = pnand %p19552_p1, %p19549_p0 }
  0x6b   :  { %19557 = shalt.err (!%p19554_p2)
}
  0x6c   :  { %s19558_s1 = scalar_lea.vmem %s147_s22, 16  ;;  %s19562_s2 = scalar_lea.vmem %s147_s22, 32 }
  0x6d   :  { %p19559_p3 = scmp.ne.s32.totalorder %s147_s22, %s19558_s1  ;;  %p19563_p4 = scmp.lt.s32.totalorder %s147_s22, %s147_s22 }
  0x6e   :  { %p19564_p5 = scmp.lt.s32.totalorder %s19562_s2, %s19558_s1 }
  0x70   :  { %p19565_p6 = por %p19564_p5, %p19563_p4 }
  0x72   :  { %p19566_p7 = pnand %p19565_p6, %p19559_p3 }
  0x74   :  { %19569 = shalt.err (!%p19566_p7)
}
  0x75   :  { %149 = dma.hbm_to_vmem [thread:$0]  %s20464_s29, 16, %s147_s22, [#allocation6]  }
  0x76   :  { %s19570_s7 = scalar_lea.hbm %s20484_s19, 16 }
  0x77   :  { %p19571_p8 = scmp.ne.s32.totalorder %s20484_s19, %s19570_s7  ;;  %p19574_p9 = scmp.lt.u32.totalorder %s19570_s7, %s20484_s19 }
  0x79   :  { %p19576_p10 = pnand %p19574_p9, %p19571_p8 }
  0x7b   :  { %19579 = shalt.err (!%p19576_p10)
}
  0x7c   :  { %s19580_s10 = scalar_lea.vmem %s171_s26, 16  ;;  %s19584_s11 = scalar_lea.vmem %s171_s26, 32 }
  0x7d   :  { %p19581_p11 = scmp.ne.s32.totalorder %s171_s26, %s19580_s10  ;;  %p19585_p12 = scmp.lt.s32.totalorder %s171_s26, %s171_s26 }
  0x7e   :  { %p19586_p13 = scmp.lt.s32.totalorder %s19584_s11, %s19580_s10 }
  0x80   :  { %p19587_p0 = por %p19586_p13, %p19585_p12 }
  0x82   :  { %p19588_p1 = pnand %p19587_p0, %p19581_p11 }
  0x84   :  { %19591 = shalt.err (!%p19588_p1)
}
  0x85   :  { %173 = dma.hbm_to_vmem [thread:$0]  %s20484_s19, 16, %s171_s26, [#allocation9]  }
  0x86   :  { %s20381_s15 = smov [#allocation11]   ;;  %s20382_s16 = smov [#allocation14]  }
  0x87   :  { %s190_s29 = sshll.u32 %s20381_s15, 4  ;;  %s214_s18 = sshll.u32 %s20382_s16, 4  ;;  %s191_s29 = int_to_ptr.vmem [resolvable:$true] %s190_s29  ;;  %s215_s18 = int_to_ptr.vmem [resolvable:$true] %s214_s18 }
  0x88   :  { %s19592_s0 = scalar_lea.hbm %s20494_s30, 16 }
  0x89   :  { %p19593_p2 = scmp.ne.s32.totalorder %s20494_s30, %s19592_s0  ;;  %p19596_p3 = scmp.lt.u32.totalorder %s19592_s0, %s20494_s30 }
  0x8b   :  { %p19598_p4 = pnand %p19596_p3, %p19593_p2 }
  0x8d   :  { %19601 = shalt.err (!%p19598_p4)
}
  0x8e   :  { %s19602_s22 = scalar_lea.vmem %s191_s29, 16  ;;  %s19606_s23 = scalar_lea.vmem %s191_s29, 32 }
  0x8f   :  { %p19603_p5 = scmp.ne.s32.totalorder %s191_s29, %s19602_s22  ;;  %p19607_p6 = scmp.lt.s32.totalorder %s191_s29, %s191_s29 }
  0x90   :  { %p19608_p7 = scmp.lt.s32.totalorder %s19606_s23, %s19602_s22 }
  0x92   :  { %p19609_p8 = por %p19608_p7, %p19607_p6 }
  0x94   :  { %p19610_p9 = pnand %p19609_p8, %p19603_p5 }
  0x96   :  { %19613 = shalt.err (!%p19610_p9)
}
  0x97   :  { %193 = dma.hbm_to_vmem [thread:$0]  %s20494_s30, 16, %s191_s29, [#allocation12]  }
  0x98   :  { %s19614_s19 = scalar_lea.hbm %s20514_s27, 16 }
  0x99   :  { %p19615_p10 = scmp.ne.s32.totalorder %s20514_s27, %s19614_s19  ;;  %p19618_p11 = scmp.lt.u32.totalorder %s19614_s19, %s20514_s27 }
  0x9b   :  { %p19620_p12 = pnand %p19618_p11, %p19615_p10 }
  0x9d   :  { %19623 = shalt.err (!%p19620_p12)
}
  0x9e   :  { %s19624_s26 = scalar_lea.vmem %s215_s18, 16  ;;  %s19628_s28 = scalar_lea.vmem %s215_s18, 32 }
  0x9f   :  { %p19625_p13 = scmp.ne.s32.totalorder %s215_s18, %s19624_s26  ;;  %p19629_p0 = scmp.lt.s32.totalorder %s215_s18, %s215_s18 }
  0xa0   :  { %p19630_p1 = scmp.lt.s32.totalorder %s19628_s28, %s19624_s26 }
  0xa2   :  { %p19631_p2 = por %p19630_p1, %p19629_p0 }
  0xa4   :  { %p19632_p3 = pnand %p19631_p2, %p19625_p13 }
  0xa6   :  { %19635 = shalt.err (!%p19632_p3)
}
  0xa7   :  { %217 = dma.hbm_to_vmem [thread:$0]  %s20514_s27, 16, %s215_s18, [#allocation15]  }
  0xa8   :  { %s20383_s1 = smov [#allocation17]   ;;  %s19636_s2 = scalar_lea.hbm %s20529_s20, 16 }
  0xa9   :  { %s236_s30 = sshll.u32 %s20383_s1, 4  ;;  %p19637_p4 = scmp.ne.s32.totalorder %s20529_s20, %s19636_s2  ;;  %s237_s30 = int_to_ptr.vmem [resolvable:$true] %s236_s30 }
  0xaa   :  { %p19640_p5 = scmp.lt.u32.totalorder %s19636_s2, %s20529_s20 }
  0xac   :  { %p19642_p6 = pnand %p19640_p5, %p19637_p4 }
  0xae   :  { %19645 = shalt.err (!%p19642_p6)
}
  0xaf   :  { %s19646_s7 = scalar_lea.vmem %s237_s30, 16  ;;  %s19650_s10 = scalar_lea.vmem %s237_s30, 32 }
  0xb0   :  { %p19647_p7 = scmp.ne.s32.totalorder %s237_s30, %s19646_s7  ;;  %p19651_p8 = scmp.lt.s32.totalorder %s237_s30, %s237_s30 }
  0xb1   :  { %p19652_p9 = scmp.lt.s32.totalorder %s19650_s10, %s19646_s7 }
  0xb3   :  { %p19653_p10 = por %p19652_p9, %p19651_p8 }
  0xb5   :  { %p19654_p11 = pnand %p19653_p10, %p19647_p7 }
  0xb7   :  { %19657 = shalt.err (!%p19654_p11)
}
  0xb8   :  { %239 = dma.hbm_to_vmem [thread:$0]  %s20529_s20, 16, %s237_s30, [#allocation18]  }
  0xb9   :  { %s20384_s27 = smov [#allocation20]   ;;  %s20385_s15 = smov [#allocation23]  }
  0xba   :  { %s255_s11 = sshll.u32 %s20384_s27, 4  ;;  %s280_s29 = sshll.u32 %s20385_s15, 4  ;;  %s256_s11 = int_to_ptr.vmem [resolvable:$true] %s255_s11  ;;  %s281_s29 = int_to_ptr.vmem [resolvable:$true] %s280_s29 }
  0xbb   :  { %s19658_s16 = scalar_lea.hbm %s20539_s4, 512 }
  0xbc   :  { %p19659_p12 = scmp.ne.s32.totalorder %s20539_s4, %s19658_s16  ;;  %p19662_p13 = scmp.lt.u32.totalorder %s19658_s16, %s20539_s4 }
  0xbe   :  { %p19664_p0 = pnand %p19662_p13, %p19659_p12 }
  0xc0   :  { %19667 = shalt.err (!%p19664_p0)
}
  0xc1   :  { %s19668_s18 = scalar_lea.vmem %s256_s11, 512  ;;  %p19673_p2 = scmp.lt.s32.totalorder %s256_s11, %s256_s11 }
  0xc2   :  { %p19669_p1 = scmp.ne.s32.totalorder %s256_s11, %s19668_s18  ;;  %p19674_p3 = scmp.lt.s32.totalorder %s19668_s18, %s19668_s18 }
  0xc4   :  { %p19675_p4 = por %p19674_p3, %p19673_p2 }
  0xc6   :  { %p19676_p5 = pnand %p19675_p4, %p19669_p1 }
  0xc8   :  { %19679 = shalt.err (!%p19676_p5)
}
  0xc9   :  { %s20386_s0 = smov 128   ;;  %s20387_s20 = smov 8  }
  0xca   :  { %261 = dma.hbm_to_vmem [thread:$0]  %s20539_s4, 512, %s256_s11, [#allocation21], %s20386_s0, %s20386_s0, %s20387_s20  }
  0xcb   :  { %s19680_s22 = scalar_lea.hbm %s20554_s25, 16 }
  0xcc   :  { %p19681_p6 = scmp.ne.s32.totalorder %s20554_s25, %s19680_s22  ;;  %p19684_p7 = scmp.lt.u32.totalorder %s19680_s22, %s20554_s25 }
  0xce   :  { %p19686_p8 = pnand %p19684_p7, %p19681_p6 }
  0xd0   :  { %19689 = shalt.err (!%p19686_p8)
}
  0xd1   :  { %s19690_s23 = scalar_lea.vmem %s281_s29, 16  ;;  %s19694_s19 = scalar_lea.vmem %s281_s29, 32 }
  0xd2   :  { %p19691_p9 = scmp.ne.s32.totalorder %s281_s29, %s19690_s23  ;;  %p19695_p10 = scmp.lt.s32.totalorder %s281_s29, %s281_s29 }
  0xd3   :  { %p19696_p11 = scmp.lt.s32.totalorder %s19694_s19, %s19690_s23 }
  0xd5   :  { %p19697_p12 = por %p19696_p11, %p19695_p10 }
  0xd7   :  { %p19698_p13 = pnand %p19697_p12, %p19691_p9 }
  0xd9   :  { %19701 = shalt.err (!%p19698_p13)
}
  0xda   :  { %283 = dma.hbm_to_vmem [thread:$0]  %s20554_s25, 16, %s281_s29, [#allocation24]  }
  0xdb   :  { %s20388_s4 = smov [#allocation26]   ;;  %s20389_s28 = smov [#allocation29]  }
  0xdc   :  { %s300_s26 = sshll.u32 %s20388_s4, 4  ;;  %s324_s1 = sshll.u32 %s20389_s28, 4  ;;  %s301_s26 = int_to_ptr.vmem [resolvable:$true] %s300_s26  ;;  %s325_s1 = int_to_ptr.vmem [resolvable:$true] %s324_s1 }
  0xdd   :  { %s19702_s30 = scalar_lea.hbm %s20564_s13, 16 }
  0xde   :  { %p19703_p0 = scmp.ne.s32.totalorder %s20564_s13, %s19702_s30  ;;  %p19706_p1 = scmp.lt.u32.totalorder %s19702_s30, %s20564_s13 }
  0xe0   :  { %p19708_p2 = pnand %p19706_p1, %p19703_p0 }
  0xe2   :  { %19711 = shalt.err (!%p19708_p2)
}
  0xe3   :  { %s19712_s2 = scalar_lea.vmem %s301_s26, 16  ;;  %s19716_s7 = scalar_lea.vmem %s301_s26, 32 }
  0xe4   :  { %p19713_p3 = scmp.ne.s32.totalorder %s301_s26, %s19712_s2  ;;  %p19717_p4 = scmp.lt.s32.totalorder %s301_s26, %s301_s26 }
  0xe5   :  { %p19718_p5 = scmp.lt.s32.totalorder %s19716_s7, %s19712_s2 }
  0xe7   :  { %p19719_p6 = por %p19718_p5, %p19717_p4 }
  0xe9   :  { %p19720_p7 = pnand %p19719_p6, %p19713_p3 }
  0xeb   :  { %19723 = shalt.err (!%p19720_p7)
}
  0xec   :  { %303 = dma.hbm_to_vmem [thread:$0]  %s20564_s13, 16, %s301_s26, [#allocation27]  }
  0xed   :  { %s19724_s25 = scalar_lea.hbm %s20584_s9, 16 }
  0xee   :  { %p19725_p8 = scmp.ne.s32.totalorder %s20584_s9, %s19724_s25  ;;  %p19728_p9 = scmp.lt.u32.totalorder %s19724_s25, %s20584_s9 }
  0xf0   :  { %p19730_p10 = pnand %p19728_p9, %p19725_p8 }
  0xf2   :  { %19733 = shalt.err (!%p19730_p10)
}
  0xf3   :  { %s19734_s10 = scalar_lea.vmem %s325_s1, 16  ;;  %s19738_s27 = scalar_lea.vmem %s325_s1, 32 }
  0xf4   :  { %p19735_p11 = scmp.ne.s32.totalorder %s325_s1, %s19734_s10  ;;  %p19739_p12 = scmp.lt.s32.totalorder %s325_s1, %s325_s1 }
  0xf5   :  { %p19740_p13 = scmp.lt.s32.totalorder %s19738_s27, %s19734_s10 }
  0xf7   :  { %p19741_p0 = por %p19740_p13, %p19739_p12 }
  0xf9   :  { %p19742_p1 = pnand %p19741_p0, %p19735_p11 }
  0xfb   :  { %19745 = shalt.err (!%p19742_p1)
}
  0xfc   :  { %327 = dma.hbm_to_vmem [thread:$0]  %s20584_s9, 16, %s325_s1, [#allocation30]  }
  0xfd   :  { %s20390_s13 = smov [#allocation32]   ;;  %s20391_s15 = smov [#allocation35]  }
  0xfe   :  { %s344_s11 = sshll.u32 %s20390_s13, 4  ;;  %s366_s29 = sshll.u32 %s20391_s15, 4  ;;  %s345_s11 = int_to_ptr.vmem [resolvable:$true] %s344_s11  ;;  %s367_s29 = int_to_ptr.vmem [resolvable:$true] %s366_s29 }
  0xff   :  { %s19746_s16 = scalar_lea.hbm %s20594_s5, 16 }
 0x100   :  { %p19747_p2 = scmp.ne.s32.totalorder %s20594_s5, %s19746_s16  ;;  %p19750_p3 = scmp.lt.u32.totalorder %s19746_s16, %s20594_s5 }
 0x102   :  { %p19752_p4 = pnand %p19750_p3, %p19747_p2 }
 0x104   :  { %19755 = shalt.err (!%p19752_p4)
}
 0x105   :  { %s19756_s18 = scalar_lea.vmem %s345_s11, 16  ;;  %s19760_s22 = scalar_lea.vmem %s345_s11, 32 }
 0x106   :  { %p19757_p5 = scmp.ne.s32.totalorder %s345_s11, %s19756_s18  ;;  %p19761_p6 = scmp.lt.s32.totalorder %s345_s11, %s345_s11 }
 0x107   :  { %p19762_p7 = scmp.lt.s32.totalorder %s19760_s22, %s19756_s18 }
 0x109   :  { %p19763_p8 = por %p19762_p7, %p19761_p6 }
 0x10b   :  { %p19764_p9 = pnand %p19763_p8, %p19757_p5 }
 0x10d   :  { %19767 = shalt.err (!%p19764_p9)
}
 0x10e   :  { %347 = dma.hbm_to_vmem [thread:$0]  %s20594_s5, 16, %s345_s11, [#allocation33]  }
 0x10f   :  { %s19768_s9 = scalar_lea.hbm %s20604_s6, 16 }
 0x110   :  { %p19769_p10 = scmp.ne.s32.totalorder %s20604_s6, %s19768_s9  ;;  %p19772_p11 = scmp.lt.u32.totalorder %s19768_s9, %s20604_s6 }
 0x112   :  { %p19774_p12 = pnand %p19772_p11, %p19769_p10 }
 0x114   :  { %19777 = shalt.err (!%p19774_p12)
}
 0x115   :  { %s19778_s23 = scalar_lea.vmem %s367_s29, 16  ;;  %s19782_s19 = scalar_lea.vmem %s367_s29, 32 }
 0x116   :  { %p19779_p13 = scmp.ne.s32.totalorder %s367_s29, %s19778_s23  ;;  %p19783_p0 = scmp.lt.s32.totalorder %s367_s29, %s367_s29 }
 0x117   :  { %p19784_p1 = scmp.lt.s32.totalorder %s19782_s19, %s19778_s23 }
 0x119   :  { %p19785_p2 = por %p19784_p1, %p19783_p0 }
 0x11b   :  { %p19786_p3 = pnand %p19785_p2, %p19779_p13 }
 0x11d   :  { %19789 = shalt.err (!%p19786_p3)
}
 0x11e   :  { %369 = dma.hbm_to_vmem [thread:$0]  %s20604_s6, 16, %s367_s29, [#allocation36]  }
 0x11f   :  { %s20392_s5 = smov [#allocation38]   ;;  %s20393_s26 = smov [#allocation41]  }
 0x120   :  { %s388_s4 = sshll.u32 %s20392_s5, 4  ;;  %s410_s28 = sshll.u32 %s20393_s26, 4  ;;  %s389_s4 = int_to_ptr.vmem [resolvable:$true] %s388_s4  ;;  %s411_s28 = int_to_ptr.vmem [resolvable:$true] %s410_s28 }
 0x121   :  { %s19790_s1 = scalar_lea.hbm %s20614_s21, 16 }
 0x122   :  { %p19791_p4 = scmp.ne.s32.totalorder %s20614_s21, %s19790_s1  ;;  %p19794_p5 = scmp.lt.u32.totalorder %s19790_s1, %s20614_s21 }
 0x124   :  { %p19796_p6 = pnand %p19794_p5, %p19791_p4 }
 0x126   :  { %19799 = shalt.err (!%p19796_p6)
}
 0x127   :  { %s19800_s30 = scalar_lea.vmem %s389_s4, 16  ;;  %s19804_s2 = scalar_lea.vmem %s389_s4, 32 }
 0x128   :  { %p19801_p7 = scmp.ne.s32.totalorder %s389_s4, %s19800_s30  ;;  %p19805_p8 = scmp.lt.s32.totalorder %s389_s4, %s389_s4 }
 0x129   :  { %p19806_p9 = scmp.lt.s32.totalorder %s19804_s2, %s19800_s30 }
 0x12b   :  { %p19807_p10 = por %p19806_p9, %p19805_p8 }
 0x12d   :  { %p19808_p11 = pnand %p19807_p10, %p19801_p7 }
 0x12f   :  { %19811 = shalt.err (!%p19808_p11)
}
 0x130   :  { %391 = dma.hbm_to_vmem [thread:$0]  %s20614_s21, 16, %s389_s4, [#allocation39]  }
 0x131   :  { %s19812_s6 = scalar_lea.hbm %s20624_s12, 16 }
 0x132   :  { %p19813_p12 = scmp.ne.s32.totalorder %s20624_s12, %s19812_s6  ;;  %p19816_p13 = scmp.lt.u32.totalorder %s19812_s6, %s20624_s12 }
 0x134   :  { %p19818_p0 = pnand %p19816_p13, %p19813_p12 }
 0x136   :  { %19821 = shalt.err (!%p19818_p0)
}
 0x137   :  { %s19822_s7 = scalar_lea.vmem %s411_s28, 16  ;;  %s19826_s25 = scalar_lea.vmem %s411_s28, 32 }
 0x138   :  { %p19823_p1 = scmp.ne.s32.totalorder %s411_s28, %s19822_s7  ;;  %p19827_p2 = scmp.lt.s32.totalorder %s411_s28, %s411_s28 }
 0x139   :  { %p19828_p3 = scmp.lt.s32.totalorder %s19826_s25, %s19822_s7 }
 0x13b   :  { %p19829_p4 = por %p19828_p3, %p19827_p2 }
 0x13d   :  { %p19830_p5 = pnand %p19829_p4, %p19823_p1 }
 0x13f   :  { %19833 = shalt.err (!%p19830_p5)
}
 0x140   :  { %413 = dma.hbm_to_vmem [thread:$0]  %s20624_s12, 16, %s411_s28, [#allocation42]  }
 0x141   :  { %s20394_s21 = smov [#allocation44]   ;;  %s20395_s27 = smov [#allocation47]  }
 0x142   :  { %s430_s10 = sshll.u32 %s20394_s21, 4  ;;  %s452_s13 = sshll.u32 %s20395_s27, 4  ;;  %s431_s10 = int_to_ptr.vmem [resolvable:$true] %s430_s10  ;;  %s453_s13 = int_to_ptr.vmem [resolvable:$true] %s452_s13 }
 0x143   :  { %s19834_s11 = scalar_lea.hbm %s20634_s24, 16 }
 0x144   :  { %p19835_p6 = scmp.ne.s32.totalorder %s20634_s24, %s19834_s11  ;;  %p19838_p7 = scmp.lt.u32.totalorder %s19834_s11, %s20634_s24 }
 0x146   :  { %p19840_p8 = pnand %p19838_p7, %p19835_p6 }
 0x148   :  { %19843 = shalt.err (!%p19840_p8)
}
 0x149   :  { %s19844_s15 = scalar_lea.vmem %s431_s10, 16  ;;  %s19848_s29 = scalar_lea.vmem %s431_s10, 32 }
 0x14a   :  { %p19845_p9 = scmp.ne.s32.totalorder %s431_s10, %s19844_s15  ;;  %p19849_p10 = scmp.lt.s32.totalorder %s431_s10, %s431_s10 }
 0x14b   :  { %p19850_p11 = scmp.lt.s32.totalorder %s19848_s29, %s19844_s15 }
 0x14d   :  { %p19851_p12 = por %p19850_p11, %p19849_p10 }
 0x14f   :  { %p19852_p13 = pnand %p19851_p12, %p19845_p9 }
 0x151   :  { %19855 = shalt.err (!%p19852_p13)
}
 0x152   :  { %s23003_s12 = sld [smem:[#allocation100_spill]] }
 0x153   :  { %433 = dma.hbm_to_vmem [thread:$0]  %s20634_s24, 16, %s431_s10, [#allocation45]  }
 0x158   :  { %s19856_s16 = scalar_lea.hbm %s23003_s12, 16 }
 0x159   :  { %p19857_p0 = scmp.ne.s32.totalorder %s23003_s12, %s19856_s16  ;;  %p19860_p1 = scmp.lt.u32.totalorder %s19856_s16, %s23003_s12 }
 0x15b   :  { %p19862_p2 = pnand %p19860_p1, %p19857_p0 }
 0x15d   :  { %19865 = shalt.err (!%p19862_p2)
}
 0x15e   :  { %s19866_s18 = scalar_lea.vmem %s453_s13, 16  ;;  %s19870_s22 = scalar_lea.vmem %s453_s13, 32 }
 0x15f   :  { %p19867_p3 = scmp.ne.s32.totalorder %s453_s13, %s19866_s18  ;;  %p19871_p4 = scmp.lt.s32.totalorder %s453_s13, %s453_s13 }
 0x160   :  { %p19872_p5 = scmp.lt.s32.totalorder %s19870_s22, %s19866_s18 }
 0x162   :  { %p19873_p6 = por %p19872_p5, %p19871_p4 }
 0x164   :  { %p19874_p7 = pnand %p19873_p6, %p19867_p3 }
 0x166   :  { %19877 = shalt.err (!%p19874_p7)
}
 0x167   :  { %455 = dma.hbm_to_vmem [thread:$0]  %s23003_s12, 16, %s453_s13, [#allocation48]  }
 0x168   :  { %s20396_s24 = smov [#allocation50]   ;;  %s20397_s23 = smov [#allocation2]  }
 0x169   :  { %s474_s9 = sshll.u32 %s20396_s24, 4  ;;  %s129_s19 = sshll.u32 %s20397_s23, 4  ;;  %s475_s9 = int_to_ptr.vmem [resolvable:$true] %s474_s9  ;;  %s130_s19 = int_to_ptr.vmem [resolvable:$true] %s129_s19 }
 0x16a   :  { %s19878_s5 = scalar_lea.hbm %s20659_s3, 16 }
 0x16b   :  { %p19879_p8 = scmp.ne.s32.totalorder %s20659_s3, %s19878_s5  ;;  %p19882_p9 = scmp.lt.u32.totalorder %s19878_s5, %s20659_s3 }
 0x16d   :  { %p19884_p10 = pnand %p19882_p9, %p19879_p8 }
 0x16f   :  { %19887 = shalt.err (!%p19884_p10)
}
 0x170   :  { %s19888_s4 = scalar_lea.vmem %s475_s9, 16  ;;  %s19892_s26 = scalar_lea.vmem %s475_s9, 32 }
 0x171   :  { %p19889_p11 = scmp.ne.s32.totalorder %s475_s9, %s19888_s4  ;;  %p19893_p12 = scmp.lt.s32.totalorder %s475_s9, %s475_s9 }
 0x172   :  { %p19894_p13 = scmp.lt.s32.totalorder %s19892_s26, %s19888_s4 }
 0x174   :  { %p19895_p0 = por %p19894_p13, %p19893_p12 }
 0x176   :  { %p19896_p1 = pnand %p19895_p0, %p19889_p11 }
 0x178   :  { %19899 = shalt.err (!%p19896_p1)
}
 0x179   :  { %s23004_s28 = sld [smem:[#allocation75_spill]] }
 0x17a   :  { %477 = dma.hbm_to_vmem [thread:$0]  %s20659_s3, 16, %s475_s9, [#allocation51]  }
 0x17f   :  { %s19900_s1 = scalar_lea.hbm %s23004_s28, 256 }
 0x180   :  { %p19901_p2 = scmp.ne.s32.totalorder %s23004_s28, %s19900_s1  ;;  %p19904_p3 = scmp.lt.u32.totalorder %s19900_s1, %s23004_s28 }
 0x182   :  { %p19906_p4 = pnand %p19904_p3, %p19901_p2 }
 0x184   :  { %19909 = shalt.err (!%p19906_p4)
}
 0x185   :  { %s19910_s30 = scalar_lea.vmem %s130_s19, 256  ;;  %p19915_p6 = scmp.lt.s32.totalorder %s130_s19, %s130_s19 }
 0x186   :  { %p19911_p5 = scmp.ne.s32.totalorder %s130_s19, %s19910_s30  ;;  %p19916_p7 = scmp.lt.s32.totalorder %s19910_s30, %s19910_s30 }
 0x188   :  { %p19917_p8 = por %p19916_p7, %p19915_p6 }
 0x18a   :  { %p19918_p9 = pnand %p19917_p8, %p19911_p5 }
 0x18c   :  { %19921 = shalt.err (!%p19918_p9)
}
 0x18d   :  { %s23005_s2 = sld [smem:[#allocation79_spill]]  ;;  %s20398_s3 = smov [#allocation7]  }
 0x18e   :  { %135 = dma.hbm_to_vmem [thread:$0]  %s23004_s28, 256, %s130_s19, [#allocation3], %s20386_s0, %s20386_s0, %s20387_s20  }
 0x18f   :  { %s158_s6 = sshll.u32 %s20398_s3, 4  ;;  %s20399_s7 = smov [#allocation10]   ;;  %s159_s6 = int_to_ptr.vmem [resolvable:$true] %s158_s6 }
 0x190   :  { %s180_s25 = sshll.u32 %s20399_s7, 4  ;;  %s181_s25 = int_to_ptr.vmem [resolvable:$true] %s180_s25 }
 0x193   :  { %s19922_s21 = scalar_lea.hbm %s23005_s2, 16 }
 0x194   :  { %p19923_p10 = scmp.ne.s32.totalorder %s23005_s2, %s19922_s21  ;;  %p19926_p11 = scmp.lt.u32.totalorder %s19922_s21, %s23005_s2 }
 0x196   :  { %p19928_p12 = pnand %p19926_p11, %p19923_p10 }
 0x198   :  { %19931 = shalt.err (!%p19928_p12)
}
 0x199   :  { %s19932_s10 = scalar_lea.vmem %s159_s6, 16  ;;  %s19936_s27 = scalar_lea.vmem %s159_s6, 32 }
 0x19a   :  { %p19933_p13 = scmp.ne.s32.totalorder %s159_s6, %s19932_s10  ;;  %p19937_p0 = scmp.lt.s32.totalorder %s159_s6, %s159_s6 }
 0x19b   :  { %p19938_p1 = scmp.lt.s32.totalorder %s19936_s27, %s19932_s10 }
 0x19d   :  { %p19939_p2 = por %p19938_p1, %p19937_p0 }
 0x19f   :  { %p19940_p3 = pnand %p19939_p2, %p19933_p13 }
 0x1a1   :  { %19943 = shalt.err (!%p19940_p3)
}
 0x1a2   :  { %s23006_s13 = sld [smem:[#allocation81_spill]] }
 0x1a3   :  { %161 = dma.hbm_to_vmem [thread:$0]  %s23005_s2, 16, %s159_s6, [#allocation6]  }
 0x1a8   :  { %s19944_s11 = scalar_lea.hbm %s23006_s13, 16 }
 0x1a9   :  { %p19945_p4 = scmp.ne.s32.totalorder %s23006_s13, %s19944_s11  ;;  %p19948_p5 = scmp.lt.u32.totalorder %s19944_s11, %s23006_s13 }
 0x1ab   :  { %p19950_p6 = pnand %p19948_p5, %p19945_p4 }
 0x1ad   :  { %19953 = shalt.err (!%p19950_p6)
}
 0x1ae   :  { %s19954_s15 = scalar_lea.vmem %s181_s25, 16  ;;  %s19958_s29 = scalar_lea.vmem %s181_s25, 32 }
 0x1af   :  { %p19955_p7 = scmp.ne.s32.totalorder %s181_s25, %s19954_s15  ;;  %p19959_p8 = scmp.lt.s32.totalorder %s181_s25, %s181_s25 }
 0x1b0   :  { %p19960_p9 = scmp.lt.s32.totalorder %s19958_s29, %s19954_s15 }
 0x1b2   :  { %p19961_p10 = por %p19960_p9, %p19959_p8 }
 0x1b4   :  { %p19962_p11 = pnand %p19961_p10, %p19955_p7 }
 0x1b6   :  { %19965 = shalt.err (!%p19962_p11)
}
 0x1b7   :  { %s23007_s12 = sld [smem:[#allocation83_spill]]  ;;  %s20400_s16 = smov [#allocation13]  }
 0x1b8   :  { %183 = dma.hbm_to_vmem [thread:$0]  %s23006_s13, 16, %s181_s25, [#allocation9]  }
 0x1b9   :  { %s202_s18 = sshll.u32 %s20400_s16, 4  ;;  %s20401_s22 = smov [#allocation16]   ;;  %s203_s18 = int_to_ptr.vmem [resolvable:$true] %s202_s18 }
 0x1ba   :  { %s226_s24 = sshll.u32 %s20401_s22, 4  ;;  %s227_s24 = int_to_ptr.vmem [resolvable:$true] %s226_s24 }
 0x1bd   :  { %s19966_s9 = scalar_lea.hbm %s23007_s12, 16 }
 0x1be   :  { %p19967_p12 = scmp.ne.s32.totalorder %s23007_s12, %s19966_s9  ;;  %p19970_p13 = scmp.lt.u32.totalorder %s19966_s9, %s23007_s12 }
 0x1c0   :  { %p19972_p0 = pnand %p19970_p13, %p19967_p12 }
 0x1c2   :  { %19975 = shalt.err (!%p19972_p0)
}
 0x1c3   :  { %s19976_s23 = scalar_lea.vmem %s203_s18, 16  ;;  %s19980_s19 = scalar_lea.vmem %s203_s18, 32 }
 0x1c4   :  { %p19977_p1 = scmp.ne.s32.totalorder %s203_s18, %s19976_s23  ;;  %p19981_p2 = scmp.lt.s32.totalorder %s203_s18, %s203_s18 }
 0x1c5   :  { %p19982_p3 = scmp.lt.s32.totalorder %s19980_s19, %s19976_s23 }
 0x1c7   :  { %p19983_p4 = por %p19982_p3, %p19981_p2 }
 0x1c9   :  { %p19984_p5 = pnand %p19983_p4, %p19977_p1 }
 0x1cb   :  { %19987 = shalt.err (!%p19984_p5)
}
 0x1cc   :  { %s23008_s5 = sld [smem:[#allocation86_spill]] }
 0x1cd   :  { %205 = dma.hbm_to_vmem [thread:$0]  %s23007_s12, 16, %s203_s18, [#allocation12]  }
 0x1d2   :  { %s19988_s4 = scalar_lea.hbm %s23008_s5, 16 }
 0x1d3   :  { %p19989_p6 = scmp.ne.s32.totalorder %s23008_s5, %s19988_s4  ;;  %p19992_p7 = scmp.lt.u32.totalorder %s19988_s4, %s23008_s5 }
 0x1d5   :  { %p19994_p8 = pnand %p19992_p7, %p19989_p6 }
 0x1d7   :  { %19997 = shalt.err (!%p19994_p8)
}
 0x1d8   :  { %s19998_s26 = scalar_lea.vmem %s227_s24, 16  ;;  %s20002_s28 = scalar_lea.vmem %s227_s24, 32 }
 0x1d9   :  { %p19999_p9 = scmp.ne.s32.totalorder %s227_s24, %s19998_s26  ;;  %p20003_p10 = scmp.lt.s32.totalorder %s227_s24, %s227_s24 }
 0x1da   :  { %p20004_p11 = scmp.lt.s32.totalorder %s20002_s28, %s19998_s26 }
 0x1dc   :  { %p20005_p12 = por %p20004_p11, %p20003_p10 }
 0x1de   :  { %p20006_p13 = pnand %p20005_p12, %p19999_p9 }
 0x1e0   :  { %20009 = shalt.err (!%p20006_p13)
}
 0x1e1   :  { %s23009_s1 = sld [smem:[#allocation87_spill]]  ;;  %s20402_s30 = smov [#allocation19]  }
 0x1e2   :  { %229 = dma.hbm_to_vmem [thread:$0]  %s23008_s5, 16, %s227_s24, [#allocation15]  }
 0x1e3   :  { %s246_s2 = sshll.u32 %s20402_s30, 4  ;;  %s20403_s3 = smov [#allocation22]   ;;  %s247_s2 = int_to_ptr.vmem [resolvable:$true] %s246_s2 }
 0x1e4   :  { %s268_s6 = sshll.u32 %s20403_s3, 4  ;;  %s269_s6 = int_to_ptr.vmem [resolvable:$true] %s268_s6 }
 0x1e7   :  { %s20010_s7 = scalar_lea.hbm %s23009_s1, 16 }
 0x1e8   :  { %p20011_p0 = scmp.ne.s32.totalorder %s23009_s1, %s20010_s7  ;;  %p20014_p1 = scmp.lt.u32.totalorder %s20010_s7, %s23009_s1 }
 0x1ea   :  { %p20016_p2 = pnand %p20014_p1, %p20011_p0 }
 0x1ec   :  { %20019 = shalt.err (!%p20016_p2)
}
 0x1ed   :  { %s20020_s25 = scalar_lea.vmem %s247_s2, 16  ;;  %s20024_s21 = scalar_lea.vmem %s247_s2, 32 }
 0x1ee   :  { %p20021_p3 = scmp.ne.s32.totalorder %s247_s2, %s20020_s25  ;;  %p20025_p4 = scmp.lt.s32.totalorder %s247_s2, %s247_s2 }
 0x1ef   :  { %p20026_p5 = scmp.lt.s32.totalorder %s20024_s21, %s20020_s25 }
 0x1f1   :  { %p20027_p6 = por %p20026_p5, %p20025_p4 }
 0x1f3   :  { %p20028_p7 = pnand %p20027_p6, %p20021_p3 }
 0x1f5   :  { %20031 = shalt.err (!%p20028_p7)
}
 0x1f6   :  { %s23010_s10 = sld [smem:[#allocation88_spill]] }
 0x1f7   :  { %249 = dma.hbm_to_vmem [thread:$0]  %s23009_s1, 16, %s247_s2, [#allocation18]  }
 0x1fc   :  { %s20032_s27 = scalar_lea.hbm %s23010_s10, 16 }
 0x1fd   :  { %p20033_p8 = scmp.ne.s32.totalorder %s23010_s10, %s20032_s27  ;;  %p20036_p9 = scmp.lt.u32.totalorder %s20032_s27, %s23010_s10 }
 0x1ff   :  { %p20038_p10 = pnand %p20036_p9, %p20033_p8 }
 0x201   :  { %20041 = shalt.err (!%p20038_p10)
}
 0x202   :  { %s20042_s13 = scalar_lea.vmem %s269_s6, 16  ;;  %s20046_s11 = scalar_lea.vmem %s269_s6, 32 }
 0x203   :  { %p20043_p11 = scmp.ne.s32.totalorder %s269_s6, %s20042_s13  ;;  %p20047_p12 = scmp.lt.s32.totalorder %s269_s6, %s269_s6 }
 0x204   :  { %p20048_p13 = scmp.lt.s32.totalorder %s20046_s11, %s20042_s13 }
 0x206   :  { %p20049_p0 = por %p20048_p13, %p20047_p12 }
 0x208   :  { %p20050_p1 = pnand %p20049_p0, %p20043_p11 }
 0x20a   :  { %20053 = shalt.err (!%p20050_p1)
}
 0x20b   :  { %s23011_s15 = sld [smem:[#allocation90_spill]]  ;;  %s20404_s29 = smov [#allocation25]  }
 0x20c   :  { %271 = dma.hbm_to_vmem [thread:$0]  %s23010_s10, 16, %s269_s6, [#allocation21]  }
 0x20d   :  { %s290_s12 = sshll.u32 %s20404_s29, 4  ;;  %s20405_s16 = smov [#allocation28]   ;;  %s291_s12 = int_to_ptr.vmem [resolvable:$true] %s290_s12 }
 0x20e   :  { %s312_s18 = sshll.u32 %s20405_s16, 4  ;;  %s313_s18 = int_to_ptr.vmem [resolvable:$true] %s312_s18 }
 0x211   :  { %s20054_s22 = scalar_lea.hbm %s23011_s15, 16 }
 0x212   :  { %p20055_p2 = scmp.ne.s32.totalorder %s23011_s15, %s20054_s22  ;;  %p20058_p3 = scmp.lt.u32.totalorder %s20054_s22, %s23011_s15 }
 0x214   :  { %p20060_p4 = pnand %p20058_p3, %p20055_p2 }
 0x216   :  { %20063 = shalt.err (!%p20060_p4)
}
 0x217   :  { %s20064_s24 = scalar_lea.vmem %s291_s12, 16  ;;  %s20068_s9 = scalar_lea.vmem %s291_s12, 32 }
 0x218   :  { %p20065_p5 = scmp.ne.s32.totalorder %s291_s12, %s20064_s24  ;;  %p20069_p6 = scmp.lt.s32.totalorder %s291_s12, %s291_s12 }
 0x219   :  { %p20070_p7 = scmp.lt.s32.totalorder %s20068_s9, %s20064_s24 }
 0x21b   :  { %p20071_p8 = por %p20070_p7, %p20069_p6 }
 0x21d   :  { %p20072_p9 = pnand %p20071_p8, %p20065_p5 }
 0x21f   :  { %20075 = shalt.err (!%p20072_p9)
}
 0x220   :  { %s23012_s23 = sld [smem:[#allocation92_spill]] }
 0x221   :  { %293 = dma.hbm_to_vmem [thread:$0]  %s23011_s15, 16, %s291_s12, [#allocation24]  }
 0x226   :  { %s20076_s19 = scalar_lea.hbm %s23012_s23, 16 }
 0x227   :  { %p20077_p10 = scmp.ne.s32.totalorder %s23012_s23, %s20076_s19  ;;  %p20080_p11 = scmp.lt.u32.totalorder %s20076_s19, %s23012_s23 }
 0x229   :  { %p20082_p12 = pnand %p20080_p11, %p20077_p10 }
 0x22b   :  { %20085 = shalt.err (!%p20082_p12)
}
 0x22c   :  { %s20086_s5 = scalar_lea.vmem %s313_s18, 16  ;;  %s20090_s4 = scalar_lea.vmem %s313_s18, 32 }
 0x22d   :  { %p20087_p13 = scmp.ne.s32.totalorder %s313_s18, %s20086_s5  ;;  %p20091_p0 = scmp.lt.s32.totalorder %s313_s18, %s313_s18 }
 0x22e   :  { %p20092_p1 = scmp.lt.s32.totalorder %s20090_s4, %s20086_s5 }
 0x230   :  { %p20093_p2 = por %p20092_p1, %p20091_p0 }
 0x232   :  { %p20094_p3 = pnand %p20093_p2, %p20087_p13 }
 0x234   :  { %20097 = shalt.err (!%p20094_p3)
}
 0x235   :  { %s23013_s26 = sld [smem:[#allocation94_spill]]  ;;  %s20406_s28 = smov [#allocation31]  }
 0x236   :  { %315 = dma.hbm_to_vmem [thread:$0]  %s23012_s23, 16, %s313_s18, [#allocation27]  }
 0x237   :  { %s334_s1 = sshll.u32 %s20406_s28, 4  ;;  %s20407_s30 = smov [#allocation34]   ;;  %s335_s1 = int_to_ptr.vmem [resolvable:$true] %s334_s1 }
 0x238   :  { %s353_s2 = sshll.u32 %s20407_s30, 4  ;;  %s354_s2 = int_to_ptr.vmem [resolvable:$true] %s353_s2 }
 0x23b   :  { %s20098_s3 = scalar_lea.hbm %s23013_s26, 16 }
 0x23c   :  { %p20099_p4 = scmp.ne.s32.totalorder %s23013_s26, %s20098_s3  ;;  %p20102_p5 = scmp.lt.u32.totalorder %s20098_s3, %s23013_s26 }
 0x23e   :  { %p20104_p6 = pnand %p20102_p5, %p20099_p4 }
 0x240   :  { %20107 = shalt.err (!%p20104_p6)
}
 0x241   :  { %s20108_s6 = scalar_lea.vmem %s335_s1, 16  ;;  %s20112_s7 = scalar_lea.vmem %s335_s1, 32 }
 0x242   :  { %p20109_p7 = scmp.ne.s32.totalorder %s335_s1, %s20108_s6  ;;  %p20113_p8 = scmp.lt.s32.totalorder %s335_s1, %s335_s1 }
 0x243   :  { %p20114_p9 = scmp.lt.s32.totalorder %s20112_s7, %s20108_s6 }
 0x245   :  { %p20115_p10 = por %p20114_p9, %p20113_p8 }
 0x247   :  { %p20116_p11 = pnand %p20115_p10, %p20109_p7 }
 0x249   :  { %20119 = shalt.err (!%p20116_p11)
}
 0x24a   :  { %s23014_s25 = sld [smem:[#allocation95_spill]] }
 0x24b   :  { %337 = dma.hbm_to_vmem [thread:$0]  %s23013_s26, 16, %s335_s1, [#allocation30]  }
 0x250   :  { %s20120_s21 = scalar_lea.hbm %s23014_s25, 512 }
 0x251   :  { %p20121_p12 = scmp.ne.s32.totalorder %s23014_s25, %s20120_s21  ;;  %p20124_p13 = scmp.lt.u32.totalorder %s20120_s21, %s23014_s25 }
 0x253   :  { %p20126_p0 = pnand %p20124_p13, %p20121_p12 }
 0x255   :  { %20129 = shalt.err (!%p20126_p0)
}
 0x256   :  { %s20130_s10 = scalar_lea.vmem %s354_s2, 512  ;;  %p20135_p2 = scmp.lt.s32.totalorder %s354_s2, %s354_s2 }
 0x257   :  { %p20131_p1 = scmp.ne.s32.totalorder %s354_s2, %s20130_s10  ;;  %p20136_p3 = scmp.lt.s32.totalorder %s20130_s10, %s20130_s10 }
 0x259   :  { %p20137_p4 = por %p20136_p3, %p20135_p2 }
 0x25b   :  { %p20138_p5 = pnand %p20137_p4, %p20131_p1 }
 0x25d   :  { %20141 = shalt.err (!%p20138_p5)
}
 0x25e   :  { %s23015_s27 = sld [smem:[#allocation96_spill]]  ;;  %s20408_s13 = smov [#allocation37]  }
 0x25f   :  { %359 = dma.hbm_to_vmem [thread:$0]  %s23014_s25, 512, %s354_s2, [#allocation33], %s20386_s0, %s20386_s0, %s20387_s20  }
 0x260   :  { %s375_s11 = sshll.u32 %s20408_s13, 4  ;;  %s20409_s15 = smov [#allocation40]   ;;  %s376_s11 = int_to_ptr.vmem [resolvable:$true] %s375_s11 }
 0x261   :  { %s397_s29 = sshll.u32 %s20409_s15, 4  ;;  %s398_s29 = int_to_ptr.vmem [resolvable:$true] %s397_s29 }
 0x264   :  { %s20142_s12 = scalar_lea.hbm %s23015_s27, 512 }
 0x265   :  { %p20143_p6 = scmp.ne.s32.totalorder %s23015_s27, %s20142_s12  ;;  %p20146_p7 = scmp.lt.u32.totalorder %s20142_s12, %s23015_s27 }
 0x267   :  { %p20148_p8 = pnand %p20146_p7, %p20143_p6 }
 0x269   :  { %20151 = shalt.err (!%p20148_p8)
}
 0x26a   :  { %s20152_s16 = scalar_lea.vmem %s376_s11, 512  ;;  %p20157_p10 = scmp.lt.s32.totalorder %s376_s11, %s376_s11 }
 0x26b   :  { %p20153_p9 = scmp.ne.s32.totalorder %s376_s11, %s20152_s16  ;;  %p20158_p11 = scmp.lt.s32.totalorder %s20152_s16, %s20152_s16 }
 0x26d   :  { %p20159_p12 = por %p20158_p11, %p20157_p10 }
 0x26f   :  { %p20160_p13 = pnand %p20159_p12, %p20153_p9 }
 0x271   :  { %20163 = shalt.err (!%p20160_p13)
}
 0x272   :  { %s23016_s18 = sld [smem:[#allocation97_spill]] }
 0x273   :  { %381 = dma.hbm_to_vmem [thread:$0]  %s23015_s27, 512, %s376_s11, [#allocation36], %s20386_s0, %s20386_s0, %s20387_s20  }
 0x278   :  { %s20164_s22 = scalar_lea.hbm %s23016_s18, 512 }
 0x279   :  { %p20165_p0 = scmp.ne.s32.totalorder %s23016_s18, %s20164_s22  ;;  %p20168_p1 = scmp.lt.u32.totalorder %s20164_s22, %s23016_s18 }
 0x27b   :  { %p20170_p2 = pnand %p20168_p1, %p20165_p0 }
 0x27d   :  { %20173 = shalt.err (!%p20170_p2)
}
 0x27e   :  { %s20174_s24 = scalar_lea.vmem %s398_s29, 512  ;;  %p20179_p4 = scmp.lt.s32.totalorder %s398_s29, %s398_s29 }
 0x27f   :  { %p20175_p3 = scmp.ne.s32.totalorder %s398_s29, %s20174_s24  ;;  %p20180_p5 = scmp.lt.s32.totalorder %s20174_s24, %s20174_s24 }
 0x281   :  { %p20181_p6 = por %p20180_p5, %p20179_p4 }
 0x283   :  { %p20182_p7 = pnand %p20181_p6, %p20175_p3 }
 0x285   :  { %20185 = shalt.err (!%p20182_p7)
}
 0x286   :  { %s23017_s9 = sld [smem:[#allocation98_spill]]  ;;  %s20410_s23 = smov [#allocation43]  }
 0x287   :  { %403 = dma.hbm_to_vmem [thread:$0]  %s23016_s18, 512, %s398_s29, [#allocation39], %s20386_s0, %s20386_s0, %s20387_s20  }
 0x288   :  { %s420_s19 = sshll.u32 %s20410_s23, 4  ;;  %s20411_s5 = smov [#allocation46]   ;;  %s421_s19 = int_to_ptr.vmem [resolvable:$true] %s420_s19 }
 0x289   :  { %s439_s4 = sshll.u32 %s20411_s5, 4  ;;  %s440_s4 = int_to_ptr.vmem [resolvable:$true] %s439_s4 }
 0x28c   :  { %s20186_s26 = scalar_lea.hbm %s23017_s9, 16 }
 0x28d   :  { %p20187_p8 = scmp.ne.s32.totalorder %s23017_s9, %s20186_s26  ;;  %p20190_p9 = scmp.lt.u32.totalorder %s20186_s26, %s23017_s9 }
 0x28f   :  { %p20192_p10 = pnand %p20190_p9, %p20187_p8 }
 0x291   :  { %20195 = shalt.err (!%p20192_p10)
}
 0x292   :  { %s20196_s28 = scalar_lea.vmem %s421_s19, 16  ;;  %s20200_s1 = scalar_lea.vmem %s421_s19, 32 }
 0x293   :  { %p20197_p11 = scmp.ne.s32.totalorder %s421_s19, %s20196_s28  ;;  %p20201_p12 = scmp.lt.s32.totalorder %s421_s19, %s421_s19 }
 0x294   :  { %p20202_p13 = scmp.lt.s32.totalorder %s20200_s1, %s20196_s28 }
 0x296   :  { %p20203_p0 = por %p20202_p13, %p20201_p12 }
 0x298   :  { %p20204_p1 = pnand %p20203_p0, %p20197_p11 }
 0x29a   :  { %20207 = shalt.err (!%p20204_p1)
}
 0x29b   :  { %s23018_s30 = sld [smem:[#allocation99_spill]] }
 0x29c   :  { %423 = dma.hbm_to_vmem [thread:$0]  %s23017_s9, 16, %s421_s19, [#allocation42]  }
 0x2a1   :  { %s20208_s2 = scalar_lea.hbm %s23018_s30, 512 }
 0x2a2   :  { %p20209_p2 = scmp.ne.s32.totalorder %s23018_s30, %s20208_s2  ;;  %p20212_p3 = scmp.lt.u32.totalorder %s20208_s2, %s23018_s30 }
 0x2a4   :  { %p20214_p4 = pnand %p20212_p3, %p20209_p2 }
 0x2a6   :  { %20217 = shalt.err (!%p20214_p4)
}
 0x2a7   :  { %s20218_s3 = scalar_lea.vmem %s440_s4, 512  ;;  %p20223_p6 = scmp.lt.s32.totalorder %s440_s4, %s440_s4 }
 0x2a8   :  { %p20219_p5 = scmp.ne.s32.totalorder %s440_s4, %s20218_s3  ;;  %p20224_p7 = scmp.lt.s32.totalorder %s20218_s3, %s20218_s3 }
 0x2aa   :  { %p20225_p8 = por %p20224_p7, %p20223_p6 }
 0x2ac   :  { %p20226_p9 = pnand %p20225_p8, %p20219_p5 }
 0x2ae   :  { %20229 = shalt.err (!%p20226_p9)
}
 0x2af   :  { %445 = dma.hbm_to_vmem [thread:$0]  %s23018_s30, 512, %s440_s4, [#allocation45], %s20386_s0, %s20386_s0, %s20387_s20  }
 0x2b0   :  { %s20412_s6 = smov [#allocation49]   ;;  %s20413_s25 = smov [#allocation52]  }
 0x2b1   :  { %s464_s7 = sshll.u32 %s20412_s6, 4  ;;  %s484_s21 = sshll.u32 %s20413_s25, 4  ;;  %s465_s7 = int_to_ptr.vmem [resolvable:$true] %s464_s7  ;;  %s485_s21 = int_to_ptr.vmem [resolvable:$true] %s484_s21 }
 0x2b2   :  { %s20230_s10 = scalar_lea.hbm %s20654_s17, 16 }
 0x2b3   :  { %p20231_p10 = scmp.ne.s32.totalorder %s20654_s17, %s20230_s10  ;;  %p20234_p11 = scmp.lt.u32.totalorder %s20230_s10, %s20654_s17 }
 0x2b5   :  { %p20236_p12 = pnand %p20234_p11, %p20231_p10 }
 0x2b7   :  { %20239 = shalt.err (!%p20236_p12)
}
 0x2b8   :  { %s20240_s27 = scalar_lea.vmem %s465_s7, 16  ;;  %s20244_s13 = scalar_lea.vmem %s465_s7, 32 }
 0x2b9   :  { %p20241_p13 = scmp.ne.s32.totalorder %s465_s7, %s20240_s27  ;;  %p20245_p0 = scmp.lt.s32.totalorder %s465_s7, %s465_s7 }
 0x2ba   :  { %p20246_p1 = scmp.lt.s32.totalorder %s20244_s13, %s20240_s27 }
 0x2bc   :  { %p20247_p2 = por %p20246_p1, %p20245_p0 }
 0x2be   :  { %p20248_p3 = pnand %p20247_p2, %p20241_p13 }
 0x2c0   :  { %20251 = shalt.err (!%p20248_p3)
}
 0x2c1   :  { %467 = dma.hbm_to_vmem [thread:$0]  %s20654_s17, 16, %s465_s7, [#allocation48]  }
 0x2c2   :  { %s20252_s11 = scalar_lea.hbm %s20664_s8, 16 }
 0x2c3   :  { %p20253_p4 = scmp.ne.s32.totalorder %s20664_s8, %s20252_s11  ;;  %p20256_p5 = scmp.lt.u32.totalorder %s20252_s11, %s20664_s8 }
 0x2c5   :  { %p20258_p6 = pnand %p20256_p5, %p20253_p4 }
 0x2c7   :  { %20261 = shalt.err (!%p20258_p6)
}
 0x2c8   :  { %s20262_s15 = scalar_lea.vmem %s485_s21, 16  ;;  %s20266_s29 = scalar_lea.vmem %s485_s21, 32 }
 0x2c9   :  { %p20263_p7 = scmp.ne.s32.totalorder %s485_s21, %s20262_s15  ;;  %p20267_p8 = scmp.lt.s32.totalorder %s485_s21, %s485_s21 }
 0x2ca   :  { %p20268_p9 = scmp.lt.s32.totalorder %s20266_s29, %s20262_s15 }
 0x2cc   :  { %p20269_p10 = por %p20268_p9, %p20267_p8 }
 0x2ce   :  { %p20270_p11 = pnand %p20269_p10, %p20263_p7 }
 0x2d0   :  { %20273 = shalt.err (!%p20270_p11)
}
 0x2d1   :  { %487 = dma.hbm_to_vmem [thread:$0]  %s20664_s8, 16, %s485_s21, [#allocation51]  }
 0x2d2   :  { %20296 = dma.done.wait [#allocation3], 256  }
 0x2d3   :  { %20297 = vsyncadd [#allocation3], 4294967040 }
 0x2d4   :  { %20298 = dma.done.wait [#allocation6], 32  }
 0x2d5   :  { %20299 = vsyncadd [#allocation6], 4294967264 }
 0x2d6   :  { %20300 = dma.done.wait [#allocation9], 32  }
 0x2d7   :  { %20301 = vsyncadd [#allocation9], 4294967264 }
 0x2d8   :  { %20302 = dma.done.wait [#allocation12], 32  }
 0x2d9   :  { %20303 = vsyncadd [#allocation12], 4294967264 }
 0x2da   :  { %20304 = dma.done.wait [#allocation15], 32  }
 0x2db   :  { %20305 = vsyncadd [#allocation15], 4294967264 }
 0x2dc   :  { %20306 = dma.done.wait [#allocation18], 32  }
 0x2dd   :  { %20307 = vsyncadd [#allocation18], 4294967264 }
 0x2de   :  { %20308 = dma.done.wait [#allocation21], 528  }
 0x2df   :  { %20309 = vsyncadd [#allocation21], 4294966768 }
 0x2e0   :  { %20310 = dma.done.wait [#allocation24], 32  }
 0x2e1   :  { %20311 = vsyncadd [#allocation24], 4294967264 }
 0x2e2   :  { %20312 = dma.done.wait [#allocation27], 32  }
 0x2e3   :  { %20313 = vsyncadd [#allocation27], 4294967264 }
 0x2e4   :  { %20314 = dma.done.wait [#allocation30], 32  }
 0x2e5   :  { %20315 = vsyncadd [#allocation30], 4294967264 }
 0x2e6   :  { %20316 = dma.done.wait [#allocation33], 528  }
 0x2e7   :  { %20317 = vsyncadd [#allocation33], 4294966768 }
 0x2e8   :  { %20318 = dma.done.wait [#allocation36], 528  }
 0x2e9   :  { %20319 = vsyncadd [#allocation36], 4294966768 }
 0x2ea   :  { %20320 = dma.done.wait [#allocation39], 528  }
 0x2eb   :  { %20321 = vsyncadd [#allocation39], 4294966768 }
 0x2ec   :  { %20322 = dma.done.wait [#allocation42], 32  }
 0x2ed   :  { %20323 = vsyncadd [#allocation42], 4294967264 }
 0x2ee   :  { %20324 = dma.done.wait [#allocation45], 528  }
 0x2ef   :  { %20325 = vsyncadd [#allocation45], 4294966768 }
 0x2f0   :  { %20326 = dma.done.wait [#allocation48], 32  }
 0x2f1   :  { %20327 = vsyncadd [#allocation48], 4294967264 }
 0x2f2   :  { %20328 = dma.done.wait [#allocation51], 32  }
 0x2f3   :  { %20329 = vsyncadd [#allocation51], 4294967264  ;;  %s23019_s17 = sld [smem:[#allocation72_spill]]  ;;  %s23020_s8 = sld [smem:[#allocation74_spill]]  ;;  %vm601_vm0 = vcmask 261120   ;;  %vm845_vm1 = vcmask 64512  }
 0x2f4   :  { %s23021_s12 = sld [smem:[#allocation78_spill]]  ;;  %s23022_s16 = sld [smem:[#allocation77_spill]]  ;;  %v15033_v33 = vld [vmem:[#allocation5] ss:$0 sm:$0xff]  ;;  %v15034_v40 = vld [vmem:[#allocation7] ss:$0 sm:$0xff]  ;;  %vm20864_vm2 = vmpackc.low %vm845_vm1, %vm845_vm1 }
 0x2f5   :  { %s20414_s18 = smov 88   ;;  %s20415_s22 = smov 96   ;;  %vm1184_vm3 = vcmask 130048   ;;  %vm7694_vm4 = vcmask 523264  }
 0x2f6   :  { %s20416_s24 = smov 80   ;;  %s20417_s9 = smov 72  }
 0x2f7   :  { %s20418_s23 = smov 64   ;;  %s20419_s19 = smov 40  }
 0x2f8   :  { %s20420_s5 = smov 56   ;;  %s20421_s4 = smov 120  }
 0x2f9   :  { %v587_v0 = vld [vmem:[%s23019_s17] sm:$0xff]  ;;  %v588_v2 = vld [vmem:[%s23019_s17 + $0x8] sm:$0xff]  ;;  %s20422_s26 = smov 48   ;;  %s23025_s28 = sld [smem:[#allocation80_spill]] }
 0x2fa   :  { %v593_v1 = vld [vmem:[%s23020_s8] sm:$0xff]  ;;  %v594_v4 = vld [vmem:[%s23020_s8 + $0x8] sm:$0xff]  ;;  %v677_v20 = vld [vmem:[%s23021_s12 + $0x10] sm:$0xff]  ;;  %s20423_s1 = smov 112   ;;  %s20424_s30 = smov 104  }
 0x2fb   :  { %v720_v3 = vadd.f32 %v593_v1, %v587_v0  ;;  %v721_v5 = vadd.f32 %v594_v4, %v588_v2  ;;  %v675_v18 = vld [vmem:[%s23021_s12] sm:$0xff]  ;;  %v676_v19 = vld [vmem:[%s23021_s12 + $0x8] sm:$0xff]  ;;  %v678_v22 = vld [vmem:[%s23021_s12 + $0x18] sm:$0xff]  ;;  %s23026_s2 = sld [smem:[#allocation73_spill]]  ;;  %s23027_s3 = sld [smem:[#allocation82_spill]] }
 0x2fc   :  { %v17688_v21 = vpack.c.bf16 %v676_v19, %v675_v18  ;;  %v17692_v23 = vpack.c.bf16 %v678_v22, %v677_v20  ;;  %v15032_v31 = vld [vmem:[%s23022_s16] ss:$0 sm:$0xff]  ;;  %s23028_s6 = sld [smem:[#allocation84_spill]]  ;;  %s23030_s25 = sld [smem:[#allocation85_spill]] }
 0x2fd   :  { %v722_v6 = vsel %vm601_vm0, %v720_v3, 0.0  ;;  %v725_v7 = vsel %vm601_vm0, %v721_v5, 0.0  ;;  %v20923_v4 = vld [vmem:[#allocation2] sm:$0xff]  ;;  %s23029_s7 = sld [smem:[#allocation76_spill]]  ;;  %s23031_s21 = sld [smem:[#allocation89_spill]] }
 0x2fe   :  { %723 = vadd.xlane.f32.xlu0 %v722_v6  ;;  %17689 = vmatprep.subr.bf16.mxu0 %v17688_v21  ;;  %s23032_s10 = sld [smem:[#allocation91_spill]]  ;;  %s23033_s27 = sld [smem:[#allocation93_spill]] }
 0x2ff   :  { %17691 = vmatpush3.bf16.msra.mxu0 %v17688_v21  ;;  %s23034_s13 = sld [smem:[#allocation101_spill]]  ;;  %s20425_s11 = smov [#allocation53]  }
 0x300   :  { %17693 = vmatprep.subr.bf16.mxu0 %v17692_v23  ;;  %s14957_s15 = sshll.u32 %s20425_s11, 4  ;;  %s14958_s15 = int_to_ptr.vmem [resolvable:$true] %s14957_s15 }
 0x301   :  { %s20274_s29 = scalar_lea.vmem %s14958_s15, 256  ;;  %p20279_p13 = scmp.lt.s32.totalorder %s14958_s15, %s14958_s15 }
 0x302   :  { %726 = vadd.xlane.f32.xlu0 %v725_v7  ;;  %p20275_p12 = scmp.ne.s32.totalorder %s14958_s15, %s20274_s29  ;;  %p20280_p0 = scmp.lt.s32.totalorder %s20274_s29, %s20274_s29 }
 0x303   :  { %17695 = vmatpush3.bf16.msra.mxu0 %v17692_v23 }
 0x304   :  { %p20281_p1 = por %p20280_p0, %p20279_p13 }
 0x306   :  { %p20282_p2 = pnand %p20281_p1, %p20275_p12 }
 0x38b   :  { %v724_v8 = vpop.xlane.xlu0 %723 }
 0x38c   :  { %v728_v9 = vmul.f32 0.03125, %v724_v8 }
 0x38e   :  { %v730_v10 = vsub.f32 %v720_v3, %v728_v9  ;;  %v20921_v3 = vld [vmem:[#allocation2 + $0x8] sm:$0xff] }
 0x38f   :  { %v727_v11 = vpop.xlane.xlu0 %726 }
 0x390   :  { %v729_v12 = vmul.f32 0.03125, %v727_v11  ;;  %v732_v13 = vmul.f32 %v730_v10, %v730_v10 }
 0x392   :  { %v731_v14 = vsub.f32 %v721_v5, %v729_v12  ;;  %v734_v15 = vsel %vm601_vm0, %v732_v13, 0.0 }
 0x393   :  { %735 = vadd.xlane.f32.xlu1 %v734_v15 }
 0x394   :  { %v733_v16 = vmul.f32 %v731_v14, %v731_v14 }
 0x396   :  { %v737_v17 = vsel %vm601_vm0, %v733_v16, 0.0 }
 0x397   :  { %738 = vadd.xlane.f32.xlu1 %v737_v17 }
 0x420   :  { %v736_v24 = vpop.xlane.xlu1 %735 }
 0x421   :  { %v740_v25 = vmul.f32 0.03125, %v736_v24 }
 0x423   :  { %v742_v26 = vadd.f32 1e-05, %v740_v25 }
 0x424   :  { %v739_v27 = vpop.xlane.xlu1 %738 }
 0x425   :  { %19178 = vrsqrt.f32 %v742_v26  ;;  %v741_v28 = vmul.f32 0.03125, %v739_v27 }
 0x427   :  { %v743_v29 = vadd.f32 1e-05, %v741_v28 }
 0x429   :  { %19180 = vrsqrt.f32 %v743_v29 }
 0x42f   :  { %v19179_v30 = vpop.eup %19178 }
 0x430   :  { %v746_v32 = vmul.f32 %v19179_v30, %v730_v10 }
 0x432   :  { %v748_v34 = vmul.f32 %v15032_v31, %v746_v32 }
 0x433   :  { %v19181_v35 = vpop.eup %19180 }
 0x434   :  { %v20834_v36 = vadd.f32 %v15033_v33, %v748_v34  ;;  %v747_v37 = vmul.f32 %v19181_v35, %v731_v14 }
 0x436   :  { %16332 = vmatprep.mubr.msk.f32.mxu0 %vm601_vm0, %v20834_v36  ;;  %v749_v38 = vmul.f32 %v15032_v31, %v747_v37 }
 0x438   :  { %v20838_v39 = vadd.f32 %v15033_v33, %v749_v38 }
 0x43a   :  { %16333 = vmatmul.mubr.msk.f32.vlgmr.msra.gmra.mrb[0].mxu0 %vm601_vm0, %v20838_v39 }
 0x50d   :  { %v16334_v41 = vpop.f32.mrb[0].mxu0 }
 0x50e   :  { %v20842_v42 = vadd.f32 %v16334_v41, %v15034_v40  ;;  %v830_v43 = vpop.f32.mrb[1].mxu0 }
 0x50f   :  { %v20844_v44 = vadd.f32 %v15034_v40, %v830_v43 }
 0x511   :  { %16339 = vmatprep.mubr.msk.f32.mxu1 %vm845_vm1, %v20844_v44  ;;  %16346 = vmatprep.mubr.msk.f32.mxu0 %vm845_vm1, %v20844_v44  ;;  %v20852_v45 = vpack.i.bf16 %v20842_v42, %v20844_v44 }
 0x513   :  { %18964 = vrot.lane.b32.xlu1 %v20852_v45, %s20414_s18  ;;  %18959 = vrot.lane.b32.xlu0 %v20852_v45, %s20415_s22 }
 0x517   :  { %18969 = vrot.lane.b32.xlu1 %v20852_v45, %s20416_s24 }
 0x51b   :  { %18974 = vrot.lane.b32.xlu1 %v20852_v45, %s20417_s9 }
 0x585   :  { %v18965_v46 = vpop.permute.xlu1 %18964  ;;  %v18960_v47 = vpop.permute.xlu0 %18959 }
 0x586   :  { %v18967_v48 = vunpack.i.h.bf16 %v18965_v46  ;;  %v18966_v49 = vunpack.i.l.bf16 %v18965_v46  ;;  %v18962_v50 = vunpack.i.h.bf16 %v18960_v47  ;;  %v18961_v51 = vunpack.i.l.bf16 %v18960_v47 }
 0x588   :  { %v20868_v53 = vpack.c.bf16 %v18967_v48, %v18966_v49  ;;  %v20870_v54 = vpack.c.bf16 %v18962_v50, %v18961_v51 }
 0x589   :  { %v18970_v55 = vpop.permute.xlu1 %18969 }
 0x58a   :  { %v18972_v56 = vunpack.i.h.bf16 %v18970_v55  ;;  %v18971_v57 = vunpack.i.l.bf16 %v18970_v55  ;;  %17698 = vmatprep.subr.msk.bf16.mxu1 %vm20864_vm2, %v20870_v54  ;;  %17704 = vmatprep.subr.msk.bf16.mxu0 %vm20864_vm2, %v20868_v53 }
 0x58b   :  { %17701 = vmatpush3.bf16.xpose.msk.msra.mxu1 %vm20864_vm2, %v20870_v54  ;;  %17707 = vmatpush3.bf16.xpose.msk.msra.mxu0 %vm20864_vm2, %v20868_v53 }
 0x58c   :  { %v20884_v58 = vpack.c.bf16 %v18972_v56, %v18971_v57 }
 0x58d   :  { %v18975_v59 = vpop.permute.xlu1 %18974 }
 0x58e   :  { %v18977_v60 = vunpack.i.h.bf16 %v18975_v59  ;;  %v18976_v61 = vunpack.i.l.bf16 %v18975_v59  ;;  %17710 = vmatprep.subr.msk.bf16.mxu1 %vm20864_vm2, %v20884_v58 }
 0x590   :  { %v20889_v62 = vpack.c.bf16 %v18977_v60, %v18976_v61 }
 0x592   :  { %16340 = vmatmul.mubr.msk.f32.vlgmr.msra.gmra.mrb[0].mxu1 %vm845_vm1, %v20842_v42  ;;  %16347 = vmatmul.mubr.msk.f32.vlgmr.msra.gmra.mrb[2].mxu0 %vm845_vm1, %v20842_v42 }
 0x593   :  { %17716 = vmatprep.subr.msk.bf16.mxu0 %vm20864_vm2, %v20889_v62  ;;  %17713 = vmatpush3.bf16.xpose.msk.msra.mxu1 %vm20864_vm2, %v20884_v58 }
 0x594   :  { %16353 = vmatprep.mubr.msk.f32.mxu1 %vm845_vm1, %v20844_v44  ;;  %17719 = vmatpush3.bf16.xpose.msk.msra.mxu0 %vm20864_vm2, %v20889_v62 }
 0x595   :  { %16360 = vmatprep.mubr.msk.f32.mxu0 %vm845_vm1, %v20844_v44  ;;  %17738 = vmatprep.subr.msk.bf16.mxu0 %vm20864_vm2, %v20870_v54 }
 0x59a   :  { %16354 = vmatmul.mubr.msk.f32.vlgmr.msra.gmra.mrb[2].mxu1 %vm845_vm1, %v20842_v42 }
 0x59b   :  { %16361 = vmatmul.mubr.msk.f32.vlgmr.msra.gmra.mrb[4].mxu0 %vm845_vm1, %v20842_v42 }
 0x59c   :  { %17741 = vmatpush3.bf16.xpose.msk.msra.mxu0 %vm20864_vm2, %v20870_v54 }
 0x59d   :  { %17744 = vmatprep.subr.msk.bf16.mxu0 %vm20864_vm2, %v20868_v53 }
 0x665   :  { %v16341_v63 = vpop.f32.mrb[0].mxu1  ;;  %v16348_v0 = vpop.f32.mrb[2].mxu0 }
 0x666   :  { %v920_v1 = vpop.f32.mrb[1].mxu1  ;;  %v1003_v2 = vpop.f32.mrb[3].mxu0  ;;  %v20926_v5 = vadd.f32 %v16341_v63, %v20921_v3  ;;  %v1009_v6 = vadd.f32 %v16348_v0, %v20921_v3 }
 0x667   :  { %v921_v7 = vadd.f32 %v920_v1, %v20923_v4  ;;  %v1004_v8 = vadd.f32 %v1003_v2, %v20923_v4 }
 0x668   :  { %v1179_v10 = vmax.f32 %v20926_v5, %v1009_v6 }
 0x669   :  { %v1178_v14 = vmax.f32 %v921_v7, %v1004_v8 }
 0x66d   :  { %v16355_v9 = vpop.f32.mrb[2].mxu1 }
 0x66e   :  { %v20933_v11 = vadd.f32 %v16355_v9, %v20921_v3  ;;  %v16362_v12 = vpop.f32.mrb[4].mxu0  ;;  %v1086_v13 = vpop.f32.mrb[3].mxu1 }
 0x66f   :  { %v1087_v15 = vadd.f32 %v1086_v13, %v20923_v4  ;;  %v1169_v16 = vpop.f32.mrb[5].mxu0  ;;  %v20938_v18 = vadd.f32 %v16362_v12, %v20921_v3 }
 0x670   :  { %v1181_v17 = vmax.f32 %v1179_v10, %v20933_v11  ;;  %v20941_v20 = vadd.f32 %v1169_v16, %v20923_v4 }
 0x671   :  { %v1180_v19 = vmax.f32 %v1178_v14, %v1087_v15 }
 0x672   :  { %v1183_v21 = vmax.f32 %v1181_v17, %v20938_v18 }
 0x673   :  { %v1182_v22 = vmax.f32 %v1180_v19, %v20941_v20 }
 0x674   :  { %v1188_v23 = vsel %vm1184_vm3, %v1183_v21, -inf }
 0x675   :  { %1189 = vmax.xlane.f32.xlu1 %v1188_v23  ;;  %v1185_v24 = vsel %vm1184_vm3, %v1182_v22, -inf }
 0x676   :  { %1186 = vmax.xlane.f32.xlu0 %v1185_v24 }
 0x686   :  { %18984 = vrot.lane.b32.xlu1 %v20852_v45, %s20418_s23 }
 0x68a   :  { %18994 = vrot.lane.b32.xlu1 %v20852_v45, %s20419_s19 }
 0x68c   :  { %18979 = vrot.lane.b32.xlu0 %v20852_v45, %s20420_s5 }
 0x68e   :  { %1603 = vrot.lane.b32.xlu1 %v20842_v42, %s20421_s4 }
 0x690   :  { %18989 = vrot.lane.b32.xlu0 %v20852_v45, %s20422_s26 }
 0x694   :  { %1601 = vrot.lane.b32.xlu0 %v20844_v44, %s20421_s4 }
 0x702   :  { %v20959_v25 = vpop.xlane.xlu1 %1189 }
 0x703   :  { %v1187_v26 = vpop.xlane.xlu0 %1186  ;;  %v1198_v28 = vsub.f32 %v1009_v6, %v20959_v25  ;;  %v1192_v47 = vsub.f32 %v20926_v5, %v20959_v25  ;;  %v1204_v59 = vsub.f32 %v20933_v11, %v20959_v25 }
 0x704   :  { %v1197_v27 = vsub.f32 %v1004_v8, %v1187_v26  ;;  %v1191_v29 = vsub.f32 %v921_v7, %v1187_v26  ;;  %v1203_v48 = vsub.f32 %v1087_v15, %v1187_v26  ;;  %v1209_v61 = vsub.f32 %v20941_v20, %v1187_v26 }
 0x705   :  { %v1201_v38 = vmul.f32 1.442695, %v1198_v28  ;;  %v1195_v51 = vmul.f32 1.442695, %v1192_v47  ;;  %v1207_v2 = vmul.f32 1.442695, %v1204_v59  ;;  %v1210_v8 = vsub.f32 %v20938_v18, %v20959_v25 }
 0x706   :  { %v18985_v30 = vpop.permute.xlu1 %18984  ;;  %v1199_v31 = vmul.f32 1.442695, %v1197_v27  ;;  %v1193_v40 = vmul.f32 1.442695, %v1191_v29  ;;  %v1205_v55 = vmul.f32 1.442695, %v1203_v48 }
 0x707   :  { %v18980_v32 = vpop.permute.xlu0 %18979  ;;  %v18987_v33 = vunpack.i.h.bf16 %v18985_v30  ;;  %v18986_v34 = vunpack.i.l.bf16 %v18985_v30  ;;  %v1211_v5 = vmul.f32 1.442695, %v1209_v61  ;;  %v1213_v12 = vmul.f32 1.442695, %v1210_v8 }
 0x708   :  { %v18982_v35 = vunpack.i.h.bf16 %v18980_v32  ;;  %v18981_v37 = vunpack.i.l.bf16 %v18980_v32  ;;  %19182 = vpow2.f32 %v1199_v31 }
 0x709   :  { %v20964_v46 = vpack.c.bf16 %v18987_v33, %v18986_v34  ;;  %19184 = vpow2.f32 %v1201_v38 }
 0x70a   :  { %v20962_v41 = vpack.c.bf16 %v18982_v35, %v18981_v37  ;;  %v18995_v43 = vpop.permute.xlu1 %18994  ;;  %19186 = vpow2.f32 %v1193_v40 }
 0x70b   :  { %v18990_v45 = vpop.permute.xlu0 %18989  ;;  %19188 = vpow2.f32 %v1195_v51  ;;  %v18997_v6 = vunpack.i.h.bf16 %v18995_v43  ;;  %v18996_v7 = vunpack.i.l.bf16 %v18995_v43 }
 0x70c   :  { %17721 = vmatprep.subr.bf16.mxu1 %v20962_v41  ;;  %v18992_v56 = vunpack.i.h.bf16 %v18990_v45  ;;  %v18991_v57 = vunpack.i.l.bf16 %v18990_v45  ;;  %19190 = vpow2.f32 %v1205_v55 }
 0x70d   :  { %17723 = vmatpush3.bf16.msra.mxu1 %v20962_v41  ;;  %19192 = vpow2.f32 %v1207_v2  ;;  %v21008_v11 = vpack.c.bf16 %v18997_v6, %v18996_v7 }
 0x70e   :  { %17725 = vmatprep.subr.bf16.mxu1 %v20964_v46  ;;  %v1604_v50 = vpop.permute.xlu1 %1603  ;;  %v20991_v1 = vpack.c.bf16 %v18992_v56, %v18991_v57  ;;  %19194 = vpow2.f32 %v1211_v5 }
 0x70f   :  { %v1602_v49 = vpop.permute.xlu0 %1601  ;;  %19196 = vpow2.f32 %v1213_v12 }
 0x710   :  { %16395 = vmatprep.mubr.msk.f32.mxu0 %vm845_vm1, %v1602_v49 }
 0x711   :  { %16396 = vmatmul.mubr.msk.f32.vlgmr.msra.gmra.mrb[6].mxu0 %vm845_vm1, %v1604_v50 }
 0x712   :  { %17747 = vmatpush3.bf16.xpose.msk.msra.mxu0 %vm20864_vm2, %v20868_v53  ;;  %16402 = vmatprep.mubr.msk.f32.mxu0 %vm845_vm1, %v1602_v49  ;;  %v20982_v60 = vpop.eup %19182 }
 0x713   :  { %17756 = vmatprep.subr.msk.bf16.mxu0 %vm20864_vm2, %v20889_v62  ;;  %v20985_v63 = vpop.eup %19184  ;;  %16367 = vmatprep.mubr.msk.f32.mxu1 %vm1184_vm3, %v20982_v60  ;;  %v1221_v48 = vsel %vm1184_vm3, %v20982_v60, 0.0 }
 0x714   :  { %v20989_v0 = vpop.eup %19186  ;;  %16368 = vmatmul.mubr.msk.f32.vlgmr.msra.gmra.mrb[4].mxu1 %vm1184_vm3, %v20985_v63 }
 0x715   :  { %17727 = vmatpush3.bf16.msra.mxu1 %v20964_v46  ;;  %16374 = vmatprep.mubr.msk.f32.mxu1 %vm1184_vm3, %v20989_v0  ;;  %v19189_v9 = vpop.eup %19188 }
 0x716   :  { %17729 = vmatprep.subr.bf16.mxu1 %v20991_v1  ;;  %v21006_v10 = vpop.eup %19190  ;;  %v1218_v51 = vsel %vm1184_vm3, %v19189_v9, 0.0 }
 0x717   :  { %v21016_v13 = vpop.eup %19192 }
 0x718   :  { %v21018_v14 = vpop.eup %19194 }
 0x719   :  { %16403 = vmatmul.mubr.msk.f32.vlgmr.msra.gmra.mrb[8].mxu0 %vm845_vm1, %v1604_v50  ;;  %v21028_v15 = vpop.eup %19196 }
 0x71a   :  { %17759 = vmatpush3.bf16.xpose.msk.msra.mxu0 %vm20864_vm2, %v20889_v62  ;;  %16416 = vmatprep.mubr.msk.f32.mxu0 %vm845_vm1, %v1602_v49 }
 0x71c   :  { %16375 = vmatmul.mubr.msk.f32.vlgmr.msra.gmra.mrb[4].mxu1 %vm1184_vm3, %v19189_v9 }
 0x71d   :  { %17731 = vmatpush3.bf16.msra.mxu1 %v20991_v1  ;;  %16381 = vmatprep.mubr.msk.f32.mxu1 %vm1184_vm3, %v21006_v10 }
 0x71e   :  { %17733 = vmatprep.subr.bf16.mxu1 %v21008_v11 }
 0x721   :  { %16417 = vmatmul.mubr.msk.f32.vlgmr.msra.gmra.mrb[10].mxu0 %vm845_vm1, %v1604_v50 }
 0x724   :  { %16382 = vmatmul.mubr.msk.f32.vlgmr.msra.gmra.mrb[4].mxu1 %vm1184_vm3, %v21016_v13 }
 0x725   :  { %17735 = vmatpush3.bf16.msra.mxu1 %v21008_v11  ;;  %16388 = vmatprep.mubr.msk.f32.mxu1 %vm1184_vm3, %v21018_v14 }
 0x726   :  { %17750 = vmatprep.subr.msk.bf16.mxu1 %vm20864_vm2, %v20884_v58 }
 0x72c   :  { %16389 = vmatmul.mubr.msk.f32.vlgmr.msra.gmra.mrb[4].mxu1 %vm1184_vm3, %v21028_v15 }
 0x72d   :  { %16409 = vmatprep.mubr.msk.f32.mxu1 %vm845_vm1, %v1602_v49  ;;  %v1215_v49 = vsel %vm1184_vm3, %v20989_v0, 0.0 }
 0x72e   :  { %17753 = vmatpush3.bf16.xpose.msk.msra.mxu1 %vm20864_vm2, %v20884_v58 }
 0x72f   :  { %17761 = vmatprep.subr.bf16.mxu1 %v20962_v41 }
 0x735   :  { %16410 = vmatmul.mubr.msk.f32.vlgmr.msra.gmra.mrb[6].mxu1 %vm845_vm1, %v1604_v50  ;;  %v1224_v50 = vsel %vm1184_vm3, %v20985_v63, 0.0 }
 0x736   :  { %17763 = vmatpush3.bf16.msra.mxu1 %v20962_v41 }
 0x737   :  { %17765 = vmatprep.subr.bf16.mxu1 %v20964_v46 }
 0x7e4   :  { %v16397_v16 = vpop.f32.mrb[6].mxu0 }
 0x7e5   :  { %v1675_v17 = vpop.f32.mrb[7].mxu0  ;;  %v1681_v26 = vadd.f32 %v16397_v16, %v20921_v3 }
 0x7e6   :  { %v1676_v27 = vadd.f32 %v1675_v17, %v20923_v4 }
 0x7ec   :  { %v16404_v18 = vpop.f32.mrb[8].mxu0 }
 0x7ed   :  { %v1750_v19 = vpop.f32.mrb[9].mxu0  ;;  %v1756_v24 = vadd.f32 %v16404_v18, %v20921_v3 }
 0x7ee   :  { %v1751_v25 = vadd.f32 %v1750_v19, %v20923_v4 }
 0x7ef   :  { %v1910_v29 = vmax.f32 %v1681_v26, %v1756_v24 }
 0x7f0   :  { %v1909_v32 = vmax.f32 %v1676_v27, %v1751_v25 }
 0x7f4   :  { %v16418_v20 = vpop.f32.mrb[10].mxu0 }
 0x7f5   :  { %v1900_v21 = vpop.f32.mrb[11].mxu0  ;;  %v1906_v34 = vadd.f32 %v16418_v20, %v20921_v3 }
 0x7f6   :  { %v1901_v37 = vadd.f32 %v1900_v21, %v20923_v4 }
 0x7ff   :  { %v21040_v22 = vpop.f32.mrb[4].mxu1 }
 0x800   :  { %v21042_v23 = vpop.f32.mrb[5].mxu1 }
 0x808   :  { %v16411_v28 = vpop.f32.mrb[6].mxu1 }
 0x809   :  { %v1831_v30 = vadd.f32 %v16411_v28, %v20921_v3  ;;  %v1825_v31 = vpop.f32.mrb[7].mxu1 }
 0x80a   :  { %v1826_v33 = vadd.f32 %v1825_v31, %v20923_v4 }
 0x80b   :  { %v1912_v35 = vmax.f32 %v1910_v29, %v1831_v30 }
 0x80c   :  { %v1911_v38 = vmax.f32 %v1909_v32, %v1826_v33 }
 0x80d   :  { %v1914_v40 = vmax.f32 %v1912_v35, %v1906_v34 }
 0x80e   :  { %v1913_v43 = vmax.f32 %v1911_v38, %v1901_v37 }
 0x80f   :  { %v1918_v45 = vsel %vm1184_vm3, %v1914_v40, -inf  ;;  %v1240_v40 = vsel %vm1184_vm3, %v21028_v15, 0.0  ;;  %v1237_v15 = vsel %vm1184_vm3, %v21018_v14, 0.0  ;;  %v680_v14 = vld [vmem:[%s23025_s28] sm:$0xff] }
 0x810   :  { %1919 = vmax.xlane.f32.xlu1 %v1918_v45  ;;  %v1915_v47 = vsel %vm1184_vm3, %v1913_v43, -inf }
 0x811   :  { %1916 = vmax.xlane.f32.xlu0 %v1915_v47 }
 0x814   :  { %1222 = vadd.xlane.f32.xlu1 %v1221_v48 }
 0x815   :  { %1216 = vadd.xlane.f32.xlu0 %v1215_v49 }
 0x818   :  { %1225 = vadd.xlane.f32.xlu1 %v1224_v50 }
 0x819   :  { %1219 = vadd.xlane.f32.xlu0 %v1218_v51 }
 0x89d   :  { %v1920_v55 = vpop.xlane.xlu1 %1919 }
 0x89e   :  { %v1922_v56 = vsub.f32 %v1681_v26, %v1920_v55  ;;  %v1928_v57 = vsub.f32 %v1756_v24, %v1920_v55  ;;  %v1934_v59 = vsub.f32 %v1831_v30, %v1920_v55  ;;  %v1917_v61 = vpop.xlane.xlu0 %1916  ;;  %v1940_v8 = vsub.f32 %v1906_v34, %v1920_v55 }
 0x89f   :  { %v1921_v2 = vsub.f32 %v1676_v27, %v1917_v61  ;;  %v1927_v5 = vsub.f32 %v1751_v25, %v1917_v61  ;;  %v1933_v63 = vsub.f32 %v1826_v33, %v1917_v61  ;;  %v1939_v17 = vsub.f32 %v1901_v37, %v1917_v61 }
 0x8a0   :  { %v1925_v60 = vmul.f32 1.442695, %v1922_v56  ;;  %v1931_v6 = vmul.f32 1.442695, %v1928_v57  ;;  %v1937_v7 = vmul.f32 1.442695, %v1934_v59 }
 0x8a1   :  { %v1923_v0 = vmul.f32 1.442695, %v1921_v2  ;;  %v1929_v12 = vmul.f32 1.442695, %v1927_v5  ;;  %v1943_v16 = vmul.f32 1.442695, %v1940_v8  ;;  %v1223_v45 = vpop.xlane.xlu1 %1222 }
 0x8a2   :  { %19198 = vpow2.f32 %v1925_v60  ;;  %v1935_v9 = vmul.f32 1.442695, %v1933_v63  ;;  %v1941_v19 = vmul.f32 1.442695, %v1939_v17  ;;  %v1232_v37 = vsel %vm1184_vm3, %v21016_v13, 0.0  ;;  %v1217_v43 = vpop.xlane.xlu0 %1216 }
 0x8a3   :  { %19200 = vpow2.f32 %v1931_v6  ;;  %v1229_v13 = vsel %vm1184_vm3, %v21006_v10, 0.0  ;;  %v681_v10 = vld [vmem:[%s23025_s28 + $0x8] sm:$0xff] }
 0x8a4   :  { %19202 = vpow2.f32 %v1937_v7  ;;  %16447 = vmatprep.subr.mxu0 %v681_v10 }
 0x8a5   :  { %19204 = vpow2.f32 %v1923_v0  ;;  %16448 = vmatpush3.msra.mxu0 %v681_v10  ;;  %v1226_v48 = vpop.xlane.xlu1 %1225 }
 0x8a6   :  { %19206 = vpow2.f32 %v1929_v12  ;;  %16452 = vmatprep.subr.mxu0 %v680_v14  ;;  %v1220_v47 = vpop.xlane.xlu0 %1219  ;;  %v1227_v12 = vadd.f32 %v1223_v45, %v1217_v43 }
 0x8a7   :  { %19208 = vpow2.f32 %v1943_v16 }
 0x8a8   :  { %19210 = vpow2.f32 %v1935_v9 }
 0x8a9   :  { %19212 = vpow2.f32 %v1941_v19 }
 0x8ac   :  { %v19199_v18 = vpop.eup %19198 }
 0x8ad   :  { %v19201_v20 = vpop.eup %19200  ;;  %v1948_v21 = vsel %vm1184_vm3, %v19199_v18, 0.0 }
 0x8ae   :  { %v1954_v24 = vsel %vm1184_vm3, %v19201_v20, 0.0  ;;  %1949 = vadd.xlane.f32.xlu0 %v1948_v21  ;;  %v19203_v25 = vpop.eup %19202  ;;  %v1228_v21 = vadd.f32 %v1226_v48, %v1220_v47 }
 0x8af   :  { %1955 = vadd.xlane.f32.xlu1 %v1954_v24  ;;  %v19205_v26 = vpop.eup %19204  ;;  %v1962_v29 = vsel %vm1184_vm3, %v19203_v25, 0.0 }
 0x8b0   :  { %v19207_v27 = vpop.eup %19206  ;;  %v1945_v28 = vsel %vm1184_vm3, %v19205_v26, 0.0 }
 0x8b1   :  { %16423 = vmatprep.mubr.msk.f32.mxu1 %vm1184_vm3, %v19207_v27  ;;  %v19209_v30 = vpop.eup %19208  ;;  %v1951_v31 = vsel %vm1184_vm3, %v19207_v27, 0.0 }
 0x8b2   :  { %1946 = vadd.xlane.f32.xlu0 %v1945_v28  ;;  %16424 = vmatmul.mubr.msk.f32.vlgmr.msra.gmra.mrb[8].mxu1 %vm1184_vm3, %v19201_v20  ;;  %v19211_v32 = vpop.eup %19210  ;;  %v1970_v33 = vsel %vm1184_vm3, %v19209_v30, 0.0 }
 0x8b3   :  { %1963 = vadd.xlane.f32.xlu1 %v1962_v29  ;;  %17767 = vmatpush3.bf16.msra.mxu1 %v20964_v46  ;;  %v1959_v34 = vsel %vm1184_vm3, %v19211_v32, 0.0  ;;  %v19213_v35 = vpop.eup %19212 }
 0x8b4   :  { %16430 = vmatprep.mubr.msk.f32.mxu1 %vm1184_vm3, %v19205_v26  ;;  %17769 = vmatprep.subr.bf16.mxu1 %v20991_v1  ;;  %v1967_v38 = vsel %vm1184_vm3, %v19213_v35, 0.0 }
 0x8b6   :  { %1952 = vadd.xlane.f32.xlu0 %v1951_v31 }
 0x8b7   :  { %1971 = vadd.xlane.f32.xlu1 %v1970_v33 }
 0x8ba   :  { %1960 = vadd.xlane.f32.xlu0 %v1959_v34  ;;  %16431 = vmatmul.mubr.msk.f32.vlgmr.msra.gmra.mrb[8].mxu1 %vm1184_vm3, %v19199_v18 }
 0x8bb   :  { %1233 = vadd.xlane.f32.xlu1 %v1232_v37  ;;  %17771 = vmatpush3.bf16.msra.mxu1 %v20991_v1 }
 0x8bc   :  { %16437 = vmatprep.mubr.msk.f32.mxu1 %vm1184_vm3, %v19211_v32  ;;  %17773 = vmatprep.subr.bf16.mxu1 %v21008_v11 }
 0x8be   :  { %1968 = vadd.xlane.f32.xlu0 %v1967_v38 }
 0x8bf   :  { %1241 = vadd.xlane.f32.xlu1 %v1240_v40 }
 0x8c2   :  { %1230 = vadd.xlane.f32.xlu0 %v1229_v13  ;;  %16438 = vmatmul.mubr.msk.f32.vlgmr.msra.gmra.mrb[8].mxu1 %vm1184_vm3, %v19203_v25 }
 0x8c3   :  { %17775 = vmatpush3.bf16.msra.mxu1 %v21008_v11  ;;  %16444 = vmatprep.mubr.msk.f32.mxu1 %vm1184_vm3, %v19213_v35 }
 0x8c4   :  { %17784 = vmatprep.subr.msk.bf16.mxu1 %vm20864_vm2, %v20868_v53 }
 0x8c6   :  { %1238 = vadd.xlane.f32.xlu0 %v1237_v15 }
 0x8ca   :  { %16445 = vmatmul.mubr.msk.f32.vlgmr.msra.gmra.mrb[8].mxu1 %vm1184_vm3, %v19209_v30 }
 0x8cc   :  { %17787 = vmatpush3.bf16.xpose.msk.msra.mxu1 %vm20864_vm2, %v20868_v53 }
 0x8cd   :  { %17796 = vmatprep.subr.msk.bf16.mxu1 %vm20864_vm2, %v20889_v62 }
 0x8d0   :  { %2471 = vrot.lane.b32.xlu1 %v20842_v42, %s20423_s1 }
 0x8dc   :  { %2469 = vrot.lane.b32.xlu0 %v20844_v44, %s20423_s1 }
 0x93b   :  { %v1950_v49 = vpop.xlane.xlu0 %1949 }
 0x93c   :  { %v1956_v50 = vpop.xlane.xlu1 %1955 }
 0x93d   :  { %v1958_v63 = vadd.f32 %v1956_v50, %v1950_v49 }
 0x93f   :  { %v1947_v51 = vpop.xlane.xlu0 %1946 }
 0x940   :  { %v1964_v55 = vpop.xlane.xlu1 %1963 }
 0x941   :  { %v1966_v17 = vadd.f32 %v1964_v55, %v1958_v63 }
 0x943   :  { %v1953_v56 = vpop.xlane.xlu0 %1952 }
 0x944   :  { %v1972_v57 = vpop.xlane.xlu1 %1971  ;;  %v1957_v0 = vadd.f32 %v1953_v56, %v1947_v51 }
 0x945   :  { %v1974_v20 = vadd.f32 %v1972_v57, %v1966_v17 }
 0x947   :  { %v1961_v59 = vpop.xlane.xlu0 %1960 }
 0x948   :  { %v1234_v2 = vpop.xlane.xlu1 %1233  ;;  %v1965_v16 = vadd.f32 %v1961_v59, %v1957_v0 }
 0x949   :  { %v1236_v24 = vadd.f32 %v1234_v2, %v1228_v21 }
 0x94b   :  { %v1969_v61 = vpop.xlane.xlu0 %1968 }
 0x94c   :  { %v1242_v60 = vpop.xlane.xlu1 %1241  ;;  %v1973_v18 = vadd.f32 %v1969_v61, %v1965_v16 }
 0x94d   :  { %v1244_v25 = vadd.f32 %v1242_v60, %v1236_v24 }
 0x94e   :  { %19214 = vrcp.f32 %v1973_v18 }
 0x94f   :  { %v1231_v5 = vpop.xlane.xlu0 %1230 }
 0x950   :  { %v2472_v8 = vpop.permute.xlu1 %2471  ;;  %v1235_v9 = vadd.f32 %v1231_v5, %v1227_v12 }
 0x953   :  { %v1239_v6 = vpop.xlane.xlu0 %1238 }
 0x954   :  { %v1243_v19 = vadd.f32 %v1239_v6, %v1235_v9 }
 0x956   :  { %19216 = vrcp.f32 %v1243_v19 }
 0x957   :  { %v2470_v7 = vpop.permute.xlu0 %2469  ;;  %19218 = vrcp.f32 %v1974_v20 }
 0x958   :  { %16468 = vmatprep.mubr.msk.f32.mxu1 %vm845_vm1, %v2470_v7  ;;  %19220 = vrcp.f32 %v1244_v25  ;;  %v19215_v26 = vpop.eup %19214 }
 0x959   :  { %16469 = vmatmul.mubr.msk.f32.vlgmr.msra.gmra.mrb[10].mxu1 %vm845_vm1, %v2472_v8 }
 0x95a   :  { %17799 = vmatpush3.bf16.xpose.msk.msra.mxu1 %vm20864_vm2, %v20889_v62  ;;  %16482 = vmatprep.mubr.msk.f32.mxu1 %vm845_vm1, %v2470_v7 }
 0x95b   :  { %17818 = vmatprep.subr.msk.bf16.mxu1 %vm20864_vm2, %v20870_v54 }
 0x960   :  { %v19217_v28 = vpop.eup %19216 }
 0x961   :  { %16483 = vmatmul.mubr.msk.f32.vlgmr.msra.gmra.mrb[12].mxu1 %vm845_vm1, %v2472_v8  ;;  %v19219_v30 = vpop.eup %19218  ;;  %v1599_v33 = vmul.f32 %v19217_v28, %v21042_v23 }
 0x962   :  { %17821 = vmatpush3.bf16.xpose.msk.msra.mxu1 %vm20864_vm2, %v20870_v54  ;;  %v19221_v34 = vpop.eup %19220 }
 0x963   :  { %17824 = vmatprep.subr.msk.bf16.mxu1 %vm20864_vm2, %v20868_v53  ;;  %v1600_v35 = vmul.f32 %v19221_v34, %v21040_v22 }
 0x99d   :  { %v16446_v27 = vpop.f32.mrb[8].mxu1 }
 0x99e   :  { %v2294_v29 = vpop.f32.mrb[9].mxu1  ;;  %v2306_v32 = vmul.f32 %v19219_v30, %v16446_v27 }
 0x99f   :  { %v2305_v31 = vmul.f32 %v19215_v26, %v2294_v29 }
 0x9a1   :  { %16449 = vmatprep.mubr.msk.f32.mxu0 %vm845_vm1, %v2305_v31 }
 0x9a2   :  { %16450 = vmatmul.mubr.msk.f32.vlgmr.msra.gmra.mrb[12].mxu0 %vm845_vm1, %v2306_v32 }
 0x9a3   :  { %16453 = vmatpush3.msra.mxu0 %v680_v14  ;;  %16454 = vmatprep.mubr.msk.f32.mxu0 %vm845_vm1, %v1599_v33 }
 0x9a4   :  { %17778 = vmatprep.subr.msk.bf16.mxu0 %vm20864_vm2, %v20870_v54 }
 0x9aa   :  { %16455 = vmatmul.mubr.msk.f32.vlgmr.msra.gmra.mrb[12].mxu0 %vm845_vm1, %v1600_v35 }
 0x9ab   :  { %17781 = vmatpush3.bf16.xpose.msk.msra.mxu0 %vm20864_vm2, %v20870_v54  ;;  %16461 = vmatprep.mubr.msk.f32.mxu0 %vm845_vm1, %v2470_v7 }
 0x9ac   :  { %17790 = vmatprep.subr.msk.bf16.mxu0 %vm20864_vm2, %v20884_v58 }
 0x9b2   :  { %16462 = vmatmul.mubr.msk.f32.vlgmr.msra.gmra.mrb[14].mxu0 %vm845_vm1, %v2472_v8 }
 0x9b3   :  { %17793 = vmatpush3.bf16.xpose.msk.msra.mxu0 %vm20864_vm2, %v20884_v58  ;;  %16475 = vmatprep.mubr.msk.f32.mxu0 %vm845_vm1, %v2470_v7 }
 0x9b4   :  { %17801 = vmatprep.subr.bf16.mxu0 %v20962_v41 }
 0x9ba   :  { %16476 = vmatmul.mubr.msk.f32.vlgmr.msra.gmra.mrb[16].mxu0 %vm845_vm1, %v2472_v8 }
 0x9bb   :  { %17803 = vmatpush3.bf16.msra.mxu0 %v20962_v41 }
 0x9bc   :  { %17805 = vmatprep.subr.bf16.mxu0 %v20964_v46 }
 0xa2c   :  { %v16470_v54 = vpop.f32.mrb[10].mxu1 }
 0xa2d   :  { %v2618_v22 = vpop.f32.mrb[11].mxu1  ;;  %v2624_v10 = vadd.f32 %v16470_v54, %v20921_v3 }
 0xa2e   :  { %v2619_v14 = vadd.f32 %v2618_v22, %v20923_v4 }
 0xa34   :  { %v16484_v23 = vpop.f32.mrb[12].mxu1 }
 0xa35   :  { %v2768_v37 = vpop.f32.mrb[13].mxu1  ;;  %v2774_v51 = vadd.f32 %v16484_v23, %v20921_v3 }
 0xa36   :  { %v2769_v56 = vadd.f32 %v2768_v37, %v20923_v4 }
 0xa85   :  { %v16463_v38 = vpop.f32.mrb[14].mxu0 }
 0xa86   :  { %v2543_v40 = vpop.f32.mrb[15].mxu0  ;;  %v2549_v13 = vadd.f32 %v16463_v38, %v20921_v3 }
 0xa87   :  { %v2544_v15 = vadd.f32 %v2543_v40, %v20923_v4 }
 0xa88   :  { %v2778_v45 = vmax.f32 %v2549_v13, %v2624_v10 }
 0xa89   :  { %v2777_v49 = vmax.f32 %v2544_v15, %v2619_v14 }
 0xa8d   :  { %v16477_v43 = vpop.f32.mrb[16].mxu0 }
 0xa8e   :  { %v2699_v47 = vadd.f32 %v16477_v43, %v20921_v3  ;;  %v2693_v48 = vpop.f32.mrb[17].mxu0 }
 0xa8f   :  { %v2694_v50 = vadd.f32 %v2693_v48, %v20923_v4 }
 0xa90   :  { %v2780_v55 = vmax.f32 %v2778_v45, %v2699_v47 }
 0xa91   :  { %v2779_v57 = vmax.f32 %v2777_v49, %v2694_v50 }
 0xa92   :  { %v2782_v59 = vmax.f32 %v2780_v55, %v2774_v51 }
 0xa93   :  { %v2781_v61 = vmax.f32 %v2779_v57, %v2769_v56 }
 0xa94   :  { %v2786_v2 = vsel %vm1184_vm3, %v2782_v59, -inf }
 0xa95   :  { %2787 = vmax.xlane.f32.xlu0 %v2786_v2  ;;  %v2783_v5 = vsel %vm1184_vm3, %v2781_v61, -inf }
 0xa96   :  { %2784 = vmax.xlane.f32.xlu1 %v2783_v5 }
 0xb22   :  { %v2788_v60 = vpop.xlane.xlu0 %2787 }
 0xb23   :  { %v2790_v6 = vsub.f32 %v2549_v13, %v2788_v60  ;;  %v2796_v7 = vsub.f32 %v2624_v10, %v2788_v60  ;;  %v2802_v8 = vsub.f32 %v2699_v47, %v2788_v60  ;;  %v2785_v0 = vpop.xlane.xlu1 %2784  ;;  %v2808_v19 = vsub.f32 %v2774_v51, %v2788_v60  ;;  %v682_v10 = vld [vmem:[%s23025_s28 + $0x10] sm:$0xff] }
 0xb24   :  { %v2789_v12 = vsub.f32 %v2544_v15, %v2785_v0  ;;  %v2795_v63 = vsub.f32 %v2619_v14, %v2785_v0  ;;  %v2801_v17 = vsub.f32 %v2694_v50, %v2785_v0  ;;  %v2807_v25 = vsub.f32 %v2769_v56, %v2785_v0 }
 0xb25   :  { %v2793_v16 = vmul.f32 1.442695, %v2790_v6  ;;  %v2799_v9 = vmul.f32 1.442695, %v2796_v7  ;;  %v2805_v18 = vmul.f32 1.442695, %v2802_v8 }
 0xb26   :  { %v2791_v20 = vmul.f32 1.442695, %v2789_v12  ;;  %v2797_v21 = vmul.f32 1.442695, %v2795_v63  ;;  %v2803_v24 = vmul.f32 1.442695, %v2801_v17 }
 0xb27   :  { %19222 = vpow2.f32 %v2793_v16  ;;  %v2811_v26 = vmul.f32 1.442695, %v2808_v19  ;;  %v2809_v27 = vmul.f32 1.442695, %v2807_v25 }
 0xb28   :  { %19224 = vpow2.f32 %v2799_v9 }
 0xb29   :  { %19226 = vpow2.f32 %v2805_v18 }
 0xb2a   :  { %19228 = vpow2.f32 %v2791_v20 }
 0xb2b   :  { %19230 = vpow2.f32 %v2797_v21 }
 0xb2c   :  { %19232 = vpow2.f32 %v2803_v24 }
 0xb2d   :  { %19234 = vpow2.f32 %v2811_v26 }
 0xb2e   :  { %19236 = vpow2.f32 %v2809_v27 }
 0xb31   :  { %v19223_v28 = vpop.eup %19222 }
 0xb32   :  { %v19225_v29 = vpop.eup %19224  ;;  %v2816_v30 = vsel %vm1184_vm3, %v19223_v28, 0.0 }
 0xb33   :  { %2817 = vadd.xlane.f32.xlu0 %v2816_v30  ;;  %v2822_v31 = vsel %vm1184_vm3, %v19225_v29, 0.0  ;;  %v19227_v32 = vpop.eup %19226 }
 0xb34   :  { %2823 = vadd.xlane.f32.xlu1 %v2822_v31  ;;  %v19229_v33 = vpop.eup %19228  ;;  %v2830_v22 = vsel %vm1184_vm3, %v19227_v32, 0.0 }
 0xb35   :  { %v19231_v34 = vpop.eup %19230  ;;  %v2813_v35 = vsel %vm1184_vm3, %v19229_v33, 0.0 }
 0xb36   :  { %v19233_v54 = vpop.eup %19232  ;;  %16489 = vmatprep.mubr.msk.f32.mxu0 %vm1184_vm3, %v19231_v34  ;;  %v2819_v15 = vsel %vm1184_vm3, %v19231_v34, 0.0 }
 0xb37   :  { %2814 = vadd.xlane.f32.xlu0 %v2813_v35  ;;  %v19235_v23 = vpop.eup %19234  ;;  %16490 = vmatmul.mubr.msk.f32.vlgmr.msra.gmra.mrb[18].mxu0 %vm1184_vm3, %v19225_v29  ;;  %v2827_v37 = vsel %vm1184_vm3, %v19233_v54, 0.0 }
 0xb38   :  { %2831 = vadd.xlane.f32.xlu1 %v2830_v22  ;;  %17807 = vmatpush3.bf16.msra.mxu0 %v20964_v46  ;;  %v19237_v38 = vpop.eup %19236  ;;  %v2838_v40 = vsel %vm1184_vm3, %v19235_v23, 0.0 }
 0xb39   :  { %16496 = vmatprep.mubr.msk.f32.mxu0 %vm1184_vm3, %v19229_v33  ;;  %17809 = vmatprep.subr.bf16.mxu0 %v20991_v1  ;;  %v2835_v13 = vsel %vm1184_vm3, %v19237_v38, 0.0 }
 0xb3b   :  { %2828 = vadd.xlane.f32.xlu0 %v2827_v37 }
 0xb3c   :  { %2839 = vadd.xlane.f32.xlu1 %v2838_v40 }
 0xb3f   :  { %2836 = vadd.xlane.f32.xlu0 %v2835_v13  ;;  %16497 = vmatmul.mubr.msk.f32.vlgmr.msra.gmra.mrb[18].mxu0 %vm1184_vm3, %v19223_v28 }
 0xb40   :  { %2820 = vadd.xlane.f32.xlu1 %v2819_v15  ;;  %17811 = vmatpush3.bf16.msra.mxu0 %v20991_v1 }
 0xb41   :  { %16503 = vmatprep.mubr.msk.f32.mxu0 %vm1184_vm3, %v19233_v54  ;;  %17813 = vmatprep.subr.bf16.mxu0 %v21008_v11 }
 0xb47   :  { %16504 = vmatmul.mubr.msk.f32.vlgmr.msra.gmra.mrb[18].mxu0 %vm1184_vm3, %v19227_v32 }
 0xb48   :  { %17815 = vmatpush3.bf16.msra.mxu0 %v21008_v11  ;;  %16510 = vmatprep.mubr.msk.f32.mxu0 %vm1184_vm3, %v19237_v38 }
 0xb49   :  { %16513 = vmatprep.subr.mxu0 %v682_v10 }
 0xb4f   :  { %16511 = vmatmul.mubr.msk.f32.vlgmr.msra.gmra.mrb[18].mxu0 %vm1184_vm3, %v19235_v23 }
 0xb50   :  { %16514 = vmatpush3.msra.mxu0 %v682_v10 }
 0xb51   :  { %3260 = vrot.lane.b32.xlu1 %v20842_v42, %s20424_s30  ;;  %17836 = vmatprep.subr.msk.bf16.mxu0 %vm20864_vm2, %v20889_v62 }
 0xb55   :  { %3258 = vrot.lane.b32.xlu0 %v20844_v44, %s20424_s30 }
 0xbc0   :  { %v2818_v14 = vpop.xlane.xlu0 %2817 }
 0xbc1   :  { %v2824_v43 = vpop.xlane.xlu1 %2823 }
 0xbc4   :  { %v2815_v45 = vpop.xlane.xlu0 %2814 }
 0xbc5   :  { %v2832_v47 = vpop.xlane.xlu1 %2831 }
 0xbc8   :  { %v2829_v48 = vpop.xlane.xlu0 %2828 }
 0xbc9   :  { %v2840_v49 = vpop.xlane.xlu1 %2839 }
 0xbcc   :  { %v2837_v50 = vpop.xlane.xlu0 %2836 }
 0xbcd   :  { %v2821_v51 = vpop.xlane.xlu1 %2820 }
 0xbce   :  { %v2825_v42 = vadd.f32 %v2821_v51, %v2815_v45 }
 0xbd0   :  { %v3259_v55 = vpop.permute.xlu0 %3258  ;;  %v2833_v44 = vadd.f32 %v2829_v48, %v2825_v42 }
 0xbd1   :  { %v3261_v56 = vpop.permute.xlu1 %3260  ;;  %16522 = vmatprep.mubr.msk.f32.mxu1 %vm845_vm1, %v3259_v55 }
 0xbd2   :  { %16523 = vmatmul.mubr.msk.f32.vlgmr.msra.gmra.mrb[14].mxu1 %vm845_vm1, %v3261_v56  ;;  %v2841_v59 = vadd.f32 %v2837_v50, %v2833_v44 }
 0xbd3   :  { %17827 = vmatpush3.bf16.xpose.msk.msra.mxu1 %vm20864_vm2, %v20868_v53  ;;  %16529 = vmatprep.mubr.msk.f32.mxu1 %vm845_vm1, %v3259_v55  ;;  %v2826_v53 = vadd.f32 %v2824_v43, %v2818_v14 }
 0xbd4   :  { %17830 = vmatprep.subr.msk.bf16.mxu1 %vm20864_vm2, %v20884_v58  ;;  %19238 = vrcp.f32 %v2841_v59 }
 0xbd5   :  { %v2834_v57 = vadd.f32 %v2832_v47, %v2826_v53 }
 0xbd7   :  { %v2842_v61 = vadd.f32 %v2840_v49, %v2834_v57 }
 0xbd9   :  { %19240 = vrcp.f32 %v2842_v61 }
 0xbda   :  { %16530 = vmatmul.mubr.msk.f32.vlgmr.msra.gmra.mrb[16].mxu1 %vm845_vm1, %v3261_v56 }
 0xbdb   :  { %17833 = vmatpush3.bf16.xpose.msk.msra.mxu1 %vm20864_vm2, %v20884_v58  ;;  %16536 = vmatprep.mubr.msk.f32.mxu1 %vm845_vm1, %v3259_v55 }
 0xbdc   :  { %17841 = vmatprep.subr.bf16.mxu1 %v20962_v41 }
 0xbde   :  { %v19239_v58 = vpop.eup %19238 }
 0xbe2   :  { %16537 = vmatmul.mubr.msk.f32.vlgmr.msra.gmra.mrb[18].mxu1 %vm845_vm1, %v3261_v56 }
 0xbe3   :  { %17843 = vmatpush3.bf16.msra.mxu1 %v20962_v41  ;;  %v19241_v60 = vpop.eup %19240 }
 0xbe4   :  { %17845 = vmatprep.subr.bf16.mxu1 %v20964_v46 }
 0xc22   :  { %v16512_v2 = vpop.f32.mrb[18].mxu0 }
 0xc23   :  { %v3162_v5 = vpop.f32.mrb[19].mxu0  ;;  %v3174_v7 = vmul.f32 %v19241_v60, %v16512_v2 }
 0xc24   :  { %v3173_v6 = vmul.f32 %v19239_v58, %v3162_v5 }
 0xc26   :  { %16515 = vmatprep.mubr.msk.f32.mxu0 %vm845_vm1, %v3173_v6 }
 0xc27   :  { %16516 = vmatmul.mubr.msk.f32.vlgmr.msra.gmra.mrb[12].mxu0 %vm845_vm1, %v3174_v7 }
 0xc28   :  { %17839 = vmatpush3.bf16.xpose.msk.msra.mxu0 %vm20864_vm2, %v20889_v62  ;;  %16543 = vmatprep.mubr.msk.f32.mxu0 %vm845_vm1, %v3259_v55 }
 0xc2f   :  { %16544 = vmatmul.mubr.msk.f32.vlgmr.msra.gmra.mrb[20].mxu0 %vm845_vm1, %v3261_v56 }
 0xca5   :  { %v16524_v41 = vpop.f32.mrb[14].mxu1 }
 0xca6   :  { %v3332_v8 = vpop.f32.mrb[15].mxu1  ;;  %v3338_v18 = vadd.f32 %v16524_v41, %v20921_v3 }
 0xca7   :  { %v3333_v62 = vadd.f32 %v3332_v8, %v20923_v4 }
 0xcad   :  { %v16531_v0 = vpop.f32.mrb[16].mxu1 }
 0xcae   :  { %v3407_v12 = vpop.f32.mrb[17].mxu1  ;;  %v3413_v9 = vadd.f32 %v16531_v0, %v20921_v3 }
 0xcaf   :  { %v3408_v17 = vadd.f32 %v3407_v12, %v20923_v4 }
 0xcb0   :  { %v3567_v21 = vmax.f32 %v3338_v18, %v3413_v9 }
 0xcb1   :  { %v3566_v24 = vmax.f32 %v3333_v62, %v3408_v17 }
 0xcb5   :  { %v16538_v63 = vpop.f32.mrb[18].mxu1 }
 0xcb6   :  { %v3482_v16 = vpop.f32.mrb[19].mxu1  ;;  %v3488_v19 = vadd.f32 %v16538_v63, %v20921_v3 }
 0xcb7   :  { %v3483_v20 = vadd.f32 %v3482_v16, %v20923_v4 }
 0xcb8   :  { %v3569_v26 = vmax.f32 %v3567_v21, %v3488_v19 }
 0xcb9   :  { %v3568_v29 = vmax.f32 %v3566_v24, %v3483_v20 }
 0xd02   :  { %v16545_v25 = vpop.f32.mrb[20].mxu0 }
 0xd03   :  { %v3563_v27 = vadd.f32 %v16545_v25, %v20921_v3  ;;  %v3557_v28 = vpop.f32.mrb[21].mxu0 }
 0xd04   :  { %v3558_v30 = vadd.f32 %v3557_v28, %v20923_v4 }
 0xd05   :  { %v3571_v31 = vmax.f32 %v3569_v26, %v3563_v27 }
 0xd06   :  { %v3570_v32 = vmax.f32 %v3568_v29, %v3558_v30  ;;  %v15141_v29 = vld [vmem:[#allocation8] ss:$0 sm:$0xff] }
 0xd07   :  { %v3575_v33 = vsel %vm1184_vm3, %v3571_v31, -inf }
 0xd08   :  { %3576 = vmax.xlane.f32.xlu0 %v3575_v33  ;;  %v3572_v34 = vsel %vm1184_vm3, %v3570_v32, -inf }
 0xd09   :  { %3573 = vmax.xlane.f32.xlu1 %v3572_v34 }
 0xd95   :  { %v3577_v35 = vpop.xlane.xlu0 %3576 }
 0xd96   :  { %v3579_v54 = vsub.f32 %v3338_v18, %v3577_v35  ;;  %v3585_v22 = vsub.f32 %v3413_v9, %v3577_v35  ;;  %v3574_v23 = vpop.xlane.xlu1 %3573  ;;  %v3591_v15 = vsub.f32 %v3488_v19, %v3577_v35  ;;  %v3597_v47 = vsub.f32 %v3563_v27, %v3577_v35 }
 0xd97   :  { %v3578_v37 = vsub.f32 %v3333_v62, %v3574_v23  ;;  %v3584_v38 = vsub.f32 %v3408_v17, %v3574_v23  ;;  %v3590_v13 = vsub.f32 %v3483_v20, %v3574_v23  ;;  %v3596_v43 = vsub.f32 %v3558_v30, %v3574_v23  ;;  %v589_v23 = vld [vmem:[%s23026_s2] sm:$0xff] }
 0xd98   :  { %v3582_v40 = vmul.f32 1.442695, %v3579_v54  ;;  %v3588_v3 = vmul.f32 1.442695, %v3585_v22  ;;  %v3594_v45 = vmul.f32 1.442695, %v3591_v15 }
 0xd99   :  { %v3580_v4 = vmul.f32 1.442695, %v3578_v37  ;;  %v3586_v10 = vmul.f32 1.442695, %v3584_v38  ;;  %v3592_v14 = vmul.f32 1.442695, %v3590_v13 }
 0xd9a   :  { %19242 = vpow2.f32 %v3582_v40  ;;  %v3598_v48 = vmul.f32 1.442695, %v3596_v43  ;;  %v3600_v49 = vmul.f32 1.442695, %v3597_v47  ;;  %v590_v54 = vld [vmem:[%s23026_s2 + $0x8] sm:$0xff]  ;;  %v602_v40 = vsel %vm601_vm0, %v589_v23, 0.0 }
 0xd9b   :  { %19244 = vpow2.f32 %v3588_v3  ;;  %v605_v38 = vsel %vm601_vm0, %v590_v54, 0.0  ;;  %v592_v3 = vld [vmem:[%s23026_s2 + $0x18] sm:$0xff]  ;;  %v591_v13 = vld [vmem:[%s23026_s2 + $0x10] sm:$0xff] }
 0xd9c   :  { %19246 = vpow2.f32 %v3580_v4 }
 0xd9d   :  { %19248 = vpow2.f32 %v3586_v10 }
 0xd9e   :  { %19250 = vpow2.f32 %v3592_v14 }
 0xd9f   :  { %19252 = vpow2.f32 %v3594_v45 }
 0xda0   :  { %19254 = vpow2.f32 %v3598_v48 }
 0xda1   :  { %19256 = vpow2.f32 %v3600_v49 }
 0xda4   :  { %v19243_v50 = vpop.eup %19242 }
 0xda5   :  { %v19245_v51 = vpop.eup %19244  ;;  %v3605_v55 = vsel %vm1184_vm3, %v19243_v50, 0.0 }
 0xda6   :  { %3606 = vadd.xlane.f32.xlu0 %v3605_v55  ;;  %v3611_v56 = vsel %vm1184_vm3, %v19245_v51, 0.0  ;;  %v19247_v42 = vpop.eup %19246 }
 0xda7   :  { %3612 = vadd.xlane.f32.xlu1 %v3611_v56  ;;  %v19249_v44 = vpop.eup %19248  ;;  %v3602_v53 = vsel %vm1184_vm3, %v19247_v42, 0.0 }
 0xda8   :  { %v19251_v57 = vpop.eup %19250  ;;  %16550 = vmatprep.mubr.msk.f32.mxu1 %vm1184_vm3, %v19249_v44  ;;  %v3608_v59 = vsel %vm1184_vm3, %v19249_v44, 0.0 }
 0xda9   :  { %v19253_v61 = vpop.eup %19252  ;;  %16551 = vmatmul.mubr.msk.f32.vlgmr.msra.gmra.mrb[20].mxu1 %vm1184_vm3, %v19245_v51  ;;  %v3616_v2 = vsel %vm1184_vm3, %v19251_v57, 0.0 }
 0xdaa   :  { %3603 = vadd.xlane.f32.xlu0 %v3602_v53  ;;  %17847 = vmatpush3.bf16.msra.mxu1 %v20964_v46  ;;  %v19255_v58 = vpop.eup %19254  ;;  %v3619_v5 = vsel %vm1184_vm3, %v19253_v61, 0.0  ;;  %v683_v46 = vld [vmem:[%s23025_s28 + $0x18] sm:$0xff] }
 0xdab   :  { %3609 = vadd.xlane.f32.xlu1 %v3608_v59  ;;  %16557 = vmatprep.mubr.msk.f32.mxu1 %vm1184_vm3, %v19247_v42  ;;  %v19257_v60 = vpop.eup %19256  ;;  %v3624_v6 = vsel %vm1184_vm3, %v19255_v58, 0.0 }
 0xdac   :  { %17849 = vmatprep.subr.bf16.mxu1 %v20991_v1  ;;  %v3627_v7 = vsel %vm1184_vm3, %v19257_v60, 0.0  ;;  %16574 = vmatprep.subr.mxu0 %v683_v46 }
 0xdad   :  { %16575 = vmatpush3.msra.mxu0 %v683_v46 }
 0xdae   :  { %3617 = vadd.xlane.f32.xlu0 %v3616_v2 }
 0xdaf   :  { %3620 = vadd.xlane.f32.xlu1 %v3619_v5 }
 0xdb1   :  { %16558 = vmatmul.mubr.msk.f32.vlgmr.msra.gmra.mrb[20].mxu1 %vm1184_vm3, %v19243_v50 }
 0xdb2   :  { %3625 = vadd.xlane.f32.xlu0 %v3624_v6  ;;  %17851 = vmatpush3.bf16.msra.mxu1 %v20991_v1 }
 0xdb3   :  { %3628 = vadd.xlane.f32.xlu1 %v3627_v7  ;;  %16564 = vmatprep.mubr.msk.f32.mxu1 %vm1184_vm3, %v19251_v57 }
 0xdb4   :  { %17853 = vmatprep.subr.bf16.mxu1 %v21008_v11 }
 0xdb9   :  { %16565 = vmatmul.mubr.msk.f32.vlgmr.msra.gmra.mrb[20].mxu1 %vm1184_vm3, %v19253_v61 }
 0xdba   :  { %17855 = vmatpush3.bf16.msra.mxu1 %v21008_v11  ;;  %16571 = vmatprep.mubr.msk.f32.mxu1 %vm1184_vm3, %v19255_v58 }
 0xdc1   :  { %16572 = vmatmul.mubr.msk.f32.vlgmr.msra.gmra.mrb[20].mxu1 %vm1184_vm3, %v19257_v60 }
 0xe33   :  { %v3607_v41 = vpop.xlane.xlu0 %3606 }
 0xe34   :  { %v3613_v8 = vpop.xlane.xlu1 %3612 }
 0xe35   :  { %v3615_v9 = vadd.f32 %v3613_v8, %v3607_v41 }
 0xe37   :  { %v3604_v0 = vpop.xlane.xlu0 %3603 }
 0xe38   :  { %v3610_v12 = vpop.xlane.xlu1 %3609 }
 0xe39   :  { %v3614_v16 = vadd.f32 %v3610_v12, %v3604_v0 }
 0xe3b   :  { %v3618_v1 = vpop.xlane.xlu0 %3617 }
 0xe3c   :  { %v3621_v63 = vpop.xlane.xlu1 %3620  ;;  %v3622_v18 = vadd.f32 %v3618_v1, %v3614_v16  ;;  %v687_v1 = vld [vmem:[%s23027_s3] sm:$0xff] }
 0xe3d   :  { %v3623_v62 = vadd.f32 %v3621_v63, %v3615_v9  ;;  %v688_v63 = vld [vmem:[%s23027_s3 + $0x8] sm:$0xff]  ;;  %v689_v9 = vld [vmem:[%s23027_s3 + $0x10] sm:$0xff] }
 0xe3e   :  { %v17856_v16 = vpack.c.bf16 %v688_v63, %v687_v1 }
 0xe3f   :  { %v3626_v17 = vpop.xlane.xlu0 %3625 }
 0xe40   :  { %v3629_v19 = vpop.xlane.xlu1 %3628  ;;  %v3630_v11 = vadd.f32 %v3626_v17, %v3622_v18  ;;  %17857 = vmatprep.subr.bf16.mxu0 %v17856_v16  ;;  %v690_v17 = vld [vmem:[%s23027_s3 + $0x18] sm:$0xff] }
 0xe41   :  { %v3631_v20 = vadd.f32 %v3629_v19, %v3623_v62  ;;  %v17860_v18 = vpack.c.bf16 %v690_v17, %v689_v9  ;;  %v692_v19 = vld [vmem:[%s23028_s6] sm:$0xff]  ;;  %v693_v62 = vld [vmem:[%s23028_s6 + $0x8] sm:$0xff] }
 0xe42   :  { %19258 = vrcp.f32 %v3630_v11  ;;  %v17864_v11 = vpack.c.bf16 %v693_v62, %v692_v19 }
 0xe43   :  { %19260 = vrcp.f32 %v3631_v20 }
 0xe4c   :  { %v19259_v24 = vpop.eup %19258 }
 0xe4d   :  { %v19261_v26 = vpop.eup %19260 }
 0xe94   :  { %v16573_v21 = vpop.f32.mrb[20].mxu1 }
 0xe95   :  { %v3951_v25 = vpop.f32.mrb[21].mxu1  ;;  %v3963_v28 = vmul.f32 %v19261_v26, %v16573_v21 }
 0xe96   :  { %v3962_v27 = vmul.f32 %v19259_v24, %v3951_v25 }
 0xe98   :  { %16576 = vmatprep.mubr.msk.f32.mxu0 %vm845_vm1, %v3962_v27 }
 0xe99   :  { %16577 = vmatmul.mubr.msk.f32.vlgmr.msra.gmra.mrb[12].mxu0 %vm845_vm1, %v3963_v28 }
 0xe9a   :  { %17859 = vmatpush3.bf16.msra.mxu0 %v17856_v16 }
 0xe9b   :  { %17861 = vmatprep.subr.bf16.mxu0 %v17860_v18 }
 0xe9e   :  { %17863 = vmatpush3.bf16.msra.mxu0 %v17860_v18 }
 0xe9f   :  { %17865 = vmatprep.subr.bf16.mxu0 %v17864_v11 }
 0xf6c   :  { %v16578_v30 = vpop.f32.mrb[12].mxu0 }
 0xf6d   :  { %v4054_v31 = vadd.f32 %v16578_v30, %v15141_v29  ;;  %v4036_v32 = vpop.f32.mrb[13].mxu0 }
 0xf6e   :  { %v4053_v33 = vadd.f32 %v15141_v29, %v4036_v32 }
 0xf6f   :  { %v4056_v34 = vadd.f32 %v4054_v31, %v20838_v39  ;;  %v611_v39 = vsel %vm601_vm0, %v592_v3, 0.0 }
 0xf70   :  { %v4055_v35 = vadd.f32 %v4053_v33, %v20834_v36  ;;  %v608_v36 = vsel %vm601_vm0, %v591_v13, 0.0 }
 0xf71   :  { %v4060_v22 = vsel %vm601_vm0, %v4056_v34, 0.0 }
 0xf72   :  { %4061 = vadd.xlane.f32.xlu1 %v4060_v22  ;;  %v4057_v37 = vsel %vm601_vm0, %v4055_v35, 0.0 }
 0xf73   :  { %4058 = vadd.xlane.f32.xlu0 %v4057_v37 }
 0xf76   :  { %606 = vadd.xlane.f32.xlu1 %v605_v38 }
 0xf77   :  { %603 = vadd.xlane.f32.xlu0 %v602_v40  ;;  %v15142_v40 = vld [vmem:[#allocation10] ss:$0 sm:$0xff] }
 0xf7a   :  { %612 = vadd.xlane.f32.xlu1 %v611_v39 }
 0xf7b   :  { %609 = vadd.xlane.f32.xlu0 %v608_v36  ;;  %v15143_v36 = vld [vmem:[#allocation11] ss:$0 sm:$0xff] }
 0xfff   :  { %v4062_v15 = vpop.xlane.xlu1 %4061 }
0x1000   :  { %v4064_v4 = vmul.f32 0.03125, %v4062_v15  ;;  %v4059_v10 = vpop.xlane.xlu0 %4058 }
0x1001   :  { %v4063_v14 = vmul.f32 0.03125, %v4059_v10 }
0x1002   :  { %v21256_v43 = vsub.f32 %v4056_v34, %v4064_v4 }
0x1003   :  { %v21258_v45 = vsub.f32 %v4055_v35, %v4063_v14  ;;  %v607_v47 = vpop.xlane.xlu1 %606  ;;  %v694_v14 = vld [vmem:[%s23028_s6 + $0x10] sm:$0xff] }
0x1004   :  { %v616_v48 = vmul.f32 0.03125, %v607_v47  ;;  %v604_v49 = vpop.xlane.xlu0 %603  ;;  %v4068_v50 = vmul.f32 %v21256_v43, %v21256_v43  ;;  %v695_v47 = vld [vmem:[%s23028_s6 + $0x18] sm:$0xff] }
0x1005   :  { %v615_v51 = vmul.f32 0.03125, %v604_v49  ;;  %v4067_v55 = vmul.f32 %v21258_v45, %v21258_v45 }
0x1006   :  { %v21264_v56 = vsub.f32 %v590_v54, %v616_v48  ;;  %v4072_v42 = vsel %vm601_vm0, %v4068_v50, 0.0 }
0x1007   :  { %v21267_v44 = vsub.f32 %v589_v23, %v615_v51  ;;  %4073 = vadd.xlane.f32.xlu1 %v4072_v42  ;;  %v613_v53 = vpop.xlane.xlu1 %612  ;;  %v4069_v57 = vsel %vm601_vm0, %v4067_v55, 0.0  ;;  %v17868_v42 = vpack.c.bf16 %v695_v47, %v694_v14 }
0x1008   :  { %v618_v59 = vmul.f32 0.03125, %v613_v53  ;;  %4070 = vadd.xlane.f32.xlu0 %v4069_v57  ;;  %v610_v61 = vpop.xlane.xlu0 %609  ;;  %v624_v2 = vmul.f32 %v21264_v56, %v21264_v56 }
0x1009   :  { %v617_v58 = vmul.f32 0.03125, %v610_v61  ;;  %v623_v5 = vmul.f32 %v21267_v44, %v21267_v44 }
0x100a   :  { %v21274_v60 = vsub.f32 %v592_v3, %v618_v59  ;;  %v630_v6 = vsel %vm601_vm0, %v624_v2, 0.0  ;;  %v19539_v59 = vld [vmem:[#allocation5] ss:$0 sm:$0xff] }
0x100b   :  { %v21277_v7 = vsub.f32 %v591_v13, %v617_v58  ;;  %631 = vadd.xlane.f32.xlu1 %v630_v6  ;;  %v627_v46 = vsel %vm601_vm0, %v623_v5, 0.0 }
0x100c   :  { %628 = vadd.xlane.f32.xlu0 %v627_v46  ;;  %v626_v41 = vmul.f32 %v21274_v60, %v21274_v60 }
0x100d   :  { %v625_v8 = vmul.f32 %v21277_v7, %v21277_v7 }
0x100e   :  { %v636_v0 = vsel %vm601_vm0, %v626_v41, 0.0 }
0x100f   :  { %637 = vadd.xlane.f32.xlu1 %v636_v0  ;;  %v633_v12 = vsel %vm601_vm0, %v625_v8, 0.0 }
0x1010   :  { %634 = vadd.xlane.f32.xlu0 %v633_v12  ;;  %v15147_v12 = vld [vmem:[#allocation14] ss:$0 sm:$0xff] }
0x1094   :  { %v4074_v20 = vpop.xlane.xlu1 %4073 }
0x1095   :  { %v4076_v21 = vmul.f32 0.03125, %v4074_v20  ;;  %v4071_v24 = vpop.xlane.xlu0 %4070 }
0x1096   :  { %v4075_v25 = vmul.f32 0.03125, %v4071_v24 }
0x1097   :  { %v4078_v26 = vadd.f32 1e-05, %v4076_v21 }
0x1098   :  { %v4077_v27 = vadd.f32 1e-05, %v4075_v25  ;;  %v632_v28 = vpop.xlane.xlu1 %631 }
0x1099   :  { %19262 = vrsqrt.f32 %v4078_v26  ;;  %v640_v29 = vmul.f32 0.03125, %v632_v28  ;;  %v629_v30 = vpop.xlane.xlu0 %628 }
0x109a   :  { %19264 = vrsqrt.f32 %v4077_v27  ;;  %v639_v31 = vmul.f32 0.03125, %v629_v30 }
0x109b   :  { %v644_v32 = vadd.f32 1e-05, %v640_v29 }
0x109c   :  { %v643_v33 = vadd.f32 1e-05, %v639_v31  ;;  %v638_v34 = vpop.xlane.xlu1 %637 }
0x109d   :  { %19266 = vrsqrt.f32 %v644_v32  ;;  %v642_v35 = vmul.f32 0.03125, %v638_v34  ;;  %v635_v54 = vpop.xlane.xlu0 %634 }
0x109e   :  { %19268 = vrsqrt.f32 %v643_v33  ;;  %v641_v22 = vmul.f32 0.03125, %v635_v54 }
0x109f   :  { %v646_v23 = vadd.f32 1e-05, %v642_v35 }
0x10a0   :  { %v645_v37 = vadd.f32 1e-05, %v641_v22 }
0x10a1   :  { %19270 = vrsqrt.f32 %v646_v23 }
0x10a2   :  { %19272 = vrsqrt.f32 %v645_v37 }
0x10a3   :  { %v19263_v38 = vpop.eup %19262 }
0x10a4   :  { %v19265_v3 = vpop.eup %19264  ;;  %v4082_v13 = vmul.f32 %v19263_v38, %v21256_v43 }
0x10a5   :  { %v4081_v39 = vmul.f32 %v19265_v3, %v21258_v45  ;;  %v19538_v45 = vld [vmem:[%s23022_s16] ss:$0 sm:$0xff] }
0x10a6   :  { %v4090_v15 = vmul.f32 %v15142_v40, %v4082_v13 }
0x10a7   :  { %v19267_v4 = vpop.eup %19266  ;;  %v4089_v10 = vmul.f32 %v15142_v40, %v4081_v39 }
0x10a8   :  { %v19269_v48 = vpop.eup %19268  ;;  %v652_v51 = vmul.f32 %v19267_v4, %v21264_v56  ;;  %v21300_v55 = vadd.f32 %v15143_v36, %v4090_v15 }
0x10a9   :  { %v21296_v49 = vadd.f32 %v15143_v36, %v4089_v10  ;;  %v651_v50 = vmul.f32 %v19269_v48, %v21267_v44 }
0x10aa   :  { %v662_v56 = vmul.f32 %v19538_v45, %v652_v51 }
0x10ab   :  { %v19271_v43 = vpop.eup %19270  ;;  %16587 = vmatprep.mubr.msk.f32.mxu0 %vm601_vm0, %v21296_v49  ;;  %v661_v53 = vmul.f32 %v19538_v45, %v651_v50 }
0x10ac   :  { %v19273_v57 = vpop.eup %19272  ;;  %16588 = vmatmul.mubr.msk.f32.vlgmr.msra.gmra.mrb[22].mxu0 %vm601_vm0, %v21300_v55  ;;  %v654_v2 = vmul.f32 %v19271_v43, %v21274_v60  ;;  %v21315_v6 = vadd.f32 %v19539_v59, %v662_v56  ;;  %v15144_v60 = vld [vmem:[#allocation13] ss:$0 sm:$0xff] }
0x10ad   :  { %17867 = vmatpush3.bf16.msra.mxu0 %v17864_v11  ;;  %v21307_v61 = vadd.f32 %v19539_v59, %v661_v53  ;;  %v653_v44 = vmul.f32 %v19273_v57, %v21277_v7 }
0x10ae   :  { %17869 = vmatprep.subr.bf16.mxu0 %v17868_v42  ;;  %v664_v46 = vmul.f32 %v19538_v45, %v654_v2 }
0x10af   :  { %16598 = vmatprep.mubr.msk.f32.mxu0 %vm601_vm0, %v21307_v61  ;;  %v663_v58 = vmul.f32 %v19538_v45, %v653_v44 }
0x10b0   :  { %v21321_v7 = vadd.f32 %v19539_v59, %v664_v46  ;;  %v21453_v46 = vld [vmem:[%s23029_s7 + $0x8] sm:$0xff] }
0x10b1   :  { %17871 = vmatpush3.bf16.msra.mxu0 %v17868_v42  ;;  %v21313_v5 = vadd.f32 %v19539_v59, %v663_v58 }
0x10b4   :  { %16599 = vmatmul.mubr.msk.f32.vlgmr.msra.gmra.mrb[24].mxu0 %vm601_vm0, %v21315_v6 }
0x10b5   :  { %16601 = vmatprep.mubr.msk.f32.mxu0 %vm601_vm0, %v21313_v5 }
0x10b8   :  { %16602 = vmatmul.mubr.msk.f32.gmra.mrb[26].mxu0 %vm601_vm0, %v21321_v7 }
0x117f   :  { %v16589_v41 = vpop.f32.mrb[22].mxu0 }
0x1180   :  { %v4177_v8 = vpop.f32.mrb[23].mxu0  ;;  %v21363_v25 = vadd.f32 %v16589_v41, %v15144_v60 }
0x1181   :  { %v21325_v0 = vadd.f32 %v15144_v60, %v4177_v8  ;;  %v21456_v60 = vld [vmem:[%s23029_s7] sm:$0xff] }
0x1183   :  { %16612 = vmatprep.mubr.msk.f32.mxu1 %vm845_vm1, %v21325_v0  ;;  %16623 = vmatprep.mubr.msk.f32.mxu0 %vm845_vm1, %v21325_v0 }
0x1187   :  { %v16600_v1 = vpop.f32.mrb[24].mxu0 }
0x1188   :  { %v4276_v63 = vadd.f32 %v16600_v1, %v15147_v12  ;;  %v4270_v16 = vpop.f32.mrb[25].mxu0 }
0x1189   :  { %v4271_v9 = vadd.f32 %v15147_v12, %v4270_v16 }
0x118b   :  { %v16603_v17 = vpop.f32.mrb[26].mxu0  ;;  %v21331_v18 = vpack.i.bf16 %v4276_v63, %v4271_v9  ;;  %v21333_v19 = vpack.c.bf16 %v4276_v63, %v4271_v9 }
0x118c   :  { %v4286_v62 = vadd.f32 %v16603_v17, %v15147_v12  ;;  %v4280_v11 = vpop.f32.mrb[27].mxu0 }
0x118d   :  { %v4281_v20 = vadd.f32 %v15147_v12, %v4280_v11  ;;  %18999 = vrot.lane.b32.xlu0 %v21331_v18, %s20421_s4  ;;  %17874 = vmatprep.subr.msk.bf16.mxu1 %vm20864_vm2, %v21333_v19 }
0x118e   :  { %17877 = vmatpush3.bf16.xpose.msk.msra.mxu1 %vm20864_vm2, %v21333_v19 }
0x118f   :  { %v21343_v21 = vpack.i.bf16 %v4286_v62, %v4281_v20  ;;  %v21345_v24 = vpack.c.bf16 %v4286_v62, %v4281_v20 }
0x1191   :  { %19019 = vrot.lane.b32.xlu0 %v21343_v21, %s20423_s1  ;;  %19004 = vrot.lane.b32.xlu1 %v21343_v21, %s20421_s4 }
0x1192   :  { %17880 = vmatprep.subr.msk.bf16.mxu1 %vm20864_vm2, %v21345_v24 }
0x1195   :  { %19029 = vrot.lane.b32.xlu0 %v21331_v18, %s20414_s18  ;;  %19009 = vrot.lane.b32.xlu1 %v21331_v18, %s20423_s1 }
0x1196   :  { %17883 = vmatpush3.bf16.xpose.msk.msra.mxu1 %vm20864_vm2, %v21345_v24 }
0x1199   :  { %19014 = vrot.lane.b32.xlu1 %v21331_v18, %s20424_s30 }
0x119d   :  { %19024 = vrot.lane.b32.xlu1 %v21343_v21, %s20424_s30  ;;  %16613 = vmatmul.mubr.msk.f32.vlgmr.msra.gmra.mrb[22].mxu1 %vm845_vm1, %v21363_v25 }
0x119e   :  { %16634 = vmatprep.mubr.msk.f32.mxu1 %vm845_vm1, %v21325_v0 }
0x11a1   :  { %19034 = vrot.lane.b32.xlu1 %v21343_v21, %s20414_s18 }
0x11ff   :  { %v19000_v26 = vpop.permute.xlu0 %18999 }
0x1200   :  { %v19002_v27 = vunpack.i.h.bf16 %v19000_v26  ;;  %v19001_v28 = vunpack.i.l.bf16 %v19000_v26 }
0x1202   :  { %v21373_v29 = vpack.c.bf16 %v19002_v27, %v19001_v28 }
0x1203   :  { %v19005_v30 = vpop.permute.xlu1 %19004  ;;  %v19020_v33 = vpop.permute.xlu0 %19019 }
0x1204   :  { %v19007_v31 = vunpack.i.h.bf16 %v19005_v30  ;;  %v19006_v32 = vunpack.i.l.bf16 %v19005_v30  ;;  %17886 = vmatprep.subr.msk.bf16.mxu0 %vm20864_vm2, %v21373_v29  ;;  %v19022_v54 = vunpack.i.h.bf16 %v19020_v33  ;;  %v19021_v22 = vunpack.i.l.bf16 %v19020_v33 }
0x1205   :  { %17889 = vmatpush3.bf16.xpose.msk.msra.mxu0 %vm20864_vm2, %v21373_v29 }
0x1206   :  { %v21381_v34 = vpack.c.bf16 %v19007_v31, %v19006_v32  ;;  %v21388_v3 = vpack.c.bf16 %v19022_v54, %v19021_v22 }
0x1207   :  { %v19010_v35 = vpop.permute.xlu1 %19009  ;;  %v19030_v36 = vpop.permute.xlu0 %19029 }
0x1208   :  { %v19012_v23 = vunpack.i.h.bf16 %v19010_v35  ;;  %v19011_v37 = vunpack.i.l.bf16 %v19010_v35  ;;  %17892 = vmatprep.subr.msk.bf16.mxu0 %vm20864_vm2, %v21381_v34  ;;  %v19032_v47 = vunpack.i.h.bf16 %v19030_v36  ;;  %v19031_v48 = vunpack.i.l.bf16 %v19030_v36 }
0x120a   :  { %v21386_v38 = vpack.c.bf16 %v19012_v23, %v19011_v37  ;;  %v21411_v51 = vpack.c.bf16 %v19032_v47, %v19031_v48 }
0x120b   :  { %v19015_v40 = vpop.permute.xlu1 %19014 }
0x120c   :  { %v19017_v13 = vunpack.i.h.bf16 %v19015_v40  ;;  %v19016_v39 = vunpack.i.l.bf16 %v19015_v40  ;;  %17898 = vmatprep.subr.msk.bf16.mxu1 %vm20864_vm2, %v21386_v38 }
0x120d   :  { %17895 = vmatpush3.bf16.xpose.msk.msra.mxu0 %vm20864_vm2, %v21381_v34  ;;  %17901 = vmatpush3.bf16.xpose.msk.msra.mxu1 %vm20864_vm2, %v21386_v38 }
0x120e   :  { %v21399_v15 = vpack.c.bf16 %v19017_v13, %v19016_v39  ;;  %17904 = vmatprep.subr.msk.bf16.mxu1 %vm20864_vm2, %v21388_v3 }
0x120f   :  { %v19025_v4 = vpop.permute.xlu1 %19024 }
0x1210   :  { %v19027_v10 = vunpack.i.h.bf16 %v19025_v4  ;;  %v19026_v14 = vunpack.i.l.bf16 %v19025_v4  ;;  %17910 = vmatprep.subr.msk.bf16.mxu0 %vm20864_vm2, %v21399_v15 }
0x1212   :  { %v21407_v50 = vpack.c.bf16 %v19027_v10, %v19026_v14 }
0x1213   :  { %v19035_v42 = vpop.permute.xlu1 %19034 }
0x1214   :  { %16624 = vmatmul.mubr.msk.f32.vlgmr.msra.gmra.mrb[28].mxu0 %vm845_vm1, %v21363_v25  ;;  %v19037_v43 = vunpack.i.h.bf16 %v19035_v42  ;;  %v19036_v45 = vunpack.i.l.bf16 %v19035_v42 }
0x1215   :  { %17907 = vmatpush3.bf16.xpose.msk.msra.mxu1 %vm20864_vm2, %v21388_v3  ;;  %17913 = vmatpush3.bf16.xpose.msk.msra.mxu0 %vm20864_vm2, %v21399_v15 }
0x1216   :  { %16645 = vmatprep.mubr.msk.f32.mxu0 %vm845_vm1, %v21325_v0  ;;  %17916 = vmatprep.subr.msk.bf16.mxu0 %vm20864_vm2, %v21407_v50  ;;  %v21425_v53 = vpack.c.bf16 %v19037_v43, %v19036_v45 }
0x1217   :  { %17921 = vmatprep.subr.bf16.mxu1 %v21411_v51 }
0x121c   :  { %16635 = vmatmul.mubr.msk.f32.vlgmr.msra.gmra.mrb[24].mxu1 %vm845_vm1, %v21363_v25 }
0x121d   :  { %17919 = vmatpush3.bf16.xpose.msk.msra.mxu0 %vm20864_vm2, %v21407_v50  ;;  %17923 = vmatpush3.bf16.msra.mxu1 %v21411_v51 }
0x121e   :  { %17925 = vmatprep.subr.bf16.mxu1 %v21425_v53  ;;  %17954 = vmatprep.subr.msk.bf16.mxu0 %vm20864_vm2, %v21333_v19 }
0x1221   :  { %17927 = vmatpush3.bf16.msra.mxu1 %v21425_v53 }
0x1224   :  { %16646 = vmatmul.mubr.msk.f32.vlgmr.msra.gmra.mrb[30].mxu0 %vm845_vm1, %v21363_v25 }
0x1225   :  { %17957 = vmatpush3.bf16.xpose.msk.msra.mxu0 %vm20864_vm2, %v21333_v19 }
0x1226   :  { %17960 = vmatprep.subr.msk.bf16.mxu0 %vm20864_vm2, %v21345_v24 }
0x122d   :  { %17963 = vmatpush3.bf16.xpose.msk.msra.mxu0 %vm20864_vm2, %v21345_v24 }
0x122e   :  { %17966 = vmatprep.subr.msk.bf16.mxu0 %vm20864_vm2, %v21373_v29 }
0x1270   :  { %v16614_v57 = vpop.f32.mrb[22].mxu1 }
0x1271   :  { %v4373_v59 = vpop.f32.mrb[23].mxu1  ;;  %v4379_v12 = vadd.f32 %v16614_v57, %v21453_v46 }
0x1272   :  { %v4374_v63 = vadd.f32 %v4373_v59, %v21456_v60 }
0x12e7   :  { %v16625_v44 = vpop.f32.mrb[28].mxu0 }
0x12e8   :  { %v4464_v56 = vpop.f32.mrb[29].mxu0  ;;  %v4470_v41 = vadd.f32 %v16625_v44, %v21453_v46 }
0x12e9   :  { %v4465_v8 = vadd.f32 %v4464_v56, %v21456_v60 }
0x12ea   :  { %v4656_v9 = vmax.f32 %v4379_v12, %v4470_v41 }
0x12eb   :  { %v4655_v17 = vmax.f32 %v4374_v63, %v4465_v8 }
0x12ef   :  { %v16636_v2 = vpop.f32.mrb[24].mxu1 }
0x12f0   :  { %v4555_v58 = vpop.f32.mrb[25].mxu1  ;;  %v21462_v1 = vadd.f32 %v16636_v2, %v21453_v46 }
0x12f1   :  { %v4556_v16 = vadd.f32 %v4555_v58, %v21456_v60 }
0x12f2   :  { %v4658_v11 = vmax.f32 %v4656_v9, %v21462_v1 }
0x12f3   :  { %v4657_v27 = vmax.f32 %v4655_v17, %v4556_v16 }
0x12f7   :  { %v16647_v62 = vpop.f32.mrb[30].mxu0 }
0x12f8   :  { %v21468_v20 = vadd.f32 %v16647_v62, %v21453_v46  ;;  %v4646_v26 = vpop.f32.mrb[31].mxu0 }
0x12f9   :  { %v21471_v28 = vadd.f32 %v4646_v26, %v21456_v60 }
0x12fa   :  { %v4660_v30 = vmax.f32 %v4658_v11, %v21468_v20 }
0x12fb   :  { %v4659_v31 = vmax.f32 %v4657_v27, %v21471_v28 }
0x12fc   :  { %v4664_v32 = vsel %vm601_vm0, %v4660_v30, -inf }
0x12fd   :  { %4665 = vmax.xlane.f32.xlu1 %v4664_v32  ;;  %v4661_v33 = vsel %vm601_vm0, %v4659_v31, -inf }
0x12fe   :  { %4662 = vmax.xlane.f32.xlu0 %v4661_v33 }
0x130e   :  { %19044 = vrot.lane.b32.xlu1 %v21343_v21, %s20415_s22 }
0x1312   :  { %19054 = vrot.lane.b32.xlu1 %v21343_v21, %s20416_s24 }
0x1314   :  { %19039 = vrot.lane.b32.xlu0 %v21331_v18, %s20415_s22 }
0x1316   :  { %5101 = vrot.lane.b32.xlu1 %v21325_v0, %s20421_s4 }
0x1318   :  { %19049 = vrot.lane.b32.xlu0 %v21331_v18, %s20416_s24 }
0x131a   :  { %19064 = vrot.lane.b32.xlu1 %v21343_v21, %s20417_s9 }
0x131c   :  { %19059 = vrot.lane.b32.xlu0 %v21331_v18, %s20417_s9 }
0x1320   :  { %5103 = vrot.lane.b32.xlu0 %v21363_v25, %s20421_s4 }
0x138a   :  { %v21493_v35 = vpop.xlane.xlu1 %4665 }
0x138b   :  { %v4663_v54 = vpop.xlane.xlu0 %4662  ;;  %v4674_v23 = vsub.f32 %v4470_v41, %v21493_v35  ;;  %v4668_v48 = vsub.f32 %v4379_v12, %v21493_v35  ;;  %v4680_v58 = vsub.f32 %v21462_v1, %v21493_v35 }
0x138c   :  { %v4673_v22 = vsub.f32 %v4465_v8, %v4663_v54  ;;  %v4667_v37 = vsub.f32 %v4374_v63, %v4663_v54  ;;  %v4679_v42 = vsub.f32 %v4556_v16, %v4663_v54  ;;  %v4685_v8 = vsub.f32 %v21471_v28, %v4663_v54 }
0x138d   :  { %v4677_v10 = vmul.f32 1.442695, %v4674_v23  ;;  %v4671_v57 = vmul.f32 1.442695, %v4668_v48  ;;  %v4683_v17 = vmul.f32 1.442695, %v4680_v58  ;;  %v4686_v28 = vsub.f32 %v21468_v20, %v21493_v35 }
0x138e   :  { %v19045_v40 = vpop.permute.xlu1 %19044  ;;  %v4675_v39 = vmul.f32 1.442695, %v4673_v22  ;;  %v4669_v21 = vmul.f32 1.442695, %v4667_v37  ;;  %v4681_v59 = vmul.f32 1.442695, %v4679_v42 }
0x138f   :  { %v19040_v13 = vpop.permute.xlu0 %19039  ;;  %v19047_v56 = vunpack.i.h.bf16 %v19045_v40  ;;  %v19046_v2 = vunpack.i.l.bf16 %v19045_v40  ;;  %v4687_v62 = vmul.f32 1.442695, %v4685_v8  ;;  %v4689_v35 = vmul.f32 1.442695, %v4686_v28 }
0x1390   :  { %v19042_v36 = vunpack.i.h.bf16 %v19040_v13  ;;  %v19041_v4 = vunpack.i.l.bf16 %v19040_v13  ;;  %19274 = vpow2.f32 %v4675_v39 }
0x1391   :  { %19276 = vpow2.f32 %v4677_v10  ;;  %v21527_v63 = vpack.c.bf16 %v19047_v56, %v19046_v2 }
0x1392   :  { %v21496_v14 = vpack.c.bf16 %v19042_v36, %v19041_v4  ;;  %v19055_v18 = vpop.permute.xlu1 %19054  ;;  %19278 = vpow2.f32 %v4669_v21 }
0x1393   :  { %v19050_v47 = vpop.permute.xlu0 %19049  ;;  %19280 = vpow2.f32 %v4671_v57  ;;  %v19057_v11 = vunpack.i.h.bf16 %v19055_v18  ;;  %v19056_v26 = vunpack.i.l.bf16 %v19055_v18 }
0x1394   :  { %17929 = vmatprep.subr.bf16.mxu1 %v21496_v14  ;;  %19282 = vpow2.f32 %v4681_v59  ;;  %v19052_v16 = vunpack.i.h.bf16 %v19050_v47  ;;  %v19051_v9 = vunpack.i.l.bf16 %v19050_v47 }
0x1395   :  { %19284 = vpow2.f32 %v4683_v17  ;;  %v21551_v32 = vpack.c.bf16 %v19057_v11, %v19056_v26 }
0x1396   :  { %v21500_v43 = vpop.permute.xlu1 %5101  ;;  %v21535_v27 = vpack.c.bf16 %v19052_v16, %v19051_v9  ;;  %19286 = vpow2.f32 %v4687_v62 }
0x1397   :  { %16700 = vmatprep.mubr.msk.f32.mxu0 %vm845_vm1, %v21500_v43  ;;  %v19060_v45 = vpop.permute.xlu0 %19059  ;;  %19288 = vpow2.f32 %v4689_v35 }
0x1398   :  { %v19062_v20 = vunpack.i.h.bf16 %v19060_v45  ;;  %v19061_v33 = vunpack.i.l.bf16 %v19060_v45 }
0x139a   :  { %v21515_v41 = vpop.eup %19274  ;;  %v19065_v54 = vpop.permute.xlu1 %19064  ;;  %v21559_v22 = vpack.c.bf16 %v19062_v20, %v19061_v33 }
0x139b   :  { %v21504_v44 = vpop.permute.xlu0 %5103  ;;  %v21521_v12 = vpop.eup %19276  ;;  %16656 = vmatprep.mubr.msk.f32.mxu1 %vm601_vm0, %v21515_v41  ;;  %v19067_v23 = vunpack.i.h.bf16 %v19065_v54  ;;  %v19066_v37 = vunpack.i.l.bf16 %v19065_v54  ;;  %v4697_v54 = vsel %vm601_vm0, %v21515_v41, 0.0 }
0x139c   :  { %16701 = vmatmul.mubr.msk.f32.vlgmr.msra.gmra.mrb[32].mxu0 %vm845_vm1, %v21504_v44  ;;  %v21525_v1 = vpop.eup %19278  ;;  %16657 = vmatmul.mubr.msk.f32.vlgmr.msra.gmra.mrb[26].mxu1 %vm601_vm0, %v21521_v12 }
0x139d   :  { %17969 = vmatpush3.bf16.xpose.msk.msra.mxu0 %vm20864_vm2, %v21373_v29  ;;  %16711 = vmatprep.mubr.msk.f32.mxu0 %vm845_vm1, %v21500_v43  ;;  %v21547_v30 = vpop.eup %19280  ;;  %v21577_v39 = vpack.c.bf16 %v19067_v23, %v19066_v37  ;;  %v4691_v23 = vsel %vm601_vm0, %v21525_v1, 0.0  ;;  %v4700_v37 = vsel %vm601_vm0, %v21521_v12, 0.0 }
0x139e   :  { %17972 = vmatprep.subr.msk.bf16.mxu0 %vm20864_vm2, %v21381_v34  ;;  %17931 = vmatpush3.bf16.msra.mxu1 %v21496_v14  ;;  %v21549_v31 = vpop.eup %19282 }
0x139f   :  { %16667 = vmatprep.mubr.msk.f32.mxu1 %vm601_vm0, %v21525_v1  ;;  %17933 = vmatprep.subr.bf16.mxu1 %v21527_v63  ;;  %v21570_v40 = vpop.eup %19284 }
0x13a0   :  { %v21575_v13 = vpop.eup %19286 }
0x13a1   :  { %v21592_v36 = vpop.eup %19288 }
0x13a2   :  { %17935 = vmatpush3.bf16.msra.mxu1 %v21527_v63 }
0x13a3   :  { %17937 = vmatprep.subr.bf16.mxu1 %v21535_v27 }
0x13a5   :  { %17975 = vmatpush3.bf16.xpose.msk.msra.mxu0 %vm20864_vm2, %v21381_v34  ;;  %16668 = vmatmul.mubr.msk.f32.vlgmr.msra.gmra.mrb[26].mxu1 %vm601_vm0, %v21547_v30 }
0x13a6   :  { %17990 = vmatprep.subr.msk.bf16.mxu0 %vm20864_vm2, %v21399_v15  ;;  %17939 = vmatpush3.bf16.msra.mxu1 %v21535_v27 }
0x13a7   :  { %16678 = vmatprep.mubr.msk.f32.mxu1 %vm601_vm0, %v21549_v31  ;;  %17941 = vmatprep.subr.bf16.mxu1 %v21551_v32 }
0x13aa   :  { %17943 = vmatpush3.bf16.msra.mxu1 %v21551_v32 }
0x13ab   :  { %17945 = vmatprep.subr.bf16.mxu1 %v21559_v22 }
0x13ac   :  { %16712 = vmatmul.mubr.msk.f32.vlgmr.msra.gmra.mrb[34].mxu0 %vm845_vm1, %v21504_v44 }
0x13ad   :  { %17993 = vmatpush3.bf16.xpose.msk.msra.mxu0 %vm20864_vm2, %v21399_v15  ;;  %16733 = vmatprep.mubr.msk.f32.mxu0 %vm845_vm1, %v21500_v43 }
0x13ae   :  { %17996 = vmatprep.subr.msk.bf16.mxu0 %vm20864_vm2, %v21407_v50  ;;  %16679 = vmatmul.mubr.msk.f32.vlgmr.msra.gmra.mrb[26].mxu1 %vm601_vm0, %v21570_v40 }
0x13af   :  { %17947 = vmatpush3.bf16.msra.mxu1 %v21559_v22  ;;  %16689 = vmatprep.mubr.msk.f32.mxu1 %vm601_vm0, %v21575_v13 }
0x13b0   :  { %17949 = vmatprep.subr.bf16.mxu1 %v21577_v39 }
0x13b3   :  { %17951 = vmatpush3.bf16.msra.mxu1 %v21577_v39 }
0x13b4   :  { %17978 = vmatprep.subr.msk.bf16.mxu1 %vm20864_vm2, %v21386_v38 }
0x13b5   :  { %17999 = vmatpush3.bf16.xpose.msk.msra.mxu0 %vm20864_vm2, %v21407_v50 }
0x13b6   :  { %16690 = vmatmul.mubr.msk.f32.vlgmr.msra.gmra.mrb[26].mxu1 %vm601_vm0, %v21592_v36 }
0x13b7   :  { %16722 = vmatprep.mubr.msk.f32.mxu1 %vm845_vm1, %v21500_v43 }
0x13bc   :  { %16734 = vmatmul.mubr.msk.f32.vlgmr.msra.gmra.mrb[36].mxu0 %vm845_vm1, %v21504_v44  ;;  %17981 = vmatpush3.bf16.xpose.msk.msra.mxu1 %vm20864_vm2, %v21386_v38 }
0x13bd   :  { %17984 = vmatprep.subr.msk.bf16.mxu1 %vm20864_vm2, %v21388_v3 }
0x13c4   :  { %17987 = vmatpush3.bf16.xpose.msk.msra.mxu1 %vm20864_vm2, %v21388_v3 }
0x13c5   :  { %18001 = vmatprep.subr.bf16.mxu1 %v21411_v51 }
0x13cb   :  { %16723 = vmatmul.mubr.msk.f32.vlgmr.msra.gmra.mrb[28].mxu1 %vm845_vm1, %v21504_v44 }
0x13cc   :  { %18003 = vmatpush3.bf16.msra.mxu1 %v21411_v51 }
0x13cd   :  { %18005 = vmatprep.subr.bf16.mxu1 %v21425_v53 }
0x13d0   :  { %18007 = vmatpush3.bf16.msra.mxu1 %v21425_v53 }
0x13d1   :  { %18009 = vmatprep.subr.bf16.mxu1 %v21496_v14 }
0x146f   :  { %v16702_v4 = vpop.f32.mrb[32].mxu0 }
0x1470   :  { %v5175_v10 = vpop.f32.mrb[33].mxu0  ;;  %v5181_v59 = vadd.f32 %v16702_v4, %v21453_v46  ;;  %v4694_v4 = vsel %vm601_vm0, %v21547_v30, 0.0 }
0x1471   :  { %v5176_v44 = vadd.f32 %v5175_v10, %v21456_v60 }
0x147f   :  { %v16713_v21 = vpop.f32.mrb[34].mxu0 }
0x1480   :  { %v5250_v18 = vpop.f32.mrb[35].mxu0  ;;  %v5256_v45 = vadd.f32 %v16713_v21, %v21453_v46 }
0x1481   :  { %v5251_v57 = vadd.f32 %v5250_v18, %v21456_v60 }
0x1482   :  { %v5410_v2 = vmax.f32 %v5181_v59, %v5256_v45 }
0x1483   :  { %v5409_v16 = vmax.f32 %v5176_v44, %v5251_v57 }
0x1489   :  { %v21616_v47 = vpop.f32.mrb[26].mxu1 }
0x148a   :  { %v21618_v48 = vpop.f32.mrb[27].mxu1 }
0x148f   :  { %v16735_v42 = vpop.f32.mrb[36].mxu0 }
0x1490   :  { %v5400_v43 = vpop.f32.mrb[37].mxu0  ;;  %v5406_v17 = vadd.f32 %v16735_v42, %v21453_v46 }
0x1491   :  { %v5401_v11 = vadd.f32 %v5400_v43, %v21456_v60 }
0x149e   :  { %v16724_v56 = vpop.f32.mrb[28].mxu1 }
0x149f   :  { %v5331_v58 = vadd.f32 %v16724_v56, %v21453_v46  ;;  %v5325_v8 = vpop.f32.mrb[29].mxu1 }
0x14a0   :  { %v5326_v9 = vadd.f32 %v5325_v8, %v21456_v60 }
0x14a1   :  { %v5412_v62 = vmax.f32 %v5410_v2, %v5331_v58 }
0x14a2   :  { %v5411_v26 = vmax.f32 %v5409_v16, %v5326_v9 }
0x14a3   :  { %v5414_v28 = vmax.f32 %v5412_v62, %v5406_v17 }
0x14a4   :  { %v5413_v20 = vmax.f32 %v5411_v26, %v5401_v11 }
0x14a5   :  { %v5418_v33 = vsel %vm601_vm0, %v5414_v28, -inf }
0x14a6   :  { %5419 = vmax.xlane.f32.xlu1 %v5418_v33  ;;  %v5415_v35 = vsel %vm601_vm0, %v5413_v20, -inf }
0x14a7   :  { %5416 = vmax.xlane.f32.xlu0 %v5415_v35 }
0x14aa   :  { %4698 = vadd.xlane.f32.xlu1 %v4697_v54 }
0x14ab   :  { %4692 = vadd.xlane.f32.xlu0 %v4691_v23 }
0x14ae   :  { %4701 = vadd.xlane.f32.xlu1 %v4700_v37 }
0x14af   :  { %4695 = vadd.xlane.f32.xlu0 %v4694_v4 }
0x1533   :  { %v5420_v10 = vpop.xlane.xlu1 %5419 }
0x1534   :  { %v5422_v21 = vsub.f32 %v5181_v59, %v5420_v10  ;;  %v5428_v18 = vsub.f32 %v5256_v45, %v5420_v10  ;;  %v5434_v42 = vsub.f32 %v5331_v58, %v5420_v10  ;;  %v5417_v43 = vpop.xlane.xlu0 %5416  ;;  %v5440_v1 = vsub.f32 %v5406_v17, %v5420_v10 }
0x1535   :  { %v5421_v56 = vsub.f32 %v5176_v44, %v5417_v43  ;;  %v5427_v41 = vsub.f32 %v5251_v57, %v5417_v43  ;;  %v5433_v26 = vsub.f32 %v5326_v9, %v5417_v43  ;;  %v5439_v59 = vsub.f32 %v5401_v11, %v5417_v43 }
0x1536   :  { %v5425_v2 = vmul.f32 1.442695, %v5422_v21  ;;  %v5431_v8 = vmul.f32 1.442695, %v5428_v18  ;;  %v5437_v16 = vmul.f32 1.442695, %v5434_v42 }
0x1537   :  { %v5423_v62 = vmul.f32 1.442695, %v5421_v56  ;;  %v5429_v12 = vmul.f32 1.442695, %v5427_v41  ;;  %v5443_v28 = vmul.f32 1.442695, %v5440_v1  ;;  %v4699_v41 = vpop.xlane.xlu1 %4698 }
0x1538   :  { %19290 = vpow2.f32 %v5425_v2  ;;  %v5435_v30 = vmul.f32 1.442695, %v5433_v26  ;;  %v5441_v44 = vmul.f32 1.442695, %v5439_v59  ;;  %v4708_v18 = vsel %vm601_vm0, %v21570_v40, 0.0  ;;  %v4693_v56 = vpop.xlane.xlu0 %4692 }
0x1539   :  { %19292 = vpow2.f32 %v5431_v8  ;;  %v4716_v43 = vsel %vm601_vm0, %v21592_v36, 0.0  ;;  %v4705_v40 = vsel %vm601_vm0, %v21549_v31, 0.0  ;;  %v4713_v36 = vsel %vm601_vm0, %v21575_v13, 0.0  ;;  %v698_v31 = vld [vmem:[%s23030_s25 + $0x8] sm:$0xff]  ;;  %v697_v13 = vld [vmem:[%s23030_s25] sm:$0xff] }
0x153a   :  { %19294 = vpow2.f32 %v5437_v16  ;;  %16780 = vmatprep.subr.mxu0 %v698_v31 }
0x153b   :  { %19296 = vpow2.f32 %v5423_v62  ;;  %16781 = vmatpush3.msra.mxu0 %v698_v31  ;;  %v4702_v8 = vpop.xlane.xlu1 %4701 }
0x153c   :  { %19298 = vpow2.f32 %v5429_v12  ;;  %16785 = vmatprep.subr.mxu0 %v697_v13  ;;  %v4696_v2 = vpop.xlane.xlu0 %4695 }
0x153d   :  { %19300 = vpow2.f32 %v5443_v28 }
0x153e   :  { %19302 = vpow2.f32 %v5435_v30 }
0x153f   :  { %19304 = vpow2.f32 %v5441_v44 }
0x1542   :  { %v19291_v45 = vpop.eup %19290 }
0x1543   :  { %v19293_v57 = vpop.eup %19292  ;;  %v5448_v58 = vsel %vm601_vm0, %v19291_v45, 0.0 }
0x1544   :  { %v5454_v17 = vsel %vm601_vm0, %v19293_v57, 0.0  ;;  %5449 = vadd.xlane.f32.xlu0 %v5448_v58  ;;  %v19295_v20 = vpop.eup %19294 }
0x1545   :  { %5455 = vadd.xlane.f32.xlu1 %v5454_v17  ;;  %v19297_v33 = vpop.eup %19296  ;;  %v5462_v11 = vsel %vm601_vm0, %v19295_v20, 0.0 }
0x1546   :  { %v19299_v9 = vpop.eup %19298  ;;  %v5445_v35 = vsel %vm601_vm0, %v19297_v33, 0.0 }
0x1547   :  { %16744 = vmatprep.mubr.msk.f32.mxu1 %vm601_vm0, %v19299_v9  ;;  %v19301_v54 = vpop.eup %19300  ;;  %v5451_v23 = vsel %vm601_vm0, %v19299_v9, 0.0  ;;  %v4703_v9 = vadd.f32 %v4699_v41, %v4693_v56 }
0x1548   :  { %5446 = vadd.xlane.f32.xlu0 %v5445_v35  ;;  %16745 = vmatmul.mubr.msk.f32.vlgmr.msra.gmra.mrb[30].mxu1 %vm601_vm0, %v19293_v57  ;;  %v19303_v37 = vpop.eup %19302  ;;  %v5470_v4 = vsel %vm601_vm0, %v19301_v54, 0.0 }
0x1549   :  { %5463 = vadd.xlane.f32.xlu1 %v5462_v11  ;;  %18011 = vmatpush3.bf16.msra.mxu1 %v21496_v14  ;;  %v5459_v10 = vsel %vm601_vm0, %v19303_v37, 0.0  ;;  %v19305_v21 = vpop.eup %19304 }
0x154a   :  { %16755 = vmatprep.mubr.msk.f32.mxu1 %vm601_vm0, %v19297_v33  ;;  %18013 = vmatprep.subr.bf16.mxu1 %v21527_v63  ;;  %v5467_v42 = vsel %vm601_vm0, %v19305_v21, 0.0 }
0x154c   :  { %5452 = vadd.xlane.f32.xlu0 %v5451_v23 }
0x154d   :  { %5471 = vadd.xlane.f32.xlu1 %v5470_v4  ;;  %18015 = vmatpush3.bf16.msra.mxu1 %v21527_v63 }
0x154e   :  { %18017 = vmatprep.subr.bf16.mxu1 %v21535_v27 }
0x1550   :  { %5460 = vadd.xlane.f32.xlu0 %v5459_v10  ;;  %16756 = vmatmul.mubr.msk.f32.vlgmr.msra.gmra.mrb[30].mxu1 %vm601_vm0, %v19291_v45 }
0x1551   :  { %4709 = vadd.xlane.f32.xlu1 %v4708_v18  ;;  %18019 = vmatpush3.bf16.msra.mxu1 %v21535_v27 }
0x1552   :  { %16766 = vmatprep.mubr.msk.f32.mxu1 %vm601_vm0, %v19303_v37  ;;  %18021 = vmatprep.subr.bf16.mxu1 %v21551_v32 }
0x1554   :  { %5468 = vadd.xlane.f32.xlu0 %v5467_v42 }
0x1555   :  { %4717 = vadd.xlane.f32.xlu1 %v4716_v43  ;;  %18023 = vmatpush3.bf16.msra.mxu1 %v21551_v32 }
0x1556   :  { %18025 = vmatprep.subr.bf16.mxu1 %v21559_v22 }
0x1558   :  { %4706 = vadd.xlane.f32.xlu0 %v4705_v40  ;;  %16767 = vmatmul.mubr.msk.f32.vlgmr.msra.gmra.mrb[30].mxu1 %vm601_vm0, %v19295_v20 }
0x1559   :  { %18027 = vmatpush3.bf16.msra.mxu1 %v21559_v22  ;;  %16777 = vmatprep.mubr.msk.f32.mxu1 %vm601_vm0, %v19305_v21  ;;  %v4704_v21 = vadd.f32 %v4702_v8, %v4696_v2 }
0x155a   :  { %18029 = vmatprep.subr.bf16.mxu1 %v21577_v39 }
0x155c   :  { %4714 = vadd.xlane.f32.xlu0 %v4713_v36 }
0x155d   :  { %18031 = vmatpush3.bf16.msra.mxu1 %v21577_v39 }
0x155e   :  { %18058 = vmatprep.subr.msk.bf16.mxu1 %vm20864_vm2, %v21386_v38 }
0x1560   :  { %16778 = vmatmul.mubr.msk.f32.vlgmr.msra.gmra.mrb[30].mxu1 %vm601_vm0, %v19301_v54 }
0x1566   :  { %5971 = vrot.lane.b32.xlu1 %v21363_v25, %s20423_s1  ;;  %18061 = vmatpush3.bf16.xpose.msk.msra.mxu1 %vm20864_vm2, %v21386_v38 }
0x1567   :  { %18064 = vmatprep.subr.msk.bf16.mxu1 %vm20864_vm2, %v21388_v3 }
0x156e   :  { %18067 = vmatpush3.bf16.xpose.msk.msra.mxu1 %vm20864_vm2, %v21388_v3 }
0x156f   :  { %18081 = vmatprep.subr.bf16.mxu1 %v21411_v51 }
0x1572   :  { %5969 = vrot.lane.b32.xlu0 %v21325_v0, %s20423_s1 }
0x15d1   :  { %v5450_v16 = vpop.xlane.xlu0 %5449 }
0x15d2   :  { %v5456_v1 = vpop.xlane.xlu1 %5455 }
0x15d3   :  { %v5458_v35 = vadd.f32 %v5456_v1, %v5450_v16 }
0x15d5   :  { %v5447_v62 = vpop.xlane.xlu0 %5446 }
0x15d6   :  { %v5464_v12 = vpop.xlane.xlu1 %5463 }
0x15d7   :  { %v5466_v23 = vadd.f32 %v5464_v12, %v5458_v35 }
0x15d9   :  { %v5453_v26 = vpop.xlane.xlu0 %5452 }
0x15da   :  { %v5472_v28 = vpop.xlane.xlu1 %5471  ;;  %v5457_v33 = vadd.f32 %v5453_v26, %v5447_v62 }
0x15db   :  { %v5474_v10 = vadd.f32 %v5472_v28, %v5466_v23 }
0x15dd   :  { %v5461_v30 = vpop.xlane.xlu0 %5460 }
0x15de   :  { %v4710_v45 = vpop.xlane.xlu1 %4709  ;;  %v5465_v11 = vadd.f32 %v5461_v30, %v5457_v33 }
0x15df   :  { %v4712_v18 = vadd.f32 %v4710_v45, %v4704_v21 }
0x15e1   :  { %v5469_v59 = vpop.xlane.xlu0 %5468 }
0x15e2   :  { %v4718_v57 = vpop.xlane.xlu1 %4717  ;;  %v5473_v37 = vadd.f32 %v5469_v59, %v5465_v11 }
0x15e3   :  { %v4720_v42 = vadd.f32 %v4718_v57, %v4712_v18 }
0x15e4   :  { %19306 = vrcp.f32 %v5473_v37 }
0x15e5   :  { %v4707_v44 = vpop.xlane.xlu0 %4706 }
0x15e6   :  { %v5972_v20 = vpop.permute.xlu1 %5971  ;;  %v4711_v54 = vadd.f32 %v4707_v44, %v4703_v9 }
0x15e9   :  { %v4715_v58 = vpop.xlane.xlu0 %4714 }
0x15ea   :  { %v4719_v4 = vadd.f32 %v4715_v58, %v4711_v54 }
0x15ec   :  { %19308 = vrcp.f32 %v4719_v4 }
0x15ed   :  { %v5970_v17 = vpop.permute.xlu0 %5969  ;;  %19310 = vrcp.f32 %v5474_v10 }
0x15ee   :  { %16820 = vmatprep.mubr.msk.f32.mxu1 %vm845_vm1, %v5970_v17  ;;  %19312 = vrcp.f32 %v4720_v42  ;;  %v19307_v43 = vpop.eup %19306 }
0x15ef   :  { %16821 = vmatmul.mubr.msk.f32.vlgmr.msra.gmra.mrb[32].mxu1 %vm845_vm1, %v5972_v20 }
0x15f0   :  { %18083 = vmatpush3.bf16.msra.mxu1 %v21411_v51 }
0x15f1   :  { %18085 = vmatprep.subr.bf16.mxu1 %v21425_v53 }
0x15f4   :  { %18087 = vmatpush3.bf16.msra.mxu1 %v21425_v53 }
0x15f5   :  { %18089 = vmatprep.subr.bf16.mxu1 %v21496_v14 }
0x15f6   :  { %v19309_v36 = vpop.eup %19308 }
0x15f7   :  { %v19311_v62 = vpop.eup %19310  ;;  %v5099_v16 = vmul.f32 %v19309_v36, %v21618_v48 }
0x15f8   :  { %v19313_v2 = vpop.eup %19312 }
0x15f9   :  { %v5100_v8 = vmul.f32 %v19313_v2, %v21616_v47  ;;  %v699_v47 = vld [vmem:[%s23030_s25 + $0x10] sm:$0xff] }
0x1633   :  { %v16779_v40 = vpop.f32.mrb[30].mxu1 }
0x1634   :  { %v5794_v31 = vpop.f32.mrb[31].mxu1  ;;  %v5806_v41 = vmul.f32 %v19311_v62, %v16779_v40 }
0x1635   :  { %v5805_v56 = vmul.f32 %v19307_v43, %v5794_v31 }
0x1637   :  { %16782 = vmatprep.mubr.msk.f32.mxu0 %vm845_vm1, %v5805_v56 }
0x1638   :  { %16783 = vmatmul.mubr.msk.f32.vlgmr.msra.gmra.mrb[38].mxu0 %vm845_vm1, %v5806_v41 }
0x1639   :  { %16786 = vmatpush3.msra.mxu0 %v697_v13  ;;  %16787 = vmatprep.mubr.msk.f32.mxu0 %vm845_vm1, %v5099_v16 }
0x163a   :  { %18034 = vmatprep.subr.msk.bf16.mxu0 %vm20864_vm2, %v21333_v19 }
0x1640   :  { %16788 = vmatmul.mubr.msk.f32.vlgmr.msra.gmra.mrb[38].mxu0 %vm845_vm1, %v5100_v8 }
0x1641   :  { %18037 = vmatpush3.bf16.xpose.msk.msra.mxu0 %vm20864_vm2, %v21333_v19  ;;  %16798 = vmatprep.mubr.msk.f32.mxu0 %vm845_vm1, %v5970_v17 }
0x1642   :  { %18040 = vmatprep.subr.msk.bf16.mxu0 %vm20864_vm2, %v21345_v24 }
0x1649   :  { %18043 = vmatpush3.bf16.xpose.msk.msra.mxu0 %vm20864_vm2, %v21345_v24 }
0x164a   :  { %18046 = vmatprep.subr.msk.bf16.mxu0 %vm20864_vm2, %v21373_v29 }
0x1650   :  { %16799 = vmatmul.mubr.msk.f32.vlgmr.msra.gmra.mrb[40].mxu0 %vm845_vm1, %v5972_v20 }
0x1651   :  { %18049 = vmatpush3.bf16.xpose.msk.msra.mxu0 %vm20864_vm2, %v21373_v29  ;;  %16809 = vmatprep.mubr.msk.f32.mxu0 %vm845_vm1, %v5970_v17 }
0x1652   :  { %18052 = vmatprep.subr.msk.bf16.mxu0 %vm20864_vm2, %v21381_v34 }
0x1659   :  { %18055 = vmatpush3.bf16.xpose.msk.msra.mxu0 %vm20864_vm2, %v21381_v34 }
0x165a   :  { %18070 = vmatprep.subr.msk.bf16.mxu0 %vm20864_vm2, %v21399_v15 }
0x1660   :  { %16810 = vmatmul.mubr.msk.f32.vlgmr.msra.gmra.mrb[42].mxu0 %vm845_vm1, %v5972_v20 }
0x1661   :  { %18073 = vmatpush3.bf16.xpose.msk.msra.mxu0 %vm20864_vm2, %v21399_v15  ;;  %16831 = vmatprep.mubr.msk.f32.mxu0 %vm845_vm1, %v5970_v17 }
0x1662   :  { %18076 = vmatprep.subr.msk.bf16.mxu0 %vm20864_vm2, %v21407_v50 }
0x1669   :  { %18079 = vmatpush3.bf16.xpose.msk.msra.mxu0 %vm20864_vm2, %v21407_v50 }
0x166a   :  { %16878 = vmatprep.subr.mxu0 %v699_v47 }
0x1670   :  { %16832 = vmatmul.mubr.msk.f32.vlgmr.msra.gmra.mrb[44].mxu0 %vm845_vm1, %v5972_v20 }
0x1671   :  { %16879 = vmatpush3.msra.mxu0 %v699_v47 }
0x1672   :  { %18114 = vmatprep.subr.msk.bf16.mxu0 %vm20864_vm2, %v21333_v19 }
0x16c2   :  { %v16822_v48 = vpop.f32.mrb[32].mxu1 }
0x16c3   :  { %v6193_v13 = vpop.f32.mrb[33].mxu1  ;;  %v6199_v17 = vadd.f32 %v16822_v48, %v21453_v46 }
0x16c4   :  { %v6194_v20 = vadd.f32 %v6193_v13, %v21456_v60 }
0x1723   :  { %v16800_v1 = vpop.f32.mrb[40].mxu0 }
0x1724   :  { %v6043_v12 = vpop.f32.mrb[41].mxu0  ;;  %v6049_v45 = vadd.f32 %v16800_v1, %v21453_v46 }
0x1725   :  { %v6044_v44 = vadd.f32 %v6043_v12, %v21456_v60 }
0x1733   :  { %v16811_v26 = vpop.f32.mrb[42].mxu0 }
0x1734   :  { %v6118_v28 = vpop.f32.mrb[43].mxu0  ;;  %v6124_v30 = vadd.f32 %v16811_v26, %v21453_v46 }
0x1735   :  { %v6119_v59 = vadd.f32 %v6118_v28, %v21456_v60 }
0x1736   :  { %v6278_v57 = vmax.f32 %v6049_v45, %v6124_v30 }
0x1737   :  { %v6277_v58 = vmax.f32 %v6044_v44, %v6119_v59 }
0x1738   :  { %v6280_v35 = vmax.f32 %v6278_v57, %v6199_v17 }
0x1739   :  { %v6279_v23 = vmax.f32 %v6277_v58, %v6194_v20 }
0x1743   :  { %v16833_v33 = vpop.f32.mrb[44].mxu0 }
0x1744   :  { %v6274_v9 = vadd.f32 %v16833_v33, %v21453_v46  ;;  %v6268_v11 = vpop.f32.mrb[45].mxu0 }
0x1745   :  { %v6269_v54 = vadd.f32 %v6268_v11, %v21456_v60 }
0x1746   :  { %v6282_v37 = vmax.f32 %v6280_v35, %v6274_v9 }
0x1747   :  { %v6281_v4 = vmax.f32 %v6279_v23, %v6269_v54 }
0x1748   :  { %v6286_v10 = vsel %vm601_vm0, %v6282_v37, -inf }
0x1749   :  { %6287 = vmax.xlane.f32.xlu0 %v6286_v10  ;;  %v6283_v21 = vsel %vm601_vm0, %v6281_v4, -inf }
0x174a   :  { %6284 = vmax.xlane.f32.xlu1 %v6283_v21 }
0x17d6   :  { %v6288_v18 = vpop.xlane.xlu0 %6287 }
0x17d7   :  { %v6290_v42 = vsub.f32 %v6049_v45, %v6288_v18  ;;  %v6296_v43 = vsub.f32 %v6124_v30, %v6288_v18  ;;  %v6285_v40 = vpop.xlane.xlu1 %6284  ;;  %v6302_v16 = vsub.f32 %v6199_v17, %v6288_v18  ;;  %v6308_v1 = vsub.f32 %v6274_v9, %v6288_v18 }
0x17d8   :  { %v6289_v36 = vsub.f32 %v6044_v44, %v6285_v40  ;;  %v6295_v31 = vsub.f32 %v6119_v59, %v6285_v40  ;;  %v6301_v41 = vsub.f32 %v6194_v20, %v6285_v40  ;;  %v6307_v48 = vsub.f32 %v6269_v54, %v6285_v40 }
0x17d9   :  { %v6293_v62 = vmul.f32 1.442695, %v6290_v42  ;;  %v6299_v56 = vmul.f32 1.442695, %v6296_v43  ;;  %v6305_v13 = vmul.f32 1.442695, %v6302_v16 }
0x17da   :  { %v6291_v2 = vmul.f32 1.442695, %v6289_v36  ;;  %v6297_v8 = vmul.f32 1.442695, %v6295_v31  ;;  %v6303_v47 = vmul.f32 1.442695, %v6301_v41 }
0x17db   :  { %19314 = vpow2.f32 %v6293_v62  ;;  %v6309_v12 = vmul.f32 1.442695, %v6307_v48  ;;  %v6311_v26 = vmul.f32 1.442695, %v6308_v1 }
0x17dc   :  { %19316 = vpow2.f32 %v6299_v56 }
0x17dd   :  { %19318 = vpow2.f32 %v6291_v2 }
0x17de   :  { %19320 = vpow2.f32 %v6297_v8 }
0x17df   :  { %19322 = vpow2.f32 %v6303_v47 }
0x17e0   :  { %19324 = vpow2.f32 %v6305_v13 }
0x17e1   :  { %19326 = vpow2.f32 %v6309_v12 }
0x17e2   :  { %19328 = vpow2.f32 %v6311_v26 }
0x17e5   :  { %v19315_v28 = vpop.eup %19314 }
0x17e6   :  { %v19317_v30 = vpop.eup %19316  ;;  %v6316_v59 = vsel %vm601_vm0, %v19315_v28, 0.0 }
0x17e7   :  { %6317 = vadd.xlane.f32.xlu0 %v6316_v59  ;;  %v6322_v45 = vsel %vm601_vm0, %v19317_v30, 0.0  ;;  %v19319_v44 = vpop.eup %19318 }
0x17e8   :  { %6323 = vadd.xlane.f32.xlu1 %v6322_v45  ;;  %v19321_v57 = vpop.eup %19320  ;;  %v6313_v58 = vsel %vm601_vm0, %v19319_v44, 0.0 }
0x17e9   :  { %v19323_v17 = vpop.eup %19322  ;;  %16842 = vmatprep.mubr.msk.f32.mxu1 %vm601_vm0, %v19321_v57  ;;  %v6319_v20 = vsel %vm601_vm0, %v19321_v57, 0.0 }
0x17ea   :  { %v19325_v33 = vpop.eup %19324  ;;  %16843 = vmatmul.mubr.msk.f32.vlgmr.msra.gmra.mrb[34].mxu1 %vm601_vm0, %v19317_v30  ;;  %v6327_v9 = vsel %vm601_vm0, %v19323_v17, 0.0 }
0x17eb   :  { %6314 = vadd.xlane.f32.xlu0 %v6313_v58  ;;  %18091 = vmatpush3.bf16.msra.mxu1 %v21496_v14  ;;  %v19327_v35 = vpop.eup %19326  ;;  %v6330_v11 = vsel %vm601_vm0, %v19325_v33, 0.0 }
0x17ec   :  { %6320 = vadd.xlane.f32.xlu1 %v6319_v20  ;;  %16853 = vmatprep.mubr.msk.f32.mxu1 %vm601_vm0, %v19319_v44  ;;  %v19329_v54 = vpop.eup %19328  ;;  %v6335_v23 = vsel %vm601_vm0, %v19327_v35, 0.0 }
0x17ed   :  { %18093 = vmatprep.subr.bf16.mxu1 %v21527_v63  ;;  %v6338_v37 = vsel %vm601_vm0, %v19329_v54, 0.0 }
0x17ef   :  { %6328 = vadd.xlane.f32.xlu0 %v6327_v9  ;;  %18095 = vmatpush3.bf16.msra.mxu1 %v21527_v63 }
0x17f0   :  { %6331 = vadd.xlane.f32.xlu1 %v6330_v11  ;;  %18097 = vmatprep.subr.bf16.mxu1 %v21535_v27 }
0x17f2   :  { %16854 = vmatmul.mubr.msk.f32.vlgmr.msra.gmra.mrb[34].mxu1 %vm601_vm0, %v19315_v28 }
0x17f3   :  { %6336 = vadd.xlane.f32.xlu0 %v6335_v23  ;;  %18099 = vmatpush3.bf16.msra.mxu1 %v21535_v27 }
0x17f4   :  { %6339 = vadd.xlane.f32.xlu1 %v6338_v37  ;;  %16864 = vmatprep.mubr.msk.f32.mxu1 %vm601_vm0, %v19323_v17 }
0x17f5   :  { %18101 = vmatprep.subr.bf16.mxu1 %v21551_v32 }
0x17f7   :  { %18103 = vmatpush3.bf16.msra.mxu1 %v21551_v32 }
0x17f8   :  { %18105 = vmatprep.subr.bf16.mxu1 %v21559_v22 }
0x17fa   :  { %16865 = vmatmul.mubr.msk.f32.vlgmr.msra.gmra.mrb[34].mxu1 %vm601_vm0, %v19325_v33 }
0x17fb   :  { %18107 = vmatpush3.bf16.msra.mxu1 %v21559_v22  ;;  %16875 = vmatprep.mubr.msk.f32.mxu1 %vm601_vm0, %v19327_v35 }
0x17fc   :  { %18109 = vmatprep.subr.bf16.mxu1 %v21577_v39 }
0x17ff   :  { %18111 = vmatpush3.bf16.msra.mxu1 %v21577_v39 }
0x1800   :  { %18126 = vmatprep.subr.msk.bf16.mxu1 %vm20864_vm2, %v21373_v29 }
0x1802   :  { %16876 = vmatmul.mubr.msk.f32.vlgmr.msra.gmra.mrb[34].mxu1 %vm601_vm0, %v19329_v54 }
0x1805   :  { %6760 = vrot.lane.b32.xlu1 %v21363_v25, %s20424_s30 }
0x1808   :  { %18129 = vmatpush3.bf16.xpose.msk.msra.mxu1 %vm20864_vm2, %v21373_v29 }
0x1809   :  { %6758 = vrot.lane.b32.xlu0 %v21325_v0, %s20424_s30  ;;  %18132 = vmatprep.subr.msk.bf16.mxu1 %vm20864_vm2, %v21381_v34 }
0x1810   :  { %18135 = vmatpush3.bf16.xpose.msk.msra.mxu1 %vm20864_vm2, %v21381_v34 }
0x1811   :  { %18150 = vmatprep.subr.msk.bf16.mxu1 %vm20864_vm2, %v21399_v15 }
0x1874   :  { %v6318_v25 = vpop.xlane.xlu0 %6317 }
0x1875   :  { %v6324_v4 = vpop.xlane.xlu1 %6323 }
0x1876   :  { %v6326_v36 = vadd.f32 %v6324_v4, %v6318_v25 }
0x1878   :  { %v6315_v10 = vpop.xlane.xlu0 %6314 }
0x1879   :  { %v6321_v0 = vpop.xlane.xlu1 %6320 }
0x187a   :  { %v6325_v34 = vadd.f32 %v6321_v0, %v6315_v10 }
0x187c   :  { %v6329_v21 = vpop.xlane.xlu0 %6328 }
0x187d   :  { %v6332_v18 = vpop.xlane.xlu1 %6331  ;;  %v6333_v31 = vadd.f32 %v6329_v21, %v6325_v34 }
0x187e   :  { %v6334_v62 = vadd.f32 %v6332_v18, %v6326_v36 }
0x1880   :  { %v6337_v42 = vpop.xlane.xlu0 %6336 }
0x1881   :  { %v6340_v29 = vpop.xlane.xlu1 %6339  ;;  %v6341_v56 = vadd.f32 %v6337_v42, %v6333_v31 }
0x1882   :  { %v6342_v41 = vadd.f32 %v6340_v29, %v6334_v62 }
0x1883   :  { %19330 = vrcp.f32 %v6341_v56 }
0x1884   :  { %v6759_v43 = vpop.permute.xlu0 %6758  ;;  %19332 = vrcp.f32 %v6342_v41 }
0x1885   :  { %v6761_v40 = vpop.permute.xlu1 %6760  ;;  %16902 = vmatprep.mubr.msk.f32.mxu1 %vm845_vm1, %v6759_v43 }
0x1886   :  { %16903 = vmatmul.mubr.msk.f32.vlgmr.msra.gmra.mrb[36].mxu1 %vm845_vm1, %v6761_v40 }
0x1887   :  { %18153 = vmatpush3.bf16.xpose.msk.msra.mxu1 %vm20864_vm2, %v21399_v15  ;;  %16924 = vmatprep.mubr.msk.f32.mxu1 %vm845_vm1, %v6759_v43 }
0x1888   :  { %18156 = vmatprep.subr.msk.bf16.mxu1 %vm20864_vm2, %v21407_v50 }
0x188d   :  { %v19331_v16 = vpop.eup %19330 }
0x188e   :  { %v19333_v8 = vpop.eup %19332 }
0x188f   :  { %18159 = vmatpush3.bf16.xpose.msk.msra.mxu1 %vm20864_vm2, %v21407_v50 }
0x1896   :  { %16925 = vmatmul.mubr.msk.f32.vlgmr.msra.gmra.mrb[38].mxu1 %vm845_vm1, %v6761_v40 }
0x18d5   :  { %v16877_v15 = vpop.f32.mrb[34].mxu1 }
0x18d6   :  { %v6662_v2 = vpop.f32.mrb[35].mxu1  ;;  %v6674_v48 = vmul.f32 %v19333_v8, %v16877_v15 }
0x18d7   :  { %v6673_v47 = vmul.f32 %v19331_v16, %v6662_v2 }
0x18d9   :  { %16880 = vmatprep.mubr.msk.f32.mxu0 %vm845_vm1, %v6673_v47 }
0x18da   :  { %16881 = vmatmul.mubr.msk.f32.vlgmr.msra.gmra.mrb[38].mxu0 %vm845_vm1, %v6674_v48 }
0x18db   :  { %18117 = vmatpush3.bf16.xpose.msk.msra.mxu0 %vm20864_vm2, %v21333_v19  ;;  %16891 = vmatprep.mubr.msk.f32.mxu0 %vm845_vm1, %v6759_v43 }
0x18dc   :  { %18120 = vmatprep.subr.msk.bf16.mxu0 %vm20864_vm2, %v21345_v24 }
0x18e3   :  { %18123 = vmatpush3.bf16.xpose.msk.msra.mxu0 %vm20864_vm2, %v21345_v24 }
0x18e4   :  { %18138 = vmatprep.subr.msk.bf16.mxu0 %vm20864_vm2, %v21386_v38 }
0x18ea   :  { %16892 = vmatmul.mubr.msk.f32.vlgmr.msra.gmra.mrb[46].mxu0 %vm845_vm1, %v6761_v40 }
0x18eb   :  { %18141 = vmatpush3.bf16.xpose.msk.msra.mxu0 %vm20864_vm2, %v21386_v38  ;;  %16913 = vmatprep.mubr.msk.f32.mxu0 %vm845_vm1, %v6759_v43 }
0x18ec   :  { %18144 = vmatprep.subr.msk.bf16.mxu0 %vm20864_vm2, %v21388_v3 }
0x18f3   :  { %18147 = vmatpush3.bf16.xpose.msk.msra.mxu0 %vm20864_vm2, %v21388_v3 }
0x18f4   :  { %18161 = vmatprep.subr.bf16.mxu0 %v21411_v51 }
0x18fa   :  { %16914 = vmatmul.mubr.msk.f32.vlgmr.msra.gmra.mrb[48].mxu0 %vm845_vm1, %v6761_v40 }
0x18fb   :  { %18163 = vmatpush3.bf16.msra.mxu0 %v21411_v51 }
0x18fc   :  { %18165 = vmatprep.subr.bf16.mxu0 %v21425_v53 }
0x18ff   :  { %18167 = vmatpush3.bf16.msra.mxu0 %v21425_v53 }
0x1900   :  { %18169 = vmatprep.subr.bf16.mxu0 %v21496_v14 }
0x1959   :  { %v16904_v19 = vpop.f32.mrb[36].mxu1 }
0x195a   :  { %v6907_v24 = vpop.f32.mrb[37].mxu1  ;;  %v6913_v26 = vadd.f32 %v16904_v19, %v21453_v46 }
0x195b   :  { %v6908_v51 = vadd.f32 %v6907_v24, %v21456_v60 }
0x1969   :  { %v16926_v38 = vpop.f32.mrb[38].mxu1 }
0x196a   :  { %v7057_v50 = vpop.f32.mrb[39].mxu1  ;;  %v7063_v57 = vadd.f32 %v16926_v38, %v21453_v46 }
0x196b   :  { %v7058_v17 = vadd.f32 %v7057_v50, %v21456_v60 }
0x19bd   :  { %v16893_v13 = vpop.f32.mrb[46].mxu0 }
0x19be   :  { %v6832_v1 = vpop.f32.mrb[47].mxu0  ;;  %v6838_v3 = vadd.f32 %v16893_v13, %v21453_v46 }
0x19bf   :  { %v6833_v12 = vadd.f32 %v6832_v1, %v21456_v60 }
0x19c0   :  { %v7067_v30 = vmax.f32 %v6838_v3, %v6913_v26 }
0x19c1   :  { %v7066_v45 = vmax.f32 %v6833_v12, %v6908_v51 }
0x19cd   :  { %v16915_v28 = vpop.f32.mrb[48].mxu0 }
0x19ce   :  { %v6988_v53 = vadd.f32 %v16915_v28, %v21453_v46  ;;  %v6982_v59 = vpop.f32.mrb[49].mxu0 }
0x19cf   :  { %v6983_v44 = vadd.f32 %v6982_v59, %v21456_v60 }
0x19d0   :  { %v7069_v58 = vmax.f32 %v7067_v30, %v6988_v53 }
0x19d1   :  { %v7068_v20 = vmax.f32 %v7066_v45, %v6983_v44 }
0x19d2   :  { %v7071_v33 = vmax.f32 %v7069_v58, %v7063_v57 }
0x19d3   :  { %v7070_v9 = vmax.f32 %v7068_v20, %v7058_v17 }
0x19d4   :  { %v7075_v35 = vsel %vm601_vm0, %v7071_v33, -inf }
0x19d5   :  { %7076 = vmax.xlane.f32.xlu0 %v7075_v35  ;;  %v7072_v11 = vsel %vm601_vm0, %v7070_v9, -inf  ;;  %v15288_v35 = vld [vmem:[#allocation16] ss:$0 sm:$0xff] }
0x19d6   :  { %7073 = vmax.xlane.f32.xlu1 %v7072_v11 }
0x1a62   :  { %v7077_v54 = vpop.xlane.xlu0 %7076 }
0x1a63   :  { %v7079_v23 = vsub.f32 %v6838_v3, %v7077_v54  ;;  %v7085_v37 = vsub.f32 %v6913_v26, %v7077_v54  ;;  %v7074_v25 = vpop.xlane.xlu1 %7073  ;;  %v7091_v18 = vsub.f32 %v6988_v53, %v7077_v54  ;;  %v7097_v34 = vsub.f32 %v7063_v57, %v7077_v54 }
0x1a64   :  { %v7078_v4 = vsub.f32 %v6833_v12, %v7074_v25  ;;  %v7084_v10 = vsub.f32 %v6908_v51, %v7074_v25  ;;  %v7090_v21 = vsub.f32 %v6983_v44, %v7074_v25  ;;  %v7096_v43 = vsub.f32 %v7058_v17, %v7074_v25 }
0x1a65   :  { %v7082_v0 = vmul.f32 1.442695, %v7079_v23  ;;  %v7088_v46 = vmul.f32 1.442695, %v7085_v37  ;;  %v7094_v40 = vmul.f32 1.442695, %v7091_v18 }
0x1a66   :  { %v7080_v60 = vmul.f32 1.442695, %v7078_v4  ;;  %v7086_v42 = vmul.f32 1.442695, %v7084_v10  ;;  %v7092_v29 = vmul.f32 1.442695, %v7090_v21 }
0x1a67   :  { %19334 = vpow2.f32 %v7082_v0  ;;  %v7098_v36 = vmul.f32 1.442695, %v7096_v43  ;;  %v7100_v31 = vmul.f32 1.442695, %v7097_v34  ;;  %v704_v34 = vld [vmem:[#allocation20] sm:$0xff] }
0x1a68   :  { %19336 = vpow2.f32 %v7088_v46 }
0x1a69   :  { %19338 = vpow2.f32 %v7080_v60 }
0x1a6a   :  { %19340 = vpow2.f32 %v7086_v42 }
0x1a6b   :  { %19342 = vpow2.f32 %v7092_v29 }
0x1a6c   :  { %19344 = vpow2.f32 %v7094_v40 }
0x1a6d   :  { %19346 = vpow2.f32 %v7098_v36  ;;  %v705_v36 = vld [vmem:[#allocation20 + $0x8] sm:$0xff] }
0x1a6e   :  { %19348 = vpow2.f32 %v7100_v31  ;;  %v706_v31 = vld [vmem:[#allocation20 + $0x10] sm:$0xff] }
0x1a71   :  { %v19335_v62 = vpop.eup %19334 }
0x1a72   :  { %v19337_v56 = vpop.eup %19336  ;;  %v7105_v41 = vsel %vm601_vm0, %v19335_v62, 0.0 }
0x1a73   :  { %7106 = vadd.xlane.f32.xlu0 %v7105_v41  ;;  %v7111_v15 = vsel %vm601_vm0, %v19337_v56, 0.0  ;;  %v19339_v16 = vpop.eup %19338 }
0x1a74   :  { %7112 = vadd.xlane.f32.xlu1 %v7111_v15  ;;  %v19341_v2 = vpop.eup %19340  ;;  %v7102_v8 = vsel %vm601_vm0, %v19339_v16, 0.0  ;;  %v709_v15 = vld [vmem:[%s23031_s21] sm:$0xff] }
0x1a75   :  { %v19343_v47 = vpop.eup %19342  ;;  %16935 = vmatprep.mubr.msk.f32.mxu0 %vm601_vm0, %v19341_v2  ;;  %v7108_v48 = vsel %vm601_vm0, %v19341_v2, 0.0 }
0x1a76   :  { %v19345_v19 = vpop.eup %19344  ;;  %16936 = vmatmul.mubr.msk.f32.vlgmr.msra.gmra.mrb[50].mxu0 %vm601_vm0, %v19337_v56  ;;  %v7116_v24 = vsel %vm601_vm0, %v19343_v47, 0.0  ;;  %v707_v56 = vld [vmem:[#allocation20 + $0x18] sm:$0xff] }
0x1a77   :  { %7103 = vadd.xlane.f32.xlu0 %v7102_v8  ;;  %18171 = vmatpush3.bf16.msra.mxu0 %v21496_v14  ;;  %v19347_v38 = vpop.eup %19346  ;;  %v7119_v50 = vsel %vm601_vm0, %v19345_v19, 0.0  ;;  %v18196_v41 = vpack.c.bf16 %v707_v56, %v706_v31 }
0x1a78   :  { %7109 = vadd.xlane.f32.xlu1 %v7108_v48  ;;  %16946 = vmatprep.mubr.msk.f32.mxu0 %vm601_vm0, %v19339_v16  ;;  %v19349_v13 = vpop.eup %19348  ;;  %v7124_v1 = vsel %vm601_vm0, %v19347_v38, 0.0  ;;  %v710_v16 = vld [vmem:[%s23031_s21 + $0x8] sm:$0xff] }
0x1a79   :  { %18173 = vmatprep.subr.bf16.mxu0 %v21527_v63  ;;  %v7127_v14 = vsel %vm601_vm0, %v19349_v13, 0.0  ;;  %v18200_v2 = vpack.c.bf16 %v710_v16, %v709_v15 }
0x1a7b   :  { %7117 = vadd.xlane.f32.xlu0 %v7116_v24  ;;  %18175 = vmatpush3.bf16.msra.mxu0 %v21527_v63  ;;  %v700_v63 = vld [vmem:[%s23030_s25 + $0x18] sm:$0xff] }
0x1a7c   :  { %7120 = vadd.xlane.f32.xlu1 %v7119_v50  ;;  %18177 = vmatprep.subr.bf16.mxu0 %v21535_v27 }
0x1a7e   :  { %16947 = vmatmul.mubr.msk.f32.vlgmr.msra.gmra.mrb[50].mxu0 %vm601_vm0, %v19335_v62  ;;  %v18192_v62 = vpack.c.bf16 %v705_v36, %v704_v34 }
0x1a7f   :  { %7125 = vadd.xlane.f32.xlu0 %v7124_v1  ;;  %18179 = vmatpush3.bf16.msra.mxu0 %v21535_v27 }
0x1a80   :  { %7128 = vadd.xlane.f32.xlu1 %v7127_v14  ;;  %16957 = vmatprep.mubr.msk.f32.mxu0 %vm601_vm0, %v19343_v47 }
0x1a81   :  { %18181 = vmatprep.subr.bf16.mxu0 %v21551_v32  ;;  %18193 = vmatprep.subr.bf16.mxu1 %v18192_v62 }
0x1a82   :  { %18195 = vmatpush3.bf16.msra.mxu1 %v18192_v62 }
0x1a83   :  { %18183 = vmatpush3.bf16.msra.mxu0 %v21551_v32  ;;  %18197 = vmatprep.subr.bf16.mxu1 %v18196_v41 }
0x1a84   :  { %18185 = vmatprep.subr.bf16.mxu0 %v21559_v22 }
0x1a86   :  { %16958 = vmatmul.mubr.msk.f32.vlgmr.msra.gmra.mrb[50].mxu0 %vm601_vm0, %v19345_v19  ;;  %18199 = vmatpush3.bf16.msra.mxu1 %v18196_v41 }
0x1a87   :  { %18187 = vmatpush3.bf16.msra.mxu0 %v21559_v22  ;;  %16968 = vmatprep.mubr.msk.f32.mxu0 %vm601_vm0, %v19347_v38 }
0x1a88   :  { %18189 = vmatprep.subr.bf16.mxu0 %v21577_v39  ;;  %18201 = vmatprep.subr.bf16.mxu1 %v18200_v2 }
0x1a8b   :  { %18191 = vmatpush3.bf16.msra.mxu0 %v21577_v39 }
0x1a8c   :  { %16971 = vmatprep.subr.mxu0 %v700_v63 }
0x1a8e   :  { %16969 = vmatmul.mubr.msk.f32.vlgmr.msra.gmra.mrb[50].mxu0 %vm601_vm0, %v19349_v13  ;;  %v15289_v13 = vld [vmem:[#allocation17] ss:$0 sm:$0xff] }
0x1a8f   :  { %16972 = vmatpush3.msra.mxu0 %v700_v63 }
0x1b00   :  { %v7107_v27 = vpop.xlane.xlu0 %7106 }
0x1b01   :  { %v7113_v3 = vpop.xlane.xlu1 %7112 }
0x1b02   :  { %v7115_v30 = vadd.f32 %v7113_v3, %v7107_v27  ;;  %v15290_v27 = vld [vmem:[#allocation19] ss:$0 sm:$0xff] }
0x1b04   :  { %v7104_v32 = vpop.xlane.xlu0 %7103 }
0x1b05   :  { %v7110_v12 = vpop.xlane.xlu1 %7109 }
0x1b06   :  { %v7114_v28 = vadd.f32 %v7110_v12, %v7104_v32  ;;  %v711_v12 = vld [vmem:[%s23031_s21 + $0x10] sm:$0xff] }
0x1b08   :  { %v7118_v26 = vpop.xlane.xlu0 %7117 }
0x1b09   :  { %v7121_v51 = vpop.xlane.xlu1 %7120  ;;  %v7122_v53 = vadd.f32 %v7118_v26, %v7114_v28  ;;  %v712_v26 = vld [vmem:[%s23031_s21 + $0x18] sm:$0xff] }
0x1b0a   :  { %v7123_v45 = vadd.f32 %v7121_v51, %v7115_v30  ;;  %v18204_v30 = vpack.c.bf16 %v712_v26, %v711_v12 }
0x1b0c   :  { %v7126_v22 = vpop.xlane.xlu0 %7125 }
0x1b0d   :  { %v7129_v59 = vpop.xlane.xlu1 %7128  ;;  %v7130_v44 = vadd.f32 %v7126_v22, %v7122_v53  ;;  %v713_v22 = vld [vmem:[%s23031_s21 + $0x20] sm:$0xff]  ;;  %v714_v53 = vld [vmem:[%s23031_s21 + $0x28] sm:$0xff] }
0x1b0e   :  { %v7131_v57 = vadd.f32 %v7129_v59, %v7123_v45  ;;  %v18208_v59 = vpack.c.bf16 %v714_v53, %v713_v22  ;;  %v715_v45 = vld [vmem:[%s23031_s21 + $0x30] sm:$0xff] }
0x1b0f   :  { %19350 = vrcp.f32 %v7130_v44  ;;  %v716_v44 = vld [vmem:[%s23031_s21 + $0x38] sm:$0xff] }
0x1b10   :  { %19352 = vrcp.f32 %v7131_v57  ;;  %v18212_v57 = vpack.c.bf16 %v716_v44, %v715_v45 }
0x1b19   :  { %v19351_v58 = vpop.eup %19350 }
0x1b1a   :  { %v19353_v20 = vpop.eup %19352 }
0x1b61   :  { %v16970_v39 = vpop.f32.mrb[50].mxu0 }
0x1b62   :  { %v7451_v17 = vpop.f32.mrb[51].mxu0  ;;  %v7463_v9 = vmul.f32 %v19353_v20, %v16970_v39  ;;  %v15291_v39 = vld [vmem:[#allocation22] ss:$0 sm:$0xff] }
0x1b63   :  { %v7462_v33 = vmul.f32 %v19351_v58, %v7451_v17 }
0x1b65   :  { %16973 = vmatprep.mubr.msk.f32.mxu0 %vm845_vm1, %v7462_v33 }
0x1b66   :  { %16974 = vmatmul.mubr.msk.f32.vlgmr.msra.gmra.mrb[38].mxu0 %vm845_vm1, %v7463_v9 }
0x1c39   :  { %v16975_v11 = vpop.f32.mrb[38].mxu0 }
0x1c3a   :  { %v7554_v54 = vadd.f32 %v16975_v11, %v15288_v35  ;;  %v7536_v23 = vpop.f32.mrb[39].mxu0  ;;  %v15294_v11 = vld [vmem:[#allocation23] ss:$0 sm:$0xff] }
0x1c3b   :  { %v7553_v37 = vadd.f32 %v15288_v35, %v7536_v23 }
0x1c3c   :  { %v7556_v25 = vadd.f32 %v7554_v54, %v21300_v55 }
0x1c3d   :  { %v7555_v4 = vadd.f32 %v7553_v37, %v21296_v49 }
0x1c3e   :  { %v7560_v10 = vsel %vm601_vm0, %v7556_v25, 0.0 }
0x1c3f   :  { %7561 = vadd.xlane.f32.xlu1 %v7560_v10  ;;  %v7557_v0 = vsel %vm601_vm0, %v7555_v4, 0.0 }
0x1c40   :  { %7558 = vadd.xlane.f32.xlu0 %v7557_v0 }
0x1ccc   :  { %v7562_v46 = vpop.xlane.xlu1 %7561 }
0x1ccd   :  { %v7564_v21 = vmul.f32 0.03125, %v7562_v46  ;;  %v7559_v18 = vpop.xlane.xlu0 %7558 }
0x1cce   :  { %v7563_v60 = vmul.f32 0.03125, %v7559_v18 }
0x1ccf   :  { %v7566_v42 = vsub.f32 %v7556_v25, %v7564_v21 }
0x1cd0   :  { %v7565_v29 = vsub.f32 %v7555_v4, %v7563_v60 }
0x1cd1   :  { %v7568_v43 = vmul.f32 %v7566_v42, %v7566_v42 }
0x1cd2   :  { %v7567_v40 = vmul.f32 %v7565_v29, %v7565_v29 }
0x1cd3   :  { %v7572_v55 = vsel %vm601_vm0, %v7568_v43, 0.0 }
0x1cd4   :  { %7573 = vadd.xlane.f32.xlu1 %v7572_v55  ;;  %v7569_v49 = vsel %vm601_vm0, %v7567_v40, 0.0 }
0x1cd5   :  { %7570 = vadd.xlane.f32.xlu0 %v7569_v49 }
0x1d61   :  { %v7574_v8 = vpop.xlane.xlu1 %7573 }
0x1d62   :  { %v7576_v47 = vmul.f32 0.03125, %v7574_v8  ;;  %v7571_v48 = vpop.xlane.xlu0 %7570 }
0x1d63   :  { %v7575_v19 = vmul.f32 0.03125, %v7571_v48  ;;  %v15298_v48 = vld [vmem:[#allocation26] ss:$0 sm:$0xff] }
0x1d64   :  { %v7578_v24 = vadd.f32 1e-05, %v7576_v47 }
0x1d65   :  { %v7577_v38 = vadd.f32 1e-05, %v7575_v19 }
0x1d66   :  { %19354 = vrsqrt.f32 %v7578_v24 }
0x1d67   :  { %19356 = vrsqrt.f32 %v7577_v38 }
0x1d70   :  { %v19355_v50 = vpop.eup %19354 }
0x1d71   :  { %v19357_v1 = vpop.eup %19356  ;;  %v7582_v14 = vmul.f32 %v19355_v50, %v7566_v42 }
0x1d72   :  { %v7581_v63 = vmul.f32 %v19357_v1, %v7565_v29  ;;  %v19540_v1 = vld [vmem:[%s23020_s8 + $0x8] sm:$0xff] }
0x1d73   :  { %v7590_v3 = vmul.f32 %v15289_v13, %v7582_v14 }
0x1d74   :  { %v7589_v32 = vmul.f32 %v15289_v13, %v7581_v63  ;;  %v19541_v63 = vld [vmem:[%s23020_s8] sm:$0xff] }
0x1d75   :  { %v7598_v28 = vadd.f32 %v15290_v27, %v7590_v3 }
0x1d76   :  { %v7597_v51 = vadd.f32 %v15290_v27, %v7589_v32 }
0x1d78   :  { %16984 = vmatprep.mubr.msk.f32.mxu1 %vm601_vm0, %v7597_v51 }
0x1d79   :  { %16985 = vmatmul.mubr.msk.f32.vlgmr.msra.gmra.mrb[40].mxu1 %vm601_vm0, %v7598_v28 }
0x1d7a   :  { %18203 = vmatpush3.bf16.msra.mxu1 %v18200_v2  ;;  %v15297_v2 = vld [vmem:[#allocation25] ss:$0 sm:$0xff] }
0x1d7b   :  { %18205 = vmatprep.subr.bf16.mxu1 %v18204_v30 }
0x1d7e   :  { %18207 = vmatpush3.bf16.msra.mxu1 %v18204_v30 }
0x1d7f   :  { %18209 = vmatprep.subr.bf16.mxu1 %v18208_v59 }
0x1d82   :  { %18211 = vmatpush3.bf16.msra.mxu1 %v18208_v59 }
0x1d83   :  { %18213 = vmatprep.subr.bf16.mxu1 %v18212_v57 }
0x1d86   :  { %18215 = vmatpush3.bf16.msra.mxu1 %v18212_v57  ;;  %v7820_v57 = vld [vmem:[%s23032_s10] sm:$0xff] }
0x1e4c   :  { %v16986_v58 = vpop.f32.mrb[40].mxu1 }
0x1e4d   :  { %v7683_v17 = vadd.f32 %v16986_v58, %v15291_v39  ;;  %v7677_v20 = vpop.f32.mrb[41].mxu1 }
0x1e4e   :  { %v7678_v33 = vadd.f32 %v15291_v39, %v7677_v20  ;;  %v7821_v39 = vld [vmem:[%s23032_s10 + $0x8] sm:$0xff]  ;;  %v7823_v20 = vld [vmem:[%s23032_s10 + $0x18] sm:$0xff] }
0x1e4f   :  { %v7687_v35 = vmax.f32 %v7683_v17, 0.0  ;;  %v18216_v58 = vpack.c.bf16 %v7821_v39, %v7820_v57  ;;  %v7822_v17 = vld [vmem:[%s23032_s10 + $0x10] sm:$0xff] }
0x1e50   :  { %v7686_v9 = vmax.f32 %v7678_v33, 0.0  ;;  %v18220_v33 = vpack.c.bf16 %v7823_v20, %v7822_v17 }
0x1e51   :  { %18217 = vmatprep.subr.bf16.mxu0 %v18216_v58 }
0x1e52   :  { %17003 = vmatprep.mubr.msk.f32.mxu1 %vm7694_vm4, %v7686_v9  ;;  %18219 = vmatpush3.bf16.msra.mxu0 %v18216_v58 }
0x1e53   :  { %17004 = vmatmul.mubr.msk.f32.vlgmr.msra.gmra.mrb[42].mxu1 %vm7694_vm4, %v7687_v35  ;;  %18221 = vmatprep.subr.bf16.mxu0 %v18220_v33 }
0x1e56   :  { %18223 = vmatpush3.bf16.msra.mxu0 %v18220_v33 }
0x1f26   :  { %v17005_v54 = vpop.f32.mrb[42].mxu1 }
0x1f27   :  { %v7773_v23 = vadd.f32 %v17005_v54, %v15294_v11  ;;  %v7767_v37 = vpop.f32.mrb[43].mxu1 }
0x1f28   :  { %v7768_v25 = vadd.f32 %v15294_v11, %v7767_v37 }
0x1f29   :  { %v7777_v4 = vadd.f32 %v7773_v23, %v7598_v28 }
0x1f2a   :  { %v7776_v10 = vadd.f32 %v7768_v25, %v7597_v51 }
0x1f2b   :  { %v7781_v0 = vsel %vm601_vm0, %v7777_v4, 0.0 }
0x1f2c   :  { %7782 = vadd.xlane.f32.xlu1 %v7781_v0  ;;  %v7778_v46 = vsel %vm601_vm0, %v7776_v10, 0.0 }
0x1f2d   :  { %7779 = vadd.xlane.f32.xlu0 %v7778_v46  ;;  %v19542_v46 = vld [vmem:[%s23022_s16] ss:$0 sm:$0xff] }
0x1fb9   :  { %v7783_v21 = vpop.xlane.xlu1 %7782 }
0x1fba   :  { %v7785_v18 = vmul.f32 0.03125, %v7783_v21  ;;  %v7780_v60 = vpop.xlane.xlu0 %7779 }
0x1fbb   :  { %v7784_v42 = vmul.f32 0.03125, %v7780_v60  ;;  %v19543_v60 = vld [vmem:[#allocation5] ss:$0 sm:$0xff] }
0x1fbc   :  { %v7787_v29 = vsub.f32 %v7777_v4, %v7785_v18 }
0x1fbd   :  { %v7786_v43 = vsub.f32 %v7776_v10, %v7784_v42 }
0x1fbe   :  { %v7789_v40 = vmul.f32 %v7787_v29, %v7787_v29 }
0x1fbf   :  { %v7788_v55 = vmul.f32 %v7786_v43, %v7786_v43 }
0x1fc0   :  { %v7793_v49 = vsel %vm601_vm0, %v7789_v40, 0.0 }
0x1fc1   :  { %7794 = vadd.xlane.f32.xlu1 %v7793_v49  ;;  %v7790_v34 = vsel %vm601_vm0, %v7788_v55, 0.0 }
0x1fc2   :  { %7791 = vadd.xlane.f32.xlu0 %v7790_v34 }
0x204e   :  { %v7795_v36 = vpop.xlane.xlu1 %7794 }
0x204f   :  { %v7797_v31 = vmul.f32 0.03125, %v7795_v36  ;;  %v7792_v62 = vpop.xlane.xlu0 %7791 }
0x2050   :  { %v7796_v56 = vmul.f32 0.03125, %v7792_v62 }
0x2051   :  { %v7799_v41 = vadd.f32 1e-05, %v7797_v31 }
0x2052   :  { %v7798_v15 = vadd.f32 1e-05, %v7796_v56 }
0x2053   :  { %19358 = vrsqrt.f32 %v7799_v41 }
0x2054   :  { %19360 = vrsqrt.f32 %v7798_v15 }
0x205d   :  { %v19359_v16 = vpop.eup %19358 }
0x205e   :  { %v19361_v8 = vpop.eup %19360  ;;  %v7803_v47 = vmul.f32 %v19359_v16, %v7787_v29 }
0x205f   :  { %v7802_v19 = vmul.f32 %v19361_v8, %v7786_v43  ;;  %v15299_v43 = vld [vmem:[#allocation28] ss:$0 sm:$0xff] }
0x2060   :  { %v7811_v24 = vmul.f32 %v15297_v2, %v7803_v47 }
0x2061   :  { %v7810_v38 = vmul.f32 %v15297_v2, %v7802_v19 }
0x2062   :  { %v7819_v50 = vadd.f32 %v15298_v48, %v7811_v24 }
0x2063   :  { %v7818_v13 = vadd.f32 %v15298_v48, %v7810_v38 }
0x2064   :  { %v7866_v14 = vadd.f32 %v19540_v1, %v7819_v50 }
0x2065   :  { %v7865_v27 = vadd.f32 %v19541_v63, %v7818_v13 }
0x2066   :  { %v7870_v3 = vsel %vm601_vm0, %v7866_v14, 0.0 }
0x2067   :  { %7871 = vadd.xlane.f32.xlu1 %v7870_v3  ;;  %v7867_v32 = vsel %vm601_vm0, %v7865_v27, 0.0 }
0x2068   :  { %7868 = vadd.xlane.f32.xlu0 %v7867_v32  ;;  %v22005_v32 = vld [vmem:[#allocation2 + $0x8] sm:$0xff] }
0x20f4   :  { %v7872_v12 = vpop.xlane.xlu1 %7871 }
0x20f5   :  { %v7874_v26 = vmul.f32 0.03125, %v7872_v12  ;;  %v7869_v51 = vpop.xlane.xlu0 %7868 }
0x20f6   :  { %v7873_v28 = vmul.f32 0.03125, %v7869_v51  ;;  %v22009_v51 = vld [vmem:[#allocation2] sm:$0xff] }
0x20f7   :  { %v7876_v30 = vsub.f32 %v7866_v14, %v7874_v26 }
0x20f8   :  { %v7875_v22 = vsub.f32 %v7865_v27, %v7873_v28 }
0x20f9   :  { %v7878_v53 = vmul.f32 %v7876_v30, %v7876_v30 }
0x20fa   :  { %v7877_v59 = vmul.f32 %v7875_v22, %v7875_v22 }
0x20fb   :  { %v7882_v45 = vsel %vm601_vm0, %v7878_v53, 0.0 }
0x20fc   :  { %7883 = vadd.xlane.f32.xlu1 %v7882_v45  ;;  %v7879_v44 = vsel %vm601_vm0, %v7877_v59, 0.0 }
0x20fd   :  { %7880 = vadd.xlane.f32.xlu0 %v7879_v44 }
0x2189   :  { %v7884_v9 = vpop.xlane.xlu1 %7883 }
0x218a   :  { %v7886_v35 = vmul.f32 0.03125, %v7884_v9  ;;  %v7881_v11 = vpop.xlane.xlu0 %7880 }
0x218b   :  { %v7885_v54 = vmul.f32 0.03125, %v7881_v11 }
0x218c   :  { %v7888_v23 = vadd.f32 1e-05, %v7886_v35 }
0x218d   :  { %v7887_v37 = vadd.f32 1e-05, %v7885_v54 }
0x218e   :  { %19362 = vrsqrt.f32 %v7888_v23 }
0x218f   :  { %19364 = vrsqrt.f32 %v7887_v37 }
0x2198   :  { %v19363_v25 = vpop.eup %19362 }
0x2199   :  { %v19365_v4 = vpop.eup %19364  ;;  %v7892_v10 = vmul.f32 %v19363_v25, %v7876_v30 }
0x219a   :  { %v7891_v0 = vmul.f32 %v19365_v4, %v7875_v22 }
0x219b   :  { %v7894_v21 = vmul.f32 %v19542_v46, %v7892_v10 }
0x219c   :  { %v7893_v18 = vmul.f32 %v19542_v46, %v7891_v0 }
0x219d   :  { %v21926_v29 = vadd.f32 %v19543_v60, %v7894_v21 }
0x219e   :  { %v21924_v42 = vadd.f32 %v19543_v60, %v7893_v18 }
0x21a0   :  { %17014 = vmatprep.mubr.msk.f32.mxu0 %vm601_vm0, %v21924_v42 }
0x21a1   :  { %17015 = vmatmul.mubr.msk.f32.vlgmr.msra.gmra.mrb[52].mxu0 %vm601_vm0, %v21926_v29 }
0x2274   :  { %v17016_v40 = vpop.f32.mrb[52].mxu0 }
0x2275   :  { %v21932_v55 = vadd.f32 %v17016_v40, %v15299_v43  ;;  %v7975_v49 = vpop.f32.mrb[53].mxu0 }
0x2276   :  { %v21934_v34 = vadd.f32 %v15299_v43, %v7975_v49 }
0x2278   :  { %17021 = vmatprep.mubr.msk.f32.mxu1 %vm845_vm1, %v21934_v34  ;;  %17028 = vmatprep.mubr.msk.f32.mxu0 %vm845_vm1, %v21934_v34  ;;  %v21942_v36 = vpack.i.bf16 %v21932_v55, %v21934_v34 }
0x227a   :  { %19074 = vrot.lane.b32.xlu1 %v21942_v36, %s20414_s18  ;;  %19069 = vrot.lane.b32.xlu0 %v21942_v36, %s20415_s22 }
0x227e   :  { %19079 = vrot.lane.b32.xlu1 %v21942_v36, %s20416_s24 }
0x2282   :  { %19084 = vrot.lane.b32.xlu1 %v21942_v36, %s20417_s9 }
0x22ec   :  { %v19075_v31 = vpop.permute.xlu1 %19074  ;;  %v19070_v62 = vpop.permute.xlu0 %19069 }
0x22ed   :  { %v19077_v56 = vunpack.i.h.bf16 %v19075_v31  ;;  %v19076_v41 = vunpack.i.l.bf16 %v19075_v31  ;;  %v19072_v15 = vunpack.i.h.bf16 %v19070_v62  ;;  %v19071_v16 = vunpack.i.l.bf16 %v19070_v62 }
0x22ef   :  { %v21952_v2 = vpack.c.bf16 %v19077_v56, %v19076_v41  ;;  %v21954_v8 = vpack.c.bf16 %v19072_v15, %v19071_v16 }
0x22f0   :  { %v19080_v47 = vpop.permute.xlu1 %19079 }
0x22f1   :  { %v19082_v48 = vunpack.i.h.bf16 %v19080_v47  ;;  %v19081_v19 = vunpack.i.l.bf16 %v19080_v47  ;;  %18226 = vmatprep.subr.msk.bf16.mxu1 %vm20864_vm2, %v21954_v8  ;;  %18232 = vmatprep.subr.msk.bf16.mxu0 %vm20864_vm2, %v21952_v2 }
0x22f2   :  { %18229 = vmatpush3.bf16.xpose.msk.msra.mxu1 %vm20864_vm2, %v21954_v8  ;;  %18235 = vmatpush3.bf16.xpose.msk.msra.mxu0 %vm20864_vm2, %v21952_v2 }
0x22f3   :  { %v21968_v24 = vpack.c.bf16 %v19082_v48, %v19081_v19 }
0x22f4   :  { %v19085_v38 = vpop.permute.xlu1 %19084 }
0x22f5   :  { %v19087_v50 = vunpack.i.h.bf16 %v19085_v38  ;;  %v19086_v13 = vunpack.i.l.bf16 %v19085_v38  ;;  %18238 = vmatprep.subr.msk.bf16.mxu1 %vm20864_vm2, %v21968_v24 }
0x22f7   :  { %v21973_v1 = vpack.c.bf16 %v19087_v50, %v19086_v13 }
0x22f9   :  { %17022 = vmatmul.mubr.msk.f32.vlgmr.msra.gmra.mrb[44].mxu1 %vm845_vm1, %v21932_v55  ;;  %17029 = vmatmul.mubr.msk.f32.vlgmr.msra.gmra.mrb[54].mxu0 %vm845_vm1, %v21932_v55 }
0x22fa   :  { %18244 = vmatprep.subr.msk.bf16.mxu0 %vm20864_vm2, %v21973_v1  ;;  %18241 = vmatpush3.bf16.xpose.msk.msra.mxu1 %vm20864_vm2, %v21968_v24 }
0x22fb   :  { %17035 = vmatprep.mubr.msk.f32.mxu1 %vm845_vm1, %v21934_v34  ;;  %18247 = vmatpush3.bf16.xpose.msk.msra.mxu0 %vm20864_vm2, %v21973_v1 }
0x22fc   :  { %17042 = vmatprep.mubr.msk.f32.mxu0 %vm845_vm1, %v21934_v34  ;;  %18266 = vmatprep.subr.msk.bf16.mxu0 %vm20864_vm2, %v21954_v8 }
0x2301   :  { %17036 = vmatmul.mubr.msk.f32.vlgmr.msra.gmra.mrb[46].mxu1 %vm845_vm1, %v21932_v55 }
0x2302   :  { %17043 = vmatmul.mubr.msk.f32.vlgmr.msra.gmra.mrb[56].mxu0 %vm845_vm1, %v21932_v55 }
0x2303   :  { %18269 = vmatpush3.bf16.xpose.msk.msra.mxu0 %vm20864_vm2, %v21954_v8 }
0x2304   :  { %18272 = vmatprep.subr.msk.bf16.mxu0 %vm20864_vm2, %v21952_v2 }
0x23cc   :  { %v17023_v14 = vpop.f32.mrb[44].mxu1  ;;  %v17030_v63 = vpop.f32.mrb[54].mxu0 }
0x23cd   :  { %v8064_v27 = vpop.f32.mrb[45].mxu1  ;;  %v8147_v3 = vpop.f32.mrb[55].mxu0  ;;  %v8070_v12 = vadd.f32 %v22005_v32, %v17023_v14  ;;  %v8153_v26 = vadd.f32 %v22005_v32, %v17030_v63 }
0x23ce   :  { %v8065_v28 = vadd.f32 %v22009_v51, %v8064_v27  ;;  %v8148_v30 = vadd.f32 %v22009_v51, %v8147_v3 }
0x23cf   :  { %v8323_v53 = vmax.f32 %v8070_v12, %v8153_v26 }
0x23d0   :  { %v8322_v57 = vmax.f32 %v8065_v28, %v8148_v30 }
0x23d4   :  { %v17037_v22 = vpop.f32.mrb[46].mxu1 }
0x23d5   :  { %v22014_v59 = vadd.f32 %v22005_v32, %v17037_v22  ;;  %v17044_v45 = vpop.f32.mrb[56].mxu0  ;;  %v8230_v44 = vpop.f32.mrb[47].mxu1 }
0x23d6   :  { %v8231_v39 = vadd.f32 %v22009_v51, %v8230_v44  ;;  %v8313_v58 = vpop.f32.mrb[57].mxu0  ;;  %v22019_v20 = vadd.f32 %v22005_v32, %v17044_v45 }
0x23d7   :  { %v8325_v17 = vmax.f32 %v8323_v53, %v22014_v59  ;;  %v22022_v9 = vadd.f32 %v22009_v51, %v8313_v58 }
0x23d8   :  { %v8324_v33 = vmax.f32 %v8322_v57, %v8231_v39 }
0x23d9   :  { %v8327_v35 = vmax.f32 %v8325_v17, %v22019_v20 }
0x23da   :  { %v8326_v11 = vmax.f32 %v8324_v33, %v22022_v9 }
0x23db   :  { %v8331_v54 = vsel %vm1184_vm3, %v8327_v35, -inf }
0x23dc   :  { %8332 = vmax.xlane.f32.xlu1 %v8331_v54  ;;  %v8328_v23 = vsel %vm1184_vm3, %v8326_v11, -inf }
0x23dd   :  { %8329 = vmax.xlane.f32.xlu0 %v8328_v23 }
0x23ed   :  { %19094 = vrot.lane.b32.xlu1 %v21942_v36, %s20418_s23 }
0x23f1   :  { %19104 = vrot.lane.b32.xlu1 %v21942_v36, %s20419_s19 }
0x23f3   :  { %19089 = vrot.lane.b32.xlu0 %v21942_v36, %s20420_s5 }
0x23f5   :  { %8746 = vrot.lane.b32.xlu1 %v21932_v55, %s20421_s4 }
0x23f7   :  { %19099 = vrot.lane.b32.xlu0 %v21942_v36, %s20422_s26 }
0x23fb   :  { %8744 = vrot.lane.b32.xlu0 %v21934_v34, %s20421_s4 }
0x2469   :  { %v22040_v37 = vpop.xlane.xlu1 %8332 }
0x246a   :  { %v8330_v25 = vpop.xlane.xlu0 %8329  ;;  %v8341_v10 = vsub.f32 %v8153_v26, %v22040_v37  ;;  %v8335_v16 = vsub.f32 %v8070_v12, %v22040_v37  ;;  %v8347_v63 = vsub.f32 %v22014_v59, %v22040_v37  ;;  %v8353_v45 = vsub.f32 %v22019_v20, %v22040_v37 }
0x246b   :  { %v8340_v4 = vsub.f32 %v8148_v30, %v8330_v25  ;;  %v8334_v0 = vsub.f32 %v8065_v28, %v8330_v25  ;;  %v8346_v47 = vsub.f32 %v8231_v39, %v8330_v25  ;;  %v8352_v3 = vsub.f32 %v22022_v9, %v8330_v25 }
0x246c   :  { %v8344_v31 = vmul.f32 1.442695, %v8341_v10  ;;  %v8338_v38 = vmul.f32 1.442695, %v8335_v16  ;;  %v8350_v30 = vmul.f32 1.442695, %v8347_v63 }
0x246d   :  { %v19095_v46 = vpop.permute.xlu1 %19094  ;;  %v8342_v21 = vmul.f32 1.442695, %v8340_v4  ;;  %v8336_v62 = vmul.f32 1.442695, %v8334_v0  ;;  %v8348_v50 = vmul.f32 1.442695, %v8346_v47 }
0x246e   :  { %v19090_v18 = vpop.permute.xlu0 %19089  ;;  %v19097_v60 = vunpack.i.h.bf16 %v19095_v46  ;;  %v19096_v43 = vunpack.i.l.bf16 %v19095_v46  ;;  %v8354_v22 = vmul.f32 1.442695, %v8352_v3  ;;  %v8356_v58 = vmul.f32 1.442695, %v8353_v45 }
0x246f   :  { %v19092_v40 = vunpack.i.h.bf16 %v19090_v18  ;;  %v19091_v49 = vunpack.i.l.bf16 %v19090_v18  ;;  %19366 = vpow2.f32 %v8342_v21 }
0x2470   :  { %v22045_v15 = vpack.c.bf16 %v19097_v60, %v19096_v43  ;;  %19368 = vpow2.f32 %v8344_v31 }
0x2471   :  { %v22043_v36 = vpack.c.bf16 %v19092_v40, %v19091_v49  ;;  %v19105_v56 = vpop.permute.xlu1 %19104  ;;  %19370 = vpow2.f32 %v8336_v62 }
0x2472   :  { %v19100_v41 = vpop.permute.xlu0 %19099  ;;  %19372 = vpow2.f32 %v8338_v38  ;;  %v19107_v53 = vunpack.i.h.bf16 %v19105_v56  ;;  %v19106_v59 = vunpack.i.l.bf16 %v19105_v56 }
0x2473   :  { %18249 = vmatprep.subr.bf16.mxu1 %v22043_v36  ;;  %v19102_v13 = vunpack.i.h.bf16 %v19100_v41  ;;  %v19101_v14 = vunpack.i.l.bf16 %v19100_v41  ;;  %19374 = vpow2.f32 %v8348_v50 }
0x2474   :  { %18251 = vmatpush3.bf16.msra.mxu1 %v22043_v36  ;;  %19376 = vpow2.f32 %v8350_v30  ;;  %v22088_v39 = vpack.c.bf16 %v19107_v53, %v19106_v59 }
0x2475   :  { %18253 = vmatprep.subr.bf16.mxu1 %v22045_v15  ;;  %v8747_v19 = vpop.permute.xlu1 %8746  ;;  %v22071_v28 = vpack.c.bf16 %v19102_v13, %v19101_v14  ;;  %19378 = vpow2.f32 %v8354_v22 }
0x2476   :  { %v8745_v48 = vpop.permute.xlu0 %8744  ;;  %19380 = vpow2.f32 %v8356_v58 }
0x2477   :  { %17077 = vmatprep.mubr.msk.f32.mxu0 %vm845_vm1, %v8745_v48 }
0x2478   :  { %17078 = vmatmul.mubr.msk.f32.vlgmr.msra.gmra.mrb[58].mxu0 %vm845_vm1, %v8747_v19 }
0x2479   :  { %18275 = vmatpush3.bf16.xpose.msk.msra.mxu0 %vm20864_vm2, %v21952_v2  ;;  %17084 = vmatprep.mubr.msk.f32.mxu0 %vm845_vm1, %v8745_v48  ;;  %v22062_v27 = vpop.eup %19366 }
0x247a   :  { %18284 = vmatprep.subr.msk.bf16.mxu0 %vm20864_vm2, %v21973_v1  ;;  %v22065_v12 = vpop.eup %19368  ;;  %17049 = vmatprep.mubr.msk.f32.mxu1 %vm1184_vm3, %v22062_v27  ;;  %v8364_v50 = vsel %vm1184_vm3, %v22062_v27, 0.0 }
0x247b   :  { %v22069_v26 = vpop.eup %19370  ;;  %17050 = vmatmul.mubr.msk.f32.vlgmr.msra.gmra.mrb[48].mxu1 %vm1184_vm3, %v22065_v12  ;;  %v8367_v14 = vsel %vm1184_vm3, %v22065_v12, 0.0 }
0x247c   :  { %18255 = vmatpush3.bf16.msra.mxu1 %v22045_v15  ;;  %17056 = vmatprep.mubr.msk.f32.mxu1 %vm1184_vm3, %v22069_v26  ;;  %v19373_v44 = vpop.eup %19372  ;;  %v8358_v13 = vsel %vm1184_vm3, %v22069_v26, 0.0 }
0x247d   :  { %18257 = vmatprep.subr.bf16.mxu1 %v22071_v28  ;;  %v22086_v57 = vpop.eup %19374  ;;  %v8361_v63 = vsel %vm1184_vm3, %v19373_v44, 0.0 }
0x247e   :  { %v22096_v17 = vpop.eup %19376 }
0x247f   :  { %v22098_v20 = vpop.eup %19378 }
0x2480   :  { %17085 = vmatmul.mubr.msk.f32.vlgmr.msra.gmra.mrb[60].mxu0 %vm845_vm1, %v8747_v19  ;;  %v22108_v33 = vpop.eup %19380 }
0x2481   :  { %18287 = vmatpush3.bf16.xpose.msk.msra.mxu0 %vm20864_vm2, %v21973_v1  ;;  %17098 = vmatprep.mubr.msk.f32.mxu0 %vm845_vm1, %v8745_v48 }
0x2483   :  { %17057 = vmatmul.mubr.msk.f32.vlgmr.msra.gmra.mrb[48].mxu1 %vm1184_vm3, %v19373_v44 }
0x2484   :  { %18259 = vmatpush3.bf16.msra.mxu1 %v22071_v28  ;;  %17063 = vmatprep.mubr.msk.f32.mxu1 %vm1184_vm3, %v22086_v57 }
0x2485   :  { %18261 = vmatprep.subr.bf16.mxu1 %v22088_v39 }
0x2488   :  { %17099 = vmatmul.mubr.msk.f32.vlgmr.msra.gmra.mrb[62].mxu0 %vm845_vm1, %v8747_v19 }
0x248b   :  { %17064 = vmatmul.mubr.msk.f32.vlgmr.msra.gmra.mrb[48].mxu1 %vm1184_vm3, %v22096_v17 }
0x248c   :  { %18263 = vmatpush3.bf16.msra.mxu1 %v22088_v39  ;;  %17070 = vmatprep.mubr.msk.f32.mxu1 %vm1184_vm3, %v22098_v20 }
0x248d   :  { %18278 = vmatprep.subr.msk.bf16.mxu1 %vm20864_vm2, %v21968_v24 }
0x2493   :  { %17071 = vmatmul.mubr.msk.f32.vlgmr.msra.gmra.mrb[48].mxu1 %vm1184_vm3, %v22108_v33 }
0x2494   :  { %17091 = vmatprep.mubr.msk.f32.mxu1 %vm845_vm1, %v8745_v48 }
0x2495   :  { %18281 = vmatpush3.bf16.xpose.msk.msra.mxu1 %vm20864_vm2, %v21968_v24 }
0x2496   :  { %18289 = vmatprep.subr.bf16.mxu1 %v22043_v36 }
0x249c   :  { %17092 = vmatmul.mubr.msk.f32.vlgmr.msra.gmra.mrb[50].mxu1 %vm845_vm1, %v8747_v19 }
0x249d   :  { %18291 = vmatpush3.bf16.msra.mxu1 %v22043_v36 }
0x249e   :  { %18293 = vmatprep.subr.bf16.mxu1 %v22045_v15 }
0x254b   :  { %v17079_v9 = vpop.f32.mrb[58].mxu0 }
0x254c   :  { %v8818_v35 = vpop.f32.mrb[59].mxu0  ;;  %v8824_v46 = vadd.f32 %v22005_v32, %v17079_v9 }
0x254d   :  { %v8819_v21 = vadd.f32 %v22009_v51, %v8818_v35 }
0x2553   :  { %v17086_v11 = vpop.f32.mrb[60].mxu0 }
0x2554   :  { %v8893_v54 = vpop.f32.mrb[61].mxu0  ;;  %v8899_v10 = vadd.f32 %v22005_v32, %v17086_v11 }
0x2555   :  { %v8894_v0 = vadd.f32 %v22009_v51, %v8893_v54 }
0x2556   :  { %v9053_v60 = vmax.f32 %v8824_v46, %v8899_v10 }
0x2557   :  { %v9052_v49 = vmax.f32 %v8819_v21, %v8894_v0 }
0x255b   :  { %v17100_v23 = vpop.f32.mrb[62].mxu0 }
0x255c   :  { %v9043_v37 = vpop.f32.mrb[63].mxu0  ;;  %v9049_v62 = vadd.f32 %v22005_v32, %v17100_v23 }
0x255d   :  { %v9044_v41 = vadd.f32 %v22009_v51, %v9043_v37 }
0x2566   :  { %v22120_v25 = vpop.f32.mrb[48].mxu1 }
0x2567   :  { %v22122_v4 = vpop.f32.mrb[49].mxu1 }
0x256f   :  { %v17093_v18 = vpop.f32.mrb[50].mxu1 }
0x2570   :  { %v8974_v43 = vadd.f32 %v22005_v32, %v17093_v18  ;;  %v8968_v40 = vpop.f32.mrb[51].mxu1 }
0x2571   :  { %v8969_v31 = vadd.f32 %v22009_v51, %v8968_v40 }
0x2572   :  { %v9055_v56 = vmax.f32 %v9053_v60, %v8974_v43 }
0x2573   :  { %v9054_v16 = vmax.f32 %v9052_v49, %v8969_v31 }
0x2574   :  { %v9057_v47 = vmax.f32 %v9055_v56, %v9049_v62 }
0x2575   :  { %v9056_v48 = vmax.f32 %v9054_v16, %v9044_v41 }
0x2576   :  { %v9061_v19 = vsel %vm1184_vm3, %v9057_v47, -inf }
0x2577   :  { %9062 = vmax.xlane.f32.xlu1 %v9061_v19  ;;  %v9058_v38 = vsel %vm1184_vm3, %v9056_v48, -inf  ;;  %v8375_v19 = vsel %vm1184_vm3, %v22096_v17, 0.0  ;;  %v8372_v17 = vsel %vm1184_vm3, %v22086_v57, 0.0  ;;  %v7826_v57 = vld [vmem:[%s23033_s27 + $0x8] sm:$0xff] }
0x2578   :  { %9059 = vmax.xlane.f32.xlu0 %v9058_v38  ;;  %17129 = vmatprep.subr.mxu0 %v7826_v57 }
0x2579   :  { %17130 = vmatpush3.msra.mxu0 %v7826_v57 }
0x257b   :  { %8365 = vadd.xlane.f32.xlu1 %v8364_v50  ;;  %v8383_v50 = vsel %vm1184_vm3, %v22108_v33, 0.0  ;;  %v8380_v33 = vsel %vm1184_vm3, %v22098_v20, 0.0  ;;  %v7825_v20 = vld [vmem:[%s23033_s27] sm:$0xff] }
0x257c   :  { %8359 = vadd.xlane.f32.xlu0 %v8358_v13  ;;  %17134 = vmatprep.subr.mxu0 %v7825_v20 }
0x257f   :  { %8368 = vadd.xlane.f32.xlu1 %v8367_v14 }
0x2580   :  { %8362 = vadd.xlane.f32.xlu0 %v8361_v63 }
0x2604   :  { %v9063_v3 = vpop.xlane.xlu1 %9062 }
0x2605   :  { %v9065_v30 = vsub.f32 %v8824_v46, %v9063_v3  ;;  %v9071_v22 = vsub.f32 %v8899_v10, %v9063_v3  ;;  %v9077_v53 = vsub.f32 %v8974_v43, %v9063_v3  ;;  %v9060_v59 = vpop.xlane.xlu0 %9059  ;;  %v9083_v11 = vsub.f32 %v9049_v62, %v9063_v3 }
0x2606   :  { %v9064_v45 = vsub.f32 %v8819_v21, %v9060_v59  ;;  %v9070_v58 = vsub.f32 %v8894_v0, %v9060_v59  ;;  %v9076_v12 = vsub.f32 %v8969_v31, %v9060_v59  ;;  %v9082_v37 = vsub.f32 %v9044_v41, %v9060_v59 }
0x2607   :  { %v9068_v27 = vmul.f32 1.442695, %v9065_v30  ;;  %v9074_v9 = vmul.f32 1.442695, %v9071_v22  ;;  %v9080_v35 = vmul.f32 1.442695, %v9077_v53 }
0x2608   :  { %v9066_v26 = vmul.f32 1.442695, %v9064_v45  ;;  %v9072_v54 = vmul.f32 1.442695, %v9070_v58  ;;  %v9086_v23 = vmul.f32 1.442695, %v9083_v11  ;;  %v8366_v14 = vpop.xlane.xlu1 %8365 }
0x2609   :  { %19382 = vpow2.f32 %v9068_v27  ;;  %v9078_v44 = vmul.f32 1.442695, %v9076_v12  ;;  %v9084_v46 = vmul.f32 1.442695, %v9082_v37  ;;  %v8360_v13 = vpop.xlane.xlu0 %8359 }
0x260a   :  { %19384 = vpow2.f32 %v9074_v9 }
0x260b   :  { %19386 = vpow2.f32 %v9080_v35 }
0x260c   :  { %19388 = vpow2.f32 %v9066_v26  ;;  %v8369_v3 = vpop.xlane.xlu1 %8368 }
0x260d   :  { %19390 = vpow2.f32 %v9072_v54  ;;  %v8363_v63 = vpop.xlane.xlu0 %8362 }
0x260e   :  { %19392 = vpow2.f32 %v9086_v23  ;;  %v8371_v35 = vadd.f32 %v8369_v3, %v8363_v63 }
0x260f   :  { %19394 = vpow2.f32 %v9078_v44  ;;  %v8370_v44 = vadd.f32 %v8366_v14, %v8360_v13 }
0x2610   :  { %19396 = vpow2.f32 %v9084_v46 }
0x2613   :  { %v19383_v10 = vpop.eup %19382 }
0x2614   :  { %v19385_v0 = vpop.eup %19384  ;;  %v9091_v21 = vsel %vm1184_vm3, %v19383_v10, 0.0 }
0x2615   :  { %v9097_v18 = vsel %vm1184_vm3, %v19385_v0, 0.0  ;;  %9092 = vadd.xlane.f32.xlu0 %v9091_v21  ;;  %v19387_v60 = vpop.eup %19386 }
0x2616   :  { %9098 = vadd.xlane.f32.xlu1 %v9097_v18  ;;  %v19389_v43 = vpop.eup %19388  ;;  %v9105_v31 = vsel %vm1184_vm3, %v19387_v60, 0.0 }
0x2617   :  { %v19391_v40 = vpop.eup %19390  ;;  %v9088_v49 = vsel %vm1184_vm3, %v19389_v43, 0.0 }
0x2618   :  { %17105 = vmatprep.mubr.msk.f32.mxu1 %vm1184_vm3, %v19391_v40  ;;  %v19393_v62 = vpop.eup %19392  ;;  %v9094_v56 = vsel %vm1184_vm3, %v19391_v40, 0.0 }
0x2619   :  { %9089 = vadd.xlane.f32.xlu0 %v9088_v49  ;;  %17106 = vmatmul.mubr.msk.f32.vlgmr.msra.gmra.mrb[52].mxu1 %vm1184_vm3, %v19385_v0  ;;  %v19395_v41 = vpop.eup %19394  ;;  %v9113_v16 = vsel %vm1184_vm3, %v19393_v62, 0.0 }
0x261a   :  { %9106 = vadd.xlane.f32.xlu1 %v9105_v31  ;;  %18295 = vmatpush3.bf16.msra.mxu1 %v22045_v15  ;;  %v9102_v47 = vsel %vm1184_vm3, %v19395_v41, 0.0  ;;  %v19397_v48 = vpop.eup %19396 }
0x261b   :  { %17112 = vmatprep.mubr.msk.f32.mxu1 %vm1184_vm3, %v19389_v43  ;;  %18297 = vmatprep.subr.bf16.mxu1 %v22071_v28  ;;  %v9110_v38 = vsel %vm1184_vm3, %v19397_v48, 0.0 }
0x261d   :  { %9095 = vadd.xlane.f32.xlu0 %v9094_v56 }
0x261e   :  { %9114 = vadd.xlane.f32.xlu1 %v9113_v16 }
0x2621   :  { %9103 = vadd.xlane.f32.xlu0 %v9102_v47  ;;  %17113 = vmatmul.mubr.msk.f32.vlgmr.msra.gmra.mrb[52].mxu1 %vm1184_vm3, %v19383_v10 }
0x2622   :  { %8376 = vadd.xlane.f32.xlu1 %v8375_v19  ;;  %18299 = vmatpush3.bf16.msra.mxu1 %v22071_v28 }
0x2623   :  { %17119 = vmatprep.mubr.msk.f32.mxu1 %vm1184_vm3, %v19395_v41  ;;  %18301 = vmatprep.subr.bf16.mxu1 %v22088_v39 }
0x2625   :  { %9111 = vadd.xlane.f32.xlu0 %v9110_v38 }
0x2626   :  { %8384 = vadd.xlane.f32.xlu1 %v8383_v50 }
0x2629   :  { %8373 = vadd.xlane.f32.xlu0 %v8372_v17  ;;  %17120 = vmatmul.mubr.msk.f32.vlgmr.msra.gmra.mrb[52].mxu1 %vm1184_vm3, %v19387_v60 }
0x262a   :  { %18303 = vmatpush3.bf16.msra.mxu1 %v22088_v39  ;;  %17126 = vmatprep.mubr.msk.f32.mxu1 %vm1184_vm3, %v19397_v48 }
0x262b   :  { %18312 = vmatprep.subr.msk.bf16.mxu1 %vm20864_vm2, %v21952_v2 }
0x262d   :  { %8381 = vadd.xlane.f32.xlu0 %v8380_v33 }
0x2631   :  { %17127 = vmatmul.mubr.msk.f32.vlgmr.msra.gmra.mrb[52].mxu1 %vm1184_vm3, %v19393_v62 }
0x2633   :  { %18315 = vmatpush3.bf16.xpose.msk.msra.mxu1 %vm20864_vm2, %v21952_v2 }
0x2634   :  { %18324 = vmatprep.subr.msk.bf16.mxu1 %vm20864_vm2, %v21973_v1 }
0x2637   :  { %9614 = vrot.lane.b32.xlu1 %v21932_v55, %s20423_s1 }
0x2643   :  { %9612 = vrot.lane.b32.xlu0 %v21934_v34, %s20423_s1 }
0x26a2   :  { %v9093_v30 = vpop.xlane.xlu0 %9092 }
0x26a3   :  { %v9099_v22 = vpop.xlane.xlu1 %9098 }
0x26a4   :  { %v9101_v31 = vadd.f32 %v9099_v22, %v9093_v30 }
0x26a6   :  { %v9090_v53 = vpop.xlane.xlu0 %9089 }
0x26a7   :  { %v9107_v59 = vpop.xlane.xlu1 %9106 }
0x26a8   :  { %v9109_v62 = vadd.f32 %v9107_v59, %v9101_v31 }
0x26aa   :  { %v9096_v45 = vpop.xlane.xlu0 %9095 }
0x26ab   :  { %v9115_v58 = vpop.xlane.xlu1 %9114  ;;  %v9100_v49 = vadd.f32 %v9096_v45, %v9090_v53 }
0x26ac   :  { %v9117_v41 = vadd.f32 %v9115_v58, %v9109_v62 }
0x26ae   :  { %v9104_v27 = vpop.xlane.xlu0 %9103 }
0x26af   :  { %v8377_v9 = vpop.xlane.xlu1 %8376 }
0x26b0   :  { %v8379_v11 = vadd.f32 %v8377_v9, %v8371_v35 }
0x26b2   :  { %v9112_v26 = vpop.xlane.xlu0 %9111 }
0x26b3   :  { %v8385_v54 = vpop.xlane.xlu1 %8384 }
0x26b4   :  { %v8387_v12 = vadd.f32 %v8385_v54, %v8379_v11 }
0x26b6   :  { %19398 = vrcp.f32 %v8387_v12  ;;  %v8374_v23 = vpop.xlane.xlu0 %8373 }
0x26b7   :  { %v8378_v37 = vadd.f32 %v8374_v23, %v8370_v44  ;;  %v9615_v21 = vpop.permute.xlu1 %9614 }
0x26ba   :  { %v8382_v10 = vpop.xlane.xlu0 %8381 }
0x26bb   :  { %v8386_v46 = vadd.f32 %v8382_v10, %v8378_v37 }
0x26bd   :  { %19400 = vrcp.f32 %v8386_v46 }
0x26be   :  { %v9613_v0 = vpop.permute.xlu0 %9612 }
0x26bf   :  { %17150 = vmatprep.mubr.msk.f32.mxu1 %vm845_vm1, %v9613_v0 }
0x26c0   :  { %v19399_v18 = vpop.eup %19398  ;;  %17151 = vmatmul.mubr.msk.f32.vlgmr.msra.gmra.mrb[54].mxu1 %vm845_vm1, %v9615_v21 }
0x26c1   :  { %18327 = vmatpush3.bf16.xpose.msk.msra.mxu1 %vm20864_vm2, %v21973_v1  ;;  %17164 = vmatprep.mubr.msk.f32.mxu1 %vm845_vm1, %v9613_v0  ;;  %v8743_v60 = vmul.f32 %v19399_v18, %v22120_v25  ;;  %v9108_v25 = vadd.f32 %v9104_v27, %v9100_v49 }
0x26c2   :  { %18346 = vmatprep.subr.msk.bf16.mxu1 %vm20864_vm2, %v21954_v8 }
0x26c3   :  { %v9116_v56 = vadd.f32 %v9112_v26, %v9108_v25 }
0x26c5   :  { %19402 = vrcp.f32 %v9116_v56 }
0x26c6   :  { %19404 = vrcp.f32 %v9117_v41 }
0x26c7   :  { %v19401_v43 = vpop.eup %19400 }
0x26c8   :  { %17165 = vmatmul.mubr.msk.f32.vlgmr.msra.gmra.mrb[56].mxu1 %vm845_vm1, %v9615_v21  ;;  %v8742_v40 = vmul.f32 %v19401_v43, %v22122_v4 }
0x26c9   :  { %18349 = vmatpush3.bf16.xpose.msk.msra.mxu1 %vm20864_vm2, %v21954_v8 }
0x26ca   :  { %18352 = vmatprep.subr.msk.bf16.mxu1 %vm20864_vm2, %v21952_v2 }
0x26cf   :  { %v19403_v47 = vpop.eup %19402 }
0x26d0   :  { %v19405_v4 = vpop.eup %19404 }
0x2704   :  { %v17128_v16 = vpop.f32.mrb[52].mxu1 }
0x2705   :  { %v9437_v48 = vpop.f32.mrb[53].mxu1  ;;  %v9449_v38 = vmul.f32 %v19405_v4, %v17128_v16 }
0x2706   :  { %v9448_v19 = vmul.f32 %v19403_v47, %v9437_v48 }
0x2708   :  { %17131 = vmatprep.mubr.msk.f32.mxu0 %vm845_vm1, %v9448_v19 }
0x2709   :  { %17132 = vmatmul.mubr.msk.f32.vlgmr.msra.gmra.mrb[64].mxu0 %vm845_vm1, %v9449_v38 }
0x270a   :  { %17135 = vmatpush3.msra.mxu0 %v7825_v20  ;;  %17136 = vmatprep.mubr.msk.f32.mxu0 %vm845_vm1, %v8742_v40 }
0x270b   :  { %18306 = vmatprep.subr.msk.bf16.mxu0 %vm20864_vm2, %v21954_v8 }
0x2711   :  { %17137 = vmatmul.mubr.msk.f32.vlgmr.msra.gmra.mrb[64].mxu0 %vm845_vm1, %v8743_v60 }
0x2712   :  { %18309 = vmatpush3.bf16.xpose.msk.msra.mxu0 %vm20864_vm2, %v21954_v8  ;;  %17143 = vmatprep.mubr.msk.f32.mxu0 %vm845_vm1, %v9613_v0 }
0x2713   :  { %18318 = vmatprep.subr.msk.bf16.mxu0 %vm20864_vm2, %v21968_v24 }
0x2719   :  { %17144 = vmatmul.mubr.msk.f32.vlgmr.msra.gmra.mrb[66].mxu0 %vm845_vm1, %v9615_v21 }
0x271a   :  { %18321 = vmatpush3.bf16.xpose.msk.msra.mxu0 %vm20864_vm2, %v21968_v24  ;;  %17157 = vmatprep.mubr.msk.f32.mxu0 %vm845_vm1, %v9613_v0 }
0x271b   :  { %18329 = vmatprep.subr.bf16.mxu0 %v22043_v36 }
0x2721   :  { %17158 = vmatmul.mubr.msk.f32.vlgmr.msra.gmra.mrb[68].mxu0 %vm845_vm1, %v9615_v21 }
0x2722   :  { %18331 = vmatpush3.bf16.msra.mxu0 %v22043_v36 }
0x2723   :  { %18333 = vmatprep.subr.bf16.mxu0 %v22045_v15 }
0x2793   :  { %v17152_v8 = vpop.f32.mrb[54].mxu1 }
0x2794   :  { %v9761_v50 = vpop.f32.mrb[55].mxu1  ;;  %v9767_v63 = vadd.f32 %v22005_v32, %v17152_v8 }
0x2795   :  { %v9762_v3 = vadd.f32 %v22009_v51, %v9761_v50 }
0x279b   :  { %v17166_v17 = vpop.f32.mrb[56].mxu1 }
0x279c   :  { %v9911_v33 = vpop.f32.mrb[57].mxu1  ;;  %v9917_v27 = vadd.f32 %v22005_v32, %v17166_v17 }
0x279d   :  { %v9912_v35 = vadd.f32 %v22009_v51, %v9911_v33 }
0x27ec   :  { %v17145_v57 = vpop.f32.mrb[66].mxu0 }
0x27ed   :  { %v9686_v20 = vpop.f32.mrb[67].mxu0  ;;  %v9692_v13 = vadd.f32 %v22005_v32, %v17145_v57 }
0x27ee   :  { %v9687_v14 = vadd.f32 %v22009_v51, %v9686_v20 }
0x27ef   :  { %v9921_v22 = vmax.f32 %v9692_v13, %v9767_v63 }
0x27f0   :  { %v9920_v45 = vmax.f32 %v9687_v14, %v9762_v3 }
0x27f4   :  { %v17159_v30 = vpop.f32.mrb[68].mxu0 }
0x27f5   :  { %v9842_v53 = vadd.f32 %v22005_v32, %v17159_v30  ;;  %v9836_v59 = vpop.f32.mrb[69].mxu0 }
0x27f6   :  { %v9837_v58 = vadd.f32 %v22009_v51, %v9836_v59 }
0x27f7   :  { %v9923_v9 = vmax.f32 %v9921_v22, %v9842_v53 }
0x27f8   :  { %v9922_v11 = vmax.f32 %v9920_v45, %v9837_v58 }
0x27f9   :  { %v9925_v26 = vmax.f32 %v9923_v9, %v9917_v27 }
0x27fa   :  { %v9924_v54 = vmax.f32 %v9922_v11, %v9912_v35 }
0x27fb   :  { %v9929_v12 = vsel %vm1184_vm3, %v9925_v26, -inf }
0x27fc   :  { %9930 = vmax.xlane.f32.xlu0 %v9929_v12  ;;  %v9926_v23 = vsel %vm1184_vm3, %v9924_v54, -inf }
0x27fd   :  { %9927 = vmax.xlane.f32.xlu1 %v9926_v23 }
0x2889   :  { %v9931_v44 = vpop.xlane.xlu0 %9930 }
0x288a   :  { %v9933_v37 = vsub.f32 %v9692_v13, %v9931_v44  ;;  %v9939_v10 = vsub.f32 %v9767_v63, %v9931_v44  ;;  %v9945_v46 = vsub.f32 %v9842_v53, %v9931_v44  ;;  %v9928_v0 = vpop.xlane.xlu1 %9927  ;;  %v9951_v31 = vsub.f32 %v9917_v27, %v9931_v44  ;;  %v7827_v53 = vld [vmem:[%s23033_s27 + $0x10] sm:$0xff] }
0x288b   :  { %v9932_v21 = vsub.f32 %v9687_v14, %v9928_v0  ;;  %v9938_v18 = vsub.f32 %v9762_v3, %v9928_v0  ;;  %v9944_v40 = vsub.f32 %v9837_v58, %v9928_v0  ;;  %v9950_v41 = vsub.f32 %v9912_v35, %v9928_v0 }
0x288c   :  { %v9936_v60 = vmul.f32 1.442695, %v9933_v37  ;;  %v9942_v43 = vmul.f32 1.442695, %v9939_v10  ;;  %v9948_v49 = vmul.f32 1.442695, %v9945_v46 }
0x288d   :  { %v9934_v25 = vmul.f32 1.442695, %v9932_v21  ;;  %v9940_v62 = vmul.f32 1.442695, %v9938_v18  ;;  %v9946_v56 = vmul.f32 1.442695, %v9944_v40 }
0x288e   :  { %19406 = vpow2.f32 %v9936_v60  ;;  %v9954_v16 = vmul.f32 1.442695, %v9951_v31  ;;  %v9952_v47 = vmul.f32 1.442695, %v9950_v41 }
0x288f   :  { %19408 = vpow2.f32 %v9942_v43 }
0x2890   :  { %19410 = vpow2.f32 %v9948_v49 }
0x2891   :  { %19412 = vpow2.f32 %v9934_v25 }
0x2892   :  { %19414 = vpow2.f32 %v9940_v62 }
0x2893   :  { %19416 = vpow2.f32 %v9946_v56 }
0x2894   :  { %19418 = vpow2.f32 %v9954_v16 }
0x2895   :  { %19420 = vpow2.f32 %v9952_v47 }
0x2898   :  { %v19407_v48 = vpop.eup %19406 }
0x2899   :  { %v19409_v4 = vpop.eup %19408  ;;  %v9959_v19 = vsel %vm1184_vm3, %v19407_v48, 0.0 }
0x289a   :  { %9960 = vadd.xlane.f32.xlu0 %v9959_v19  ;;  %v9965_v38 = vsel %vm1184_vm3, %v19409_v4, 0.0  ;;  %v19411_v8 = vpop.eup %19410 }
0x289b   :  { %9966 = vadd.xlane.f32.xlu1 %v9965_v38  ;;  %v19413_v50 = vpop.eup %19412  ;;  %v9973_v20 = vsel %vm1184_vm3, %v19411_v8, 0.0 }
0x289c   :  { %v19415_v17 = vpop.eup %19414  ;;  %v9956_v33 = vsel %vm1184_vm3, %v19413_v50, 0.0 }
0x289d   :  { %v19417_v57 = vpop.eup %19416  ;;  %17171 = vmatprep.mubr.msk.f32.mxu0 %vm1184_vm3, %v19415_v17  ;;  %v9962_v22 = vsel %vm1184_vm3, %v19415_v17, 0.0 }
0x289e   :  { %9957 = vadd.xlane.f32.xlu0 %v9956_v33  ;;  %v19419_v13 = vpop.eup %19418  ;;  %17172 = vmatmul.mubr.msk.f32.vlgmr.msra.gmra.mrb[70].mxu0 %vm1184_vm3, %v19409_v4  ;;  %v9970_v14 = vsel %vm1184_vm3, %v19417_v57, 0.0 }
0x289f   :  { %9974 = vadd.xlane.f32.xlu1 %v9973_v20  ;;  %18335 = vmatpush3.bf16.msra.mxu0 %v22045_v15  ;;  %v19421_v63 = vpop.eup %19420  ;;  %v9981_v3 = vsel %vm1184_vm3, %v19419_v13, 0.0 }
0x28a0   :  { %17178 = vmatprep.mubr.msk.f32.mxu0 %vm1184_vm3, %v19413_v50  ;;  %18337 = vmatprep.subr.bf16.mxu0 %v22071_v28  ;;  %v9978_v30 = vsel %vm1184_vm3, %v19421_v63, 0.0 }
0x28a2   :  { %9971 = vadd.xlane.f32.xlu0 %v9970_v14 }
0x28a3   :  { %9982 = vadd.xlane.f32.xlu1 %v9981_v3 }
0x28a6   :  { %9979 = vadd.xlane.f32.xlu0 %v9978_v30  ;;  %17179 = vmatmul.mubr.msk.f32.vlgmr.msra.gmra.mrb[70].mxu0 %vm1184_vm3, %v19407_v48 }
0x28a7   :  { %9963 = vadd.xlane.f32.xlu1 %v9962_v22  ;;  %18339 = vmatpush3.bf16.msra.mxu0 %v22071_v28 }
0x28a8   :  { %17185 = vmatprep.mubr.msk.f32.mxu0 %vm1184_vm3, %v19417_v57  ;;  %18341 = vmatprep.subr.bf16.mxu0 %v22088_v39 }
0x28ae   :  { %17186 = vmatmul.mubr.msk.f32.vlgmr.msra.gmra.mrb[70].mxu0 %vm1184_vm3, %v19411_v8 }
0x28af   :  { %18343 = vmatpush3.bf16.msra.mxu0 %v22088_v39  ;;  %17192 = vmatprep.mubr.msk.f32.mxu0 %vm1184_vm3, %v19421_v63 }
0x28b0   :  { %17195 = vmatprep.subr.mxu0 %v7827_v53 }
0x28b6   :  { %17193 = vmatmul.mubr.msk.f32.vlgmr.msra.gmra.mrb[70].mxu0 %vm1184_vm3, %v19419_v13 }
0x28b7   :  { %17196 = vmatpush3.msra.mxu0 %v7827_v53 }
0x28b8   :  { %10403 = vrot.lane.b32.xlu1 %v21932_v55, %s20424_s30  ;;  %18364 = vmatprep.subr.msk.bf16.mxu0 %vm20864_vm2, %v21973_v1 }
0x28bc   :  { %10401 = vrot.lane.b32.xlu0 %v21934_v34, %s20424_s30 }
0x2927   :  { %v9961_v59 = vpop.xlane.xlu0 %9960 }
0x2928   :  { %v9967_v45 = vpop.xlane.xlu1 %9966 }
0x2929   :  { %v9969_v58 = vadd.f32 %v9967_v45, %v9961_v59 }
0x292b   :  { %v9958_v27 = vpop.xlane.xlu0 %9957 }
0x292c   :  { %v9975_v9 = vpop.xlane.xlu1 %9974 }
0x292d   :  { %v9977_v35 = vadd.f32 %v9975_v9, %v9969_v58 }
0x292f   :  { %v9972_v11 = vpop.xlane.xlu0 %9971 }
0x2930   :  { %v9983_v26 = vpop.xlane.xlu1 %9982 }
0x2931   :  { %v9985_v54 = vadd.f32 %v9983_v26, %v9977_v35 }
0x2933   :  { %v9980_v12 = vpop.xlane.xlu0 %9979  ;;  %19422 = vrcp.f32 %v9985_v54 }
0x2934   :  { %v9964_v23 = vpop.xlane.xlu1 %9963 }
0x2935   :  { %v9968_v44 = vadd.f32 %v9964_v23, %v9958_v27 }
0x2937   :  { %v9976_v55 = vadd.f32 %v9972_v11, %v9968_v44  ;;  %v10402_v37 = vpop.permute.xlu0 %10401 }
0x2938   :  { %v10404_v10 = vpop.permute.xlu1 %10403  ;;  %17204 = vmatprep.mubr.msk.f32.mxu1 %vm845_vm1, %v10402_v37 }
0x2939   :  { %v9984_v46 = vadd.f32 %v9980_v12, %v9976_v55  ;;  %17205 = vmatmul.mubr.msk.f32.vlgmr.msra.gmra.mrb[58].mxu1 %vm845_vm1, %v10404_v10 }
0x293a   :  { %18355 = vmatpush3.bf16.xpose.msk.msra.mxu1 %vm20864_vm2, %v21952_v2  ;;  %17211 = vmatprep.mubr.msk.f32.mxu1 %vm845_vm1, %v10402_v37 }
0x293b   :  { %18358 = vmatprep.subr.msk.bf16.mxu1 %vm20864_vm2, %v21968_v24  ;;  %19424 = vrcp.f32 %v9984_v46 }
0x293d   :  { %v19423_v34 = vpop.eup %19422 }
0x2941   :  { %17212 = vmatmul.mubr.msk.f32.vlgmr.msra.gmra.mrb[60].mxu1 %vm845_vm1, %v10404_v10 }
0x2942   :  { %18361 = vmatpush3.bf16.xpose.msk.msra.mxu1 %vm20864_vm2, %v21968_v24  ;;  %17218 = vmatprep.mubr.msk.f32.mxu1 %vm845_vm1, %v10402_v37 }
0x2943   :  { %18369 = vmatprep.subr.bf16.mxu1 %v22043_v36 }
0x2945   :  { %v19425_v0 = vpop.eup %19424 }
0x2949   :  { %17219 = vmatmul.mubr.msk.f32.vlgmr.msra.gmra.mrb[62].mxu1 %vm845_vm1, %v10404_v10 }
0x294a   :  { %18371 = vmatpush3.bf16.msra.mxu1 %v22043_v36 }
0x294b   :  { %18373 = vmatprep.subr.bf16.mxu1 %v22045_v15 }
0x2989   :  { %v17194_v2 = vpop.f32.mrb[70].mxu0 }
0x298a   :  { %v10317_v21 = vmul.f32 %v19423_v34, %v17194_v2  ;;  %v10305_v18 = vpop.f32.mrb[71].mxu0 }
0x298b   :  { %v10316_v60 = vmul.f32 %v19425_v0, %v10305_v18 }
0x298d   :  { %17197 = vmatprep.mubr.msk.f32.mxu0 %vm845_vm1, %v10316_v60 }
0x298e   :  { %17198 = vmatmul.mubr.msk.f32.vlgmr.msra.gmra.mrb[64].mxu0 %vm845_vm1, %v10317_v21 }
0x298f   :  { %18367 = vmatpush3.bf16.xpose.msk.msra.mxu0 %vm20864_vm2, %v21973_v1  ;;  %17225 = vmatprep.mubr.msk.f32.mxu0 %vm845_vm1, %v10402_v37 }
0x2996   :  { %17226 = vmatmul.mubr.msk.f32.vlgmr.msra.gmra.mrb[72].mxu0 %vm845_vm1, %v10404_v10 }
0x2a0c   :  { %v17206_v24 = vpop.f32.mrb[58].mxu1 }
0x2a0d   :  { %v10475_v36 = vpop.f32.mrb[59].mxu1  ;;  %v10481_v56 = vadd.f32 %v22005_v32, %v17206_v24 }
0x2a0e   :  { %v10476_v1 = vadd.f32 %v22009_v51, %v10475_v36 }
0x2a14   :  { %v17213_v43 = vpop.f32.mrb[60].mxu1 }
0x2a15   :  { %v10550_v40 = vpop.f32.mrb[61].mxu1  ;;  %v10556_v25 = vadd.f32 %v22005_v32, %v17213_v43 }
0x2a16   :  { %v10551_v62 = vadd.f32 %v22009_v51, %v10550_v40 }
0x2a17   :  { %v10710_v47 = vmax.f32 %v10481_v56, %v10556_v25 }
0x2a18   :  { %v10709_v48 = vmax.f32 %v10476_v1, %v10551_v62 }
0x2a1c   :  { %v17220_v49 = vpop.f32.mrb[62].mxu1 }
0x2a1d   :  { %v10625_v31 = vpop.f32.mrb[63].mxu1  ;;  %v10631_v41 = vadd.f32 %v22005_v32, %v17220_v49 }
0x2a1e   :  { %v10626_v16 = vadd.f32 %v22009_v51, %v10625_v31 }
0x2a1f   :  { %v10712_v19 = vmax.f32 %v10710_v47, %v10631_v41 }
0x2a20   :  { %v10711_v50 = vmax.f32 %v10709_v48, %v10626_v16 }
0x2a69   :  { %v17227_v4 = vpop.f32.mrb[72].mxu0 }
0x2a6a   :  { %v10706_v38 = vadd.f32 %v22005_v32, %v17227_v4  ;;  %v10700_v8 = vpop.f32.mrb[73].mxu0 }
0x2a6b   :  { %v10701_v17 = vadd.f32 %v22009_v51, %v10700_v8 }
0x2a6c   :  { %v10714_v33 = vmax.f32 %v10712_v19, %v10706_v38 }
0x2a6d   :  { %v10713_v57 = vmax.f32 %v10711_v50, %v10701_v17 }
0x2a6e   :  { %v10718_v20 = vsel %vm1184_vm3, %v10714_v33, -inf }
0x2a6f   :  { %10719 = vmax.xlane.f32.xlu0 %v10718_v20  ;;  %v10715_v13 = vsel %vm1184_vm3, %v10713_v57, -inf  ;;  %v15406_v20 = vld [vmem:[#allocation29] ss:$0 sm:$0xff] }
0x2a70   :  { %10716 = vmax.xlane.f32.xlu1 %v10715_v13 }
0x2afc   :  { %v10720_v14 = vpop.xlane.xlu0 %10719 }
0x2afd   :  { %v10722_v63 = vsub.f32 %v10481_v56, %v10720_v14  ;;  %v10728_v3 = vsub.f32 %v10556_v25, %v10720_v14  ;;  %v10717_v30 = vpop.xlane.xlu1 %10716  ;;  %v10734_v58 = vsub.f32 %v10631_v41, %v10720_v14  ;;  %v10740_v26 = vsub.f32 %v10706_v38, %v10720_v14 }
0x2afe   :  { %v10721_v22 = vsub.f32 %v10476_v1, %v10717_v30  ;;  %v10727_v53 = vsub.f32 %v10551_v62, %v10717_v30  ;;  %v10733_v45 = vsub.f32 %v10626_v16, %v10717_v30  ;;  %v10739_v35 = vsub.f32 %v10701_v17, %v10717_v30 }
0x2aff   :  { %v10725_v59 = vmul.f32 1.442695, %v10722_v63  ;;  %v10731_v32 = vmul.f32 1.442695, %v10728_v3  ;;  %v10737_v11 = vmul.f32 1.442695, %v10734_v58 }
0x2b00   :  { %v10723_v51 = vmul.f32 1.442695, %v10721_v22  ;;  %v10729_v27 = vmul.f32 1.442695, %v10727_v53  ;;  %v10735_v9 = vmul.f32 1.442695, %v10733_v45 }
0x2b01   :  { %19426 = vpow2.f32 %v10725_v59  ;;  %v10741_v54 = vmul.f32 1.442695, %v10739_v35  ;;  %v10743_v12 = vmul.f32 1.442695, %v10740_v26 }
0x2b02   :  { %19428 = vpow2.f32 %v10731_v32 }
0x2b03   :  { %19430 = vpow2.f32 %v10723_v51 }
0x2b04   :  { %19432 = vpow2.f32 %v10729_v27 }
0x2b05   :  { %19434 = vpow2.f32 %v10735_v9 }
0x2b06   :  { %19436 = vpow2.f32 %v10737_v11 }
0x2b07   :  { %19438 = vpow2.f32 %v10741_v54  ;;  %v7833_v54 = vld [vmem:[#allocation34 + $0x8] sm:$0xff] }
0x2b08   :  { %19440 = vpow2.f32 %v10743_v12 }
0x2b0b   :  { %v19427_v23 = vpop.eup %19426 }
0x2b0c   :  { %v19429_v44 = vpop.eup %19428  ;;  %v10748_v55 = vsel %vm1184_vm3, %v19427_v23, 0.0 }
0x2b0d   :  { %10749 = vadd.xlane.f32.xlu0 %v10748_v55  ;;  %v10754_v37 = vsel %vm1184_vm3, %v19429_v44, 0.0  ;;  %v19431_v10 = vpop.eup %19430 }
0x2b0e   :  { %10755 = vadd.xlane.f32.xlu1 %v10754_v37  ;;  %v19433_v46 = vpop.eup %19432  ;;  %v10745_v34 = vsel %vm1184_vm3, %v19431_v10, 0.0  ;;  %v7837_v37 = vld [vmem:[#allocation37] sm:$0xff] }
0x2b0f   :  { %v19435_v2 = vpop.eup %19434  ;;  %17232 = vmatprep.mubr.msk.f32.mxu1 %vm1184_vm3, %v19433_v46  ;;  %v10751_v0 = vsel %vm1184_vm3, %v19433_v46, 0.0 }
0x2b10   :  { %v19437_v21 = vpop.eup %19436  ;;  %17233 = vmatmul.mubr.msk.f32.vlgmr.msra.gmra.mrb[64].mxu1 %vm1184_vm3, %v19429_v44  ;;  %v10759_v18 = vsel %vm1184_vm3, %v19435_v2, 0.0  ;;  %v7835_v44 = vld [vmem:[#allocation34 + $0x18] sm:$0xff] }
0x2b11   :  { %10746 = vadd.xlane.f32.xlu0 %v10745_v34  ;;  %18375 = vmatpush3.bf16.msra.mxu1 %v22045_v15  ;;  %v19439_v60 = vpop.eup %19438  ;;  %v10762_v24 = vsel %vm1184_vm3, %v19437_v21, 0.0  ;;  %v7828_v15 = vld [vmem:[%s23033_s27 + $0x18] sm:$0xff] }
0x2b12   :  { %10752 = vadd.xlane.f32.xlu1 %v10751_v0  ;;  %17239 = vmatprep.mubr.msk.f32.mxu1 %vm1184_vm3, %v19431_v10  ;;  %v19441_v36 = vpop.eup %19440  ;;  %v10767_v43 = vsel %vm1184_vm3, %v19439_v60, 0.0  ;;  %v7838_v10 = vld [vmem:[#allocation37 + $0x8] sm:$0xff] }
0x2b13   :  { %18377 = vmatprep.subr.bf16.mxu1 %v22071_v28  ;;  %v10770_v40 = vsel %vm1184_vm3, %v19441_v36, 0.0  ;;  %17256 = vmatprep.subr.mxu0 %v7828_v15  ;;  %v18392_v46 = vpack.c.bf16 %v7838_v10, %v7837_v37 }
0x2b14   :  { %17257 = vmatpush3.msra.mxu0 %v7828_v15 }
0x2b15   :  { %10760 = vadd.xlane.f32.xlu0 %v10759_v18 }
0x2b16   :  { %10763 = vadd.xlane.f32.xlu1 %v10762_v24 }
0x2b18   :  { %17240 = vmatmul.mubr.msk.f32.vlgmr.msra.gmra.mrb[64].mxu1 %vm1184_vm3, %v19427_v23  ;;  %v7834_v23 = vld [vmem:[#allocation34 + $0x10] sm:$0xff] }
0x2b19   :  { %10768 = vadd.xlane.f32.xlu0 %v10767_v43  ;;  %18379 = vmatpush3.bf16.msra.mxu1 %v22071_v28  ;;  %v18388_v55 = vpack.c.bf16 %v7835_v44, %v7834_v23 }
0x2b1a   :  { %10771 = vadd.xlane.f32.xlu1 %v10770_v40  ;;  %17246 = vmatprep.mubr.msk.f32.mxu1 %vm1184_vm3, %v19435_v2 }
0x2b1b   :  { %18381 = vmatprep.subr.bf16.mxu1 %v22088_v39 }
0x2b20   :  { %17247 = vmatmul.mubr.msk.f32.vlgmr.msra.gmra.mrb[64].mxu1 %vm1184_vm3, %v19437_v21 }
0x2b21   :  { %18383 = vmatpush3.bf16.msra.mxu1 %v22088_v39  ;;  %17253 = vmatprep.mubr.msk.f32.mxu1 %vm1184_vm3, %v19439_v60 }
0x2b28   :  { %17254 = vmatmul.mubr.msk.f32.vlgmr.msra.gmra.mrb[64].mxu1 %vm1184_vm3, %v19441_v36  ;;  %v15407_v36 = vld [vmem:[#allocation31] ss:$0 sm:$0xff] }
0x2b9a   :  { %v10750_v49 = vpop.xlane.xlu0 %10749 }
0x2b9b   :  { %v10756_v31 = vpop.xlane.xlu1 %10755 }
0x2b9c   :  { %v10758_v1 = vadd.f32 %v10756_v31, %v10750_v49  ;;  %v15408_v49 = vld [vmem:[#allocation32] ss:$0 sm:$0xff] }
0x2b9e   :  { %v10747_v25 = vpop.xlane.xlu0 %10746 }
0x2b9f   :  { %v10753_v62 = vpop.xlane.xlu1 %10752 }
0x2ba0   :  { %v10757_v41 = vadd.f32 %v10753_v62, %v10747_v25  ;;  %v7839_v62 = vld [vmem:[#allocation37 + $0x10] sm:$0xff] }
0x2ba2   :  { %v10761_v28 = vpop.xlane.xlu0 %10760 }
0x2ba3   :  { %v10764_v56 = vpop.xlane.xlu1 %10763  ;;  %v10765_v47 = vadd.f32 %v10761_v28, %v10757_v41  ;;  %v7840_v28 = vld [vmem:[#allocation37 + $0x18] sm:$0xff] }
0x2ba4   :  { %v10766_v4 = vadd.f32 %v10764_v56, %v10758_v1  ;;  %v18396_v1 = vpack.c.bf16 %v7840_v28, %v7839_v62  ;;  %v22478_v62 = vld [vmem:[%s23029_s7] sm:$0xff] }
0x2ba6   :  { %v10769_v16 = vpop.xlane.xlu0 %10768 }
0x2ba7   :  { %v10772_v48 = vpop.xlane.xlu1 %10771  ;;  %v10773_v39 = vadd.f32 %v10769_v16, %v10765_v47  ;;  %v15409_v16 = vld [vmem:[#allocation35] ss:$0 sm:$0xff] }
0x2ba8   :  { %v10774_v19 = vadd.f32 %v10772_v48, %v10766_v4 }
0x2ba9   :  { %19442 = vrcp.f32 %v10773_v39 }
0x2baa   :  { %19444 = vrcp.f32 %v10774_v19 }
0x2bb3   :  { %v19443_v8 = vpop.eup %19442 }
0x2bb4   :  { %v19445_v17 = vpop.eup %19444 }
0x2bfb   :  { %v17255_v38 = vpop.f32.mrb[64].mxu1 }
0x2bfc   :  { %v11094_v50 = vpop.f32.mrb[65].mxu1  ;;  %v11106_v57 = vmul.f32 %v19445_v17, %v17255_v38 }
0x2bfd   :  { %v11105_v33 = vmul.f32 %v19443_v8, %v11094_v50 }
0x2bff   :  { %17258 = vmatprep.mubr.msk.f32.mxu0 %vm845_vm1, %v11105_v33 }
0x2c00   :  { %17259 = vmatmul.mubr.msk.f32.vlgmr.msra.gmra.mrb[64].mxu0 %vm845_vm1, %v11106_v57 }
0x2cd3   :  { %v17260_v13 = vpop.f32.mrb[64].mxu0 }
0x2cd4   :  { %v11197_v14 = vadd.f32 %v17260_v13, %v15406_v20  ;;  %v11179_v63 = vpop.f32.mrb[65].mxu0 }
0x2cd5   :  { %v11196_v3 = vadd.f32 %v15406_v20, %v11179_v63 }
0x2cd6   :  { %v11199_v30 = vadd.f32 %v11197_v14, %v21926_v29 }
0x2cd7   :  { %v11198_v22 = vadd.f32 %v11196_v3, %v21924_v42  ;;  %v7832_v42 = vld [vmem:[#allocation34] sm:$0xff] }
0x2cd8   :  { %v11203_v53 = vsel %vm601_vm0, %v11199_v30, 0.0  ;;  %v18384_v12 = vpack.c.bf16 %v7833_v54, %v7832_v42 }
0x2cd9   :  { %11204 = vadd.xlane.f32.xlu1 %v11203_v53  ;;  %v11200_v59 = vsel %vm601_vm0, %v11198_v22, 0.0 }
0x2cda   :  { %11201 = vadd.xlane.f32.xlu0 %v11200_v59  ;;  %18385 = vmatprep.subr.bf16.mxu0 %v18384_v12 }
0x2cdb   :  { %18387 = vmatpush3.bf16.msra.mxu0 %v18384_v12 }
0x2cdc   :  { %18389 = vmatprep.subr.bf16.mxu0 %v18388_v55 }
0x2cdf   :  { %18391 = vmatpush3.bf16.msra.mxu0 %v18388_v55 }
0x2ce0   :  { %18393 = vmatprep.subr.bf16.mxu0 %v18392_v46 }
0x2d66   :  { %v11205_v32 = vpop.xlane.xlu1 %11204 }
0x2d67   :  { %v11207_v45 = vmul.f32 0.03125, %v11205_v32  ;;  %v11202_v58 = vpop.xlane.xlu0 %11201 }
0x2d68   :  { %v11206_v51 = vmul.f32 0.03125, %v11202_v58 }
0x2d69   :  { %v11209_v27 = vsub.f32 %v11199_v30, %v11207_v45 }
0x2d6a   :  { %v11208_v9 = vsub.f32 %v11198_v22, %v11206_v51 }
0x2d6b   :  { %v11211_v35 = vmul.f32 %v11209_v27, %v11209_v27 }
0x2d6c   :  { %v11210_v11 = vmul.f32 %v11208_v9, %v11208_v9 }
0x2d6d   :  { %v11215_v26 = vsel %vm601_vm0, %v11211_v35, 0.0 }
0x2d6e   :  { %11216 = vadd.xlane.f32.xlu1 %v11215_v26  ;;  %v11212_v29 = vsel %vm601_vm0, %v11210_v11, 0.0 }
0x2d6f   :  { %11213 = vadd.xlane.f32.xlu0 %v11212_v29 }
0x2dfb   :  { %v11217_v34 = vpop.xlane.xlu1 %11216 }
0x2dfc   :  { %v11219_v2 = vmul.f32 0.03125, %v11217_v34  ;;  %v11214_v0 = vpop.xlane.xlu0 %11213 }
0x2dfd   :  { %v11218_v21 = vmul.f32 0.03125, %v11214_v0 }
0x2dfe   :  { %v11221_v18 = vadd.f32 1e-05, %v11219_v2 }
0x2dff   :  { %v11220_v60 = vadd.f32 1e-05, %v11218_v21 }
0x2e00   :  { %19446 = vrsqrt.f32 %v11221_v18 }
0x2e01   :  { %19448 = vrsqrt.f32 %v11220_v60 }
0x2e0a   :  { %v19447_v24 = vpop.eup %19446 }
0x2e0b   :  { %v19449_v43 = vpop.eup %19448  ;;  %v11225_v40 = vmul.f32 %v19447_v24, %v11209_v27 }
0x2e0c   :  { %v11224_v15 = vmul.f32 %v19449_v43, %v11208_v9 }
0x2e0d   :  { %v11233_v31 = vmul.f32 %v15407_v36, %v11225_v40 }
0x2e0e   :  { %v11232_v25 = vmul.f32 %v15407_v36, %v11224_v15 }
0x2e0f   :  { %v22332_v41 = vadd.f32 %v15408_v49, %v11233_v31  ;;  %v22474_v31 = vld [vmem:[%s23029_s7 + $0x8] sm:$0xff] }
0x2e10   :  { %v22330_v56 = vadd.f32 %v15408_v49, %v11232_v25 }
0x2e12   :  { %17269 = vmatprep.mubr.msk.f32.mxu0 %vm601_vm0, %v22330_v56 }
0x2e13   :  { %17270 = vmatmul.mubr.msk.f32.vlgmr.msra.gmra.mrb[74].mxu0 %vm601_vm0, %v22332_v41 }
0x2e14   :  { %18395 = vmatpush3.bf16.msra.mxu0 %v18392_v46  ;;  %17280 = vmatprep.mubr.msk.f32.mxu0 %vm601_vm0, %v21307_v61  ;;  %v15412_v61 = vld [vmem:[#allocation38] ss:$0 sm:$0xff] }
0x2e15   :  { %18397 = vmatprep.subr.bf16.mxu0 %v18396_v1 }
0x2e18   :  { %18399 = vmatpush3.bf16.msra.mxu0 %v18396_v1 }
0x2e1b   :  { %17281 = vmatmul.mubr.msk.f32.vlgmr.msra.gmra.mrb[76].mxu0 %vm601_vm0, %v21315_v6 }
0x2e1c   :  { %17283 = vmatprep.mubr.msk.f32.mxu0 %vm601_vm0, %v21313_v5 }
0x2e1f   :  { %17284 = vmatmul.mubr.msk.f32.gmra.mrb[78].mxu0 %vm601_vm0, %v21321_v7 }
0x2ee6   :  { %v17271_v47 = vpop.f32.mrb[74].mxu0 }
0x2ee7   :  { %v11320_v48 = vpop.f32.mrb[75].mxu0  ;;  %v22384_v13 = vadd.f32 %v17271_v47, %v15409_v16 }
0x2ee8   :  { %v22346_v4 = vadd.f32 %v15409_v16, %v11320_v48 }
0x2eea   :  { %17294 = vmatprep.mubr.msk.f32.mxu1 %vm845_vm1, %v22346_v4  ;;  %17305 = vmatprep.mubr.msk.f32.mxu0 %vm845_vm1, %v22346_v4 }
0x2eee   :  { %v17282_v39 = vpop.f32.mrb[76].mxu0 }
0x2eef   :  { %v11407_v6 = vadd.f32 %v17282_v39, %v15412_v61  ;;  %v11401_v19 = vpop.f32.mrb[77].mxu0 }
0x2ef0   :  { %v11402_v38 = vadd.f32 %v15412_v61, %v11401_v19 }
0x2ef2   :  { %v17285_v5 = vpop.f32.mrb[78].mxu0  ;;  %v22352_v8 = vpack.i.bf16 %v11407_v6, %v11402_v38  ;;  %v22354_v7 = vpack.c.bf16 %v11407_v6, %v11402_v38 }
0x2ef3   :  { %v11417_v50 = vadd.f32 %v17285_v5, %v15412_v61  ;;  %v11411_v17 = vpop.f32.mrb[79].mxu0 }
0x2ef4   :  { %v11412_v33 = vadd.f32 %v15412_v61, %v11411_v17  ;;  %19109 = vrot.lane.b32.xlu0 %v22352_v8, %s20421_s4  ;;  %18402 = vmatprep.subr.msk.bf16.mxu1 %vm20864_vm2, %v22354_v7 }
0x2ef5   :  { %18405 = vmatpush3.bf16.xpose.msk.msra.mxu1 %vm20864_vm2, %v22354_v7 }
0x2ef6   :  { %v22364_v57 = vpack.i.bf16 %v11417_v50, %v11412_v33  ;;  %v22366_v20 = vpack.c.bf16 %v11417_v50, %v11412_v33 }
0x2ef8   :  { %19114 = vrot.lane.b32.xlu1 %v22364_v57, %s20421_s4  ;;  %19129 = vrot.lane.b32.xlu0 %v22364_v57, %s20423_s1 }
0x2ef9   :  { %18408 = vmatprep.subr.msk.bf16.mxu1 %vm20864_vm2, %v22366_v20 }
0x2efc   :  { %19119 = vrot.lane.b32.xlu1 %v22352_v8, %s20423_s1  ;;  %19139 = vrot.lane.b32.xlu0 %v22352_v8, %s20414_s18 }
0x2efd   :  { %18411 = vmatpush3.bf16.xpose.msk.msra.mxu1 %vm20864_vm2, %v22366_v20 }
0x2f00   :  { %19124 = vrot.lane.b32.xlu1 %v22352_v8, %s20424_s30 }
0x2f04   :  { %19134 = vrot.lane.b32.xlu1 %v22364_v57, %s20424_s30  ;;  %17295 = vmatmul.mubr.msk.f32.vlgmr.msra.gmra.mrb[66].mxu1 %vm845_vm1, %v22384_v13 }
0x2f05   :  { %17316 = vmatprep.mubr.msk.f32.mxu1 %vm845_vm1, %v22346_v4 }
0x2f08   :  { %19144 = vrot.lane.b32.xlu1 %v22364_v57, %s20414_s18 }
0x2f66   :  { %v19110_v14 = vpop.permute.xlu0 %19109 }
0x2f67   :  { %v19112_v63 = vunpack.i.h.bf16 %v19110_v14  ;;  %v19111_v3 = vunpack.i.l.bf16 %v19110_v14 }
0x2f69   :  { %v22394_v30 = vpack.c.bf16 %v19112_v63, %v19111_v3 }
0x2f6a   :  { %v19115_v22 = vpop.permute.xlu1 %19114  ;;  %v19130_v32 = vpop.permute.xlu0 %19129 }
0x2f6b   :  { %v19117_v53 = vunpack.i.h.bf16 %v19115_v22  ;;  %v19116_v59 = vunpack.i.l.bf16 %v19115_v22  ;;  %18414 = vmatprep.subr.msk.bf16.mxu0 %vm20864_vm2, %v22394_v30  ;;  %v19132_v51 = vunpack.i.h.bf16 %v19130_v32  ;;  %v19131_v27 = vunpack.i.l.bf16 %v19130_v32 }
0x2f6c   :  { %18417 = vmatpush3.bf16.xpose.msk.msra.mxu0 %vm20864_vm2, %v22394_v30 }
0x2f6d   :  { %v22402_v45 = vpack.c.bf16 %v19117_v53, %v19116_v59  ;;  %v22409_v29 = vpack.c.bf16 %v19132_v51, %v19131_v27 }
0x2f6e   :  { %v19120_v58 = vpop.permute.xlu1 %19119  ;;  %v19140_v12 = vpop.permute.xlu0 %19139 }
0x2f6f   :  { %v19122_v9 = vunpack.i.h.bf16 %v19120_v58  ;;  %v19121_v35 = vunpack.i.l.bf16 %v19120_v58  ;;  %18420 = vmatprep.subr.msk.bf16.mxu0 %vm20864_vm2, %v22402_v45  ;;  %v19142_v10 = vunpack.i.h.bf16 %v19140_v12  ;;  %v19141_v46 = vunpack.i.l.bf16 %v19140_v12 }
0x2f71   :  { %v22407_v11 = vpack.c.bf16 %v19122_v9, %v19121_v35  ;;  %v22432_v2 = vpack.c.bf16 %v19142_v10, %v19141_v46 }
0x2f72   :  { %v19125_v26 = vpop.permute.xlu1 %19124 }
0x2f73   :  { %v19127_v42 = vunpack.i.h.bf16 %v19125_v26  ;;  %v19126_v54 = vunpack.i.l.bf16 %v19125_v26  ;;  %18426 = vmatprep.subr.msk.bf16.mxu1 %vm20864_vm2, %v22407_v11 }
0x2f74   :  { %18423 = vmatpush3.bf16.xpose.msk.msra.mxu0 %vm20864_vm2, %v22402_v45  ;;  %18429 = vmatpush3.bf16.xpose.msk.msra.mxu1 %vm20864_vm2, %v22407_v11 }
0x2f75   :  { %v22420_v23 = vpack.c.bf16 %v19127_v42, %v19126_v54  ;;  %18432 = vmatprep.subr.msk.bf16.mxu1 %vm20864_vm2, %v22409_v29 }
0x2f76   :  { %v19135_v44 = vpop.permute.xlu1 %19134 }
0x2f77   :  { %v19137_v55 = vunpack.i.h.bf16 %v19135_v44  ;;  %v19136_v37 = vunpack.i.l.bf16 %v19135_v44  ;;  %18438 = vmatprep.subr.msk.bf16.mxu0 %vm20864_vm2, %v22420_v23 }
0x2f79   :  { %v22428_v34 = vpack.c.bf16 %v19137_v55, %v19136_v37 }
0x2f7a   :  { %v19145_v0 = vpop.permute.xlu1 %19144 }
0x2f7b   :  { %17306 = vmatmul.mubr.msk.f32.vlgmr.msra.gmra.mrb[80].mxu0 %vm845_vm1, %v22384_v13  ;;  %v19147_v21 = vunpack.i.h.bf16 %v19145_v0  ;;  %v19146_v18 = vunpack.i.l.bf16 %v19145_v0 }
0x2f7c   :  { %18435 = vmatpush3.bf16.xpose.msk.msra.mxu1 %vm20864_vm2, %v22409_v29  ;;  %18441 = vmatpush3.bf16.xpose.msk.msra.mxu0 %vm20864_vm2, %v22420_v23 }
0x2f7d   :  { %17327 = vmatprep.mubr.msk.f32.mxu0 %vm845_vm1, %v22346_v4  ;;  %18444 = vmatprep.subr.msk.bf16.mxu0 %vm20864_vm2, %v22428_v34  ;;  %v22446_v60 = vpack.c.bf16 %v19147_v21, %v19146_v18 }
0x2f7e   :  { %18449 = vmatprep.subr.bf16.mxu1 %v22432_v2 }
0x2f83   :  { %17317 = vmatmul.mubr.msk.f32.vlgmr.msra.gmra.mrb[68].mxu1 %vm845_vm1, %v22384_v13 }
0x2f84   :  { %18447 = vmatpush3.bf16.xpose.msk.msra.mxu0 %vm20864_vm2, %v22428_v34  ;;  %18451 = vmatpush3.bf16.msra.mxu1 %v22432_v2 }
0x2f85   :  { %18453 = vmatprep.subr.bf16.mxu1 %v22446_v60  ;;  %18482 = vmatprep.subr.msk.bf16.mxu0 %vm20864_vm2, %v22354_v7 }
0x2f88   :  { %18455 = vmatpush3.bf16.msra.mxu1 %v22446_v60 }
0x2f8b   :  { %17328 = vmatmul.mubr.msk.f32.vlgmr.msra.gmra.mrb[82].mxu0 %vm845_vm1, %v22384_v13 }
0x2f8c   :  { %18485 = vmatpush3.bf16.xpose.msk.msra.mxu0 %vm20864_vm2, %v22354_v7 }
0x2f8d   :  { %18488 = vmatprep.subr.msk.bf16.mxu0 %vm20864_vm2, %v22366_v20 }
0x2f94   :  { %18491 = vmatpush3.bf16.xpose.msk.msra.mxu0 %vm20864_vm2, %v22366_v20 }
0x2f95   :  { %18494 = vmatprep.subr.msk.bf16.mxu0 %vm20864_vm2, %v22394_v30 }
0x2fd7   :  { %v17296_v24 = vpop.f32.mrb[66].mxu1 }
0x2fd8   :  { %v11504_v36 = vpop.f32.mrb[67].mxu1  ;;  %v11510_v1 = vadd.f32 %v22474_v31, %v17296_v24 }
0x2fd9   :  { %v11505_v47 = vadd.f32 %v22478_v62, %v11504_v36 }
0x304e   :  { %v17307_v43 = vpop.f32.mrb[80].mxu0 }
0x304f   :  { %v11595_v40 = vpop.f32.mrb[81].mxu0  ;;  %v11601_v25 = vadd.f32 %v22474_v31, %v17307_v43 }
0x3050   :  { %v11596_v28 = vadd.f32 %v22478_v62, %v11595_v40 }
0x3051   :  { %v11787_v61 = vmax.f32 %v11510_v1, %v11601_v25 }
0x3052   :  { %v11786_v39 = vmax.f32 %v11505_v47, %v11596_v28 }
0x3056   :  { %v17318_v15 = vpop.f32.mrb[68].mxu1 }
0x3057   :  { %v11686_v49 = vpop.f32.mrb[69].mxu1  ;;  %v22483_v16 = vadd.f32 %v22474_v31, %v17318_v15 }
0x3058   :  { %v11687_v48 = vadd.f32 %v22478_v62, %v11686_v49 }
0x3059   :  { %v11789_v19 = vmax.f32 %v11787_v61, %v22483_v16 }
0x305a   :  { %v11788_v50 = vmax.f32 %v11786_v39, %v11687_v48 }
0x305e   :  { %v17329_v6 = vpop.f32.mrb[82].mxu0 }
0x305f   :  { %v22489_v38 = vadd.f32 %v22474_v31, %v17329_v6  ;;  %v11777_v5 = vpop.f32.mrb[83].mxu0 }
0x3060   :  { %v22492_v17 = vadd.f32 %v22478_v62, %v11777_v5 }
0x3061   :  { %v11791_v33 = vmax.f32 %v11789_v19, %v22489_v38 }
0x3062   :  { %v11790_v14 = vmax.f32 %v11788_v50, %v22492_v17 }
0x3063   :  { %v11795_v63 = vsel %vm601_vm0, %v11791_v33, -inf }
0x3064   :  { %11796 = vmax.xlane.f32.xlu1 %v11795_v63  ;;  %v11792_v3 = vsel %vm601_vm0, %v11790_v14, -inf }
0x3065   :  { %11793 = vmax.xlane.f32.xlu0 %v11792_v3 }
0x3075   :  { %19154 = vrot.lane.b32.xlu1 %v22364_v57, %s20415_s22 }
0x3079   :  { %19164 = vrot.lane.b32.xlu1 %v22364_v57, %s20416_s24 }
0x307b   :  { %19149 = vrot.lane.b32.xlu0 %v22352_v8, %s20415_s22 }
0x307d   :  { %12232 = vrot.lane.b32.xlu1 %v22346_v4, %s20421_s4 }
0x307f   :  { %19159 = vrot.lane.b32.xlu0 %v22352_v8, %s20416_s24 }
0x3081   :  { %19174 = vrot.lane.b32.xlu1 %v22364_v57, %s20417_s9 }
0x3083   :  { %19169 = vrot.lane.b32.xlu0 %v22352_v8, %s20417_s9 }
0x3087   :  { %12234 = vrot.lane.b32.xlu0 %v22384_v13, %s20421_s4 }
0x30f1   :  { %v22514_v22 = vpop.xlane.xlu1 %11796 }
0x30f2   :  { %v11794_v53 = vpop.xlane.xlu0 %11793  ;;  %v11805_v32 = vsub.f32 %v11601_v25, %v22514_v22  ;;  %v11799_v44 = vsub.f32 %v11510_v1, %v22514_v22  ;;  %v11811_v36 = vsub.f32 %v22483_v16, %v22514_v22  ;;  %v11817_v6 = vsub.f32 %v22489_v38, %v22514_v22 }
0x30f3   :  { %v11804_v59 = vsub.f32 %v11596_v28, %v11794_v53  ;;  %v11798_v58 = vsub.f32 %v11505_v47, %v11794_v53  ;;  %v11810_v55 = vsub.f32 %v11687_v48, %v11794_v53  ;;  %v11816_v40 = vsub.f32 %v22492_v17, %v11794_v53 }
0x30f4   :  { %v11808_v42 = vmul.f32 1.442695, %v11805_v32  ;;  %v11802_v46 = vmul.f32 1.442695, %v11799_v44  ;;  %v11814_v16 = vmul.f32 1.442695, %v11811_v36 }
0x30f5   :  { %v19155_v51 = vpop.permute.xlu1 %19154  ;;  %v11806_v9 = vmul.f32 1.442695, %v11804_v59  ;;  %v11800_v57 = vmul.f32 1.442695, %v11798_v58  ;;  %v11812_v0 = vmul.f32 1.442695, %v11810_v55 }
0x30f6   :  { %v19150_v27 = vpop.permute.xlu0 %19149  ;;  %v19157_v18 = vunpack.i.h.bf16 %v19155_v51  ;;  %v19156_v24 = vunpack.i.l.bf16 %v19155_v51  ;;  %v11818_v47 = vmul.f32 1.442695, %v11816_v40  ;;  %v11820_v33 = vmul.f32 1.442695, %v11817_v6 }
0x30f7   :  { %v19152_v35 = vunpack.i.h.bf16 %v19150_v27  ;;  %v19151_v26 = vunpack.i.l.bf16 %v19150_v27  ;;  %19450 = vpow2.f32 %v11806_v9 }
0x30f8   :  { %19452 = vpow2.f32 %v11808_v42  ;;  %v22548_v25 = vpack.c.bf16 %v19157_v18, %v19156_v24 }
0x30f9   :  { %v22517_v54 = vpack.c.bf16 %v19152_v35, %v19151_v26  ;;  %v19165_v8 = vpop.permute.xlu1 %19164  ;;  %19454 = vpow2.f32 %v11800_v57 }
0x30fa   :  { %v19160_v12 = vpop.permute.xlu0 %19159  ;;  %19456 = vpow2.f32 %v11802_v46  ;;  %v19167_v48 = vunpack.i.h.bf16 %v19165_v8  ;;  %v19166_v61 = vunpack.i.l.bf16 %v19165_v8 }
0x30fb   :  { %18457 = vmatprep.subr.bf16.mxu1 %v22517_v54  ;;  %19458 = vpow2.f32 %v11812_v0  ;;  %v19162_v28 = vunpack.i.h.bf16 %v19160_v12  ;;  %v19161_v1 = vunpack.i.l.bf16 %v19160_v12 }
0x30fc   :  { %19460 = vpow2.f32 %v11814_v16  ;;  %v22572_v50 = vpack.c.bf16 %v19167_v48, %v19166_v61 }
0x30fd   :  { %v22521_v37 = vpop.permute.xlu1 %12232  ;;  %v22556_v39 = vpack.c.bf16 %v19162_v28, %v19161_v1  ;;  %19462 = vpow2.f32 %v11818_v47 }
0x30fe   :  { %17382 = vmatprep.mubr.msk.f32.mxu0 %vm845_vm1, %v22521_v37  ;;  %v19170_v10 = vpop.permute.xlu0 %19169  ;;  %19464 = vpow2.f32 %v11820_v33 }
0x30ff   :  { %v19172_v38 = vunpack.i.h.bf16 %v19170_v10  ;;  %v19171_v17 = vunpack.i.l.bf16 %v19170_v10 }
0x3101   :  { %v22536_v43 = vpop.eup %19450  ;;  %v19175_v14 = vpop.permute.xlu1 %19174  ;;  %v22580_v63 = vpack.c.bf16 %v19172_v38, %v19171_v17 }
0x3102   :  { %v22525_v21 = vpop.permute.xlu0 %12234  ;;  %v22542_v15 = vpop.eup %19452  ;;  %17338 = vmatprep.mubr.msk.f32.mxu1 %vm601_vm0, %v22536_v43  ;;  %v19177_v3 = vunpack.i.h.bf16 %v19175_v14  ;;  %v19176_v22 = vunpack.i.l.bf16 %v19175_v14  ;;  %v11828_v6 = vsel %vm601_vm0, %v22536_v43, 0.0 }
0x3103   :  { %17383 = vmatmul.mubr.msk.f32.vlgmr.msra.gmra.mrb[84].mxu0 %vm845_vm1, %v22525_v21  ;;  %v22546_v49 = vpop.eup %19454  ;;  %17339 = vmatmul.mubr.msk.f32.vlgmr.msra.gmra.mrb[70].mxu1 %vm601_vm0, %v22542_v15  ;;  %v11831_v17 = vsel %vm601_vm0, %v22542_v15, 0.0 }
0x3104   :  { %18497 = vmatpush3.bf16.xpose.msk.msra.mxu0 %vm20864_vm2, %v22394_v30  ;;  %17393 = vmatprep.mubr.msk.f32.mxu0 %vm845_vm1, %v22521_v37  ;;  %v22568_v19 = vpop.eup %19456  ;;  %v22598_v32 = vpack.c.bf16 %v19177_v3, %v19176_v22  ;;  %v11822_v38 = vsel %vm601_vm0, %v22546_v49, 0.0 }
0x3105   :  { %18500 = vmatprep.subr.msk.bf16.mxu0 %vm20864_vm2, %v22402_v45  ;;  %18459 = vmatpush3.bf16.msra.mxu1 %v22517_v54  ;;  %v22570_v5 = vpop.eup %19458  ;;  %v11825_v33 = vsel %vm601_vm0, %v22568_v19, 0.0 }
0x3106   :  { %17349 = vmatprep.mubr.msk.f32.mxu1 %vm601_vm0, %v22546_v49  ;;  %18461 = vmatprep.subr.bf16.mxu1 %v22548_v25  ;;  %v22591_v53 = vpop.eup %19460 }
0x3107   :  { %v22596_v59 = vpop.eup %19462 }
0x3108   :  { %v22613_v58 = vpop.eup %19464 }
0x3109   :  { %18463 = vmatpush3.bf16.msra.mxu1 %v22548_v25 }
0x310a   :  { %18465 = vmatprep.subr.bf16.mxu1 %v22556_v39 }
0x310c   :  { %18503 = vmatpush3.bf16.xpose.msk.msra.mxu0 %vm20864_vm2, %v22402_v45  ;;  %17350 = vmatmul.mubr.msk.f32.vlgmr.msra.gmra.mrb[70].mxu1 %vm601_vm0, %v22568_v19 }
0x310d   :  { %18518 = vmatprep.subr.msk.bf16.mxu0 %vm20864_vm2, %v22420_v23  ;;  %18467 = vmatpush3.bf16.msra.mxu1 %v22556_v39 }
0x310e   :  { %17360 = vmatprep.mubr.msk.f32.mxu1 %vm601_vm0, %v22570_v5  ;;  %18469 = vmatprep.subr.bf16.mxu1 %v22572_v50 }
0x3111   :  { %18471 = vmatpush3.bf16.msra.mxu1 %v22572_v50 }
0x3112   :  { %18473 = vmatprep.subr.bf16.mxu1 %v22580_v63 }
0x3113   :  { %17394 = vmatmul.mubr.msk.f32.vlgmr.msra.gmra.mrb[86].mxu0 %vm845_vm1, %v22525_v21 }
0x3114   :  { %18521 = vmatpush3.bf16.xpose.msk.msra.mxu0 %vm20864_vm2, %v22420_v23  ;;  %17415 = vmatprep.mubr.msk.f32.mxu0 %vm845_vm1, %v22521_v37 }
0x3115   :  { %18524 = vmatprep.subr.msk.bf16.mxu0 %vm20864_vm2, %v22428_v34  ;;  %17361 = vmatmul.mubr.msk.f32.vlgmr.msra.gmra.mrb[70].mxu1 %vm601_vm0, %v22591_v53 }
0x3116   :  { %18475 = vmatpush3.bf16.msra.mxu1 %v22580_v63  ;;  %17371 = vmatprep.mubr.msk.f32.mxu1 %vm601_vm0, %v22596_v59 }
0x3117   :  { %18477 = vmatprep.subr.bf16.mxu1 %v22598_v32 }
0x311a   :  { %18479 = vmatpush3.bf16.msra.mxu1 %v22598_v32 }
0x311b   :  { %18506 = vmatprep.subr.msk.bf16.mxu1 %vm20864_vm2, %v22407_v11 }
0x311c   :  { %18527 = vmatpush3.bf16.xpose.msk.msra.mxu0 %vm20864_vm2, %v22428_v34 }
0x311d   :  { %17372 = vmatmul.mubr.msk.f32.vlgmr.msra.gmra.mrb[70].mxu1 %vm601_vm0, %v22613_v58 }
0x311e   :  { %17404 = vmatprep.mubr.msk.f32.mxu1 %vm845_vm1, %v22521_v37 }
0x3123   :  { %17416 = vmatmul.mubr.msk.f32.vlgmr.msra.gmra.mrb[88].mxu0 %vm845_vm1, %v22525_v21  ;;  %18509 = vmatpush3.bf16.xpose.msk.msra.mxu1 %vm20864_vm2, %v22407_v11 }
0x3124   :  { %18512 = vmatprep.subr.msk.bf16.mxu1 %vm20864_vm2, %v22409_v29 }
0x312b   :  { %18515 = vmatpush3.bf16.xpose.msk.msra.mxu1 %vm20864_vm2, %v22409_v29 }
0x312c   :  { %18529 = vmatprep.subr.bf16.mxu1 %v22432_v2 }
0x3132   :  { %17405 = vmatmul.mubr.msk.f32.vlgmr.msra.gmra.mrb[72].mxu1 %vm845_vm1, %v22525_v21 }
0x3133   :  { %18531 = vmatpush3.bf16.msra.mxu1 %v22432_v2 }
0x3134   :  { %18533 = vmatprep.subr.bf16.mxu1 %v22446_v60 }
0x3137   :  { %18535 = vmatpush3.bf16.msra.mxu1 %v22446_v60 }
0x3138   :  { %18537 = vmatprep.subr.bf16.mxu1 %v22517_v54 }
0x31d6   :  { %v17384_v51 = vpop.f32.mrb[84].mxu0 }
0x31d7   :  { %v12306_v27 = vpop.f32.mrb[85].mxu0  ;;  %v12312_v55 = vadd.f32 %v22474_v31, %v17384_v51 }
0x31d8   :  { %v12307_v37 = vadd.f32 %v22478_v62, %v12306_v27 }
0x31e6   :  { %v17395_v9 = vpop.f32.mrb[86].mxu0 }
0x31e7   :  { %v12381_v35 = vpop.f32.mrb[87].mxu0  ;;  %v12387_v12 = vadd.f32 %v22474_v31, %v17395_v9 }
0x31e8   :  { %v12382_v44 = vadd.f32 %v22478_v62, %v12381_v35 }
0x31e9   :  { %v12541_v46 = vmax.f32 %v12312_v55, %v12387_v12 }
0x31ea   :  { %v12540_v18 = vmax.f32 %v12307_v37, %v12382_v44 }
0x31f0   :  { %v22637_v26 = vpop.f32.mrb[70].mxu1 }
0x31f1   :  { %v22639_v42 = vpop.f32.mrb[71].mxu1 }
0x31f6   :  { %v17417_v57 = vpop.f32.mrb[88].mxu0 }
0x31f7   :  { %v12531_v8 = vpop.f32.mrb[89].mxu0  ;;  %v12537_v36 = vadd.f32 %v22474_v31, %v17417_v57 }
0x31f8   :  { %v12532_v28 = vadd.f32 %v22478_v62, %v12531_v8 }
0x3205   :  { %v17406_v10 = vpop.f32.mrb[72].mxu1 }
0x3206   :  { %v12462_v0 = vadd.f32 %v22474_v31, %v17406_v10  ;;  %v12456_v21 = vpop.f32.mrb[73].mxu1 }
0x3207   :  { %v12457_v24 = vadd.f32 %v22478_v62, %v12456_v21 }
0x3208   :  { %v12543_v40 = vmax.f32 %v12541_v46, %v12462_v0 }
0x3209   :  { %v12542_v1 = vmax.f32 %v12540_v18, %v12457_v24 }
0x320a   :  { %v12545_v16 = vmax.f32 %v12543_v40, %v12537_v36 }
0x320b   :  { %v12544_v47 = vmax.f32 %v12542_v1, %v12532_v28 }
0x320c   :  { %v12549_v48 = vsel %vm601_vm0, %v12545_v16, -inf }
0x320d   :  { %12550 = vmax.xlane.f32.xlu1 %v12549_v48  ;;  %v12546_v61 = vsel %vm601_vm0, %v12544_v47, -inf }
0x320e   :  { %12547 = vmax.xlane.f32.xlu0 %v12546_v61 }
0x3211   :  { %11829 = vadd.xlane.f32.xlu1 %v11828_v6 }
0x3212   :  { %11823 = vadd.xlane.f32.xlu0 %v11822_v38 }
0x3215   :  { %11832 = vadd.xlane.f32.xlu1 %v11831_v17 }
0x3216   :  { %11826 = vadd.xlane.f32.xlu0 %v11825_v33 }
0x329a   :  { %v12551_v14 = vpop.xlane.xlu1 %12550 }
0x329b   :  { %v12553_v3 = vsub.f32 %v12312_v55, %v12551_v14  ;;  %v12559_v22 = vsub.f32 %v12387_v12, %v12551_v14  ;;  %v12565_v51 = vsub.f32 %v12462_v0, %v12551_v14  ;;  %v12548_v27 = vpop.xlane.xlu0 %12547  ;;  %v12571_v49 = vsub.f32 %v12537_v36, %v12551_v14 }
0x329c   :  { %v12552_v9 = vsub.f32 %v12307_v37, %v12548_v27  ;;  %v12558_v43 = vsub.f32 %v12382_v44, %v12548_v27  ;;  %v12564_v19 = vsub.f32 %v12457_v24, %v12548_v27  ;;  %v12570_v37 = vsub.f32 %v12532_v28, %v12548_v27 }
0x329d   :  { %v12556_v35 = vmul.f32 1.442695, %v12553_v3  ;;  %v12562_v57 = vmul.f32 1.442695, %v12559_v22  ;;  %v12568_v8 = vmul.f32 1.442695, %v12565_v51 }
0x329e   :  { %v11830_v10 = vpop.xlane.xlu1 %11829  ;;  %v12554_v46 = vmul.f32 1.442695, %v12552_v9  ;;  %v12560_v21 = vmul.f32 1.442695, %v12558_v43  ;;  %v12574_v55 = vmul.f32 1.442695, %v12571_v49 }
0x329f   :  { %19466 = vpow2.f32 %v12556_v35  ;;  %v11824_v15 = vpop.xlane.xlu0 %11823  ;;  %v12566_v12 = vmul.f32 1.442695, %v12564_v19  ;;  %v12572_v0 = vmul.f32 1.442695, %v12570_v37  ;;  %v11839_v3 = vsel %vm601_vm0, %v22591_v53, 0.0 }
0x32a0   :  { %19468 = vpow2.f32 %v12562_v57  ;;  %v22659_v18 = vadd.f32 %v11830_v10, %v11824_v15  ;;  %v11847_v51 = vsel %vm601_vm0, %v22613_v58, 0.0  ;;  %v11836_v53 = vsel %vm601_vm0, %v22570_v5, 0.0  ;;  %v7843_v5 = vld [vmem:[#allocation40 + $0x8] sm:$0xff] }
0x32a1   :  { %19470 = vpow2.f32 %v12568_v8  ;;  %v11844_v58 = vsel %vm601_vm0, %v22596_v59, 0.0  ;;  %17462 = vmatprep.subr.mxu0 %v7843_v5  ;;  %v7842_v59 = vld [vmem:[#allocation40] sm:$0xff] }
0x32a2   :  { %19472 = vpow2.f32 %v12554_v46  ;;  %17463 = vmatpush3.msra.mxu0 %v7843_v5  ;;  %v11833_v9 = vpop.xlane.xlu1 %11832 }
0x32a3   :  { %19474 = vpow2.f32 %v12560_v21  ;;  %17467 = vmatprep.subr.mxu0 %v7842_v59  ;;  %v11827_v27 = vpop.xlane.xlu0 %11826 }
0x32a4   :  { %19476 = vpow2.f32 %v12574_v55 }
0x32a5   :  { %19478 = vpow2.f32 %v12566_v12 }
0x32a6   :  { %19480 = vpow2.f32 %v12572_v0 }
0x32a9   :  { %v19467_v44 = vpop.eup %19466 }
0x32aa   :  { %v19469_v36 = vpop.eup %19468  ;;  %v12579_v40 = vsel %vm601_vm0, %v19467_v44, 0.0 }
0x32ab   :  { %v12585_v1 = vsel %vm601_vm0, %v19469_v36, 0.0  ;;  %12580 = vadd.xlane.f32.xlu0 %v12579_v40  ;;  %v19471_v16 = vpop.eup %19470 }
0x32ac   :  { %12586 = vadd.xlane.f32.xlu1 %v12585_v1  ;;  %v19473_v47 = vpop.eup %19472  ;;  %v12593_v28 = vsel %vm601_vm0, %v19471_v16, 0.0 }
0x32ad   :  { %v19475_v24 = vpop.eup %19474  ;;  %v12576_v48 = vsel %vm601_vm0, %v19473_v47, 0.0 }
0x32ae   :  { %17426 = vmatprep.mubr.msk.f32.mxu1 %vm601_vm0, %v19475_v24  ;;  %v19477_v61 = vpop.eup %19476  ;;  %v12582_v6 = vsel %vm601_vm0, %v19475_v24, 0.0 }
0x32af   :  { %12577 = vadd.xlane.f32.xlu0 %v12576_v48  ;;  %17427 = vmatmul.mubr.msk.f32.vlgmr.msra.gmra.mrb[74].mxu1 %vm601_vm0, %v19469_v36  ;;  %v19479_v38 = vpop.eup %19478  ;;  %v12601_v17 = vsel %vm601_vm0, %v19477_v61, 0.0 }
0x32b0   :  { %12594 = vadd.xlane.f32.xlu1 %v12593_v28  ;;  %18539 = vmatpush3.bf16.msra.mxu1 %v22517_v54  ;;  %v12590_v33 = vsel %vm601_vm0, %v19479_v38, 0.0  ;;  %v19481_v14 = vpop.eup %19480 }
0x32b1   :  { %17437 = vmatprep.mubr.msk.f32.mxu1 %vm601_vm0, %v19473_v47  ;;  %18541 = vmatprep.subr.bf16.mxu1 %v22548_v25  ;;  %v12598_v22 = vsel %vm601_vm0, %v19481_v14, 0.0 }
0x32b3   :  { %12583 = vadd.xlane.f32.xlu0 %v12582_v6 }
0x32b4   :  { %12602 = vadd.xlane.f32.xlu1 %v12601_v17  ;;  %18543 = vmatpush3.bf16.msra.mxu1 %v22548_v25 }
0x32b5   :  { %18545 = vmatprep.subr.bf16.mxu1 %v22556_v39 }
0x32b7   :  { %12591 = vadd.xlane.f32.xlu0 %v12590_v33  ;;  %17438 = vmatmul.mubr.msk.f32.vlgmr.msra.gmra.mrb[74].mxu1 %vm601_vm0, %v19467_v44  ;;  %v11835_v44 = vadd.f32 %v11833_v9, %v11827_v27 }
0x32b8   :  { %11840 = vadd.xlane.f32.xlu1 %v11839_v3  ;;  %18547 = vmatpush3.bf16.msra.mxu1 %v22556_v39 }
0x32b9   :  { %17448 = vmatprep.mubr.msk.f32.mxu1 %vm601_vm0, %v19479_v38  ;;  %18549 = vmatprep.subr.bf16.mxu1 %v22572_v50 }
0x32bb   :  { %12599 = vadd.xlane.f32.xlu0 %v12598_v22 }
0x32bc   :  { %11848 = vadd.xlane.f32.xlu1 %v11847_v51  ;;  %18551 = vmatpush3.bf16.msra.mxu1 %v22572_v50 }
0x32bd   :  { %18553 = vmatprep.subr.bf16.mxu1 %v22580_v63 }
0x32bf   :  { %11837 = vadd.xlane.f32.xlu0 %v11836_v53  ;;  %17449 = vmatmul.mubr.msk.f32.vlgmr.msra.gmra.mrb[74].mxu1 %vm601_vm0, %v19471_v16 }
0x32c0   :  { %18555 = vmatpush3.bf16.msra.mxu1 %v22580_v63  ;;  %17459 = vmatprep.mubr.msk.f32.mxu1 %vm601_vm0, %v19481_v14 }
0x32c1   :  { %18557 = vmatprep.subr.bf16.mxu1 %v22598_v32 }
0x32c3   :  { %11845 = vadd.xlane.f32.xlu0 %v11844_v58 }
0x32c4   :  { %18559 = vmatpush3.bf16.msra.mxu1 %v22598_v32 }
0x32c5   :  { %18586 = vmatprep.subr.msk.bf16.mxu1 %vm20864_vm2, %v22407_v11 }
0x32c7   :  { %17460 = vmatmul.mubr.msk.f32.vlgmr.msra.gmra.mrb[74].mxu1 %vm601_vm0, %v19477_v61 }
0x32cd   :  { %13102 = vrot.lane.b32.xlu1 %v22384_v13, %s20423_s1  ;;  %18589 = vmatpush3.bf16.xpose.msk.msra.mxu1 %vm20864_vm2, %v22407_v11 }
0x32ce   :  { %18592 = vmatprep.subr.msk.bf16.mxu1 %vm20864_vm2, %v22409_v29 }
0x32d5   :  { %18595 = vmatpush3.bf16.xpose.msk.msra.mxu1 %vm20864_vm2, %v22409_v29 }
0x32d6   :  { %18609 = vmatprep.subr.bf16.mxu1 %v22432_v2 }
0x32d9   :  { %13100 = vrot.lane.b32.xlu0 %v22346_v4, %s20423_s1 }
0x3338   :  { %v12581_v43 = vpop.xlane.xlu0 %12580 }
0x3339   :  { %v12587_v35 = vpop.xlane.xlu1 %12586 }
0x333a   :  { %v12589_v57 = vadd.f32 %v12587_v35, %v12581_v43 }
0x333c   :  { %v12578_v8 = vpop.xlane.xlu0 %12577 }
0x333d   :  { %v12595_v49 = vpop.xlane.xlu1 %12594 }
0x333e   :  { %v12597_v10 = vadd.f32 %v12595_v49, %v12589_v57 }
0x3340   :  { %v12584_v46 = vpop.xlane.xlu0 %12583 }
0x3341   :  { %v12603_v15 = vpop.xlane.xlu1 %12602  ;;  %v12588_v21 = vadd.f32 %v12584_v46, %v12578_v8 }
0x3342   :  { %v12605_v19 = vadd.f32 %v12603_v15, %v12597_v10 }
0x3344   :  { %v12592_v55 = vpop.xlane.xlu0 %12591 }
0x3345   :  { %v11841_v12 = vpop.xlane.xlu1 %11840  ;;  %v12596_v37 = vadd.f32 %v12592_v55, %v12588_v21 }
0x3346   :  { %v11843_v0 = vadd.f32 %v11841_v12, %v11835_v44 }
0x3348   :  { %v12600_v36 = vpop.xlane.xlu0 %12599 }
0x3349   :  { %v11849_v40 = vpop.xlane.xlu1 %11848  ;;  %v12604_v1 = vadd.f32 %v12600_v36, %v12596_v37 }
0x334a   :  { %v11851_v16 = vadd.f32 %v11849_v40, %v11843_v0 }
0x334c   :  { %19482 = vrcp.f32 %v11851_v16  ;;  %v11838_v47 = vpop.xlane.xlu0 %11837 }
0x334d   :  { %v11842_v24 = vadd.f32 %v11838_v47, %v22659_v18  ;;  %v13103_v6 = vpop.permute.xlu1 %13102 }
0x3350   :  { %v11846_v48 = vpop.xlane.xlu0 %11845 }
0x3351   :  { %v11850_v28 = vadd.f32 %v11846_v48, %v11842_v24 }
0x3353   :  { %19484 = vrcp.f32 %v11850_v28 }
0x3354   :  { %v13101_v61 = vpop.permute.xlu0 %13100  ;;  %19486 = vrcp.f32 %v12605_v19 }
0x3355   :  { %17502 = vmatprep.mubr.msk.f32.mxu1 %vm845_vm1, %v13101_v61  ;;  %19488 = vrcp.f32 %v12604_v1 }
0x3356   :  { %v19483_v38 = vpop.eup %19482  ;;  %17503 = vmatmul.mubr.msk.f32.vlgmr.msra.gmra.mrb[76].mxu1 %vm845_vm1, %v13103_v6 }
0x3357   :  { %18611 = vmatpush3.bf16.msra.mxu1 %v22432_v2  ;;  %v12231_v17 = vmul.f32 %v19483_v38, %v22637_v26  ;;  %v7844_v26 = vld [vmem:[#allocation40 + $0x10] sm:$0xff] }
0x3358   :  { %18613 = vmatprep.subr.bf16.mxu1 %v22446_v60 }
0x335b   :  { %18615 = vmatpush3.bf16.msra.mxu1 %v22446_v60 }
0x335c   :  { %18617 = vmatprep.subr.bf16.mxu1 %v22517_v54 }
0x335d   :  { %v19485_v18 = vpop.eup %19484 }
0x335e   :  { %v12230_v33 = vmul.f32 %v19485_v18, %v22639_v42  ;;  %v19487_v14 = vpop.eup %19486 }
0x335f   :  { %v19489_v22 = vpop.eup %19488 }
0x339a   :  { %v17461_v3 = vpop.f32.mrb[74].mxu1 }
0x339b   :  { %v12937_v51 = vmul.f32 %v19487_v14, %v17461_v3  ;;  %v12925_v53 = vpop.f32.mrb[75].mxu1 }
0x339c   :  { %v12936_v58 = vmul.f32 %v19489_v22, %v12925_v53 }
0x339e   :  { %17464 = vmatprep.mubr.msk.f32.mxu0 %vm845_vm1, %v12936_v58 }
0x339f   :  { %17465 = vmatmul.mubr.msk.f32.vlgmr.msra.gmra.mrb[90].mxu0 %vm845_vm1, %v12937_v51 }
0x33a0   :  { %17468 = vmatpush3.msra.mxu0 %v7842_v59  ;;  %17469 = vmatprep.mubr.msk.f32.mxu0 %vm845_vm1, %v12230_v33 }
0x33a1   :  { %18562 = vmatprep.subr.msk.bf16.mxu0 %vm20864_vm2, %v22354_v7 }
0x33a7   :  { %17470 = vmatmul.mubr.msk.f32.vlgmr.msra.gmra.mrb[90].mxu0 %vm845_vm1, %v12231_v17 }
0x33a8   :  { %18565 = vmatpush3.bf16.xpose.msk.msra.mxu0 %vm20864_vm2, %v22354_v7  ;;  %17480 = vmatprep.mubr.msk.f32.mxu0 %vm845_vm1, %v13101_v61 }
0x33a9   :  { %18568 = vmatprep.subr.msk.bf16.mxu0 %vm20864_vm2, %v22366_v20 }
0x33b0   :  { %18571 = vmatpush3.bf16.xpose.msk.msra.mxu0 %vm20864_vm2, %v22366_v20 }
0x33b1   :  { %18574 = vmatprep.subr.msk.bf16.mxu0 %vm20864_vm2, %v22394_v30 }
0x33b7   :  { %17481 = vmatmul.mubr.msk.f32.vlgmr.msra.gmra.mrb[92].mxu0 %vm845_vm1, %v13103_v6 }
0x33b8   :  { %18577 = vmatpush3.bf16.xpose.msk.msra.mxu0 %vm20864_vm2, %v22394_v30  ;;  %17491 = vmatprep.mubr.msk.f32.mxu0 %vm845_vm1, %v13101_v61 }
0x33b9   :  { %18580 = vmatprep.subr.msk.bf16.mxu0 %vm20864_vm2, %v22402_v45 }
0x33c0   :  { %18583 = vmatpush3.bf16.xpose.msk.msra.mxu0 %vm20864_vm2, %v22402_v45 }
0x33c1   :  { %18598 = vmatprep.subr.msk.bf16.mxu0 %vm20864_vm2, %v22420_v23 }
0x33c7   :  { %17492 = vmatmul.mubr.msk.f32.vlgmr.msra.gmra.mrb[94].mxu0 %vm845_vm1, %v13103_v6 }
0x33c8   :  { %18601 = vmatpush3.bf16.xpose.msk.msra.mxu0 %vm20864_vm2, %v22420_v23  ;;  %17513 = vmatprep.mubr.msk.f32.mxu0 %vm845_vm1, %v13101_v61 }
0x33c9   :  { %18604 = vmatprep.subr.msk.bf16.mxu0 %vm20864_vm2, %v22428_v34 }
0x33d0   :  { %18607 = vmatpush3.bf16.xpose.msk.msra.mxu0 %vm20864_vm2, %v22428_v34 }
0x33d1   :  { %17560 = vmatprep.subr.mxu0 %v7844_v26 }
0x33d7   :  { %17514 = vmatmul.mubr.msk.f32.vlgmr.msra.gmra.mrb[96].mxu0 %vm845_vm1, %v13103_v6 }
0x33d8   :  { %17561 = vmatpush3.msra.mxu0 %v7844_v26 }
0x33d9   :  { %18642 = vmatprep.subr.msk.bf16.mxu0 %vm20864_vm2, %v22354_v7 }
0x3429   :  { %v17504_v42 = vpop.f32.mrb[76].mxu1 }
0x342a   :  { %v13324_v5 = vpop.f32.mrb[77].mxu1  ;;  %v13330_v15 = vadd.f32 %v22474_v31, %v17504_v42 }
0x342b   :  { %v13325_v21 = vadd.f32 %v22478_v62, %v13324_v5 }
0x348a   :  { %v17482_v59 = vpop.f32.mrb[92].mxu0 }
0x348b   :  { %v13174_v27 = vpop.f32.mrb[93].mxu0  ;;  %v13180_v8 = vadd.f32 %v22474_v31, %v17482_v59 }
0x348c   :  { %v13175_v49 = vadd.f32 %v22478_v62, %v13174_v27 }
0x349a   :  { %v17493_v9 = vpop.f32.mrb[94].mxu0 }
0x349b   :  { %v13249_v43 = vpop.f32.mrb[95].mxu0  ;;  %v13255_v35 = vadd.f32 %v22474_v31, %v17493_v9 }
0x349c   :  { %v13250_v57 = vadd.f32 %v22478_v62, %v13249_v43 }
0x349d   :  { %v13409_v10 = vmax.f32 %v13180_v8, %v13255_v35 }
0x349e   :  { %v13408_v46 = vmax.f32 %v13175_v49, %v13250_v57 }
0x349f   :  { %v13411_v12 = vmax.f32 %v13409_v10, %v13330_v15 }
0x34a0   :  { %v13410_v0 = vmax.f32 %v13408_v46, %v13325_v21 }
0x34aa   :  { %v17515_v19 = vpop.f32.mrb[96].mxu0 }
0x34ab   :  { %v13405_v55 = vadd.f32 %v22474_v31, %v17515_v19  ;;  %v13399_v37 = vpop.f32.mrb[97].mxu0 }
0x34ac   :  { %v13400_v44 = vadd.f32 %v22478_v62, %v13399_v37 }
0x34ad   :  { %v13413_v36 = vmax.f32 %v13411_v12, %v13405_v55 }
0x34ae   :  { %v13412_v40 = vmax.f32 %v13410_v0, %v13400_v44 }
0x34af   :  { %v13417_v1 = vsel %vm601_vm0, %v13413_v36, -inf }
0x34b0   :  { %13418 = vmax.xlane.f32.xlu0 %v13417_v1  ;;  %v13414_v16 = vsel %vm601_vm0, %v13412_v40, -inf }
0x34b1   :  { %13415 = vmax.xlane.f32.xlu1 %v13414_v16 }
0x353d   :  { %v13419_v47 = vpop.xlane.xlu0 %13418 }
0x353e   :  { %v13421_v24 = vsub.f32 %v13180_v8, %v13419_v47  ;;  %v13427_v48 = vsub.f32 %v13255_v35, %v13419_v47  ;;  %v13416_v28 = vpop.xlane.xlu1 %13415  ;;  %v13433_v33 = vsub.f32 %v13330_v15, %v13419_v47  ;;  %v13439_v58 = vsub.f32 %v13405_v55, %v13419_v47 }
0x353f   :  { %v13420_v61 = vsub.f32 %v13175_v49, %v13416_v28  ;;  %v13426_v6 = vsub.f32 %v13250_v57, %v13416_v28  ;;  %v13432_v18 = vsub.f32 %v13325_v21, %v13416_v28  ;;  %v13438_v51 = vsub.f32 %v13400_v44, %v13416_v28 }
0x3540   :  { %v13424_v38 = vmul.f32 1.442695, %v13421_v24  ;;  %v13430_v17 = vmul.f32 1.442695, %v13427_v48  ;;  %v13436_v53 = vmul.f32 1.442695, %v13433_v33 }
0x3541   :  { %v13422_v14 = vmul.f32 1.442695, %v13420_v61  ;;  %v13428_v3 = vmul.f32 1.442695, %v13426_v6  ;;  %v13434_v22 = vmul.f32 1.442695, %v13432_v18 }
0x3542   :  { %19490 = vpow2.f32 %v13424_v38  ;;  %v13440_v26 = vmul.f32 1.442695, %v13438_v51  ;;  %v13442_v42 = vmul.f32 1.442695, %v13439_v58 }
0x3543   :  { %19492 = vpow2.f32 %v13430_v17 }
0x3544   :  { %19494 = vpow2.f32 %v13422_v14 }
0x3545   :  { %19496 = vpow2.f32 %v13428_v3 }
0x3546   :  { %19498 = vpow2.f32 %v13434_v22 }
0x3547   :  { %19500 = vpow2.f32 %v13436_v53 }
0x3548   :  { %19502 = vpow2.f32 %v13440_v26 }
0x3549   :  { %19504 = vpow2.f32 %v13442_v42 }
0x354c   :  { %v19491_v5 = vpop.eup %19490 }
0x354d   :  { %v19493_v59 = vpop.eup %19492  ;;  %v13447_v27 = vsel %vm601_vm0, %v19491_v5, 0.0 }
0x354e   :  { %13448 = vadd.xlane.f32.xlu0 %v13447_v27  ;;  %v13453_v9 = vsel %vm601_vm0, %v19493_v59, 0.0  ;;  %v19495_v43 = vpop.eup %19494 }
0x354f   :  { %13454 = vadd.xlane.f32.xlu1 %v13453_v9  ;;  %v19497_v35 = vpop.eup %19496  ;;  %v13444_v57 = vsel %vm601_vm0, %v19495_v43, 0.0 }
0x3550   :  { %v19499_v8 = vpop.eup %19498  ;;  %17524 = vmatprep.mubr.msk.f32.mxu1 %vm601_vm0, %v19497_v35  ;;  %v13450_v49 = vsel %vm601_vm0, %v19497_v35, 0.0 }
0x3551   :  { %v19501_v10 = vpop.eup %19500  ;;  %17525 = vmatmul.mubr.msk.f32.vlgmr.msra.gmra.mrb[78].mxu1 %vm601_vm0, %v19493_v59  ;;  %v13458_v46 = vsel %vm601_vm0, %v19499_v8, 0.0 }
0x3552   :  { %13445 = vadd.xlane.f32.xlu0 %v13444_v57  ;;  %18619 = vmatpush3.bf16.msra.mxu1 %v22517_v54  ;;  %v19503_v15 = vpop.eup %19502  ;;  %v13461_v21 = vsel %vm601_vm0, %v19501_v10, 0.0 }
0x3553   :  { %13451 = vadd.xlane.f32.xlu1 %v13450_v49  ;;  %17535 = vmatprep.mubr.msk.f32.mxu1 %vm601_vm0, %v19495_v43  ;;  %v19505_v19 = vpop.eup %19504  ;;  %v13466_v55 = vsel %vm601_vm0, %v19503_v15, 0.0 }
0x3554   :  { %18621 = vmatprep.subr.bf16.mxu1 %v22548_v25  ;;  %v13469_v12 = vsel %vm601_vm0, %v19505_v19, 0.0 }
0x3556   :  { %13459 = vadd.xlane.f32.xlu0 %v13458_v46  ;;  %18623 = vmatpush3.bf16.msra.mxu1 %v22548_v25 }
0x3557   :  { %13462 = vadd.xlane.f32.xlu1 %v13461_v21  ;;  %18625 = vmatprep.subr.bf16.mxu1 %v22556_v39 }
0x3559   :  { %17536 = vmatmul.mubr.msk.f32.vlgmr.msra.gmra.mrb[78].mxu1 %vm601_vm0, %v19491_v5 }
0x355a   :  { %13467 = vadd.xlane.f32.xlu0 %v13466_v55  ;;  %18627 = vmatpush3.bf16.msra.mxu1 %v22556_v39 }
0x355b   :  { %13470 = vadd.xlane.f32.xlu1 %v13469_v12  ;;  %17546 = vmatprep.mubr.msk.f32.mxu1 %vm601_vm0, %v19499_v8 }
0x355c   :  { %18629 = vmatprep.subr.bf16.mxu1 %v22572_v50 }
0x355e   :  { %18631 = vmatpush3.bf16.msra.mxu1 %v22572_v50 }
0x355f   :  { %18633 = vmatprep.subr.bf16.mxu1 %v22580_v63 }
0x3561   :  { %17547 = vmatmul.mubr.msk.f32.vlgmr.msra.gmra.mrb[78].mxu1 %vm601_vm0, %v19501_v10 }
0x3562   :  { %18635 = vmatpush3.bf16.msra.mxu1 %v22580_v63  ;;  %17557 = vmatprep.mubr.msk.f32.mxu1 %vm601_vm0, %v19503_v15 }
0x3563   :  { %18637 = vmatprep.subr.bf16.mxu1 %v22598_v32 }
0x3566   :  { %18639 = vmatpush3.bf16.msra.mxu1 %v22598_v32 }
0x3567   :  { %18654 = vmatprep.subr.msk.bf16.mxu1 %vm20864_vm2, %v22394_v30 }
0x3569   :  { %17558 = vmatmul.mubr.msk.f32.vlgmr.msra.gmra.mrb[78].mxu1 %vm601_vm0, %v19505_v19 }
0x356c   :  { %13891 = vrot.lane.b32.xlu1 %v22384_v13, %s20424_s30 }
0x356f   :  { %18657 = vmatpush3.bf16.xpose.msk.msra.mxu1 %vm20864_vm2, %v22394_v30 }
0x3570   :  { %13889 = vrot.lane.b32.xlu0 %v22346_v4, %s20424_s30  ;;  %18660 = vmatprep.subr.msk.bf16.mxu1 %vm20864_vm2, %v22402_v45 }
0x3577   :  { %18663 = vmatpush3.bf16.xpose.msk.msra.mxu1 %vm20864_vm2, %v22402_v45 }
0x3578   :  { %18678 = vmatprep.subr.msk.bf16.mxu1 %vm20864_vm2, %v22420_v23 }
0x35db   :  { %v13449_v13 = vpop.xlane.xlu0 %13448 }
0x35dc   :  { %v13455_v37 = vpop.xlane.xlu1 %13454 }
0x35dd   :  { %v13457_v44 = vadd.f32 %v13455_v37, %v13449_v13 }
0x35df   :  { %v13446_v4 = vpop.xlane.xlu0 %13445 }
0x35e0   :  { %v13452_v0 = vpop.xlane.xlu1 %13451 }
0x35e1   :  { %v13456_v36 = vadd.f32 %v13452_v0, %v13446_v4 }
0x35e3   :  { %v13460_v40 = vpop.xlane.xlu0 %13459 }
0x35e4   :  { %v13464_v30 = vadd.f32 %v13460_v40, %v13456_v36  ;;  %v13463_v1 = vpop.xlane.xlu1 %13462 }
0x35e5   :  { %v13465_v16 = vadd.f32 %v13463_v1, %v13457_v44 }
0x35e7   :  { %v13468_v47 = vpop.xlane.xlu0 %13467 }
0x35e8   :  { %v13472_v24 = vadd.f32 %v13468_v47, %v13464_v30  ;;  %v13471_v48 = vpop.xlane.xlu1 %13470 }
0x35e9   :  { %v13473_v28 = vadd.f32 %v13471_v48, %v13465_v16 }
0x35eb   :  { %v13890_v61 = vpop.permute.xlu0 %13889  ;;  %19506 = vrcp.f32 %v13473_v28 }
0x35ec   :  { %v13892_v45 = vpop.permute.xlu1 %13891  ;;  %17584 = vmatprep.mubr.msk.f32.mxu1 %vm845_vm1, %v13890_v61  ;;  %19508 = vrcp.f32 %v13472_v24 }
0x35ed   :  { %17585 = vmatmul.mubr.msk.f32.vlgmr.msra.gmra.mrb[80].mxu1 %vm845_vm1, %v13892_v45 }
0x35ee   :  { %18681 = vmatpush3.bf16.xpose.msk.msra.mxu1 %vm20864_vm2, %v22420_v23  ;;  %17606 = vmatprep.mubr.msk.f32.mxu1 %vm845_vm1, %v13890_v61 }
0x35ef   :  { %18684 = vmatprep.subr.msk.bf16.mxu1 %vm20864_vm2, %v22428_v34 }
0x35f5   :  { %v19507_v6 = vpop.eup %19506 }
0x35f6   :  { %18687 = vmatpush3.bf16.xpose.msk.msra.mxu1 %vm20864_vm2, %v22428_v34  ;;  %v19509_v17 = vpop.eup %19508 }
0x35fd   :  { %17607 = vmatmul.mubr.msk.f32.vlgmr.msra.gmra.mrb[82].mxu1 %vm845_vm1, %v13892_v45 }
0x363c   :  { %v17559_v38 = vpop.f32.mrb[78].mxu1 }
0x363d   :  { %v13805_v18 = vmul.f32 %v19507_v6, %v17559_v38  ;;  %v13793_v33 = vpop.f32.mrb[79].mxu1 }
0x363e   :  { %v13804_v23 = vmul.f32 %v19509_v17, %v13793_v33 }
0x3640   :  { %17562 = vmatprep.mubr.msk.f32.mxu0 %vm845_vm1, %v13804_v23 }
0x3641   :  { %17563 = vmatmul.mubr.msk.f32.vlgmr.msra.gmra.mrb[90].mxu0 %vm845_vm1, %v13805_v18 }
0x3642   :  { %18645 = vmatpush3.bf16.xpose.msk.msra.mxu0 %vm20864_vm2, %v22354_v7  ;;  %17573 = vmatprep.mubr.msk.f32.mxu0 %vm845_vm1, %v13890_v61 }
0x3643   :  { %18648 = vmatprep.subr.msk.bf16.mxu0 %vm20864_vm2, %v22366_v20 }
0x364a   :  { %18651 = vmatpush3.bf16.xpose.msk.msra.mxu0 %vm20864_vm2, %v22366_v20 }
0x364b   :  { %18666 = vmatprep.subr.msk.bf16.mxu0 %vm20864_vm2, %v22407_v11 }
0x3651   :  { %17574 = vmatmul.mubr.msk.f32.vlgmr.msra.gmra.mrb[98].mxu0 %vm845_vm1, %v13892_v45 }
0x3652   :  { %18669 = vmatpush3.bf16.xpose.msk.msra.mxu0 %vm20864_vm2, %v22407_v11  ;;  %17595 = vmatprep.mubr.msk.f32.mxu0 %vm845_vm1, %v13890_v61 }
0x3653   :  { %18672 = vmatprep.subr.msk.bf16.mxu0 %vm20864_vm2, %v22409_v29 }
0x365a   :  { %18675 = vmatpush3.bf16.xpose.msk.msra.mxu0 %vm20864_vm2, %v22409_v29 }
0x365b   :  { %18689 = vmatprep.subr.bf16.mxu0 %v22432_v2 }
0x3661   :  { %17596 = vmatmul.mubr.msk.f32.vlgmr.msra.gmra.mrb[100].mxu0 %vm845_vm1, %v13892_v45 }
0x3662   :  { %18691 = vmatpush3.bf16.msra.mxu0 %v22432_v2 }
0x3663   :  { %18693 = vmatprep.subr.bf16.mxu0 %v22446_v60 }
0x3666   :  { %18695 = vmatpush3.bf16.msra.mxu0 %v22446_v60 }
0x3667   :  { %18697 = vmatprep.subr.bf16.mxu0 %v22517_v54 }
0x36c0   :  { %v17586_v7 = vpop.f32.mrb[80].mxu1 }
0x36c1   :  { %v14038_v20 = vpop.f32.mrb[81].mxu1  ;;  %v14044_v22 = vadd.f32 %v22474_v31, %v17586_v7 }
0x36c2   :  { %v14039_v2 = vadd.f32 %v22478_v62, %v14038_v20 }
0x36d0   :  { %v17608_v11 = vpop.f32.mrb[82].mxu1 }
0x36d1   :  { %v14188_v34 = vpop.f32.mrb[83].mxu1  ;;  %v14194_v5 = vadd.f32 %v22474_v31, %v17608_v11 }
0x36d2   :  { %v14189_v27 = vadd.f32 %v22478_v62, %v14188_v34 }
0x3724   :  { %v17575_v14 = vpop.f32.mrb[98].mxu0 }
0x3725   :  { %v13963_v3 = vpop.f32.mrb[99].mxu0  ;;  %v13969_v52 = vadd.f32 %v22474_v31, %v17575_v14 }
0x3726   :  { %v13964_v29 = vadd.f32 %v22478_v62, %v13963_v3 }
0x3727   :  { %v14198_v53 = vmax.f32 %v13969_v52, %v14044_v22 }
0x3728   :  { %v14197_v26 = vmax.f32 %v13964_v29, %v14039_v2 }
0x3734   :  { %v17597_v51 = vpop.f32.mrb[100].mxu0 }
0x3735   :  { %v14119_v60 = vadd.f32 %v22474_v31, %v17597_v51  ;;  %v14113_v58 = vpop.f32.mrb[101].mxu0 }
0x3736   :  { %v14114_v42 = vadd.f32 %v22478_v62, %v14113_v58 }
0x3737   :  { %v14200_v59 = vmax.f32 %v14198_v53, %v14119_v60 }
0x3738   :  { %v14199_v9 = vmax.f32 %v14197_v26, %v14114_v42 }
0x3739   :  { %v14202_v43 = vmax.f32 %v14200_v59, %v14194_v5  ;;  %v15553_v59 = vld [vmem:[#allocation41] ss:$0 sm:$0xff] }
0x373a   :  { %v14201_v35 = vmax.f32 %v14199_v9, %v14189_v27 }
0x373b   :  { %v14206_v57 = vsel %vm601_vm0, %v14202_v43, -inf }
0x373c   :  { %14207 = vmax.xlane.f32.xlu0 %v14206_v57  ;;  %v14203_v8 = vsel %vm601_vm0, %v14201_v35, -inf }
0x373d   :  { %14204 = vmax.xlane.f32.xlu1 %v14203_v8 }
0x37c9   :  { %v14208_v49 = vpop.xlane.xlu0 %14207 }
0x37ca   :  { %v14210_v10 = vsub.f32 %v13969_v52, %v14208_v49  ;;  %v14216_v46 = vsub.f32 %v14044_v22, %v14208_v49  ;;  %v14205_v15 = vpop.xlane.xlu1 %14204  ;;  %v14222_v13 = vsub.f32 %v14119_v60, %v14208_v49  ;;  %v14228_v36 = vsub.f32 %v14194_v5, %v14208_v49 }
0x37cb   :  { %v14209_v21 = vsub.f32 %v13964_v29, %v14205_v15  ;;  %v14215_v19 = vsub.f32 %v14039_v2, %v14205_v15  ;;  %v14221_v12 = vsub.f32 %v14114_v42, %v14205_v15  ;;  %v14227_v4 = vsub.f32 %v14189_v27, %v14205_v15 }
0x37cc   :  { %v14213_v55 = vmul.f32 1.442695, %v14210_v10  ;;  %v14219_v31 = vmul.f32 1.442695, %v14216_v46  ;;  %v14225_v0 = vmul.f32 1.442695, %v14222_v13 }
0x37cd   :  { %v14211_v62 = vmul.f32 1.442695, %v14209_v21  ;;  %v14217_v37 = vmul.f32 1.442695, %v14215_v19  ;;  %v14223_v44 = vmul.f32 1.442695, %v14221_v12 }
0x37ce   :  { %19510 = vpow2.f32 %v14213_v55  ;;  %v14229_v40 = vmul.f32 1.442695, %v14227_v4  ;;  %v14231_v30 = vmul.f32 1.442695, %v14228_v36  ;;  %v7851_v4 = vld [vmem:[#allocation46 + $0x10] sm:$0xff] }
0x37cf   :  { %19512 = vpow2.f32 %v14219_v31 }
0x37d0   :  { %19514 = vpow2.f32 %v14211_v62  ;;  %v7849_v62 = vld [vmem:[#allocation46] sm:$0xff] }
0x37d1   :  { %19516 = vpow2.f32 %v14217_v37  ;;  %v7850_v37 = vld [vmem:[#allocation46 + $0x8] sm:$0xff] }
0x37d2   :  { %19518 = vpow2.f32 %v14223_v44  ;;  %v18720_v44 = vpack.c.bf16 %v7850_v37, %v7849_v62 }
0x37d3   :  { %19520 = vpow2.f32 %v14225_v0  ;;  %v7852_v0 = vld [vmem:[#allocation46 + $0x18] sm:$0xff] }
0x37d4   :  { %19522 = vpow2.f32 %v14229_v40  ;;  %v18724_v36 = vpack.c.bf16 %v7852_v0, %v7851_v4  ;;  %18721 = vmatprep.subr.bf16.mxu1 %v18720_v44  ;;  %v7854_v40 = vld [vmem:[%s23034_s13] sm:$0xff] }
0x37d5   :  { %19524 = vpow2.f32 %v14231_v30  ;;  %18723 = vmatpush3.bf16.msra.mxu1 %v18720_v44  ;;  %v7855_v30 = vld [vmem:[%s23034_s13 + $0x8] sm:$0xff]  ;;  %v15562_v4 = vld [vmem:[#allocation50] ss:$0 sm:$0xff] }
0x37d6   :  { %18725 = vmatprep.subr.bf16.mxu1 %v18724_v36 }
0x37d8   :  { %v19511_v1 = vpop.eup %19510 }
0x37d9   :  { %v19513_v16 = vpop.eup %19512  ;;  %v14236_v47 = vsel %vm601_vm0, %v19511_v1, 0.0  ;;  %18727 = vmatpush3.bf16.msra.mxu1 %v18724_v36 }
0x37da   :  { %14237 = vadd.xlane.f32.xlu0 %v14236_v47  ;;  %v14242_v24 = vsel %vm601_vm0, %v19513_v16, 0.0  ;;  %v19515_v48 = vpop.eup %19514 }
0x37db   :  { %14243 = vadd.xlane.f32.xlu1 %v14242_v24  ;;  %v19517_v28 = vpop.eup %19516  ;;  %v14233_v61 = vsel %vm601_vm0, %v19515_v48, 0.0 }
0x37dc   :  { %v19519_v45 = vpop.eup %19518  ;;  %17617 = vmatprep.mubr.msk.f32.mxu0 %vm601_vm0, %v19517_v28  ;;  %v14239_v6 = vsel %vm601_vm0, %v19517_v28, 0.0 }
0x37dd   :  { %v19521_v38 = vpop.eup %19520  ;;  %17618 = vmatmul.mubr.msk.f32.vlgmr.msra.gmra.mrb[102].mxu0 %vm601_vm0, %v19513_v16  ;;  %v14247_v17 = vsel %vm601_vm0, %v19519_v45, 0.0 }
0x37de   :  { %14234 = vadd.xlane.f32.xlu0 %v14233_v61  ;;  %18699 = vmatpush3.bf16.msra.mxu0 %v22517_v54  ;;  %v19523_v18 = vpop.eup %19522  ;;  %v14250_v33 = vsel %vm601_vm0, %v19521_v38, 0.0 }
0x37df   :  { %14240 = vadd.xlane.f32.xlu1 %v14239_v6  ;;  %17628 = vmatprep.mubr.msk.f32.mxu0 %vm601_vm0, %v19515_v48  ;;  %v19525_v23 = vpop.eup %19524  ;;  %v14255_v7 = vsel %vm601_vm0, %v19523_v18, 0.0  ;;  %v15554_v6 = vld [vmem:[#allocation43] ss:$0 sm:$0xff] }
0x37e0   :  { %18701 = vmatprep.subr.bf16.mxu0 %v22548_v25  ;;  %v14258_v54 = vsel %vm601_vm0, %v19525_v23, 0.0 }
0x37e2   :  { %14248 = vadd.xlane.f32.xlu0 %v14247_v17  ;;  %18703 = vmatpush3.bf16.msra.mxu0 %v22548_v25  ;;  %v7845_v25 = vld [vmem:[#allocation40 + $0x18] sm:$0xff] }
0x37e3   :  { %14251 = vadd.xlane.f32.xlu1 %v14250_v33  ;;  %18705 = vmatprep.subr.bf16.mxu0 %v22556_v39  ;;  %v15555_v33 = vld [vmem:[#allocation44] ss:$0 sm:$0xff] }
0x37e5   :  { %17629 = vmatmul.mubr.msk.f32.vlgmr.msra.gmra.mrb[102].mxu0 %vm601_vm0, %v19511_v1  ;;  %v18728_v1 = vpack.c.bf16 %v7855_v30, %v7854_v40  ;;  %v15563_v30 = vld [vmem:[#allocation52] ss:$0 sm:$0xff] }
0x37e6   :  { %14256 = vadd.xlane.f32.xlu0 %v14255_v7  ;;  %18707 = vmatpush3.bf16.msra.mxu0 %v22556_v39 }
0x37e7   :  { %14259 = vadd.xlane.f32.xlu1 %v14258_v54  ;;  %17639 = vmatprep.mubr.msk.f32.mxu0 %vm601_vm0, %v19519_v45  ;;  %v7856_v54 = vld [vmem:[%s23034_s13 + $0x10] sm:$0xff] }
0x37e8   :  { %18709 = vmatprep.subr.bf16.mxu0 %v22572_v50  ;;  %18729 = vmatprep.subr.bf16.mxu1 %v18728_v1 }
0x37ea   :  { %18711 = vmatpush3.bf16.msra.mxu0 %v22572_v50 }
0x37eb   :  { %18713 = vmatprep.subr.bf16.mxu0 %v22580_v63 }
0x37ed   :  { %17640 = vmatmul.mubr.msk.f32.vlgmr.msra.gmra.mrb[102].mxu0 %vm601_vm0, %v19521_v38 }
0x37ee   :  { %18715 = vmatpush3.bf16.msra.mxu0 %v22580_v63  ;;  %17650 = vmatprep.mubr.msk.f32.mxu0 %vm601_vm0, %v19523_v18 }
0x37ef   :  { %18717 = vmatprep.subr.bf16.mxu0 %v22598_v32 }
0x37f2   :  { %18719 = vmatpush3.bf16.msra.mxu0 %v22598_v32 }
0x37f3   :  { %17653 = vmatprep.subr.mxu0 %v7845_v25 }
0x37f5   :  { %17651 = vmatmul.mubr.msk.f32.vlgmr.msra.gmra.mrb[102].mxu0 %vm601_vm0, %v19525_v23 }
0x37f6   :  { %17654 = vmatpush3.msra.mxu0 %v7845_v25  ;;  %v7857_v25 = vld [vmem:[%s23034_s13 + $0x18] sm:$0xff] }
0x3867   :  { %v14238_v39 = vpop.xlane.xlu0 %14237 }
0x3868   :  { %v14244_v20 = vpop.xlane.xlu1 %14243 }
0x3869   :  { %v14246_v52 = vadd.f32 %v14244_v20, %v14238_v39 }
0x386b   :  { %v14235_v50 = vpop.xlane.xlu0 %14234 }
0x386c   :  { %v14241_v11 = vpop.xlane.xlu1 %14240 }
0x386d   :  { %v14245_v3 = vadd.f32 %v14241_v11, %v14235_v50  ;;  %v18732_v50 = vpack.c.bf16 %v7857_v25, %v7856_v54  ;;  %v7858_v11 = vld [vmem:[%s23034_s13 + $0x20] sm:$0xff] }
0x386f   :  { %v14249_v34 = vpop.xlane.xlu0 %14248 }
0x3870   :  { %v14252_v14 = vpop.xlane.xlu1 %14251  ;;  %v14253_v29 = vadd.f32 %v14249_v34, %v14245_v3  ;;  %v7859_v34 = vld [vmem:[%s23034_s13 + $0x28] sm:$0xff]  ;;  %v7860_v3 = vld [vmem:[%s23034_s13 + $0x30] sm:$0xff] }
0x3871   :  { %v14254_v2 = vadd.f32 %v14252_v14, %v14246_v52  ;;  %v18736_v14 = vpack.c.bf16 %v7859_v34, %v7858_v11  ;;  %v7861_v52 = vld [vmem:[%s23034_s13 + $0x38] sm:$0xff] }
0x3873   :  { %v14257_v63 = vpop.xlane.xlu0 %14256 }
0x3874   :  { %v14260_v22 = vpop.xlane.xlu1 %14259  ;;  %v14261_v51 = vadd.f32 %v14257_v63, %v14253_v29  ;;  %v18740_v63 = vpack.c.bf16 %v7861_v52, %v7860_v3  ;;  %v15556_v29 = vld [vmem:[#allocation47] ss:$0 sm:$0xff] }
0x3875   :  { %v14262_v53 = vadd.f32 %v14260_v22, %v14254_v2 }
0x3876   :  { %19526 = vrcp.f32 %v14261_v51 }
0x3877   :  { %19528 = vrcp.f32 %v14262_v53 }
0x3880   :  { %v19527_v60 = vpop.eup %19526 }
0x3881   :  { %v19529_v26 = vpop.eup %19528 }
0x38c8   :  { %v17652_v32 = vpop.f32.mrb[102].mxu0 }
0x38c9   :  { %v14582_v58 = vpop.f32.mrb[103].mxu0  ;;  %v14594_v5 = vmul.f32 %v19529_v26, %v17652_v32 }
0x38ca   :  { %v14593_v42 = vmul.f32 %v19527_v60, %v14582_v58  ;;  %v15559_v58 = vld [vmem:[#allocation49] ss:$0 sm:$0xff] }
0x38cc   :  { %17655 = vmatprep.mubr.msk.f32.mxu0 %vm845_vm1, %v14593_v42 }
0x38cd   :  { %17656 = vmatmul.mubr.msk.f32.vlgmr.msra.gmra.mrb[90].mxu0 %vm845_vm1, %v14594_v5 }
0x39a0   :  { %v17657_v27 = vpop.f32.mrb[90].mxu0 }
0x39a1   :  { %v14685_v9 = vadd.f32 %v17657_v27, %v15553_v59  ;;  %v14667_v43 = vpop.f32.mrb[91].mxu0 }
0x39a2   :  { %v14684_v35 = vadd.f32 %v15553_v59, %v14667_v43 }
0x39a3   :  { %v14687_v57 = vadd.f32 %v14685_v9, %v22332_v41 }
0x39a4   :  { %v14686_v8 = vadd.f32 %v14684_v35, %v22330_v56 }
0x39a5   :  { %v14691_v49 = vsel %vm601_vm0, %v14687_v57, 0.0 }
0x39a6   :  { %14692 = vadd.xlane.f32.xlu1 %v14691_v49  ;;  %v14688_v10 = vsel %vm601_vm0, %v14686_v8, 0.0 }
0x39a7   :  { %14689 = vadd.xlane.f32.xlu0 %v14688_v10 }
0x3a33   :  { %v14693_v46 = vpop.xlane.xlu1 %14692 }
0x3a34   :  { %v14695_v15 = vmul.f32 0.03125, %v14693_v46  ;;  %v14690_v21 = vpop.xlane.xlu0 %14689 }
0x3a35   :  { %v14694_v19 = vmul.f32 0.03125, %v14690_v21 }
0x3a36   :  { %v14697_v55 = vsub.f32 %v14687_v57, %v14695_v15 }
0x3a37   :  { %v14696_v31 = vsub.f32 %v14686_v8, %v14694_v19 }
0x3a38   :  { %v14699_v12 = vmul.f32 %v14697_v55, %v14697_v55 }
0x3a39   :  { %v14698_v13 = vmul.f32 %v14696_v31, %v14696_v31 }
0x3a3a   :  { %v14703_v41 = vsel %vm601_vm0, %v14699_v12, 0.0 }
0x3a3b   :  { %14704 = vadd.xlane.f32.xlu1 %v14703_v41  ;;  %v14700_v56 = vsel %vm601_vm0, %v14698_v13, 0.0 }
0x3a3c   :  { %14701 = vadd.xlane.f32.xlu0 %v14700_v56 }
0x3ac8   :  { %v14705_v16 = vpop.xlane.xlu1 %14704 }
0x3ac9   :  { %v14707_v47 = vmul.f32 0.03125, %v14705_v16  ;;  %v14702_v24 = vpop.xlane.xlu0 %14701 }
0x3aca   :  { %v14706_v48 = vmul.f32 0.03125, %v14702_v24 }
0x3acb   :  { %v14709_v28 = vadd.f32 1e-05, %v14707_v47 }
0x3acc   :  { %v14708_v61 = vadd.f32 1e-05, %v14706_v48 }
0x3acd   :  { %19530 = vrsqrt.f32 %v14709_v28 }
0x3ace   :  { %19532 = vrsqrt.f32 %v14708_v61 }
0x3ad7   :  { %v19531_v45 = vpop.eup %19530 }
0x3ad8   :  { %v19533_v38 = vpop.eup %19532  ;;  %v14713_v17 = vmul.f32 %v19531_v45, %v14697_v55 }
0x3ad9   :  { %v14712_v18 = vmul.f32 %v19533_v38, %v14696_v31 }
0x3ada   :  { %v14721_v23 = vmul.f32 %v15554_v6, %v14713_v17 }
0x3adb   :  { %v14720_v7 = vmul.f32 %v15554_v6, %v14712_v18 }
0x3adc   :  { %v14729_v20 = vadd.f32 %v15555_v33, %v14721_v23 }
0x3add   :  { %v14728_v39 = vadd.f32 %v15555_v33, %v14720_v7 }
0x3adf   :  { %17666 = vmatprep.mubr.msk.f32.mxu1 %vm601_vm0, %v14728_v39 }
0x3ae0   :  { %17667 = vmatmul.mubr.msk.f32.vlgmr.msra.gmra.mrb[84].mxu1 %vm601_vm0, %v14729_v20 }
0x3ae1   :  { %18731 = vmatpush3.bf16.msra.mxu1 %v18728_v1 }
0x3ae2   :  { %18733 = vmatprep.subr.bf16.mxu1 %v18732_v50 }
0x3ae5   :  { %18735 = vmatpush3.bf16.msra.mxu1 %v18732_v50 }
0x3ae6   :  { %18737 = vmatprep.subr.bf16.mxu1 %v18736_v14 }
0x3ae9   :  { %18739 = vmatpush3.bf16.msra.mxu1 %v18736_v14 }
0x3aea   :  { %18741 = vmatprep.subr.bf16.mxu1 %v18740_v63 }
0x3aed   :  { %18743 = vmatpush3.bf16.msra.mxu1 %v18740_v63 }
0x3bb3   :  { %v17668_v22 = vpop.f32.mrb[84].mxu1 }
0x3bb4   :  { %v14814_v2 = vadd.f32 %v17668_v22, %v15556_v29  ;;  %v14808_v51 = vpop.f32.mrb[85].mxu1 }
0x3bb5   :  { %v14809_v53 = vadd.f32 %v15556_v29, %v14808_v51 }
0x3bb6   :  { %v14818_v60 = vmax.f32 %v14814_v2, 0.0 }
0x3bb7   :  { %v14817_v32 = vmax.f32 %v14809_v53, 0.0 }
0x3bb9   :  { %17685 = vmatprep.mubr.msk.f32.mxu1 %vm7694_vm4, %v14817_v32 }
0x3bba   :  { %17686 = vmatmul.mubr.msk.f32.vlgmr.msra.gmra.mrb[86].mxu1 %vm7694_vm4, %v14818_v60 }
0x3c8d   :  { %v17687_v26 = vpop.f32.mrb[86].mxu1 }
0x3c8e   :  { %v14903_v42 = vadd.f32 %v17687_v26, %v15559_v58  ;;  %v14897_v5 = vpop.f32.mrb[87].mxu1 }
0x3c8f   :  { %v14898_v59 = vadd.f32 %v15559_v58, %v14897_v5 }
0x3c90   :  { %v14907_v27 = vadd.f32 %v14903_v42, %v14729_v20 }
0x3c91   :  { %v14906_v9 = vadd.f32 %v14898_v59, %v14728_v39 }
0x3c92   :  { %v14911_v43 = vsel %vm601_vm0, %v14907_v27, 0.0 }
0x3c93   :  { %14912 = vadd.xlane.f32.xlu1 %v14911_v43  ;;  %v14908_v35 = vsel %vm601_vm0, %v14906_v9, 0.0 }
0x3c94   :  { %14909 = vadd.xlane.f32.xlu0 %v14908_v35 }
0x3d20   :  { %v14913_v57 = vpop.xlane.xlu1 %14912 }
0x3d21   :  { %v14915_v8 = vmul.f32 0.03125, %v14913_v57  ;;  %v14910_v49 = vpop.xlane.xlu0 %14909 }
0x3d22   :  { %v14914_v10 = vmul.f32 0.03125, %v14910_v49 }
0x3d23   :  { %v14917_v46 = vsub.f32 %v14907_v27, %v14915_v8 }
0x3d24   :  { %v14916_v15 = vsub.f32 %v14906_v9, %v14914_v10 }
0x3d25   :  { %v14919_v21 = vmul.f32 %v14917_v46, %v14917_v46 }
0x3d26   :  { %v14918_v19 = vmul.f32 %v14916_v15, %v14916_v15 }
0x3d27   :  { %v14923_v55 = vsel %vm601_vm0, %v14919_v21, 0.0 }
0x3d28   :  { %14924 = vadd.xlane.f32.xlu1 %v14923_v55  ;;  %v14920_v31 = vsel %vm601_vm0, %v14918_v19, 0.0 }
0x3d29   :  { %14921 = vadd.xlane.f32.xlu0 %v14920_v31 }
0x3db5   :  { %v14925_v12 = vpop.xlane.xlu1 %14924 }
0x3db6   :  { %v14927_v13 = vmul.f32 0.03125, %v14925_v12  ;;  %v14922_v41 = vpop.xlane.xlu0 %14921 }
0x3db7   :  { %v14926_v56 = vmul.f32 0.03125, %v14922_v41 }
0x3db8   :  { %v14929_v62 = vadd.f32 1e-05, %v14927_v13 }
0x3db9   :  { %v14928_v37 = vadd.f32 1e-05, %v14926_v56 }
0x3dba   :  { %19534 = vrsqrt.f32 %v14929_v62 }
0x3dbb   :  { %19536 = vrsqrt.f32 %v14928_v37 }
0x3dc4   :  { %v19535_v44 = vpop.eup %19534 }
0x3dc5   :  { %v19537_v0 = vpop.eup %19536  ;;  %v14933_v36 = vmul.f32 %v19535_v44, %v14917_v46 }
0x3dc6   :  { %v14932_v40 = vmul.f32 %v19537_v0, %v14916_v15 }
0x3dc7   :  { %v14941_v1 = vmul.f32 %v15562_v4, %v14933_v36 }
0x3dc8   :  { %v14940_v16 = vmul.f32 %v15562_v4, %v14932_v40 }
0x3dc9   :  { %v14949_v47 = vadd.f32 %v15563_v30, %v14941_v1 }
0x3dca   :  { %v14948_v24 = vadd.f32 %v15563_v30, %v14940_v16 }
0x3dcb   :  { %14951 = vst.msk [vmem:[#allocation53 + $0x8] sm:$0xff] %vm601_vm0, %v14949_v47 }
0x3dcc   :  { %14950 = vst.msk [vmem:[#allocation53] sm:$0xff] %vm601_vm0, %v14948_v24 }
0x3dcd   :  { %20285 = shalt.err (!%p20282_p2)
}
0x3dce   :  { %s20286_s17 = scalar_lea.hbm %s20669_s14, 256 }
0x3dcf   :  { %p20287_p3 = scmp.ne.s32.totalorder %s20669_s14, %s20286_s17  ;;  %p20290_p4 = scmp.lt.u32.totalorder %s20286_s17, %s20669_s14 }
0x3dd1   :  { %p20292_p5 = pnand %p20290_p4, %p20287_p3 }
0x3dd3   :  { %20295 = shalt.err (!%p20292_p5)
}
0x3dd4   :  { %14963 = dma.vmem_to_hbm [thread:$0]  %s14958_s15, 256, %s20669_s14, [#allocation4], %s20386_s0, %s20386_s0, %s20387_s20  }
0x3dd5   :  { %20330 = dma.done.wait [#allocation4], 256  }
0x3dd6   :  { %20331 = vsyncadd [#allocation4], 4294967040 }
0x3dd7   :  { %14967 = vsyncpa [#allocation3], 1 }
0x3dd8   :  { %14968 = vsyncpa [#allocation6], 1 }
0x3dd9   :  { %14969 = vsyncpa [#allocation9], 1 }
0x3dda   :  { %14970 = vsyncpa [#allocation12], 1 }
0x3ddb   :  { %14971 = vsyncpa [#allocation15], 1 }
0x3ddc   :  { %14972 = vsyncpa [#allocation18], 1 }
0x3ddd   :  { %14973 = vsyncpa [#allocation21], 1 }
0x3dde   :  { %14974 = vsyncpa [#allocation24], 1 }
0x3ddf   :  { %14975 = vsyncpa [#allocation27], 1 }
0x3de0   :  { %14976 = vsyncpa [#allocation30], 1 }
0x3de1   :  { %14977 = vsyncpa [#allocation33], 1 }
0x3de2   :  { %14978 = vsyncpa [#allocation36], 1 }
0x3de3   :  { %14979 = vsyncpa [#allocation39], 1 }
0x3de4   :  { %14980 = vsyncpa [#allocation42], 1 }
0x3de5   :  { %14981 = vsyncpa [#allocation45], 1 }
0x3de6   :  { %14982 = vsyncpa [#allocation48], 1 }
0x3de7   :  { %14983 = vsyncpa [#allocation51], 1 }
0x3de8   :  { %14984 = vsyncpa [#allocation4], 1 }

</bundles_post_ra>
